<compile_context>
chip_gen: v6e
topology: v6e:2x2x1
jax: 0.10.0
libtpu: 0.0.40
codegen_flags: <defaults>
</compile_context>

<pallas_src>
import functools
import math

import jax
import jax.numpy as jnp
from jax.experimental import pallas as pl
from jax.experimental.pallas import tpu as pltpu


def _layer_norm(y, gamma, beta, eps=1e-5):
    mu = jnp.mean(y, axis=-1, keepdims=True)
    var = jnp.mean((y - mu) ** 2, axis=-1, keepdims=True)
    return (y - mu) * jax.lax.rsqrt(var + eps) * gamma + beta


def _mha_batched_heads(q, k, v, allowed, *, num_heads, block_size, md):
    """Head-batched block-local attention.  q/k/v: (TS, D) f32 -> (TS, D) f32."""
    TS, D = q.shape
    Dh = D // num_heads
    nb = TS // block_size
    qb = q.astype(md).reshape(nb, block_size, num_heads, Dh)
    kb = k.astype(md).reshape(nb, block_size, num_heads, Dh)
    vb = v.astype(md).reshape(nb, block_size, num_heads, Dh)
    # (nb, H, bs, bs) scores, f32; heads stay contiguous on lanes in qb/kb/vb.
    s = jnp.einsum('nqhd,nkhd->nhqk', qb, kb,
                   preferred_element_type=jnp.float32)
    s = jnp.where(allowed[:, None], s, -1e30)
    m = jnp.max(s, axis=-1, keepdims=True)
    p = jnp.exp(s - m)
    l = jnp.sum(p, axis=-1, keepdims=True)
    p = p * pl.reciprocal(l, approx=True)          # EUP slot, effectively free
    o = jnp.einsum('nhqk,nkhd->nqhd', p.astype(md), vb,
                   preferred_element_type=jnp.float32)  # (nb, bs, H, Dh)
    return o.reshape(TS, D)


def _mha_head_loop(q, k, v, allowed, *, num_heads, block_size, md):
    """Fallback: per-head loop with lane slices (known-good lowering path)."""
    TS, D = q.shape
    Dh = D // num_heads
    nb = TS // block_size
    qb = q.astype(md).reshape(nb, block_size, D)
    kb = k.astype(md).reshape(nb, block_size, D)
    vb = v.astype(md).reshape(nb, block_size, D)
    head_outs = []
    for h in range(num_heads):
        sl = slice(h * Dh, (h + 1) * Dh)
        s = jnp.einsum('nqd,nkd->nqk', qb[:, :, sl], kb[:, :, sl],
                       preferred_element_type=jnp.float32)
        s = jnp.where(allowed, s, -1e30)
        m = jnp.max(s, axis=-1, keepdims=True)
        p = jnp.exp(s - m)
        l = jnp.sum(p, axis=-1, keepdims=True)
        p = p * pl.reciprocal(l, approx=True)
        oh = jnp.einsum('nqk,nkd->nqd', p.astype(md), vb[:, :, sl],
                        preferred_element_type=jnp.float32)
        head_outs.append(oh.reshape(TS, Dh))
    return jnp.concatenate(head_outs, axis=-1)


def decoder_layer_kernel(
    x_ref, kvmask_ref,
    wq_ref, bq_ref, wk_ref, bk_ref, wv_ref, bv_ref, wo_ref, bo_ref,
    g1_ref, be1_ref,
    w1_ref, b1_ref, w2_ref, b2_ref,
    g2_ref, be2_ref,
    out_ref,
    *, num_heads, block_size, matmul_dtype, batched_heads):
    TS, D = x_ref.shape
    Dh = D // num_heads
    nb = TS // block_size
    md = matmul_dtype

    x = x_ref[...].astype(jnp.float32)                       # (TS, D)
    xm = x.astype(md)

    # ---- QKV projections (full-D contractions); 1/sqrt(Dh) folded into q ----
    # Weights arrive already in matmul_dtype (host pre-cast): no per-step casts.
    scale = 1.0 / math.sqrt(Dh)
    q = (jnp.dot(xm, wq_ref[...], preferred_element_type=jnp.float32)
         + bq_ref[...]) * scale
    k = jnp.dot(xm, wk_ref[...], preferred_element_type=jnp.float32) + bk_ref[...]
    v = jnp.dot(xm, wv_ref[...], preferred_element_type=jnp.float32) + bv_ref[...]

    # Block-causal mask, built once per tile at (nb, bs, bs) -- never (S, S).
    qi = jax.lax.broadcasted_iota(jnp.int32, (nb, block_size, block_size), 1)
    ki = jax.lax.broadcasted_iota(jnp.int32, (nb, block_size, block_size), 2)
    allowed = (qi >= ki) & (kvmask_ref[...] > 0.0)            # (nb,1,bs) bcast

    if batched_heads:
        attn = _mha_batched_heads(q, k, v, allowed, num_heads=num_heads,
                                  block_size=block_size, md=md)
    else:
        attn = _mha_head_loop(q, k, v, allowed, num_heads=num_heads,
                              block_size=block_size, md=md)

    # One K=D output projection.
    attn = jnp.dot(attn.astype(md), wo_ref[...],
                   preferred_element_type=jnp.float32) + bo_ref[...]

    # ---- residual + LayerNorm 1 (dropout_p == 0 -> identity) ----
    h1 = _layer_norm(attn + x, g1_ref[...], be1_ref[...])

    # ---- feed-forward: D -> 4D -> D with ReLU (hidden cast to md early) ----
    ff = jnp.dot(h1.astype(md), w1_ref[...],
                 preferred_element_type=jnp.float32) + b1_ref[...]
    ff = jnp.maximum(ff, 0.0).astype(md)        # (TS, 4D) f32 dies here
    ff = jnp.dot(ff, w2_ref[...],
                 preferred_element_type=jnp.float32) + b2_ref[...]

    # ---- residual + LayerNorm 2 ----
    out = _layer_norm(ff + h1, g2_ref[...], be2_ref[...])
    out_ref[...] = out.astype(out_ref.dtype)


def _pick_seq_tile(S, block_size, cap):
    """Largest tile <= cap dividing S, multiple of block_size, preferring
    MXU-friendly multiples of 256/128 (full M passes), else 8 sublanes."""
    if S <= cap:
        return S
    for align in (256, 128, 8):
        start = cap - (cap % align)
        for cand in range(start, 0, -align):
            if cand > 0 and S % cand == 0 and cand % block_size == 0:
                return cand
    return S


def local_attention_decoder_layer(x, mask, params, *, num_heads, block_size,
                                  seq_tile=None, matmul_dtype=jnp.bfloat16,
                                  single_buffer_weights=True,
                                  batched_heads=True):
    B, S, D = x.shape
    (wq, bq, wk, bk, wv, bv, wo, bo, g1, be1, w1, b1, w2, b2, g2, be2) = params
    H4 = w1.shape[1]
    assert D % num_heads == 0
    assert S % block_size == 0

    # Physical VMEM drives the sequence-tile cap and the scoped-VMEM clamp.
    try:
        vmem_phys = int(getattr(pltpu.get_tpu_info(), "vmem_capacity_bytes",
                                64 << 20))
    except Exception:
        vmem_phys = 64 << 20
    ts_cap = 512 if vmem_phys >= (96 << 20) else 256   # 512 on v5e/v6e, 256 on v7x
    TS = _pick_seq_tile(S, block_size, ts_cap) if seq_tile is None else seq_tile
    assert S % TS == 0 and TS % block_size == 0
    nbt = TS // block_size

    # Pre-cast weight *matrices* to matmul_dtype on the host (biases / LN params
    # stay f32: they are added to f32 accumulations and are tiny).
    cast = lambda w: w.astype(matmul_dtype)
    params_cast = (cast(wq), bq, cast(wk), bk, cast(wv), bv, cast(wo), bo,
                   g1, be1, cast(w1), b1, cast(w2), b2, g2, be2)

    # Key-validity mask pre-laid-out as (B, S//bs, 1, bs): exactly the broadcast
    # shape the kernel needs, so no in-kernel lane->sublane reshape.
    mask_blocks = mask.astype(jnp.float32).reshape(
        B, S // block_size, 1, block_size)

    grid = (B, S // TS)
    itemsize_md = jnp.dtype(matmul_dtype).itemsize

    def build(sb_weights, use_batched):
        kernel = functools.partial(
            decoder_layer_kernel, num_heads=num_heads, block_size=block_size,
            matmul_dtype=matmul_dtype, batched_heads=use_batched)

        def invariant(shape):
            zeros = (0,) * len(shape)
            kwargs = {"pipeline_mode": pl.Buffered(1)} if sb_weights else {}
            return pl.BlockSpec(shape, lambda b, t, _z=zeros: _z, **kwargs)

        x_spec = pl.BlockSpec((pl.Squeezed(), TS, D), lambda b, t: (b, t, 0))
        mask_spec = pl.BlockSpec((pl.Squeezed(), nbt, 1, block_size),
                                 lambda b, t: (b, t, 0, 0))
        out_spec = pl.BlockSpec((pl.Squeezed(), TS, D), lambda b, t: (b, t, 0))

        # Scoped-VMEM budget from the actual buffering factors:
        #   weights x1 (Buffered(1)) or x2 (default), activations f32 per tile,
        #   double-buffered x/out streams; clamp to 85% of physical VMEM.
        wf = 1 if sb_weights else 2
        weight_bytes = wf * itemsize_md * (4 * D * D + 2 * D * H4)
        small_bytes = wf * 4 * (9 * D + H4)
        act_bytes = (4 * (10 * TS * D) + (4 + itemsize_md) * TS * H4
                     + 8 * TS * block_size * num_heads)
        stream_bytes = 2 * 2 * TS * D * x.dtype.itemsize
        est = weight_bytes + small_bytes + act_bytes + stream_bytes + (8 << 20)
        vmem_cap = min(int(vmem_phys * 0.85), 100 << 20)
        vmem_limit = int(max(32 << 20, min(est, vmem_cap)))

        return pl.pallas_call(
            kernel,
            out_shape=jax.ShapeDtypeStruct((B, S, D), x.dtype),
            grid_spec=pltpu.PrefetchScalarGridSpec(
                num_scalar_prefetch=0,
                grid=grid,
                in_specs=[
                    x_spec, mask_spec,
                    invariant((D, D)), invariant((1, D)),      # wq, bq
                    invariant((D, D)), invariant((1, D)),      # wk, bk
                    invariant((D, D)), invariant((1, D)),      # wv, bv
                    invariant((D, D)), invariant((1, D)),      # wo, bo
                    invariant((1, D)), invariant((1, D)),      # ln1 gamma, beta
                    invariant((D, H4)), invariant((1, H4)),    # ff w1, b1
                    invariant((H4, D)), invariant((1, D)),     # ff w2, b2
                    invariant((1, D)), invariant((1, D)),      # ln2 gamma, beta
                ],
                out_specs=out_spec,
            ),
            compiler_params=pltpu.CompilerParams(
                dimension_semantics=("parallel", "parallel"),
                vmem_limit_bytes=vmem_limit),
        )

    # Preferred config first; fall back gracefully if the installed jax rejects
    # Buffered(1) or the two-batch-dim head einsum during Mosaic lowering.
    attempts = [(single_buffer_weights, batched_heads)]
    if batched_heads:
        attempts.append((single_buffer_weights, False))
    if single_buffer_weights:
        attempts.append((False, False))
    last_err = None
    for sb, bh in attempts:
        try:
            return build(sb, bh)(x, mask_blocks, *params_cast)
        except Exception as e:          # lowering / VMEM fallback
            last_err = e
    raise last_err


def reference(x, mask, params, *, num_heads, block_size):
    (wq, bq, wk, bk, wv, bv, wo, bo, g1, be1, w1, b1, w2, b2, g2, be2) = params
    B, S, D = x.shape
    Dh = D // num_heads
    q = x @ wq + bq
    k = x @ wk + bk
    v = x @ wv + bv
    qh = q.reshape(B, S, num_heads, Dh).transpose(0, 2, 1, 3)
    kh = k.reshape(B, S, num_heads, Dh).transpose(0, 2, 1, 3)
    vh = v.reshape(B, S, num_heads, Dh).transpose(0, 2, 1, 3)
    s = jnp.einsum('bhqd,bhkd->bhqk', qh, kh) / math.sqrt(Dh)
    row = jnp.arange(S)[:, None]
    col = jnp.arange(S)[None, :]
    allowed = ((row // block_size) == (col // block_size)) & (row >= col)
    allowed = allowed[None, None] & (mask[:, None, None, :] > 0.0)
    s = jnp.where(allowed, s, -1e30)
    p = jax.nn.softmax(s, axis=-1)
    o = jnp.einsum('bhqk,bhkd->bhqd', p, vh).transpose(0, 2, 1, 3).reshape(B, S, D)
    attn = o @ wo + bo
    h1 = _layer_norm(attn + x, g1, be1)
    ff = jnp.maximum(h1 @ w1 + b1, 0.0) @ w2 + b2
    return _layer_norm(ff + h1, g2, be2)


if __name__ == "__main__":
    B, S, D = 2, 64, 128          # batch, seq, model dim (input_dim == output_dim)
    num_heads, block_size = 4, 8  # Dh = 32
    H4 = 4 * D

    key = jax.random.PRNGKey(0)
    ks = jax.random.split(key, 16)

    def w(k, shape, scale=0.05):
        return (scale * jax.random.normal(k, shape)).astype(jnp.float32)

    params = (
        w(ks[0], (D, D)), w(ks[1], (1, D)),        # wq, bq
        w(ks[2], (D, D)), w(ks[3], (1, D)),        # wk, bk
        w(ks[4], (D, D)), w(ks[5], (1, D)),        # wv, bv
        w(ks[6], (D, D)), w(ks[7], (1, D)),        # wo, bo
        jnp.ones((1, D), jnp.float32), jnp.zeros((1, D), jnp.float32),   # ln1
        w(ks[8], (D, H4)), w(ks[9], (1, H4)),      # ff w1, b1
        w(ks[10], (H4, D)), w(ks[11], (1, D)),     # ff w2, b2
        jnp.ones((1, D), jnp.float32), jnp.zeros((1, D), jnp.float32),   # ln2
    )

    x = jax.random.normal(ks[12], (B, S, D), dtype=jnp.float32)
    mask = jnp.ones((B, S), jnp.float32)
    mask = mask.at[1, S - 5:].set(0.0)             # pad out last 5 tokens of batch 1

    ref = reference(x, mask, params, num_heads=num_heads, block_size=block_size)

    # Default perf path: bf16 matmuls (MXU peak), single-buffered bf16 weights,
    # head-batched attention.  Looser tolerance vs the f32 reference.
    out = local_attention_decoder_layer(
        x, mask, params, num_heads=num_heads, block_size=block_size)
    out = jax.block_until_ready(out)
    err_bf16 = float(jnp.max(jnp.abs(out - ref)))
    assert err_bf16 < 6e-2, f"bf16 path max abs diff {err_bf16}"

    # Tight numerics check on the f32 matmul path.
    out32 = local_attention_decoder_layer(
        x, mask, params, num_heads=num_heads, block_size=block_size,
        matmul_dtype=jnp.float32)
    out32 = jax.block_until_ready(out32)
    err_f32 = float(jnp.max(jnp.abs(out32 - ref)))
    assert err_f32 < 5e-3, f"f32 path max abs diff {err_f32}"

    print("KERNEL_OK")
</pallas_src>

<mosaic_0001>
module attributes {stable_mosaic.version = 11 : i64} {
  func.func @decoder_layer_kernel(%arg0: i32, %arg1: i32, %arg2: memref<1x64x128xf32, #tpu.memory_space<vmem>>, %arg3: memref<1x8x1x8xf32, #tpu.memory_space<vmem>>, %arg4: memref<128x128xbf16, #tpu.memory_space<vmem>>, %arg5: memref<1x128xf32, #tpu.memory_space<vmem>>, %arg6: memref<128x128xbf16, #tpu.memory_space<vmem>>, %arg7: memref<1x128xf32, #tpu.memory_space<vmem>>, %arg8: memref<128x128xbf16, #tpu.memory_space<vmem>>, %arg9: memref<1x128xf32, #tpu.memory_space<vmem>>, %arg10: memref<128x128xbf16, #tpu.memory_space<vmem>>, %arg11: memref<1x128xf32, #tpu.memory_space<vmem>>, %arg12: memref<1x128xf32, #tpu.memory_space<vmem>>, %arg13: memref<1x128xf32, #tpu.memory_space<vmem>>, %arg14: memref<128x512xbf16, #tpu.memory_space<vmem>>, %arg15: memref<1x512xf32, #tpu.memory_space<vmem>>, %arg16: memref<512x128xbf16, #tpu.memory_space<vmem>>, %arg17: memref<1x128xf32, #tpu.memory_space<vmem>>, %arg18: memref<1x128xf32, #tpu.memory_space<vmem>>, %arg19: memref<1x128xf32, #tpu.memory_space<vmem>>, %arg20: memref<1x64x128xf32, #tpu.memory_space<vmem>>) attributes {dimension_semantics = [#tpu.dimension_semantics<parallel>, #tpu.dimension_semantics<parallel>], iteration_bounds = array<i64: 2, 1>, scalar_prefetch = 0 : i64, scratch_operands = 0 : i64, tpu.core_type = #tpu.core_type<tc>, window_params = [{transform_indices = @transform_0, window_bounds = array<i64: 1, 64, 128>}, {transform_indices = @transform_1, window_bounds = array<i64: 1, 8, 1, 8>}, {pipeline_mode = #tpu.pipeline_mode<synchronous>, transform_indices = @transform_2, window_bounds = array<i64: 128, 128>}, {pipeline_mode = #tpu.pipeline_mode<synchronous>, transform_indices = @transform_3, window_bounds = array<i64: 1, 128>}, {pipeline_mode = #tpu.pipeline_mode<synchronous>, transform_indices = @transform_4, window_bounds = array<i64: 128, 128>}, {pipeline_mode = #tpu.pipeline_mode<synchronous>, transform_indices = @transform_5, window_bounds = array<i64: 1, 128>}, {pipeline_mode = #tpu.pipeline_mode<synchronous>, transform_indices = @transform_6, window_bounds = array<i64: 128, 128>}, {pipeline_mode = #tpu.pipeline_mode<synchronous>, transform_indices = @transform_7, window_bounds = array<i64: 1, 128>}, {pipeline_mode = #tpu.pipeline_mode<synchronous>, transform_indices = @transform_8, window_bounds = array<i64: 128, 128>}, {pipeline_mode = #tpu.pipeline_mode<synchronous>, transform_indices = @transform_9, window_bounds = array<i64: 1, 128>}, {pipeline_mode = #tpu.pipeline_mode<synchronous>, transform_indices = @transform_10, window_bounds = array<i64: 1, 128>}, {pipeline_mode = #tpu.pipeline_mode<synchronous>, transform_indices = @transform_11, window_bounds = array<i64: 1, 128>}, {pipeline_mode = #tpu.pipeline_mode<synchronous>, transform_indices = @transform_12, window_bounds = array<i64: 128, 512>}, {pipeline_mode = #tpu.pipeline_mode<synchronous>, transform_indices = @transform_13, window_bounds = array<i64: 1, 512>}, {pipeline_mode = #tpu.pipeline_mode<synchronous>, transform_indices = @transform_14, window_bounds = array<i64: 512, 128>}, {pipeline_mode = #tpu.pipeline_mode<synchronous>, transform_indices = @transform_15, window_bounds = array<i64: 1, 128>}, {pipeline_mode = #tpu.pipeline_mode<synchronous>, transform_indices = @transform_16, window_bounds = array<i64: 1, 128>}, {pipeline_mode = #tpu.pipeline_mode<synchronous>, transform_indices = @transform_17, window_bounds = array<i64: 1, 128>}, {transform_indices = @transform_18, window_bounds = array<i64: 1, 64, 128>}]} {
    %c0 = arith.constant 0 : index
    %c0_0 = arith.constant 0 : index
    %c0_1 = arith.constant 0 : index
    %0 = vector.load %arg2[%c0, %c0_0, %c0_1] : memref<1x64x128xf32, #tpu.memory_space<vmem>>, vector<1x64x128xf32>
    %1 = vector.shape_cast %0 : vector<1x64x128xf32> to vector<64x128xf32>
    %2 = arith.truncf %1 : vector<64x128xf32> to vector<64x128xbf16>
    %c0_2 = arith.constant 0 : index
    %c0_3 = arith.constant 0 : index
    %3 = vector.load %arg4[%c0_2, %c0_3] : memref<128x128xbf16, #tpu.memory_space<vmem>>, vector<128x128xbf16>
    %cst = arith.constant dense<0.000000e+00> : vector<64x128xf32>
    %4 = tpu.matmul %2, %3, %cst {dimension_numbers = #tpu.dot_dimension_numbers<[1], [0], [0], [1], [0, 0, 1, 1], [], []>} : vector<64x128xbf16>, vector<128x128xbf16>, vector<64x128xf32> -> vector<64x128xf32>
    %c0_4 = arith.constant 0 : index
    %c0_5 = arith.constant 0 : index
    %5 = vector.load %arg5[%c0_4, %c0_5] : memref<1x128xf32, #tpu.memory_space<vmem>>, vector<1x128xf32>
    %6 = vector.broadcast %5 : vector<1x128xf32> to vector<64x128xf32>
    %7 = arith.addf %4, %6 : vector<64x128xf32>
    %cst_6 = arith.constant 0.176776692 : f32
    %8 = vector.broadcast %cst_6 : f32 to vector<64x128xf32>
    %9 = arith.mulf %7, %8 : vector<64x128xf32>
    %c0_7 = arith.constant 0 : index
    %c0_8 = arith.constant 0 : index
    %10 = vector.load %arg6[%c0_7, %c0_8] : memref<128x128xbf16, #tpu.memory_space<vmem>>, vector<128x128xbf16>
    %cst_9 = arith.constant dense<0.000000e+00> : vector<64x128xf32>
    %11 = tpu.matmul %2, %10, %cst_9 {dimension_numbers = #tpu.dot_dimension_numbers<[1], [0], [0], [1], [0, 0, 1, 1], [], []>} : vector<64x128xbf16>, vector<128x128xbf16>, vector<64x128xf32> -> vector<64x128xf32>
    %c0_10 = arith.constant 0 : index
    %c0_11 = arith.constant 0 : index
    %12 = vector.load %arg7[%c0_10, %c0_11] : memref<1x128xf32, #tpu.memory_space<vmem>>, vector<1x128xf32>
    %13 = vector.broadcast %12 : vector<1x128xf32> to vector<64x128xf32>
    %14 = arith.addf %11, %13 : vector<64x128xf32>
    %c0_12 = arith.constant 0 : index
    %c0_13 = arith.constant 0 : index
    %15 = vector.load %arg8[%c0_12, %c0_13] : memref<128x128xbf16, #tpu.memory_space<vmem>>, vector<128x128xbf16>
    %cst_14 = arith.constant dense<0.000000e+00> : vector<64x128xf32>
    %16 = tpu.matmul %2, %15, %cst_14 {dimension_numbers = #tpu.dot_dimension_numbers<[1], [0], [0], [1], [0, 0, 1, 1], [], []>} : vector<64x128xbf16>, vector<128x128xbf16>, vector<64x128xf32> -> vector<64x128xf32>
    %c0_15 = arith.constant 0 : index
    %c0_16 = arith.constant 0 : index
    %17 = vector.load %arg9[%c0_15, %c0_16] : memref<1x128xf32, #tpu.memory_space<vmem>>, vector<1x128xf32>
    %18 = vector.broadcast %17 : vector<1x128xf32> to vector<64x128xf32>
    %19 = arith.addf %16, %18 : vector<64x128xf32>
    %20 = tpu.iota {dimensions = array<i32: 1>} : vector<8x8x8xi32>
    %21 = tpu.iota {dimensions = array<i32: 2>} : vector<8x8x8xi32>
    %22 = arith.cmpi sge, %20, %21 : vector<8x8x8xi32>
    %c0_17 = arith.constant 0 : index
    %c0_18 = arith.constant 0 : index
    %c0_19 = arith.constant 0 : index
    %c0_20 = arith.constant 0 : index
    %23 = vector.load %arg3[%c0_17, %c0_18, %c0_19, %c0_20] : memref<1x8x1x8xf32, #tpu.memory_space<vmem>>, vector<1x8x1x8xf32>
    %24 = vector.shape_cast %23 : vector<1x8x1x8xf32> to vector<8x1x8xf32>
    %cst_21 = arith.constant 0.000000e+00 : f32
    %25 = vector.broadcast %cst_21 : f32 to vector<8x1x8xf32>
    %26 = arith.cmpf ogt, %24, %25 : vector<8x1x8xf32>
    %27 = vector.broadcast %26 : vector<8x1x8xi1> to vector<8x8x8xi1>
    %28 = arith.andi %22, %27 : vector<8x8x8xi1>
    %29 = arith.truncf %9 : vector<64x128xf32> to vector<64x128xbf16>
    %30 = vector.shape_cast %29 : vector<64x128xbf16> to vector<8x8x128xbf16>
    %31 = arith.truncf %14 : vector<64x128xf32> to vector<64x128xbf16>
    %32 = vector.shape_cast %31 : vector<64x128xbf16> to vector<8x8x128xbf16>
    %33 = arith.truncf %19 : vector<64x128xf32> to vector<64x128xbf16>
    %34 = vector.shape_cast %33 : vector<64x128xbf16> to vector<8x8x128xbf16>
    %35 = vector.extract_strided_slice %30 {offsets = [0, 0, 0], sizes = [8, 8, 32], strides = [1, 1, 1]} : vector<8x8x128xbf16> to vector<8x8x32xbf16>
    %36 = vector.extract_strided_slice %32 {offsets = [0, 0, 0], sizes = [8, 8, 32], strides = [1, 1, 1]} : vector<8x8x128xbf16> to vector<8x8x32xbf16>
    "tpu.trace_start"() <{level = 10 : i32, message = "nqd,nkd->nqk"}> : () -> ()
    %cst_22 = arith.constant dense<0.000000e+00> : vector<8x8x8xf32>
    %37 = tpu.matmul %35, %36, %cst_22 {dimension_numbers = #tpu.dot_dimension_numbers<[2], [2], [1], [1], [0, 0, 0, 1, 1, 1], [0], [0]>} : vector<8x8x32xbf16>, vector<8x8x32xbf16>, vector<8x8x8xf32> -> vector<8x8x8xf32>
    %cst_23 = arith.constant -1.000000e+30 : f32
    "tpu.trace_stop"() : () -> ()
    %38 = vector.broadcast %cst_23 : f32 to vector<8x8x8xf32>
    %39 = arith.select %28, %37, %38 : vector<8x8x8xi1>, vector<8x8x8xf32>
    %cst_24 = arith.constant dense<0xFF800000> : vector<8x8xf32>
    %40 = vector.multi_reduction <maximumf>, %39, %cst_24 [2] : vector<8x8x8xf32> to vector<8x8xf32>
    %41 = vector.shape_cast %40 : vector<8x8xf32> to vector<8x8x1xf32>
    %42 = vector.broadcast %41 : vector<8x8x1xf32> to vector<8x8x8xf32>
    %43 = arith.subf %39, %42 : vector<8x8x8xf32>
    %44 = math.exp %43 : vector<8x8x8xf32>
    %cst_25 = arith.constant dense<0.000000e+00> : vector<8x8xf32>
    %45 = vector.multi_reduction <add>, %44, %cst_25 [2] : vector<8x8x8xf32> to vector<8x8xf32>
    %46 = vector.shape_cast %45 : vector<8x8xf32> to vector<8x8x1xf32>
    %47 = tpu.reciprocal %46 {approx = true} : vector<8x8x1xf32> -> vector<8x8x1xf32>
    %48 = vector.broadcast %47 : vector<8x8x1xf32> to vector<8x8x8xf32>
    %49 = arith.mulf %44, %48 : vector<8x8x8xf32>
    %50 = arith.truncf %49 : vector<8x8x8xf32> to vector<8x8x8xbf16>
    %51 = vector.extract_strided_slice %34 {offsets = [0, 0, 0], sizes = [8, 8, 32], strides = [1, 1, 1]} : vector<8x8x128xbf16> to vector<8x8x32xbf16>
    "tpu.trace_start"() <{level = 10 : i32, message = "nqk,nkd->nqd"}> : () -> ()
    %cst_26 = arith.constant dense<0.000000e+00> : vector<8x8x32xf32>
    %52 = tpu.matmul %50, %51, %cst_26 {dimension_numbers = #tpu.dot_dimension_numbers<[2], [1], [1], [2], [0, 0, 0, 1, 1, 2], [0], [0]>} : vector<8x8x8xbf16>, vector<8x8x32xbf16>, vector<8x8x32xf32> -> vector<8x8x32xf32>
    "tpu.trace_stop"() : () -> ()
    %53 = vector.shape_cast %52 : vector<8x8x32xf32> to vector<64x32xf32>
    %54 = vector.extract_strided_slice %30 {offsets = [0, 0, 32], sizes = [8, 8, 32], strides = [1, 1, 1]} : vector<8x8x128xbf16> to vector<8x8x32xbf16>
    %55 = vector.extract_strided_slice %32 {offsets = [0, 0, 32], sizes = [8, 8, 32], strides = [1, 1, 1]} : vector<8x8x128xbf16> to vector<8x8x32xbf16>
    "tpu.trace_start"() <{level = 10 : i32, message = "nqd,nkd->nqk"}> : () -> ()
    %cst_27 = arith.constant dense<0.000000e+00> : vector<8x8x8xf32>
    %56 = tpu.matmul %54, %55, %cst_27 {dimension_numbers = #tpu.dot_dimension_numbers<[2], [2], [1], [1], [0, 0, 0, 1, 1, 1], [0], [0]>} : vector<8x8x32xbf16>, vector<8x8x32xbf16>, vector<8x8x8xf32> -> vector<8x8x8xf32>
    %cst_28 = arith.constant -1.000000e+30 : f32
    "tpu.trace_stop"() : () -> ()
    %57 = vector.broadcast %cst_28 : f32 to vector<8x8x8xf32>
    %58 = arith.select %28, %56, %57 : vector<8x8x8xi1>, vector<8x8x8xf32>
    %cst_29 = arith.constant dense<0xFF800000> : vector<8x8xf32>
    %59 = vector.multi_reduction <maximumf>, %58, %cst_29 [2] : vector<8x8x8xf32> to vector<8x8xf32>
    %60 = vector.shape_cast %59 : vector<8x8xf32> to vector<8x8x1xf32>
    %61 = vector.broadcast %60 : vector<8x8x1xf32> to vector<8x8x8xf32>
    %62 = arith.subf %58, %61 : vector<8x8x8xf32>
    %63 = math.exp %62 : vector<8x8x8xf32>
    %cst_30 = arith.constant dense<0.000000e+00> : vector<8x8xf32>
    %64 = vector.multi_reduction <add>, %63, %cst_30 [2] : vector<8x8x8xf32> to vector<8x8xf32>
    %65 = vector.shape_cast %64 : vector<8x8xf32> to vector<8x8x1xf32>
    %66 = tpu.reciprocal %65 {approx = true} : vector<8x8x1xf32> -> vector<8x8x1xf32>
    %67 = vector.broadcast %66 : vector<8x8x1xf32> to vector<8x8x8xf32>
    %68 = arith.mulf %63, %67 : vector<8x8x8xf32>
    %69 = arith.truncf %68 : vector<8x8x8xf32> to vector<8x8x8xbf16>
    %70 = vector.extract_strided_slice %34 {offsets = [0, 0, 32], sizes = [8, 8, 32], strides = [1, 1, 1]} : vector<8x8x128xbf16> to vector<8x8x32xbf16>
    "tpu.trace_start"() <{level = 10 : i32, message = "nqk,nkd->nqd"}> : () -> ()
    %cst_31 = arith.constant dense<0.000000e+00> : vector<8x8x32xf32>
    %71 = tpu.matmul %69, %70, %cst_31 {dimension_numbers = #tpu.dot_dimension_numbers<[2], [1], [1], [2], [0, 0, 0, 1, 1, 2], [0], [0]>} : vector<8x8x8xbf16>, vector<8x8x32xbf16>, vector<8x8x32xf32> -> vector<8x8x32xf32>
    "tpu.trace_stop"() : () -> ()
    %72 = vector.shape_cast %71 : vector<8x8x32xf32> to vector<64x32xf32>
    %73 = vector.extract_strided_slice %30 {offsets = [0, 0, 64], sizes = [8, 8, 32], strides = [1, 1, 1]} : vector<8x8x128xbf16> to vector<8x8x32xbf16>
    %74 = vector.extract_strided_slice %32 {offsets = [0, 0, 64], sizes = [8, 8, 32], strides = [1, 1, 1]} : vector<8x8x128xbf16> to vector<8x8x32xbf16>
    "tpu.trace_start"() <{level = 10 : i32, message = "nqd,nkd->nqk"}> : () -> ()
    %cst_32 = arith.constant dense<0.000000e+00> : vector<8x8x8xf32>
    %75 = tpu.matmul %73, %74, %cst_32 {dimension_numbers = #tpu.dot_dimension_numbers<[2], [2], [1], [1], [0, 0, 0, 1, 1, 1], [0], [0]>} : vector<8x8x32xbf16>, vector<8x8x32xbf16>, vector<8x8x8xf32> -> vector<8x8x8xf32>
    %cst_33 = arith.constant -1.000000e+30 : f32
    "tpu.trace_stop"() : () -> ()
    %76 = vector.broadcast %cst_33 : f32 to vector<8x8x8xf32>
    %77 = arith.select %28, %75, %76 : vector<8x8x8xi1>, vector<8x8x8xf32>
    %cst_34 = arith.constant dense<0xFF800000> : vector<8x8xf32>
    %78 = vector.multi_reduction <maximumf>, %77, %cst_34 [2] : vector<8x8x8xf32> to vector<8x8xf32>
    %79 = vector.shape_cast %78 : vector<8x8xf32> to vector<8x8x1xf32>
    %80 = vector.broadcast %79 : vector<8x8x1xf32> to vector<8x8x8xf32>
    %81 = arith.subf %77, %80 : vector<8x8x8xf32>
    %82 = math.exp %81 : vector<8x8x8xf32>
    %cst_35 = arith.constant dense<0.000000e+00> : vector<8x8xf32>
    %83 = vector.multi_reduction <add>, %82, %cst_35 [2] : vector<8x8x8xf32> to vector<8x8xf32>
    %84 = vector.shape_cast %83 : vector<8x8xf32> to vector<8x8x1xf32>
    %85 = tpu.reciprocal %84 {approx = true} : vector<8x8x1xf32> -> vector<8x8x1xf32>
    %86 = vector.broadcast %85 : vector<8x8x1xf32> to vector<8x8x8xf32>
    %87 = arith.mulf %82, %86 : vector<8x8x8xf32>
    %88 = arith.truncf %87 : vector<8x8x8xf32> to vector<8x8x8xbf16>
    %89 = vector.extract_strided_slice %34 {offsets = [0, 0, 64], sizes = [8, 8, 32], strides = [1, 1, 1]} : vector<8x8x128xbf16> to vector<8x8x32xbf16>
    "tpu.trace_start"() <{level = 10 : i32, message = "nqk,nkd->nqd"}> : () -> ()
    %cst_36 = arith.constant dense<0.000000e+00> : vector<8x8x32xf32>
    %90 = tpu.matmul %88, %89, %cst_36 {dimension_numbers = #tpu.dot_dimension_numbers<[2], [1], [1], [2], [0, 0, 0, 1, 1, 2], [0], [0]>} : vector<8x8x8xbf16>, vector<8x8x32xbf16>, vector<8x8x32xf32> -> vector<8x8x32xf32>
    "tpu.trace_stop"() : () -> ()
    %91 = vector.shape_cast %90 : vector<8x8x32xf32> to vector<64x32xf32>
    %92 = vector.extract_strided_slice %30 {offsets = [0, 0, 96], sizes = [8, 8, 32], strides = [1, 1, 1]} : vector<8x8x128xbf16> to vector<8x8x32xbf16>
    %93 = vector.extract_strided_slice %32 {offsets = [0, 0, 96], sizes = [8, 8, 32], strides = [1, 1, 1]} : vector<8x8x128xbf16> to vector<8x8x32xbf16>
    "tpu.trace_start"() <{level = 10 : i32, message = "nqd,nkd->nqk"}> : () -> ()
    %cst_37 = arith.constant dense<0.000000e+00> : vector<8x8x8xf32>
    %94 = tpu.matmul %92, %93, %cst_37 {dimension_numbers = #tpu.dot_dimension_numbers<[2], [2], [1], [1], [0, 0, 0, 1, 1, 1], [0], [0]>} : vector<8x8x32xbf16>, vector<8x8x32xbf16>, vector<8x8x8xf32> -> vector<8x8x8xf32>
    %cst_38 = arith.constant -1.000000e+30 : f32
    "tpu.trace_stop"() : () -> ()
    %95 = vector.broadcast %cst_38 : f32 to vector<8x8x8xf32>
    %96 = arith.select %28, %94, %95 : vector<8x8x8xi1>, vector<8x8x8xf32>
    %cst_39 = arith.constant dense<0xFF800000> : vector<8x8xf32>
    %97 = vector.multi_reduction <maximumf>, %96, %cst_39 [2] : vector<8x8x8xf32> to vector<8x8xf32>
    %98 = vector.shape_cast %97 : vector<8x8xf32> to vector<8x8x1xf32>
    %99 = vector.broadcast %98 : vector<8x8x1xf32> to vector<8x8x8xf32>
    %100 = arith.subf %96, %99 : vector<8x8x8xf32>
    %101 = math.exp %100 : vector<8x8x8xf32>
    %cst_40 = arith.constant dense<0.000000e+00> : vector<8x8xf32>
    %102 = vector.multi_reduction <add>, %101, %cst_40 [2] : vector<8x8x8xf32> to vector<8x8xf32>
    %103 = vector.shape_cast %102 : vector<8x8xf32> to vector<8x8x1xf32>
    %104 = tpu.reciprocal %103 {approx = true} : vector<8x8x1xf32> -> vector<8x8x1xf32>
    %105 = vector.broadcast %104 : vector<8x8x1xf32> to vector<8x8x8xf32>
    %106 = arith.mulf %101, %105 : vector<8x8x8xf32>
    %107 = arith.truncf %106 : vector<8x8x8xf32> to vector<8x8x8xbf16>
    %108 = vector.extract_strided_slice %34 {offsets = [0, 0, 96], sizes = [8, 8, 32], strides = [1, 1, 1]} : vector<8x8x128xbf16> to vector<8x8x32xbf16>
    "tpu.trace_start"() <{level = 10 : i32, message = "nqk,nkd->nqd"}> : () -> ()
    %cst_41 = arith.constant dense<0.000000e+00> : vector<8x8x32xf32>
    %109 = tpu.matmul %107, %108, %cst_41 {dimension_numbers = #tpu.dot_dimension_numbers<[2], [1], [1], [2], [0, 0, 0, 1, 1, 2], [0], [0]>} : vector<8x8x8xbf16>, vector<8x8x32xbf16>, vector<8x8x32xf32> -> vector<8x8x32xf32>
    "tpu.trace_stop"() : () -> ()
    %110 = vector.shape_cast %109 : vector<8x8x32xf32> to vector<64x32xf32>
    %111 = tpu.concatenate %53, %72, %91, %110 in 1 : vector<64x32xf32>, vector<64x32xf32>, vector<64x32xf32>, vector<64x32xf32> -> vector<64x128xf32>
    %112 = arith.truncf %111 : vector<64x128xf32> to vector<64x128xbf16>
    %c0_42 = arith.constant 0 : index
    %c0_43 = arith.constant 0 : index
    %113 = vector.load %arg10[%c0_42, %c0_43] : memref<128x128xbf16, #tpu.memory_space<vmem>>, vector<128x128xbf16>
    %cst_44 = arith.constant dense<0.000000e+00> : vector<64x128xf32>
    %114 = tpu.matmul %112, %113, %cst_44 {dimension_numbers = #tpu.dot_dimension_numbers<[1], [0], [0], [1], [0, 0, 1, 1], [], []>} : vector<64x128xbf16>, vector<128x128xbf16>, vector<64x128xf32> -> vector<64x128xf32>
    %c0_45 = arith.constant 0 : index
    %c0_46 = arith.constant 0 : index
    %115 = vector.load %arg11[%c0_45, %c0_46] : memref<1x128xf32, #tpu.memory_space<vmem>>, vector<1x128xf32>
    %116 = vector.broadcast %115 : vector<1x128xf32> to vector<64x128xf32>
    %117 = arith.addf %114, %116 : vector<64x128xf32>
    %118 = arith.addf %117, %1 : vector<64x128xf32>
    %c0_47 = arith.constant 0 : index
    %c0_48 = arith.constant 0 : index
    %119 = vector.load %arg12[%c0_47, %c0_48] : memref<1x128xf32, #tpu.memory_space<vmem>>, vector<1x128xf32>
    %c0_49 = arith.constant 0 : index
    %c0_50 = arith.constant 0 : index
    %120 = vector.load %arg13[%c0_49, %c0_50] : memref<1x128xf32, #tpu.memory_space<vmem>>, vector<1x128xf32>
    %cst_51 = arith.constant dense<0.000000e+00> : vector<64xf32>
    %121 = vector.multi_reduction <add>, %118, %cst_51 [1] : vector<64x128xf32> to vector<64xf32>
    %122 = vector.shape_cast %121 : vector<64xf32> to vector<64x1xf32>
    %cst_52 = arith.constant 1.280000e+02 : f32
    %123 = vector.broadcast %cst_52 : f32 to vector<64x1xf32>
    %124 = arith.divf %122, %123 : vector<64x1xf32>
    %125 = vector.broadcast %124 : vector<64x1xf32> to vector<64x128xf32>
    %126 = arith.subf %118, %125 : vector<64x128xf32>
    %127 = arith.mulf %126, %126 : vector<64x128xf32>
    %cst_53 = arith.constant dense<0.000000e+00> : vector<64xf32>
    %128 = vector.multi_reduction <add>, %127, %cst_53 [1] : vector<64x128xf32> to vector<64xf32>
    %129 = vector.shape_cast %128 : vector<64xf32> to vector<64x1xf32>
    %cst_54 = arith.constant 1.280000e+02 : f32
    %130 = vector.broadcast %cst_54 : f32 to vector<64x1xf32>
    %131 = arith.divf %129, %130 : vector<64x1xf32>
    %132 = vector.broadcast %124 : vector<64x1xf32> to vector<64x128xf32>
    %133 = arith.subf %118, %132 : vector<64x128xf32>
    %cst_55 = arith.constant 9.99999974E-6 : f32
    %134 = vector.broadcast %cst_55 : f32 to vector<64x1xf32>
    %135 = arith.addf %131, %134 : vector<64x1xf32>
    %136 = math.rsqrt %135 : vector<64x1xf32>
    %137 = vector.broadcast %136 : vector<64x1xf32> to vector<64x128xf32>
    %138 = arith.mulf %133, %137 : vector<64x128xf32>
    %139 = vector.broadcast %119 : vector<1x128xf32> to vector<64x128xf32>
    %140 = arith.mulf %138, %139 : vector<64x128xf32>
    %141 = vector.broadcast %120 : vector<1x128xf32> to vector<64x128xf32>
    %142 = arith.addf %140, %141 : vector<64x128xf32>
    %143 = arith.truncf %142 : vector<64x128xf32> to vector<64x128xbf16>
    %c0_56 = arith.constant 0 : index
    %c0_57 = arith.constant 0 : index
    %144 = vector.load %arg14[%c0_56, %c0_57] : memref<128x512xbf16, #tpu.memory_space<vmem>>, vector<128x512xbf16>
    %cst_58 = arith.constant dense<0.000000e+00> : vector<64x512xf32>
    %145 = tpu.matmul %143, %144, %cst_58 {dimension_numbers = #tpu.dot_dimension_numbers<[1], [0], [0], [1], [0, 0, 1, 1], [], []>} : vector<64x128xbf16>, vector<128x512xbf16>, vector<64x512xf32> -> vector<64x512xf32>
    %c0_59 = arith.constant 0 : index
    %c0_60 = arith.constant 0 : index
    %146 = vector.load %arg15[%c0_59, %c0_60] : memref<1x512xf32, #tpu.memory_space<vmem>>, vector<1x512xf32>
    %147 = vector.broadcast %146 : vector<1x512xf32> to vector<64x512xf32>
    %148 = arith.addf %145, %147 : vector<64x512xf32>
    %cst_61 = arith.constant 0.000000e+00 : f32
    %149 = vector.broadcast %cst_61 : f32 to vector<64x512xf32>
    %150 = arith.maximumf %148, %149 : vector<64x512xf32>
    %151 = arith.truncf %150 : vector<64x512xf32> to vector<64x512xbf16>
    %c0_62 = arith.constant 0 : index
    %c0_63 = arith.constant 0 : index
    %152 = vector.load %arg16[%c0_62, %c0_63] : memref<512x128xbf16, #tpu.memory_space<vmem>>, vector<512x128xbf16>
    %cst_64 = arith.constant dense<0.000000e+00> : vector<64x128xf32>
    %153 = tpu.matmul %151, %152, %cst_64 {dimension_numbers = #tpu.dot_dimension_numbers<[1], [0], [0], [1], [0, 0, 1, 1], [], []>} : vector<64x512xbf16>, vector<512x128xbf16>, vector<64x128xf32> -> vector<64x128xf32>
    %c0_65 = arith.constant 0 : index
    %c0_66 = arith.constant 0 : index
    %154 = vector.load %arg17[%c0_65, %c0_66] : memref<1x128xf32, #tpu.memory_space<vmem>>, vector<1x128xf32>
    %155 = vector.broadcast %154 : vector<1x128xf32> to vector<64x128xf32>
    %156 = arith.addf %153, %155 : vector<64x128xf32>
    %157 = arith.addf %156, %142 : vector<64x128xf32>
    %c0_67 = arith.constant 0 : index
    %c0_68 = arith.constant 0 : index
    %158 = vector.load %arg18[%c0_67, %c0_68] : memref<1x128xf32, #tpu.memory_space<vmem>>, vector<1x128xf32>
    %c0_69 = arith.constant 0 : index
    %c0_70 = arith.constant 0 : index
    %159 = vector.load %arg19[%c0_69, %c0_70] : memref<1x128xf32, #tpu.memory_space<vmem>>, vector<1x128xf32>
    %cst_71 = arith.constant dense<0.000000e+00> : vector<64xf32>
    %160 = vector.multi_reduction <add>, %157, %cst_71 [1] : vector<64x128xf32> to vector<64xf32>
    %161 = vector.shape_cast %160 : vector<64xf32> to vector<64x1xf32>
    %cst_72 = arith.constant 1.280000e+02 : f32
    %162 = vector.broadcast %cst_72 : f32 to vector<64x1xf32>
    %163 = arith.divf %161, %162 : vector<64x1xf32>
    %164 = vector.broadcast %163 : vector<64x1xf32> to vector<64x128xf32>
    %165 = arith.subf %157, %164 : vector<64x128xf32>
    %166 = arith.mulf %165, %165 : vector<64x128xf32>
    %cst_73 = arith.constant dense<0.000000e+00> : vector<64xf32>
    %167 = vector.multi_reduction <add>, %166, %cst_73 [1] : vector<64x128xf32> to vector<64xf32>
    %168 = vector.shape_cast %167 : vector<64xf32> to vector<64x1xf32>
    %cst_74 = arith.constant 1.280000e+02 : f32
    %169 = vector.broadcast %cst_74 : f32 to vector<64x1xf32>
    %170 = arith.divf %168, %169 : vector<64x1xf32>
    %171 = vector.broadcast %163 : vector<64x1xf32> to vector<64x128xf32>
    %172 = arith.subf %157, %171 : vector<64x128xf32>
    %cst_75 = arith.constant 9.99999974E-6 : f32
    %173 = vector.broadcast %cst_75 : f32 to vector<64x1xf32>
    %174 = arith.addf %170, %173 : vector<64x1xf32>
    %175 = math.rsqrt %174 : vector<64x1xf32>
    %176 = vector.broadcast %175 : vector<64x1xf32> to vector<64x128xf32>
    %177 = arith.mulf %172, %176 : vector<64x128xf32>
    %178 = vector.broadcast %158 : vector<1x128xf32> to vector<64x128xf32>
    %179 = arith.mulf %177, %178 : vector<64x128xf32>
    %180 = vector.broadcast %159 : vector<1x128xf32> to vector<64x128xf32>
    %181 = arith.addf %179, %180 : vector<64x128xf32>
    %c0_76 = arith.constant 0 : index
    %c0_77 = arith.constant 0 : index
    %c0_78 = arith.constant 0 : index
    %182 = vector.load %arg20[%c0_76, %c0_77, %c0_78] : memref<1x64x128xf32, #tpu.memory_space<vmem>>, vector<1x64x128xf32>
    %183 = vector.shape_cast %182 : vector<1x64x128xf32> to vector<64x128xf32>
    %184 = vector.shape_cast %181 : vector<64x128xf32> to vector<1x64x128xf32>
    tpu.vector_store %arg20[%c0_76, %c0_77, %c0_78], %184 {strides = array<i32>} : memref<1x64x128xf32, #tpu.memory_space<vmem>>, vector<1x64x128xf32>,
    return
  }
  func.func @transform_0(%arg0: i32, %arg1: i32) -> (i32, i32, i32) {
    %c0_i32 = arith.constant 0 : i32
    %c0_i32_0 = arith.constant 0 : i32
    return %arg0, %arg1, %c0_i32 : i32, i32, i32
  }
  func.func @transform_1(%arg0: i32, %arg1: i32) -> (i32, i32, i32, i32) {
    %c0_i32 = arith.constant 0 : i32
    %c0_i32_0 = arith.constant 0 : i32
    %c0_i32_1 = arith.constant 0 : i32
    return %arg0, %arg1, %c0_i32, %c0_i32_0 : i32, i32, i32, i32
  }
  func.func @transform_2(%arg0: i32, %arg1: i32) -> (i32, i32) {
    %c0_i32 = arith.constant 0 : i32
    %c0_i32_0 = arith.constant 0 : i32
    %c0_i32_1 = arith.constant 0 : i32
    return %c0_i32, %c0_i32_0 : i32, i32
  }
  func.func @transform_3(%arg0: i32, %arg1: i32) -> (i32, i32) {
    %c0_i32 = arith.constant 0 : i32
    %c0_i32_0 = arith.constant 0 : i32
    %c0_i32_1 = arith.constant 0 : i32
    return %c0_i32, %c0_i32_0 : i32, i32
  }
  func.func @transform_4(%arg0: i32, %arg1: i32) -> (i32, i32) {
    %c0_i32 = arith.constant 0 : i32
    %c0_i32_0 = arith.constant 0 : i32
    %c0_i32_1 = arith.constant 0 : i32
    return %c0_i32, %c0_i32_0 : i32, i32
  }
  func.func @transform_5(%arg0: i32, %arg1: i32) -> (i32, i32) {
    %c0_i32 = arith.constant 0 : i32
    %c0_i32_0 = arith.constant 0 : i32
    %c0_i32_1 = arith.constant 0 : i32
    return %c0_i32, %c0_i32_0 : i32, i32
  }
  func.func @transform_6(%arg0: i32, %arg1: i32) -> (i32, i32) {
    %c0_i32 = arith.constant 0 : i32
    %c0_i32_0 = arith.constant 0 : i32
    %c0_i32_1 = arith.constant 0 : i32
    return %c0_i32, %c0_i32_0 : i32, i32
  }
  func.func @transform_7(%arg0: i32, %arg1: i32) -> (i32, i32) {
    %c0_i32 = arith.constant 0 : i32
    %c0_i32_0 = arith.constant 0 : i32
    %c0_i32_1 = arith.constant 0 : i32
    return %c0_i32, %c0_i32_0 : i32, i32
  }
  func.func @transform_8(%arg0: i32, %arg1: i32) -> (i32, i32) {
    %c0_i32 = arith.constant 0 : i32
    %c0_i32_0 = arith.constant 0 : i32
    %c0_i32_1 = arith.constant 0 : i32
    return %c0_i32, %c0_i32_0 : i32, i32
  }
  func.func @transform_9(%arg0: i32, %arg1: i32) -> (i32, i32) {
    %c0_i32 = arith.constant 0 : i32
    %c0_i32_0 = arith.constant 0 : i32
    %c0_i32_1 = arith.constant 0 : i32
    return %c0_i32, %c0_i32_0 : i32, i32
  }
  func.func @transform_10(%arg0: i32, %arg1: i32) -> (i32, i32) {
    %c0_i32 = arith.constant 0 : i32
    %c0_i32_0 = arith.constant 0 : i32
    %c0_i32_1 = arith.constant 0 : i32
    return %c0_i32, %c0_i32_0 : i32, i32
  }
  func.func @transform_11(%arg0: i32, %arg1: i32) -> (i32, i32) {
    %c0_i32 = arith.constant 0 : i32
    %c0_i32_0 = arith.constant 0 : i32
    %c0_i32_1 = arith.constant 0 : i32
    return %c0_i32, %c0_i32_0 : i32, i32
  }
  func.func @transform_12(%arg0: i32, %arg1: i32) -> (i32, i32) {
    %c0_i32 = arith.constant 0 : i32
    %c0_i32_0 = arith.constant 0 : i32
    %c0_i32_1 = arith.constant 0 : i32
    return %c0_i32, %c0_i32_0 : i32, i32
  }
  func.func @transform_13(%arg0: i32, %arg1: i32) -> (i32, i32) {
    %c0_i32 = arith.constant 0 : i32
    %c0_i32_0 = arith.constant 0 : i32
    %c0_i32_1 = arith.constant 0 : i32
    return %c0_i32, %c0_i32_0 : i32, i32
  }
  func.func @transform_14(%arg0: i32, %arg1: i32) -> (i32, i32) {
    %c0_i32 = arith.constant 0 : i32
    %c0_i32_0 = arith.constant 0 : i32
    %c0_i32_1 = arith.constant 0 : i32
    return %c0_i32, %c0_i32_0 : i32, i32
  }
  func.func @transform_15(%arg0: i32, %arg1: i32) -> (i32, i32) {
    %c0_i32 = arith.constant 0 : i32
    %c0_i32_0 = arith.constant 0 : i32
    %c0_i32_1 = arith.constant 0 : i32
    return %c0_i32, %c0_i32_0 : i32, i32
  }
  func.func @transform_16(%arg0: i32, %arg1: i32) -> (i32, i32) {
    %c0_i32 = arith.constant 0 : i32
    %c0_i32_0 = arith.constant 0 : i32
    %c0_i32_1 = arith.constant 0 : i32
    return %c0_i32, %c0_i32_0 : i32, i32
  }
  func.func @transform_17(%arg0: i32, %arg1: i32) -> (i32, i32) {
    %c0_i32 = arith.constant 0 : i32
    %c0_i32_0 = arith.constant 0 : i32
    %c0_i32_1 = arith.constant 0 : i32
    return %c0_i32, %c0_i32_0 : i32, i32
  }
  func.func @transform_18(%arg0: i32, %arg1: i32) -> (i32, i32, i32) {
    %c0_i32 = arith.constant 0 : i32
    %c0_i32_0 = arith.constant 0 : i32
    return %arg0, %arg1, %c0_i32 : i32, i32, i32
  }
}

module attributes {stable_mosaic.version = 11 : i64} {
  func.func @decoder_layer_kernel(%arg0: i32, %arg1: i32, %arg2: memref<1x64x128xf32, #tpu.memory_space<vmem>>, %arg3: memref<1x8x1x8xf32, #tpu.memory_space<vmem>>, %arg4: memref<128x128xbf16, #tpu.memory_space<vmem>>, %arg5: memref<1x128xf32, #tpu.memory_space<vmem>>, %arg6: memref<128x128xbf16, #tpu.memory_space<vmem>>, %arg7: memref<1x128xf32, #tpu.memory_space<vmem>>, %arg8: memref<128x128xbf16, #tpu.memory_space<vmem>>, %arg9: memref<1x128xf32, #tpu.memory_space<vmem>>, %arg10: memref<128x128xbf16, #tpu.memory_space<vmem>>, %arg11: memref<1x128xf32, #tpu.memory_space<vmem>>, %arg12: memref<1x128xf32, #tpu.memory_space<vmem>>, %arg13: memref<1x128xf32, #tpu.memory_space<vmem>>, %arg14: memref<128x512xbf16, #tpu.memory_space<vmem>>, %arg15: memref<1x512xf32, #tpu.memory_space<vmem>>, %arg16: memref<512x128xbf16, #tpu.memory_space<vmem>>, %arg17: memref<1x128xf32, #tpu.memory_space<vmem>>, %arg18: memref<1x128xf32, #tpu.memory_space<vmem>>, %arg19: memref<1x128xf32, #tpu.memory_space<vmem>>, %arg20: memref<1x64x128xf32, #tpu.memory_space<vmem>>) attributes {dimension_semantics = [#tpu.dimension_semantics<parallel>, #tpu.dimension_semantics<parallel>], iteration_bounds = array<i64: 2, 1>, scalar_prefetch = 0 : i64, scratch_operands = 0 : i64, tpu.core_type = #tpu.core_type<tc>, window_params = [{transform_indices = @transform_0, window_bounds = array<i64: 1, 64, 128>}, {transform_indices = @transform_1, window_bounds = array<i64: 1, 8, 1, 8>}, {pipeline_mode = #tpu.pipeline_mode<synchronous>, transform_indices = @transform_2, window_bounds = array<i64: 128, 128>}, {pipeline_mode = #tpu.pipeline_mode<synchronous>, transform_indices = @transform_3, window_bounds = array<i64: 1, 128>}, {pipeline_mode = #tpu.pipeline_mode<synchronous>, transform_indices = @transform_4, window_bounds = array<i64: 128, 128>}, {pipeline_mode = #tpu.pipeline_mode<synchronous>, transform_indices = @transform_5, window_bounds = array<i64: 1, 128>}, {pipeline_mode = #tpu.pipeline_mode<synchronous>, transform_indices = @transform_6, window_bounds = array<i64: 128, 128>}, {pipeline_mode = #tpu.pipeline_mode<synchronous>, transform_indices = @transform_7, window_bounds = array<i64: 1, 128>}, {pipeline_mode = #tpu.pipeline_mode<synchronous>, transform_indices = @transform_8, window_bounds = array<i64: 128, 128>}, {pipeline_mode = #tpu.pipeline_mode<synchronous>, transform_indices = @transform_9, window_bounds = array<i64: 1, 128>}, {pipeline_mode = #tpu.pipeline_mode<synchronous>, transform_indices = @transform_10, window_bounds = array<i64: 1, 128>}, {pipeline_mode = #tpu.pipeline_mode<synchronous>, transform_indices = @transform_11, window_bounds = array<i64: 1, 128>}, {pipeline_mode = #tpu.pipeline_mode<synchronous>, transform_indices = @transform_12, window_bounds = array<i64: 128, 512>}, {pipeline_mode = #tpu.pipeline_mode<synchronous>, transform_indices = @transform_13, window_bounds = array<i64: 1, 512>}, {pipeline_mode = #tpu.pipeline_mode<synchronous>, transform_indices = @transform_14, window_bounds = array<i64: 512, 128>}, {pipeline_mode = #tpu.pipeline_mode<synchronous>, transform_indices = @transform_15, window_bounds = array<i64: 1, 128>}, {pipeline_mode = #tpu.pipeline_mode<synchronous>, transform_indices = @transform_16, window_bounds = array<i64: 1, 128>}, {pipeline_mode = #tpu.pipeline_mode<synchronous>, transform_indices = @transform_17, window_bounds = array<i64: 1, 128>}, {transform_indices = @transform_18, window_bounds = array<i64: 1, 64, 128>}]} {
    %c0 = arith.constant 0 : index
    %c0_0 = arith.constant 0 : index
    %c0_1 = arith.constant 0 : index
    %0 = vector.load %arg2[%c0, %c0_0, %c0_1] : memref<1x64x128xf32, #tpu.memory_space<vmem>>, vector<1x64x128xf32>
    %1 = vector.shape_cast %0 : vector<1x64x128xf32> to vector<64x128xf32>
    %2 = arith.truncf %1 : vector<64x128xf32> to vector<64x128xbf16>
    %c0_2 = arith.constant 0 : index
    %c0_3 = arith.constant 0 : index
    %3 = vector.load %arg4[%c0_2, %c0_3] : memref<128x128xbf16, #tpu.memory_space<vmem>>, vector<128x128xbf16>
    %cst = arith.constant dense<0.000000e+00> : vector<64x128xf32>
    %4 = tpu.matmul %2, %3, %cst {dimension_numbers = #tpu.dot_dimension_numbers<[1], [0], [0], [1], [0, 0, 1, 1], [], []>} : vector<64x128xbf16>, vector<128x128xbf16>, vector<64x128xf32> -> vector<64x128xf32>
    %c0_4 = arith.constant 0 : index
    %c0_5 = arith.constant 0 : index
    %5 = vector.load %arg5[%c0_4, %c0_5] : memref<1x128xf32, #tpu.memory_space<vmem>>, vector<1x128xf32>
    %6 = vector.broadcast %5 : vector<1x128xf32> to vector<64x128xf32>
    %7 = arith.addf %4, %6 : vector<64x128xf32>
    %cst_6 = arith.constant 0.176776692 : f32
    %8 = vector.broadcast %cst_6 : f32 to vector<64x128xf32>
    %9 = arith.mulf %7, %8 : vector<64x128xf32>
    %c0_7 = arith.constant 0 : index
    %c0_8 = arith.constant 0 : index
    %10 = vector.load %arg6[%c0_7, %c0_8] : memref<128x128xbf16, #tpu.memory_space<vmem>>, vector<128x128xbf16>
    %cst_9 = arith.constant dense<0.000000e+00> : vector<64x128xf32>
    %11 = tpu.matmul %2, %10, %cst_9 {dimension_numbers = #tpu.dot_dimension_numbers<[1], [0], [0], [1], [0, 0, 1, 1], [], []>} : vector<64x128xbf16>, vector<128x128xbf16>, vector<64x128xf32> -> vector<64x128xf32>
    %c0_10 = arith.constant 0 : index
    %c0_11 = arith.constant 0 : index
    %12 = vector.load %arg7[%c0_10, %c0_11] : memref<1x128xf32, #tpu.memory_space<vmem>>, vector<1x128xf32>
    %13 = vector.broadcast %12 : vector<1x128xf32> to vector<64x128xf32>
    %14 = arith.addf %11, %13 : vector<64x128xf32>
    %c0_12 = arith.constant 0 : index
    %c0_13 = arith.constant 0 : index
    %15 = vector.load %arg8[%c0_12, %c0_13] : memref<128x128xbf16, #tpu.memory_space<vmem>>, vector<128x128xbf16>
    %cst_14 = arith.constant dense<0.000000e+00> : vector<64x128xf32>
    %16 = tpu.matmul %2, %15, %cst_14 {dimension_numbers = #tpu.dot_dimension_numbers<[1], [0], [0], [1], [0, 0, 1, 1], [], []>} : vector<64x128xbf16>, vector<128x128xbf16>, vector<64x128xf32> -> vector<64x128xf32>
    %c0_15 = arith.constant 0 : index
    %c0_16 = arith.constant 0 : index
    %17 = vector.load %arg9[%c0_15, %c0_16] : memref<1x128xf32, #tpu.memory_space<vmem>>, vector<1x128xf32>
    %18 = vector.broadcast %17 : vector<1x128xf32> to vector<64x128xf32>
    %19 = arith.addf %16, %18 : vector<64x128xf32>
    %20 = tpu.iota {dimensions = array<i32: 1>} : vector<8x8x8xi32>
    %21 = tpu.iota {dimensions = array<i32: 2>} : vector<8x8x8xi32>
    %22 = arith.cmpi sge, %20, %21 : vector<8x8x8xi32>
    %c0_17 = arith.constant 0 : index
    %c0_18 = arith.constant 0 : index
    %c0_19 = arith.constant 0 : index
    %c0_20 = arith.constant 0 : index
    %23 = vector.load %arg3[%c0_17, %c0_18, %c0_19, %c0_20] : memref<1x8x1x8xf32, #tpu.memory_space<vmem>>, vector<1x8x1x8xf32>
    %24 = vector.shape_cast %23 : vector<1x8x1x8xf32> to vector<8x1x8xf32>
    %cst_21 = arith.constant 0.000000e+00 : f32
    %25 = vector.broadcast %cst_21 : f32 to vector<8x1x8xf32>
    %26 = arith.cmpf ogt, %24, %25 : vector<8x1x8xf32>
    %27 = vector.broadcast %26 : vector<8x1x8xi1> to vector<8x8x8xi1>
    %28 = arith.andi %22, %27 : vector<8x8x8xi1>
    %29 = arith.truncf %9 : vector<64x128xf32> to vector<64x128xbf16>
    %30 = vector.shape_cast %29 : vector<64x128xbf16> to vector<8x8x128xbf16>
    %31 = arith.truncf %14 : vector<64x128xf32> to vector<64x128xbf16>
    %32 = vector.shape_cast %31 : vector<64x128xbf16> to vector<8x8x128xbf16>
    %33 = arith.truncf %19 : vector<64x128xf32> to vector<64x128xbf16>
    %34 = vector.shape_cast %33 : vector<64x128xbf16> to vector<8x8x128xbf16>
    %35 = vector.extract_strided_slice %30 {offsets = [0, 0, 0], sizes = [8, 8, 32], strides = [1, 1, 1]} : vector<8x8x128xbf16> to vector<8x8x32xbf16>
    %36 = vector.extract_strided_slice %32 {offsets = [0, 0, 0], sizes = [8, 8, 32], strides = [1, 1, 1]} : vector<8x8x128xbf16> to vector<8x8x32xbf16>
    "tpu.trace_start"() <{level = 10 : i32, message = "nqd,nkd->nqk"}> : () -> ()
    %cst_22 = arith.constant dense<0.000000e+00> : vector<8x8x8xf32>
    %37 = tpu.matmul %35, %36, %cst_22 {dimension_numbers = #tpu.dot_dimension_numbers<[2], [2], [1], [1], [0, 0, 0, 1, 1, 1], [0], [0]>} : vector<8x8x32xbf16>, vector<8x8x32xbf16>, vector<8x8x8xf32> -> vector<8x8x8xf32>
    %cst_23 = arith.constant -1.000000e+30 : f32
    "tpu.trace_stop"() : () -> ()
    %38 = vector.broadcast %cst_23 : f32 to vector<8x8x8xf32>
    %39 = arith.select %28, %37, %38 : vector<8x8x8xi1>, vector<8x8x8xf32>
    %cst_24 = arith.constant dense<0xFF800000> : vector<8x8xf32>
    %40 = vector.multi_reduction <maximumf>, %39, %cst_24 [2] : vector<8x8x8xf32> to vector<8x8xf32>
    %41 = vector.shape_cast %40 : vector<8x8xf32> to vector<8x8x1xf32>
    %42 = vector.broadcast %41 : vector<8x8x1xf32> to vector<8x8x8xf32>
    %43 = arith.subf %39, %42 : vector<8x8x8xf32>
    %44 = math.exp %43 : vector<8x8x8xf32>
    %cst_25 = arith.constant dense<0.000000e+00> : vector<8x8xf32>
    %45 = vector.multi_reduction <add>, %44, %cst_25 [2] : vector<8x8x8xf32> to vector<8x8xf32>
    %46 = vector.shape_cast %45 : vector<8x8xf32> to vector<8x8x1xf32>
    %47 = tpu.reciprocal %46 {approx = true} : vector<8x8x1xf32> -> vector<8x8x1xf32>
    %48 = vector.broadcast %47 : vector<8x8x1xf32> to vector<8x8x8xf32>
    %49 = arith.mulf %44, %48 : vector<8x8x8xf32>
    %50 = arith.truncf %49 : vector<8x8x8xf32> to vector<8x8x8xbf16>
    %51 = vector.extract_strided_slice %34 {offsets = [0, 0, 0], sizes = [8, 8, 32], strides = [1, 1, 1]} : vector<8x8x128xbf16> to vector<8x8x32xbf16>
    "tpu.trace_start"() <{level = 10 : i32, message = "nqk,nkd->nqd"}> : () -> ()
    %cst_26 = arith.constant dense<0.000000e+00> : vector<8x8x32xf32>
    %52 = tpu.matmul %50, %51, %cst_26 {dimension_numbers = #tpu.dot_dimension_numbers<[2], [1], [1], [2], [0, 0, 0, 1, 1, 2], [0], [0]>} : vector<8x8x8xbf16>, vector<8x8x32xbf16>, vector<8x8x32xf32> -> vector<8x8x32xf32>
    "tpu.trace_stop"() : () -> ()
    %53 = vector.shape_cast %52 : vector<8x8x32xf32> to vector<64x32xf32>
    %54 = vector.extract_strided_slice %30 {offsets = [0, 0, 32], sizes = [8, 8, 32], strides = [1, 1, 1]} : vector<8x8x128xbf16> to vector<8x8x32xbf16>
    %55 = vector.extract_strided_slice %32 {offsets = [0, 0, 32], sizes = [8, 8, 32], strides = [1, 1, 1]} : vector<8x8x128xbf16> to vector<8x8x32xbf16>
    "tpu.trace_start"() <{level = 10 : i32, message = "nqd,nkd->nqk"}> : () -> ()
    %cst_27 = arith.constant dense<0.000000e+00> : vector<8x8x8xf32>
    %56 = tpu.matmul %54, %55, %cst_27 {dimension_numbers = #tpu.dot_dimension_numbers<[2], [2], [1], [1], [0, 0, 0, 1, 1, 1], [0], [0]>} : vector<8x8x32xbf16>, vector<8x8x32xbf16>, vector<8x8x8xf32> -> vector<8x8x8xf32>
    %cst_28 = arith.constant -1.000000e+30 : f32
    "tpu.trace_stop"() : () -> ()
    %57 = vector.broadcast %cst_28 : f32 to vector<8x8x8xf32>
    %58 = arith.select %28, %56, %57 : vector<8x8x8xi1>, vector<8x8x8xf32>
    %cst_29 = arith.constant dense<0xFF800000> : vector<8x8xf32>
    %59 = vector.multi_reduction <maximumf>, %58, %cst_29 [2] : vector<8x8x8xf32> to vector<8x8xf32>
    %60 = vector.shape_cast %59 : vector<8x8xf32> to vector<8x8x1xf32>
    %61 = vector.broadcast %60 : vector<8x8x1xf32> to vector<8x8x8xf32>
    %62 = arith.subf %58, %61 : vector<8x8x8xf32>
    %63 = math.exp %62 : vector<8x8x8xf32>
    %cst_30 = arith.constant dense<0.000000e+00> : vector<8x8xf32>
    %64 = vector.multi_reduction <add>, %63, %cst_30 [2] : vector<8x8x8xf32> to vector<8x8xf32>
    %65 = vector.shape_cast %64 : vector<8x8xf32> to vector<8x8x1xf32>
    %66 = tpu.reciprocal %65 {approx = true} : vector<8x8x1xf32> -> vector<8x8x1xf32>
    %67 = vector.broadcast %66 : vector<8x8x1xf32> to vector<8x8x8xf32>
    %68 = arith.mulf %63, %67 : vector<8x8x8xf32>
    %69 = arith.truncf %68 : vector<8x8x8xf32> to vector<8x8x8xbf16>
    %70 = vector.extract_strided_slice %34 {offsets = [0, 0, 32], sizes = [8, 8, 32], strides = [1, 1, 1]} : vector<8x8x128xbf16> to vector<8x8x32xbf16>
    "tpu.trace_start"() <{level = 10 : i32, message = "nqk,nkd->nqd"}> : () -> ()
    %cst_31 = arith.constant dense<0.000000e+00> : vector<8x8x32xf32>
    %71 = tpu.matmul %69, %70, %cst_31 {dimension_numbers = #tpu.dot_dimension_numbers<[2], [1], [1], [2], [0, 0, 0, 1, 1, 2], [0], [0]>} : vector<8x8x8xbf16>, vector<8x8x32xbf16>, vector<8x8x32xf32> -> vector<8x8x32xf32>
    "tpu.trace_stop"() : () -> ()
    %72 = vector.shape_cast %71 : vector<8x8x32xf32> to vector<64x32xf32>
    %73 = vector.extract_strided_slice %30 {offsets = [0, 0, 64], sizes = [8, 8, 32], strides = [1, 1, 1]} : vector<8x8x128xbf16> to vector<8x8x32xbf16>
    %74 = vector.extract_strided_slice %32 {offsets = [0, 0, 64], sizes = [8, 8, 32], strides = [1, 1, 1]} : vector<8x8x128xbf16> to vector<8x8x32xbf16>
    "tpu.trace_start"() <{level = 10 : i32, message = "nqd,nkd->nqk"}> : () -> ()
    %cst_32 = arith.constant dense<0.000000e+00> : vector<8x8x8xf32>
    %75 = tpu.matmul %73, %74, %cst_32 {dimension_numbers = #tpu.dot_dimension_numbers<[2], [2], [1], [1], [0, 0, 0, 1, 1, 1], [0], [0]>} : vector<8x8x32xbf16>, vector<8x8x32xbf16>, vector<8x8x8xf32> -> vector<8x8x8xf32>
    %cst_33 = arith.constant -1.000000e+30 : f32
    "tpu.trace_stop"() : () -> ()
    %76 = vector.broadcast %cst_33 : f32 to vector<8x8x8xf32>
    %77 = arith.select %28, %75, %76 : vector<8x8x8xi1>, vector<8x8x8xf32>
    %cst_34 = arith.constant dense<0xFF800000> : vector<8x8xf32>
    %78 = vector.multi_reduction <maximumf>, %77, %cst_34 [2] : vector<8x8x8xf32> to vector<8x8xf32>
    %79 = vector.shape_cast %78 : vector<8x8xf32> to vector<8x8x1xf32>
    %80 = vector.broadcast %79 : vector<8x8x1xf32> to vector<8x8x8xf32>
    %81 = arith.subf %77, %80 : vector<8x8x8xf32>
    %82 = math.exp %81 : vector<8x8x8xf32>
    %cst_35 = arith.constant dense<0.000000e+00> : vector<8x8xf32>
    %83 = vector.multi_reduction <add>, %82, %cst_35 [2] : vector<8x8x8xf32> to vector<8x8xf32>
    %84 = vector.shape_cast %83 : vector<8x8xf32> to vector<8x8x1xf32>
    %85 = tpu.reciprocal %84 {approx = true} : vector<8x8x1xf32> -> vector<8x8x1xf32>
    %86 = vector.broadcast %85 : vector<8x8x1xf32> to vector<8x8x8xf32>
    %87 = arith.mulf %82, %86 : vector<8x8x8xf32>
    %88 = arith.truncf %87 : vector<8x8x8xf32> to vector<8x8x8xbf16>
    %89 = vector.extract_strided_slice %34 {offsets = [0, 0, 64], sizes = [8, 8, 32], strides = [1, 1, 1]} : vector<8x8x128xbf16> to vector<8x8x32xbf16>
    "tpu.trace_start"() <{level = 10 : i32, message = "nqk,nkd->nqd"}> : () -> ()
    %cst_36 = arith.constant dense<0.000000e+00> : vector<8x8x32xf32>
    %90 = tpu.matmul %88, %89, %cst_36 {dimension_numbers = #tpu.dot_dimension_numbers<[2], [1], [1], [2], [0, 0, 0, 1, 1, 2], [0], [0]>} : vector<8x8x8xbf16>, vector<8x8x32xbf16>, vector<8x8x32xf32> -> vector<8x8x32xf32>
    "tpu.trace_stop"() : () -> ()
    %91 = vector.shape_cast %90 : vector<8x8x32xf32> to vector<64x32xf32>
    %92 = vector.extract_strided_slice %30 {offsets = [0, 0, 96], sizes = [8, 8, 32], strides = [1, 1, 1]} : vector<8x8x128xbf16> to vector<8x8x32xbf16>
    %93 = vector.extract_strided_slice %32 {offsets = [0, 0, 96], sizes = [8, 8, 32], strides = [1, 1, 1]} : vector<8x8x128xbf16> to vector<8x8x32xbf16>
    "tpu.trace_start"() <{level = 10 : i32, message = "nqd,nkd->nqk"}> : () -> ()
    %cst_37 = arith.constant dense<0.000000e+00> : vector<8x8x8xf32>
    %94 = tpu.matmul %92, %93, %cst_37 {dimension_numbers = #tpu.dot_dimension_numbers<[2], [2], [1], [1], [0, 0, 0, 1, 1, 1], [0], [0]>} : vector<8x8x32xbf16>, vector<8x8x32xbf16>, vector<8x8x8xf32> -> vector<8x8x8xf32>
    %cst_38 = arith.constant -1.000000e+30 : f32
    "tpu.trace_stop"() : () -> ()
    %95 = vector.broadcast %cst_38 : f32 to vector<8x8x8xf32>
    %96 = arith.select %28, %94, %95 : vector<8x8x8xi1>, vector<8x8x8xf32>
    %cst_39 = arith.constant dense<0xFF800000> : vector<8x8xf32>
    %97 = vector.multi_reduction <maximumf>, %96, %cst_39 [2] : vector<8x8x8xf32> to vector<8x8xf32>
    %98 = vector.shape_cast %97 : vector<8x8xf32> to vector<8x8x1xf32>
    %99 = vector.broadcast %98 : vector<8x8x1xf32> to vector<8x8x8xf32>
    %100 = arith.subf %96, %99 : vector<8x8x8xf32>
    %101 = math.exp %100 : vector<8x8x8xf32>
    %cst_40 = arith.constant dense<0.000000e+00> : vector<8x8xf32>
    %102 = vector.multi_reduction <add>, %101, %cst_40 [2] : vector<8x8x8xf32> to vector<8x8xf32>
    %103 = vector.shape_cast %102 : vector<8x8xf32> to vector<8x8x1xf32>
    %104 = tpu.reciprocal %103 {approx = true} : vector<8x8x1xf32> -> vector<8x8x1xf32>
    %105 = vector.broadcast %104 : vector<8x8x1xf32> to vector<8x8x8xf32>
    %106 = arith.mulf %101, %105 : vector<8x8x8xf32>
    %107 = arith.truncf %106 : vector<8x8x8xf32> to vector<8x8x8xbf16>
    %108 = vector.extract_strided_slice %34 {offsets = [0, 0, 96], sizes = [8, 8, 32], strides = [1, 1, 1]} : vector<8x8x128xbf16> to vector<8x8x32xbf16>
    "tpu.trace_start"() <{level = 10 : i32, message = "nqk,nkd->nqd"}> : () -> ()
    %cst_41 = arith.constant dense<0.000000e+00> : vector<8x8x32xf32>
    %109 = tpu.matmul %107, %108, %cst_41 {dimension_numbers = #tpu.dot_dimension_numbers<[2], [1], [1], [2], [0, 0, 0, 1, 1, 2], [0], [0]>} : vector<8x8x8xbf16>, vector<8x8x32xbf16>, vector<8x8x32xf32> -> vector<8x8x32xf32>
    "tpu.trace_stop"() : () -> ()
    %110 = vector.shape_cast %109 : vector<8x8x32xf32> to vector<64x32xf32>
    %111 = tpu.concatenate %53, %72, %91, %110 in 1 : vector<64x32xf32>, vector<64x32xf32>, vector<64x32xf32>, vector<64x32xf32> -> vector<64x128xf32>
    %112 = arith.truncf %111 : vector<64x128xf32> to vector<64x128xbf16>
    %c0_42 = arith.constant 0 : index
    %c0_43 = arith.constant 0 : index
    %113 = vector.load %arg10[%c0_42, %c0_43] : memref<128x128xbf16, #tpu.memory_space<vmem>>, vector<128x128xbf16>
    %cst_44 = arith.constant dense<0.000000e+00> : vector<64x128xf32>
    %114 = tpu.matmul %112, %113, %cst_44 {dimension_numbers = #tpu.dot_dimension_numbers<[1], [0], [0], [1], [0, 0, 1, 1], [], []>} : vector<64x128xbf16>, vector<128x128xbf16>, vector<64x128xf32> -> vector<64x128xf32>
    %c0_45 = arith.constant 0 : index
    %c0_46 = arith.constant 0 : index
    %115 = vector.load %arg11[%c0_45, %c0_46] : memref<1x128xf32, #tpu.memory_space<vmem>>, vector<1x128xf32>
    %116 = vector.broadcast %115 : vector<1x128xf32> to vector<64x128xf32>
    %117 = arith.addf %114, %116 : vector<64x128xf32>
    %118 = arith.addf %117, %1 : vector<64x128xf32>
    %c0_47 = arith.constant 0 : index
    %c0_48 = arith.constant 0 : index
    %119 = vector.load %arg12[%c0_47, %c0_48] : memref<1x128xf32, #tpu.memory_space<vmem>>, vector<1x128xf32>
    %c0_49 = arith.constant 0 : index
    %c0_50 = arith.constant 0 : index
    %120 = vector.load %arg13[%c0_49, %c0_50] : memref<1x128xf32, #tpu.memory_space<vmem>>, vector<1x128xf32>
    %cst_51 = arith.constant dense<0.000000e+00> : vector<64xf32>
    %121 = vector.multi_reduction <add>, %118, %cst_51 [1] : vector<64x128xf32> to vector<64xf32>
    %122 = vector.shape_cast %121 : vector<64xf32> to vector<64x1xf32>
    %cst_52 = arith.constant 1.280000e+02 : f32
    %123 = vector.broadcast %cst_52 : f32 to vector<64x1xf32>
    %124 = arith.divf %122, %123 : vector<64x1xf32>
    %125 = vector.broadcast %124 : vector<64x1xf32> to vector<64x128xf32>
    %126 = arith.subf %118, %125 : vector<64x128xf32>
    %127 = arith.mulf %126, %126 : vector<64x128xf32>
    %cst_53 = arith.constant dense<0.000000e+00> : vector<64xf32>
    %128 = vector.multi_reduction <add>, %127, %cst_53 [1] : vector<64x128xf32> to vector<64xf32>
    %129 = vector.shape_cast %128 : vector<64xf32> to vector<64x1xf32>
    %cst_54 = arith.constant 1.280000e+02 : f32
    %130 = vector.broadcast %cst_54 : f32 to vector<64x1xf32>
    %131 = arith.divf %129, %130 : vector<64x1xf32>
    %132 = vector.broadcast %124 : vector<64x1xf32> to vector<64x128xf32>
    %133 = arith.subf %118, %132 : vector<64x128xf32>
    %cst_55 = arith.constant 9.99999974E-6 : f32
    %134 = vector.broadcast %cst_55 : f32 to vector<64x1xf32>
    %135 = arith.addf %131, %134 : vector<64x1xf32>
    %136 = math.rsqrt %135 : vector<64x1xf32>
    %137 = vector.broadcast %136 : vector<64x1xf32> to vector<64x128xf32>
    %138 = arith.mulf %133, %137 : vector<64x128xf32>
    %139 = vector.broadcast %119 : vector<1x128xf32> to vector<64x128xf32>
    %140 = arith.mulf %138, %139 : vector<64x128xf32>
    %141 = vector.broadcast %120 : vector<1x128xf32> to vector<64x128xf32>
    %142 = arith.addf %140, %141 : vector<64x128xf32>
    %143 = arith.truncf %142 : vector<64x128xf32> to vector<64x128xbf16>
    %c0_56 = arith.constant 0 : index
    %c0_57 = arith.constant 0 : index
    %144 = vector.load %arg14[%c0_56, %c0_57] : memref<128x512xbf16, #tpu.memory_space<vmem>>, vector<128x512xbf16>
    %cst_58 = arith.constant dense<0.000000e+00> : vector<64x512xf32>
    %145 = tpu.matmul %143, %144, %cst_58 {dimension_numbers = #tpu.dot_dimension_numbers<[1], [0], [0], [1], [0, 0, 1, 1], [], []>} : vector<64x128xbf16>, vector<128x512xbf16>, vector<64x512xf32> -> vector<64x512xf32>
    %c0_59 = arith.constant 0 : index
    %c0_60 = arith.constant 0 : index
    %146 = vector.load %arg15[%c0_59, %c0_60] : memref<1x512xf32, #tpu.memory_space<vmem>>, vector<1x512xf32>
    %147 = vector.broadcast %146 : vector<1x512xf32> to vector<64x512xf32>
    %148 = arith.addf %145, %147 : vector<64x512xf32>
    %cst_61 = arith.constant 0.000000e+00 : f32
    %149 = vector.broadcast %cst_61 : f32 to vector<64x512xf32>
    %150 = arith.maximumf %148, %149 : vector<64x512xf32>
    %151 = arith.truncf %150 : vector<64x512xf32> to vector<64x512xbf16>
    %c0_62 = arith.constant 0 : index
    %c0_63 = arith.constant 0 : index
    %152 = vector.load %arg16[%c0_62, %c0_63] : memref<512x128xbf16, #tpu.memory_space<vmem>>, vector<512x128xbf16>
    %cst_64 = arith.constant dense<0.000000e+00> : vector<64x128xf32>
    %153 = tpu.matmul %151, %152, %cst_64 {dimension_numbers = #tpu.dot_dimension_numbers<[1], [0], [0], [1], [0, 0, 1, 1], [], []>} : vector<64x512xbf16>, vector<512x128xbf16>, vector<64x128xf32> -> vector<64x128xf32>
    %c0_65 = arith.constant 0 : index
    %c0_66 = arith.constant 0 : index
    %154 = vector.load %arg17[%c0_65, %c0_66] : memref<1x128xf32, #tpu.memory_space<vmem>>, vector<1x128xf32>
    %155 = vector.broadcast %154 : vector<1x128xf32> to vector<64x128xf32>
    %156 = arith.addf %153, %155 : vector<64x128xf32>
    %157 = arith.addf %156, %142 : vector<64x128xf32>
    %c0_67 = arith.constant 0 : index
    %c0_68 = arith.constant 0 : index
    %158 = vector.load %arg18[%c0_67, %c0_68] : memref<1x128xf32, #tpu.memory_space<vmem>>, vector<1x128xf32>
    %c0_69 = arith.constant 0 : index
    %c0_70 = arith.constant 0 : index
    %159 = vector.load %arg19[%c0_69, %c0_70] : memref<1x128xf32, #tpu.memory_space<vmem>>, vector<1x128xf32>
    %cst_71 = arith.constant dense<0.000000e+00> : vector<64xf32>
    %160 = vector.multi_reduction <add>, %157, %cst_71 [1] : vector<64x128xf32> to vector<64xf32>
    %161 = vector.shape_cast %160 : vector<64xf32> to vector<64x1xf32>
    %cst_72 = arith.constant 1.280000e+02 : f32
    %162 = vector.broadcast %cst_72 : f32 to vector<64x1xf32>
    %163 = arith.divf %161, %162 : vector<64x1xf32>
    %164 = vector.broadcast %163 : vector<64x1xf32> to vector<64x128xf32>
    %165 = arith.subf %157, %164 : vector<64x128xf32>
    %166 = arith.mulf %165, %165 : vector<64x128xf32>
    %cst_73 = arith.constant dense<0.000000e+00> : vector<64xf32>
    %167 = vector.multi_reduction <add>, %166, %cst_73 [1] : vector<64x128xf32> to vector<64xf32>
    %168 = vector.shape_cast %167 : vector<64xf32> to vector<64x1xf32>
    %cst_74 = arith.constant 1.280000e+02 : f32
    %169 = vector.broadcast %cst_74 : f32 to vector<64x1xf32>
    %170 = arith.divf %168, %169 : vector<64x1xf32>
    %171 = vector.broadcast %163 : vector<64x1xf32> to vector<64x128xf32>
    %172 = arith.subf %157, %171 : vector<64x128xf32>
    %cst_75 = arith.constant 9.99999974E-6 : f32
    %173 = vector.broadcast %cst_75 : f32 to vector<64x1xf32>
    %174 = arith.addf %170, %173 : vector<64x1xf32>
    %175 = math.rsqrt %174 : vector<64x1xf32>
    %176 = vector.broadcast %175 : vector<64x1xf32> to vector<64x128xf32>
    %177 = arith.mulf %172, %176 : vector<64x128xf32>
    %178 = vector.broadcast %158 : vector<1x128xf32> to vector<64x128xf32>
    %179 = arith.mulf %177, %178 : vector<64x128xf32>
    %180 = vector.broadcast %159 : vector<1x128xf32> to vector<64x128xf32>
    %181 = arith.addf %179, %180 : vector<64x128xf32>
    %c0_76 = arith.constant 0 : index
    %c0_77 = arith.constant 0 : index
    %c0_78 = arith.constant 0 : index
    %182 = vector.load %arg20[%c0_76, %c0_77, %c0_78] : memref<1x64x128xf32, #tpu.memory_space<vmem>>, vector<1x64x128xf32>
    %183 = vector.shape_cast %182 : vector<1x64x128xf32> to vector<64x128xf32>
    %184 = vector.shape_cast %181 : vector<64x128xf32> to vector<1x64x128xf32>
    tpu.vector_store %arg20[%c0_76, %c0_77, %c0_78], %184 {strides = array<i32>} : memref<1x64x128xf32, #tpu.memory_space<vmem>>, vector<1x64x128xf32>,
    return
  }
  func.func @transform_0(%arg0: i32, %arg1: i32) -> (i32, i32, i32) {
    %c0_i32 = arith.constant 0 : i32
    %c0_i32_0 = arith.constant 0 : i32
    return %arg0, %arg1, %c0_i32 : i32, i32, i32
  }
  func.func @transform_1(%arg0: i32, %arg1: i32) -> (i32, i32, i32, i32) {
    %c0_i32 = arith.constant 0 : i32
    %c0_i32_0 = arith.constant 0 : i32
    %c0_i32_1 = arith.constant 0 : i32
    return %arg0, %arg1, %c0_i32, %c0_i32_0 : i32, i32, i32, i32
  }
  func.func @transform_2(%arg0: i32, %arg1: i32) -> (i32, i32) {
    %c0_i32 = arith.constant 0 : i32
    %c0_i32_0 = arith.constant 0 : i32
    %c0_i32_1 = arith.constant 0 : i32
    return %c0_i32, %c0_i32_0 : i32, i32
  }
  func.func @transform_3(%arg0: i32, %arg1: i32) -> (i32, i32) {
    %c0_i32 = arith.constant 0 : i32
    %c0_i32_0 = arith.constant 0 : i32
    %c0_i32_1 = arith.constant 0 : i32
    return %c0_i32, %c0_i32_0 : i32, i32
  }
  func.func @transform_4(%arg0: i32, %arg1: i32) -> (i32, i32) {
    %c0_i32 = arith.constant 0 : i32
    %c0_i32_0 = arith.constant 0 : i32
    %c0_i32_1 = arith.constant 0 : i32
    return %c0_i32, %c0_i32_0 : i32, i32
  }
  func.func @transform_5(%arg0: i32, %arg1: i32) -> (i32, i32) {
    %c0_i32 = arith.constant 0 : i32
    %c0_i32_0 = arith.constant 0 : i32
    %c0_i32_1 = arith.constant 0 : i32
    return %c0_i32, %c0_i32_0 : i32, i32
  }
  func.func @transform_6(%arg0: i32, %arg1: i32) -> (i32, i32) {
    %c0_i32 = arith.constant 0 : i32
    %c0_i32_0 = arith.constant 0 : i32
    %c0_i32_1 = arith.constant 0 : i32
    return %c0_i32, %c0_i32_0 : i32, i32
  }
  func.func @transform_7(%arg0: i32, %arg1: i32) -> (i32, i32) {
    %c0_i32 = arith.constant 0 : i32
    %c0_i32_0 = arith.constant 0 : i32
    %c0_i32_1 = arith.constant 0 : i32
    return %c0_i32, %c0_i32_0 : i32, i32
  }
  func.func @transform_8(%arg0: i32, %arg1: i32) -> (i32, i32) {
    %c0_i32 = arith.constant 0 : i32
    %c0_i32_0 = arith.constant 0 : i32
    %c0_i32_1 = arith.constant 0 : i32
    return %c0_i32, %c0_i32_0 : i32, i32
  }
  func.func @transform_9(%arg0: i32, %arg1: i32) -> (i32, i32) {
    %c0_i32 = arith.constant 0 : i32
    %c0_i32_0 = arith.constant 0 : i32
    %c0_i32_1 = arith.constant 0 : i32
    return %c0_i32, %c0_i32_0 : i32, i32
  }
  func.func @transform_10(%arg0: i32, %arg1: i32) -> (i32, i32) {
    %c0_i32 = arith.constant 0 : i32
    %c0_i32_0 = arith.constant 0 : i32
    %c0_i32_1 = arith.constant 0 : i32
    return %c0_i32, %c0_i32_0 : i32, i32
  }
  func.func @transform_11(%arg0: i32, %arg1: i32) -> (i32, i32) {
    %c0_i32 = arith.constant 0 : i32
    %c0_i32_0 = arith.constant 0 : i32
    %c0_i32_1 = arith.constant 0 : i32
    return %c0_i32, %c0_i32_0 : i32, i32
  }
  func.func @transform_12(%arg0: i32, %arg1: i32) -> (i32, i32) {
    %c0_i32 = arith.constant 0 : i32
    %c0_i32_0 = arith.constant 0 : i32
    %c0_i32_1 = arith.constant 0 : i32
    return %c0_i32, %c0_i32_0 : i32, i32
  }
  func.func @transform_13(%arg0: i32, %arg1: i32) -> (i32, i32) {
    %c0_i32 = arith.constant 0 : i32
    %c0_i32_0 = arith.constant 0 : i32
    %c0_i32_1 = arith.constant 0 : i32
    return %c0_i32, %c0_i32_0 : i32, i32
  }
  func.func @transform_14(%arg0: i32, %arg1: i32) -> (i32, i32) {
    %c0_i32 = arith.constant 0 : i32
    %c0_i32_0 = arith.constant 0 : i32
    %c0_i32_1 = arith.constant 0 : i32
    return %c0_i32, %c0_i32_0 : i32, i32
  }
  func.func @transform_15(%arg0: i32, %arg1: i32) -> (i32, i32) {
    %c0_i32 = arith.constant 0 : i32
    %c0_i32_0 = arith.constant 0 : i32
    %c0_i32_1 = arith.constant 0 : i32
    return %c0_i32, %c0_i32_0 : i32, i32
  }
  func.func @transform_16(%arg0: i32, %arg1: i32) -> (i32, i32) {
    %c0_i32 = arith.constant 0 : i32
    %c0_i32_0 = arith.constant 0 : i32
    %c0_i32_1 = arith.constant 0 : i32
    return %c0_i32, %c0_i32_0 : i32, i32
  }
  func.func @transform_17(%arg0: i32, %arg1: i32) -> (i32, i32) {
    %c0_i32 = arith.constant 0 : i32
    %c0_i32_0 = arith.constant 0 : i32
    %c0_i32_1 = arith.constant 0 : i32
    return %c0_i32, %c0_i32_0 : i32, i32
  }
  func.func @transform_18(%arg0: i32, %arg1: i32) -> (i32, i32, i32) {
    %c0_i32 = arith.constant 0 : i32
    %c0_i32_0 = arith.constant 0 : i32
    return %arg0, %arg1, %c0_i32 : i32, i32, i32
  }
}

</mosaic_0001>

<bundles_post_ra>
// kernel: tpu_custom_call.1
= control target key start
LH: loop header
LB: loop body
LE: loop exit
PB: predicated region body
PF: predicated region fallthrough
CT: control target
= control target key end

     0   :  { %s9968_s0 = inlined_call_operand.hbm [shape: f32[2,64,128], index: 0, kind: input, shape index: {}]   ;;  %s9969_s1 = inlined_call_operand.hbm [shape: f32[2,8,1,8], index: 1, kind: input, shape index: {}]   ;;  %s9970_s2 = inlined_call_operand.hbm [shape: bf16[128,128], index: 2, kind: input, shape index: {}]   ;;  %s9971_s3 = inlined_call_operand.vmem [shape: f32[1,128], index: 3, kind: input, shape index: {}]   ;;  %s9972_s4 = inlined_call_operand.hbm [shape: bf16[128,128], index: 4, kind: input, shape index: {}]   ;;  %s9973_s5 = inlined_call_operand.vmem [shape: f32[1,128], index: 5, kind: input, shape index: {}]   ;;  %s9974_s6 = inlined_call_operand.hbm [shape: bf16[128,128], index: 6, kind: input, shape index: {}]   ;;  %s9975_s7 = inlined_call_operand.vmem [shape: f32[1,128], index: 7, kind: input, shape index: {}]   ;;  %s9976_s8 = inlined_call_operand.hbm [shape: bf16[128,128], index: 8, kind: input, shape index: {}]   ;;  %s9977_s9 = inlined_call_operand.vmem [shape: f32[1,128], index: 9, kind: input, shape index: {}]   ;;  %s9978_s10 = inlined_call_operand.vmem [shape: f32[1,128], index: 10, kind: input, shape index: {}]   ;;  %s9979_s11 = inlined_call_operand.vmem [shape: f32[1,128], index: 11, kind: input, shape index: {}]   ;;  %s9980_s12 = inlined_call_operand.hbm [shape: bf16[128,512], index: 12, kind: input, shape index: {}]   ;;  %s9981_s13 = inlined_call_operand.vmem [shape: f32[1,512], index: 13, kind: input, shape index: {}]   ;;  %s9982_s14 = inlined_call_operand.hbm [shape: bf16[512,128], index: 14, kind: input, shape index: {}]   ;;  %s9983_s15 = inlined_call_operand.vmem [shape: f32[1,128], index: 15, kind: input, shape index: {}]   ;;  %s9984_s16 = inlined_call_operand.vmem [shape: f32[1,128], index: 16, kind: input, shape index: {}]   ;;  %s9985_s17 = inlined_call_operand.vmem [shape: f32[1,128], index: 17, kind: input, shape index: {}]   ;;  %s9986_s18 = inlined_call_operand.hbm [shape: f32[2,64,128], index: 18, kind: output, shape index: {}]  }
   0x1   :  { %10002 = sst [smem:[#allocation40_spill]] %s9968_s0 }
   0x2   :  { %10003 = sst [smem:[#allocation41_spill]] %s9969_s1 }
   0x3   :  { %10004 = sst [smem:[#allocation42_spill]] %s9970_s2 }
   0x4   :  { %10005 = sst [smem:[#allocation43_spill]] %s9972_s4 }
   0x5   :  { %10006 = sst [smem:[#allocation44_spill]] %s9974_s6 }
   0x6   :  { %10007 = sst [smem:[#allocation45_spill]] %s9976_s8 }
   0x7   :  { %10008 = sst [smem:[#allocation46_spill]] %s9979_s11 }
   0x8   :  { %10009 = sst [smem:[#allocation47_spill]] %s9980_s12 }
   0x9   :  { %10010 = sst [smem:[#allocation48_spill]] %s9981_s13 }
   0xa   :  { %10011 = sst [smem:[#allocation49_spill]] %s9982_s14 }
   0xb   :  { %10012 = sst [smem:[#allocation50_spill]] %s9983_s15 }
   0xc   :  { %10013 = sst [smem:[#allocation51_spill]] %s9984_s16 }
   0xd   :  { %10014 = sst [smem:[#allocation52_spill]] %s9985_s17 }
   0xe   :  { %10015 = sst [smem:[#allocation53_spill]] %s9986_s18 }
   0xf   :  { %23 = vsyncpa [#allocation3], 0 }
  0x10   :  { %25 = vsyncpa [#allocation3 + $0x1], 0 }
  0x11   :  { %26 = vsyncpa [#allocation6], 0 }
  0x12   :  { %28 = vsyncpa [#allocation6 + $0x1], 0 }
  0x13   :  { %29 = vsyncpa [#allocation9], 0 }
  0x14   :  { %30 = vsyncpa [#allocation12], 0 }
  0x15   :  { %31 = vsyncpa [#allocation15], 0 }
  0x16   :  { %32 = vsyncpa [#allocation4], 0 }
  0x17   :  { %34 = vsyncpa [#allocation4 + $0x1], 0  ;;  %s8264_s27 = smov 0   ;;  %s8266_s28 = smov 0  }
  0x18   :  { %s8268_s29 = smov 0   ;;  %s8270_s30 = smov 0  }
  0x19   :  { %s8272_s0 = smov 0   ;;  %s8274_s19 = smov 0  }
  0x1a LB: > { %10016 = sst [smem:[#allocation24_spill]] %s8123_s27  ;;  %s8295_s1 = sadd.s32 4294967295, %s8143_s19   ;;  %s8143_s19 = sphi %s8274_s19, %s40_s19   ;;  %s8139_s0 = sphi %s8272_s0, %s10097_s0   ;;  %s8135_s30 = sphi %s8270_s30, %s10096_s30   ;;  %s8131_s29 = sphi %s8268_s29, %s10092_s29   ;;  %s8127_s28 = sphi %s8266_s28, %s10095_s28   ;;  %s8123_s27 = sphi %s8264_s27, %s10094_s27  }
  0x1b   : > { %10017 = sst [smem:[#allocation25_spill]] %s8131_s29  ;;  %p6347_p0 = scmp.ge.s32.totalorder %s8143_s19, 1 }
  0x1c   : > { %10018 = sst [smem:[#allocation26_spill]] %s8135_s30  ;;  %p75_p1 = scmp.eq.s32.totalorder %s8295_s1, 0 }
  0x1d   : > { %p477_p2 = scmp.lt.s32.totalorder %s8143_s19, 3  ;;  %s8145_s21 = smov [#allocation7]  }
  0x1e   : > { %s489_s22 = sshll.u32 %s8145_s21, 4  ;;  %s8146_s23 = smov [#allocation8]   ;;  %s490_s22 = int_to_ptr.vmem [resolvable:$true] %s489_s22 }
  0x1f   : > { %p8300_p3 = pnand %p6347_p0, %p477_p2  ;;  %s505_s24 = sshll.u32 %s8146_s23, 4  ;;  %s506_s24 = int_to_ptr.vmem [resolvable:$true] %s505_s24 }
  0x20   : > { %s8147_s25 = smov [#allocation11]   ;;  %s7842_s21 = scalar_lea.vmem %s490_s22, 1024 }
  0x21   : > { %p7378_p4 = pneg %p8300_p3  ;;  %s537_s26 = sshll.u32 %s8147_s25, 4  ;;  %s538_s26 = int_to_ptr.vmem [resolvable:$true] %s537_s26 }
  0x22   : > { %p7843_p8 = scmp.ne.s32.totalorder %s490_s22, %s7842_s21  ;;  %p7850_p11 = scmp.lt.s32.totalorder %s490_s22, %s490_s22 }
  0x23   : > { %p8309_p6 = pnand %p7378_p4, %p75_p1  ;;  %p7851_p12 = scmp.lt.s32.totalorder %s7842_s21, %s7842_s21 }
  0x25   : > { %p8315_p7 = pneg %p8309_p6  ;;  %p7852_p13 = por %p7851_p12, %p7850_p11 }
  0x27   : > { %p7845_p9 = pnand %p7843_p8, %p8315_p7 }
  0x29   : > { %p7846_p10 = pneg %p7845_p9 }
  0x2b   : > { %p7853_p0 = pnand %p7852_p13, %p7846_p10 }
  0x2d   : > { %7856 = shalt.err (!%p7853_p0)
}
  0x2e   : > { %s8148_s23 = smov 64   ;;  %s8149_s25 = smov 4  }
  0x2f   : > { %s10022_s16 = sld [smem:[#allocation42_spill]]  ;;  %s7868_s15 = scalar_lea.vmem %s506_s24, 1024 }
  0x30   : > { %p7869_p2 = scmp.ne.s32.totalorder %s506_s24, %s7868_s15  ;;  %p7876_p9 = scmp.lt.s32.totalorder %s506_s24, %s506_s24 }
  0x31   : > { %p7877_p10 = scmp.lt.s32.totalorder %s7868_s15, %s7868_s15 }
  0x32   : > { %p7871_p4 = pnand %p7869_p2, %p8315_p7 }
  0x33   : > { %p7878_p11 = por %p7877_p10, %p7876_p9 }
  0x34   : > { %p7872_p8 = pneg %p7871_p4 }
  0x35   : > { %7381 = dma.hbm_to_vmem [thread:$0]  (!%p8309_p6), %s10022_s16, 1024, %s490_s22, [#allocation6], %s8148_s23, %s8148_s23, %s8149_s25  }
  0x36   : > { %p7879_p12 = pnand %p7878_p11, %p7872_p8 }
  0x38   : > { %7882 = shalt.err (!%p7879_p12)
}
  0x39   : > { %s10023_s4 = sld [smem:[#allocation43_spill]]  ;;  %s7894_s16 = scalar_lea.vmem %s538_s26, 1024 }
  0x3a   : > { %p7895_p13 = scmp.ne.s32.totalorder %s538_s26, %s7894_s16  ;;  %p7902_p4 = scmp.lt.s32.totalorder %s538_s26, %s538_s26 }
  0x3b   : > { %p7903_p9 = scmp.lt.s32.totalorder %s7894_s16, %s7894_s16 }
  0x3c   : > { %p7897_p0 = pnand %p7895_p13, %p8315_p7 }
  0x3d   : > { %p7904_p8 = por %p7903_p9, %p7902_p4 }
  0x3e   : > { %p7898_p2 = pneg %p7897_p0 }
  0x3f   : > { %7384 = dma.hbm_to_vmem [thread:$0]  (!%p8309_p6), %s10023_s4, 1024, %s506_s24, [#allocation9], %s8148_s23, %s8148_s23, %s8149_s25  }
  0x40   : > { %p7905_p10 = pnand %p7904_p8, %p7898_p2 }
  0x42   : > { %7908 = shalt.err (!%p7905_p10)
}
  0x43   : > { %s10024_s8 = sld [smem:[#allocation45_spill]]  ;;  %s8150_s17 = smov [#allocation10]  }
  0x44   : > { %s521_s30 = sshll.u32 %s8150_s17, 4  ;;  %s8151_s22 = smov [#allocation13]   ;;  %s522_s30 = int_to_ptr.vmem [resolvable:$true] %s521_s30 }
  0x45   : > { %s559_s24 = sshll.u32 %s8151_s22, 4  ;;  %s7920_s21 = scalar_lea.vmem %s522_s30, 1024  ;;  %s560_s24 = int_to_ptr.vmem [resolvable:$true] %s559_s24 }
  0x46   : > { %p7921_p11 = scmp.ne.s32.totalorder %s522_s30, %s7920_s21  ;;  %p7928_p0 = scmp.lt.s32.totalorder %s522_s30, %s522_s30 }
  0x47   : > { %p7929_p2 = scmp.lt.s32.totalorder %s7920_s21, %s7920_s21 }
  0x48   : > { %p7923_p12 = pnand %p7921_p11, %p8315_p7 }
  0x49   : > { %7390 = dma.hbm_to_vmem [thread:$0]  (!%p8309_p6), %s10024_s8, 1024, %s538_s26, [#allocation12], %s8148_s23, %s8148_s23, %s8149_s25  }
  0x4a   : > { %p7924_p13 = pneg %p7923_p12  ;;  %p7930_p4 = por %p7929_p2, %p7928_p0 }
  0x4c   : > { %p7931_p9 = pnand %p7930_p4, %p7924_p13 }
  0x4e   : > { %7934 = shalt.err (!%p7931_p9)
}
  0x4f   : > { %s10025_s6 = sld [smem:[#allocation44_spill]]  ;;  %s7946_s15 = scalar_lea.vmem %s560_s24, 4096 }
  0x50   : > { %p7947_p8 = scmp.ne.s32.totalorder %s560_s24, %s7946_s15  ;;  %p7954_p12 = scmp.lt.s32.totalorder %s560_s24, %s560_s24 }
  0x51   : > { %p7955_p0 = scmp.lt.s32.totalorder %s7946_s15, %s7946_s15 }
  0x52   : > { %p7949_p10 = pnand %p7947_p8, %p8315_p7 }
  0x53   : > { %p7956_p13 = por %p7955_p0, %p7954_p12 }
  0x54   : > { %p7950_p11 = pneg %p7949_p10 }
  0x55   : > { %7387 = dma.hbm_to_vmem [thread:$0]  (!%p8309_p6), %s10025_s6, 1024, %s522_s30, [#allocation9], %s8148_s23, %s8148_s23, %s8149_s25  }
  0x56   : > { %p7957_p2 = pnand %p7956_p13, %p7950_p11 }
  0x58   : > { %7960 = shalt.err (!%p7957_p2)
}
  0x59   : > { %s8152_s13 = smov 256   ;;  %s9988_s17 = smov 16  }
  0x5a   : > { %s10026_s12 = sld [smem:[#allocation47_spill]]  ;;  %s8154_s30 = smov [#allocation14]  }
  0x5b   : > { %s575_s26 = sshll.u32 %s8154_s30, 4  ;;  %s576_s26 = int_to_ptr.vmem [resolvable:$true] %s575_s26 }
  0x5c   : > { %s7972_s16 = scalar_lea.vmem %s576_s26, 4096  ;;  %p7980_p10 = scmp.lt.s32.totalorder %s576_s26, %s576_s26 }
  0x5d   : > { %p7973_p4 = scmp.ne.s32.totalorder %s576_s26, %s7972_s16  ;;  %p7981_p11 = scmp.lt.s32.totalorder %s7972_s16, %s7972_s16 }
  0x5f   : > { %p7975_p9 = pnand %p7973_p4, %p8315_p7  ;;  %p7982_p12 = por %p7981_p11, %p7980_p10 }
  0x60   : > { %7393 = dma.hbm_to_vmem [thread:$0]  (!%p8309_p6), %s10026_s12, 4096, %s560_s24, [#allocation12], %s8152_s13, %s8152_s13, %s9988_s17  }
  0x61   : > { %p7976_p8 = pneg %p7975_p9 }
  0x63   : > { %p7983_p0 = pnand %p7982_p12, %p7976_p8 }
  0x65   : > { %7986 = shalt.err (!%p7983_p0)
}
  0x66   : > { %s10027_s14 = sld [smem:[#allocation49_spill]]  ;;  %s6346_s18 = sadd.s32 4294967294, %s8143_s19  }
  0x67   : > { %s52_s2 = sadd.s32 1, %s8139_s0  ;;  %s61_s13 = sadd.s32 1, %s8131_s29 }
  0x68   : > { %p54_p7 = scmp.ge.s32.totalorder %s52_s2, 2  ;;  %p68_p13 = scmp.ne.s32.totalorder %s8131_s29, %s8127_s28 }
  0x69   : > { %p69_p2 = scmp.eq.s32.totalorder %s8143_s19, 0  ;;  %p74_p9 = scmp.ne.s32.totalorder %s8127_s28, %s8123_s27 }
  0x6a   : > { %s10099_s2 = smov (%p54_p7, %s52_s2), 0  ;;  %p470_p12 = scmp.eq.s32.totalorder %s6346_s18, 1 }
  0x6b   : > { %10028 = sst [smem:[#allocation27_spill]] %s10099_s2  ;;  %p8385_p4 = por %p69_p2, %p68_p13 }
  0x6c   : > { %7396 = dma.hbm_to_vmem [thread:$0]  (!%p8309_p6), %s10027_s14, 4096, %s576_s26, [#allocation15], %s8148_s23, %s8148_s23, %s8149_s25  }
  0x6d   : > { %s56_s23 = ssub.s32 %s8139_s0, %s10099_s2  ;;  %p464_p6 = scmp.eq.s32.totalorder %s8295_s1, 1 }
  0x6e   : > { %p59_p8 = scmp.eq.s32.totalorder %s56_s23, 0  ;;  %p8396_p10 = por %p75_p1, %p74_p9 }
  0x6f   : > { %p8400_p11 = por %p464_p6, %p68_p13  ;;  %p8407_p0 = por %p470_p12, %p74_p9 }
  0x70   : > { %s8405_s30 = scalar_select %p59_p8, %s8131_s29, %s61_s13  }
  0x71   : > { %s10031_s21 = scalar_select %p8400_p11, 1, 0 }
  0x72   : > { %10033 = sst [smem:[#allocation29_spill]] %s8405_s30  ;;  %p7414_p7 = scmp.lt.s32.totalorder %s8143_s19, 2 }
  0x73   : > { %10032 = sst [smem:[#allocation28_spill]] %s10031_s21  ;;  %s8413_s16 = sand.u32 1, %s8131_s29  }
  0x74   : > { %s10034_s26 = scalar_select %p8407_p0, 1, 0 }
  0x75   : > { %s6569_s15 = sshll.u32 %s8139_s0, 10  ;;  %s6355_s24 = sshll.u32 %s8413_s16, 6 }
  0x76   : > { %10035 = sst [smem:[#allocation30_spill]] %s10034_s26  ;;  %s602_s8 = scalar_lea.vmem [#allocation2], %s6355_s24 }
  0x77   : > { %s10036_s4 = sld [smem:[#allocation40_spill]]  ;;  %s611_s12 = sshll.u32 %s602_s8, 4  ;;  %s612_s12 = int_to_ptr.vmem [resolvable:$true] %s611_s12 }
  0x78   : > { %p8422_p13 = pnand %p7414_p7, %p8385_p4  ;;  %s599_s13 = scalar_lea.sflag [#allocation3], %s8413_s16 }
  0x79   : > { %s8000_s14 = scalar_lea.vmem %s612_s12, 1024 }
  0x7a   : > { %p7989_p2 = pneg %p8422_p13  ;;  %p8001_p9 = scmp.ne.s32.totalorder %s612_s12, %s8000_s14 }
  0x7c   : > { %p8003_p6 = pnand %p8001_p9, %p7989_p2 }
  0x7d   : > { %s610_s6 = scalar_lea.hbm %s10036_s4, %s6569_s15  ;;  %s8155_s4 = smov [#allocation2]  }
  0x7e   : > { %p8004_p8 = pneg %p8003_p6  ;;  %s8005_s17 = sshll.u32 %s8155_s4, 4  ;;  %s8006_s17 = int_to_ptr.vmem [resolvable:$false] %s8005_s17 }
  0x7f   : > { %s8007_s8 = scalar_lea.vmem %s8006_s17, 2048  ;;  %p8008_p4 = scmp.lt.s32.totalorder %s612_s12, %s8006_s17 }
  0x80   : > { %p8009_p12 = scmp.lt.s32.totalorder %s8007_s8, %s8000_s14 }
  0x82   : > { %p8010_p7 = por %p8009_p12, %p8008_p4 }
  0x84   : > { %p8011_p5 = pnand %p8010_p7, %p8004_p8 }
  0x86   : > { %8014 = shalt.err (!%p8011_p5)
}
  0x87   : > { %s8156_s22 = smov 128   ;;  %s8157_s15 = smov 8  }
  0x88   : > { %7400 = dma.hbm_to_vmem [thread:$0]  (!%p8422_p13), %s610_s6, 1024, %s612_s12, %s599_s13, %s8156_s22, %s8156_s22, %s8157_s15  }
  0x89   : > { %s621_s24 = sand.u32 1, %s8143_s19   ;;  %s6358_s23 = sshll.u32 %s8413_s16, 3 }
  0x8a   : > { %s6570_s2 = sshll.u32 %s8139_s0, 7  ;;  %s625_s4 = scalar_lea.vmem [#allocation5], %s6358_s23 }
  0x8b   : > { %s634_s30 = sshll.u32 %s625_s4, 4  ;;  %s10038_s14 = sld [smem:[#allocation41_spill]]  ;;  %s635_s30 = int_to_ptr.vmem [resolvable:$true] %s634_s30 }
  0x8c   : > { %s622_s26 = scalar_lea.sflag [#allocation6], %s621_s24  ;;  %s8028_s27 = scalar_lea.vmem %s635_s30, 128 }
  0x8d   : > { %p8029_p5 = scmp.ne.s32.totalorder %s635_s30, %s8028_s27  ;;  %s8158_s21 = smov [#allocation5]  }
  0x8e   : > { %s8033_s11 = sshll.u32 %s8158_s21, 4  ;;  %s8034_s11 = int_to_ptr.vmem [resolvable:$false] %s8033_s11 }
  0x8f   : > { %p8031_p9 = pnand %p8029_p5, %p7989_p2  ;;  %s8035_s6 = scalar_lea.vmem %s8034_s11, 256 }
  0x90   : > { %p8036_p8 = scmp.lt.s32.totalorder %s635_s30, %s8034_s11  ;;  %p8037_p4 = scmp.lt.s32.totalorder %s8035_s6, %s8028_s27 }
  0x91   : > { %s633_s8 = scalar_lea.hbm %s10038_s14, %s6570_s2  ;;  %p8032_p6 = pneg %p8031_p9 }
  0x92   : > { %p8038_p12 = por %p8037_p4, %p8036_p8 }
  0x94   : > { %p8039_p7 = pnand %p8038_p12, %p8032_p6 }
  0x96   : > { %8042 = shalt.err (!%p8039_p7)
}
  0x97   : > { %s8159_s12 = smov 1   ;;  %s10039_s29 = smov 16  }
  0x98   : > { %7403 = dma.hbm_to_vmem [thread:$0]  (!%p8422_p13), %s633_s8, 128, %s635_s30, %s622_s26, %s10039_s29, %s10039_s29, %s8159_s12  }
  0x99   : > { %646 = sbr.rel (%p8300_p3) target bundleno = 4469 (0x1175), region = 92 }
  0x9e   : > { %s8450_s2 = sand.u32 1, %s8127_s28  }
  0x9f   : > { %s6362_s11 = sshll.u32 %s8450_s2, 6  ;;  %s649_s27 = scalar_lea.sflag [#allocation3], %s8450_s2 }
  0xa0   : > { %s8456_s21 = scalar_lea.vmem [#allocation2], %s6362_s11 }
  0xa1   : > { %8094 = dma.done.wait (%p8396_p10), %s649_s27, 1024  }
  0xa2   : > { %8096 = vsyncadd (%p8396_p10), %s649_s27, 4294966272  ;;  %s657_s20 = sand.u32 1, %s8295_s1   ;;  %s6363_s30 = sshll.u32 %s8450_s2, 3 }
  0xa3   : > { %s658_s26 = scalar_lea.sflag [#allocation6], %s657_s20  ;;  %s8464_s16 = scalar_lea.vmem [#allocation5], %s6363_s30 }
  0xa4   : > { %8098 = dma.done.wait (%p8396_p10), %s658_s26, 128  }
  0xa5   : > { %8100 = vsyncadd (%p8396_p10), %s658_s26, 4294967168 }
  0xa6   : > { %8102 = dma.done.wait (%p75_p1), [#allocation6], 1024  }
  0xa7   : > { %8104 = vsyncadd (%p75_p1), [#allocation6], 4294966272 }
  0xa8   : > { %8106 = dma.done.wait (%p75_p1), [#allocation9], 2048  }
  0xa9   : > { %8108 = vsyncadd (%p75_p1), [#allocation9], 4294965248 }
  0xaa   : > { %8110 = dma.done.wait (%p75_p1), [#allocation12], 5120  }
  0xab   : > { %8112 = vsyncadd (%p75_p1), [#allocation12], 4294962176 }
  0xac   : > { %8114 = dma.done.wait (%p75_p1), [#allocation15], 4096  }
  0xad   : > { %8116 = vsyncadd (%p75_p1), [#allocation15], 4294963200  ;;  %v7551_v0 = vld [vmem:[#allocation8 + $0x38] sm:$0xff]   ;;  %v7552_v1 = vld [vmem:[#allocation8 + $0x30] sm:$0xff]   ;;  %v9997_v36 = vmov 0.0   ;;  %vm8161_vm0 = vmmov 0  }
  0xae   : > { %6876 = vmatprep.subr.bf16.mxu1 %v7551_v0  ;;  %v7553_v2 = vld [vmem:[#allocation7 + $0x38] sm:$0xff]   ;;  %v7554_v3 = vld [vmem:[#allocation8 + $0x28] sm:$0xff]   ;;  %v7555_v4 = vld [vmem:[#allocation7 + $0x30] sm:$0xff]   ;;  %vm1324_vm1 = vcmask 261120   ;;  %vm1801_vm2 = vcmask 1043456   ;;  %vm1701_vm9 = vcmask 64512  }
  0xaf   : > { %6877 = vmatpush3.bf16.msra.mxu1 %v7551_v0  ;;  %6852 = vmatprep.subr.bf16.mxu0 %v7553_v2  ;;  %v7557_v5 = vld [vmem:[#allocation7 + $0x28] sm:$0xff]   ;;  %v7556_v6 = vld [vmem:[#allocation8 + $0x20] sm:$0xff]   ;;  %v7558_v8 = vld [vmem:[#allocation8 + $0x18] sm:$0xff]   ;;  %s8163_s24 = smov 96   ;;  %s8164_s23 = smov 64  }
  0xb0   : > { %6878 = vmatprep.subr.bf16.mxu1 %v7552_v1  ;;  %6853 = vmatpush3.bf16.msra.mxu0 %v7553_v2  ;;  %v7559_v7 = vld [vmem:[#allocation7 + $0x20] sm:$0xff]   ;;  %v7561_v9 = vld [vmem:[#allocation7 + $0x18] sm:$0xff]   ;;  %v747_v10 = vld [vmem:[%s8456_s21] sm:$0xff]  ;;  %s8165_s4 = smov 32   ;;  %s10078_s27 = sld [smem:[#allocation46_spill]] }
  0xb1   : > { %6854 = vmatprep.subr.bf16.mxu0 %v7555_v4  ;;  %v748_v11 = vld [vmem:[%s8456_s21 + $0x8] sm:$0xff]  ;;  %v7560_v12 = vld [vmem:[#allocation8 + $0x10] sm:$0xff]   ;;  %v7562_v15 = vld [vmem:[#allocation8 + $0x8] sm:$0xff]   ;;  %s10080_s30 = sld [smem:[#allocation48_spill]]  ;;  %s8166_s20 = smov [#allocation16]  }
  0xb2   : > { %v755_v13 = vpack.c.bf16 %v748_v11, %v747_v10  ;;  %v7563_v14 = vld [vmem:[#allocation7 + $0x10] sm:$0xff]   ;;  %v7565_v16 = vld [vmem:[#allocation7 + $0x8] sm:$0xff]   ;;  %v7564_v17 = vld [vmem:[#allocation8] sm:$0xff]   ;;  %s10082_s1 = sld [smem:[#allocation50_spill]] }
  0xb3   : > { %6879 = vmatpush3.bf16.msra.mxu1 %v7552_v1  ;;  %v749_v18 = vld [vmem:[%s8456_s21 + $0x10] sm:$0xff]  ;;  %v750_v19 = vld [vmem:[%s8456_s21 + $0x18] sm:$0xff]  ;;  %v751_v21 = vld [vmem:[%s8456_s21 + $0x20] sm:$0xff]  ;;  %s10083_s13 = sld [smem:[#allocation51_spill]] }
  0xb4   : > { %6880 = vmatprep.subr.bf16.mxu1 %v7554_v3  ;;  %6855 = vmatpush3.bf16.msra.mxu0 %v7555_v4  ;;  %v7566_v20 = vld [vmem:[#allocation7] sm:$0xff]   ;;  %v752_v22 = vld [vmem:[%s8456_s21 + $0x28] sm:$0xff]  ;;  %v756_v24 = vpack.c.bf16 %v750_v19, %v749_v18  ;;  %v7568_v26 = vld [vmem:[#allocation10 + $0x30] sm:$0xff]   ;;  %s10087_s12 = sld [smem:[#allocation53_spill]] }
  0xb5   : > { %6856 = vmatprep.subr.bf16.mxu0 %v7557_v5  ;;  %6892 = vmatprep.mubr.bf16.mxu1 %v755_v13  ;;  %v7567_v23 = vld [vmem:[#allocation10 + $0x38] sm:$0xff]   ;;  %v757_v25 = vpack.c.bf16 %v752_v22, %v751_v21  ;;  %v753_v27 = vld [vmem:[%s8456_s21 + $0x30] sm:$0xff]  ;;  %v754_v28 = vld [vmem:[%s8456_s21 + $0x38] sm:$0xff] }
  0xb6   : > { %6868 = vmatprep.mubr.bf16.mxu0 %v755_v13  ;;  %v7569_v29 = vld [vmem:[#allocation10 + $0x28] sm:$0xff]   ;;  %v758_v30 = vpack.c.bf16 %v754_v28, %v753_v27  ;;  %v7570_v31 = vld [vmem:[#allocation10 + $0x20] sm:$0xff]   ;;  %v7571_v32 = vld [vmem:[#allocation10 + $0x18] sm:$0xff]  }
  0xb7   : > { %6881 = vmatpush3.bf16.msra.mxu1 %v7554_v3  ;;  %v7572_v33 = vld [vmem:[#allocation10 + $0x10] sm:$0xff]   ;;  %v7573_v34 = vld [vmem:[#allocation10 + $0x8] sm:$0xff]   ;;  %v7574_v35 = vld [vmem:[#allocation10] sm:$0xff]  }
  0xb8   : > { %6882 = vmatprep.subr.bf16.mxu1 %v7556_v6  ;;  %6857 = vmatpush3.bf16.msra.mxu0 %v7557_v5  ;;  %v8503_v38 = vld [vmem:[%s9973_s5] ss:$0 sm:$0xff] }
  0xb9   : > { %6858 = vmatprep.subr.bf16.mxu0 %v7559_v7  ;;  %v8509_v42 = vld [vmem:[%s9971_s3] ss:$0 sm:$0xff] }
  0xbb   : > { %6883 = vmatpush3.bf16.msra.mxu1 %v7556_v6 }
  0xbc   : > { %6884 = vmatprep.subr.bf16.mxu1 %v7558_v8  ;;  %6859 = vmatpush3.bf16.msra.mxu0 %v7559_v7 }
  0xbd   : > { %6860 = vmatprep.subr.bf16.mxu0 %v7561_v9 }
  0xbf   : > { %6885 = vmatpush3.bf16.msra.mxu1 %v7558_v8 }
  0xc0   : > { %6886 = vmatprep.subr.bf16.mxu1 %v7560_v12  ;;  %6861 = vmatpush3.bf16.msra.mxu0 %v7561_v9 }
  0xc1   : > { %6862 = vmatprep.subr.bf16.mxu0 %v7563_v14 }
  0xc3   : > { %6887 = vmatpush3.bf16.msra.mxu1 %v7560_v12 }
  0xc4   : > { %6888 = vmatprep.subr.bf16.mxu1 %v7562_v15  ;;  %6863 = vmatpush3.bf16.msra.mxu0 %v7563_v14 }
  0xc5   : > { %6864 = vmatprep.subr.bf16.mxu0 %v7565_v16 }
  0xc7   : > { %6889 = vmatpush3.bf16.msra.mxu1 %v7562_v15 }
  0xc8   : > { %6890 = vmatprep.subr.bf16.mxu1 %v7564_v17  ;;  %6865 = vmatpush3.bf16.msra.mxu0 %v7565_v16 }
  0xc9   : > { %6866 = vmatprep.subr.bf16.mxu0 %v7566_v20 }
  0xcb   : > { %6891 = vmatpush3.bf16.msra.mxu1 %v7564_v17 }
  0xcc   : > { %6867 = vmatpush3.bf16.msra.mxu0 %v7566_v20  ;;  %6924 = vmatprep.subr.bf16.mxu1 %v9997_v36 }
  0xcd   : > { %6900 = vmatprep.subr.bf16.mxu0 %v7567_v23 }
  0xce   : > { %6893 = vmatmul.mubr.bf16.vlgmr.msra.gmra.mxu1 %v756_v24 }
  0xcf   : > { %6896 = vmatprep.mubr.bf16.mxu1 %v757_v25  ;;  %6869 = vmatmul.mubr.bf16.vlgmr.msra.gmra.mxu0 %v756_v24 }
  0xd0   : > { %6872 = vmatprep.mubr.bf16.mxu0 %v757_v25  ;;  %6901 = vmatpush3.bf16.msra.mxu0 %v7567_v23 }
  0xd1   : > { %6902 = vmatprep.subr.bf16.mxu0 %v7568_v26 }
  0xd4   : > { %6903 = vmatpush3.bf16.msra.mxu0 %v7568_v26 }
  0xd5   : > { %6904 = vmatprep.subr.bf16.mxu0 %v7569_v29 }
  0xd6   : > { %6897 = vmatmul.mubr.bf16.gmra.mxu1 %v758_v30 }
  0xd7   : > { %6873 = vmatmul.mubr.bf16.gmra.mxu0 %v758_v30  ;;  %6926 = vmatprep.mubr.msk.bf16.mxu1 %vm8161_vm0, %v9997_v36 }
  0xd8   : > { %6905 = vmatpush3.bf16.msra.mxu0 %v7569_v29  ;;  %6916 = vmatprep.mubr.bf16.mxu0 %v755_v13 }
  0xd9   : > { %6906 = vmatprep.subr.bf16.mxu0 %v7570_v31 }
  0xdc   : > { %6907 = vmatpush3.bf16.msra.mxu0 %v7570_v31 }
  0xdd   : > { %6908 = vmatprep.subr.bf16.mxu0 %v7571_v32 }
  0xe0   : > { %6909 = vmatpush3.bf16.msra.mxu0 %v7571_v32 }
  0xe1   : > { %6910 = vmatprep.subr.bf16.mxu0 %v7572_v33 }
  0xe4   : > { %6911 = vmatpush3.bf16.msra.mxu0 %v7572_v33 }
  0xe5   : > { %6912 = vmatprep.subr.bf16.mxu0 %v7573_v34 }
  0xe8   : > { %6913 = vmatpush3.bf16.msra.mxu0 %v7573_v34 }
  0xe9   : > { %6914 = vmatprep.subr.bf16.mxu0 %v7574_v35 }
  0xec   : > { %6915 = vmatpush3.bf16.msra.mxu0 %v7574_v35 }
  0xed   : > { %6948 = vmatprep.subr.bf16.mxu0 %v9997_v36 }
  0xef   : > { %6917 = vmatmul.mubr.bf16.vlgmr.msra.gmra.mxu0 %v756_v24 }
  0xf0   : > { %6920 = vmatprep.mubr.bf16.mxu0 %v757_v25 }
  0xf7   : > { %6921 = vmatmul.mubr.bf16.gmra.mxu0 %v758_v30 }
  0xf8   : > { %6950 = vmatprep.mubr.msk.bf16.mxu0 %vm8161_vm0, %v9997_v36 }
 0x18e   : > { %v6894_v37 = vpop.f32.mrf.mxu1 }
 0x18f   : > { %v6870_v40 = vpop.f32.mrf.mxu0  ;;  %v1017_v2 = vadd.f32 %v6894_v37, %v8503_v38 }
 0x190   : > { %v1008_v39 = vpop.f32.mrf.mxu1  ;;  %v873_v10 = vadd.f32 %v6870_v40, %v8509_v42  ;;  %v8617_v40 = vld [vmem:[%s9975_s7] ss:$0 sm:$0xff] }
 0x191   : > { %v1009_v41 = vadd.f32 %v8503_v38, %v1008_v39  ;;  %v864_v44 = vpop.f32.mrf.mxu0  ;;  %v8544_v8 = vpack.c.bf16 %v1017_v2, %v1017_v2 }
 0x192   : > { %v6895_v43 = vpop.f32.mrf.mxu1  ;;  %v865_v47 = vadd.f32 %v8509_v42, %v864_v44  ;;  %v897_v16 = vmul.f32 0.17677669, %v873_v10 }
 0x193   : > { %v8511_v45 = vpack.c.bf16 %v1009_v41, %v1009_v41  ;;  %v6871_v48 = vpop.f32.mrf.mxu0  ;;  %v1020_v14 = vadd.f32 %v6895_v43, %v8503_v38  ;;  %v1421_v15 = vsel %vm1324_vm1, %v8544_v8, 0 }
 0x194   : > { %v1011_v46 = vpop.f32.mrf.mxu1  ;;  %v895_v53 = vmul.f32 0.17677669, %v865_v47  ;;  %v8568_v21 = vpack.c.bf16 %v897_v16, %v897_v16  ;;  %v876_v22 = vadd.f32 %v6871_v48, %v8509_v42  ;;  %v1186_v16 = vld [vmem:[%s8464_s16 + $0x6] sm:$0x1] }
 0x195   : > { %v1012_v49 = vadd.f32 %v8503_v38, %v1011_v46  ;;  %v1329_v51 = vsel %vm1324_vm1, %v8511_v45, 0  ;;  %v867_v52 = vpop.f32.mrf.mxu0  ;;  %v8566_v19 = vpack.c.bf16 %v1020_v14, %v1020_v14  ;;  %vm1194_vm10 = vcmp.gt.f32.partialorder %v1186_v16, 0.0 }
 0x196   : > { %v6898_v50 = vpop.f32.mrf.mxu1  ;;  %6925 = vmatpush3.bf16.xpose.msra.mxu1 %v1329_v51  ;;  %v8525_v62 = vpack.c.bf16 %v895_v53, %v895_v53  ;;  %v868_v63 = vadd.f32 %v8509_v42, %v867_v52  ;;  %v898_v26 = vmul.f32 0.17677669, %v876_v22  ;;  %v1182_v22 = vld [vmem:[%s8464_s16 + $0x2] sm:$0x1] }
 0x197   : > { %v6874_v55 = vpop.f32.mrf.mxu0  ;;  %6930 = vmatprep.subr.bf16.mxu1 %v9997_v36  ;;  %v8519_v57 = vpack.c.bf16 %v1012_v49, %v1012_v49  ;;  %v1033_v59 = vadd.f32 %v6898_v50, %v8503_v38  ;;  %v1467_v24 = vsel %vm1324_vm1, %v8566_v19, 0  ;;  %vm1190_vm11 = vcmp.gt.f32.partialorder %v1182_v22, 0.0 }
 0x198   : > { %v1024_v54 = vpop.f32.mrf.mxu1  ;;  %v896_v5 = vmul.f32 0.17677669, %v868_v63  ;;  %v889_v6 = vadd.f32 %v6874_v55, %v8509_v42  ;;  %v8586_v29 = vpack.c.bf16 %v898_v26, %v898_v26  ;;  %v1175_v63 = vlaneseq }
 0x199   : > { %v1025_v56 = vadd.f32 %v8503_v38, %v1024_v54  ;;  %v880_v58 = vpop.f32.mrf.mxu0  ;;  %v1375_v3 = vsel %vm1324_vm1, %v8519_v57, 0  ;;  %v8535_v4 = vpack.c.bf16 %v1033_v59, %v1033_v59 }
 0x19a   : > { %v881_v61 = vadd.f32 %v8509_v42, %v880_v58  ;;  %v8549_v11 = vpack.c.bf16 %v896_v5, %v896_v5  ;;  %v901_v12 = vmul.f32 0.17677669, %v889_v6  ;;  %v6899_v13 = vpop.f32.mrf.mxu1  ;;  %v1181_v6 = vld [vmem:[%s8464_s16 + $0x1] sm:$0x1]  ;;  %v1178_v10 = vand.u32 127, %v1175_v63 }
 0x19b   : > { %v8522_v60 = vpack.c.bf16 %v1025_v56, %v1025_v56  ;;  %v1605_v9 = vsel %vm1324_vm1, %v8535_v4, 0  ;;  %v6875_v20 = vpop.f32.mrf.mxu0  ;;  %v1036_v30 = vadd.f32 %v6899_v13, %v8503_v38  ;;  %vm1189_vm4 = vcmp.gt.f32.partialorder %v1181_v6, 0.0 }
 0x19c   : > { %v899_v0 = vmul.f32 0.17677669, %v881_v61  ;;  %v8563_v17 = vpack.c.bf16 %v901_v12, %v901_v12  ;;  %v1027_v18 = vpop.f32.mrf.mxu1  ;;  %v892_v34 = vadd.f32 %v6875_v20, %v8509_v42 }
 0x19d   : > { %v1513_v1 = vsel %vm1324_vm1, %v8522_v60, 0  ;;  %6927 = vmatmul.mubr.msk.bf16.vlgmr.msra.gmra.mxu1 %vm1324_vm1, %v8525_v62  ;;  %v1028_v23 = vadd.f32 %v8503_v38, %v1027_v18  ;;  %v883_v25 = vpop.f32.mrf.mxu0  ;;  %v8595_v33 = vpack.c.bf16 %v1036_v30, %v1036_v30 }
 0x19e   : > { %6949 = vmatpush3.bf16.xpose.msra.mxu0 %v1513_v1  ;;  %6931 = vmatpush3.bf16.xpose.msra.mxu1 %v1375_v3  ;;  %v8542_v7 = vpack.c.bf16 %v899_v0, %v899_v0  ;;  %v884_v28 = vadd.f32 %v8509_v42, %v883_v25  ;;  %v902_v38 = vmul.f32 0.17677669, %v892_v34  ;;  %v1180_v0 = vld [vmem:[%s8464_s16] sm:$0x1]  ;;  %v8647_v1 = vshrl.u32 %v1175_v63, 7 }
 0x19f   : > { %6932 = vmatprep.mubr.msk.bf16.mxu1 %vm8161_vm0, %v9997_v36  ;;  %6936 = vmatprep.subr.bf16.mxu1 %v9997_v36  ;;  %v8582_v27 = vpack.c.bf16 %v1028_v23, %v1028_v23  ;;  %v1651_v37 = vsel %vm1324_vm1, %v8595_v33, 0  ;;  %vm1188_vm3 = vcmp.gt.f32.partialorder %v1180_v0, 0.0  ;;  %v9995_v3 = vmov 0  }
 0x1a0   : > { %6960 = vmatprep.subr.bf16.mxu0 %v9997_v36  ;;  %v900_v32 = vmul.f32 0.17677669, %v884_v28  ;;  %v8608_v39 = vpack.c.bf16 %v902_v38, %v902_v38  ;;  %10040 = vst [vmem:[#allocation31_spill] sm:$0xff] %v8647_v1  ;;  %v8650_v2 = vsub.s32 0, %v8647_v1  ;;  %v1196_v5 = vsel %vm1188_vm3, 1, %v9995_v3 }
 0x1a1   : > { %v1559_v31 = vsel %vm1324_vm1, %v8582_v27, 0  ;;  %vm8657_vm6 = vcmp.ge.s32.totalorder %v8647_v1, %v1178_v10  ;;  %v1197_v14 = vsel %vm1189_vm4, 1, %v9995_v3  ;;  %v1198_v34 = vsel %vm1190_vm11, 1, %v9995_v3 }
 0x1a2   : > { %v8599_v35 = vpack.c.bf16 %v900_v32, %v900_v32  ;;  %10041 = vst [vmem:[#allocation32_spill] sm:$0xff] %v8650_v2  ;;  %v1207_v12 = vrot.slane %v1196_v5, %v8650_v2  ;;  %v1211_v20 = vrot.slane %v1197_v14, %v8650_v2 }
 0x1a4   : > { %vm1236_vm7 = vcmp.eq.s32.totalorder %v1207_v12, 1  ;;  %vm1237_vm12 = vcmp.eq.s32.totalorder %v1211_v20, 1 }
 0x1a5   : > { %6951 = vmatmul.mubr.msk.bf16.vlgmr.msra.gmra.mxu0 %vm1324_vm1, %v8542_v7  ;;  %6933 = vmatmul.mubr.msk.bf16.vlgmr.msra.gmra.mxu1 %vm1324_vm1, %v8549_v11  ;;  %vm8666_vm8 = vmand %vm8657_vm6, %vm1236_vm7 }
 0x1a6   : > { %6961 = vmatpush3.bf16.xpose.msra.mxu0 %v1605_v9  ;;  %6937 = vmatpush3.bf16.xpose.msra.mxu1 %v1421_v15  ;;  %v1184_v9 = vld [vmem:[%s8464_s16 + $0x4] sm:$0x1]  ;;  %vm8685_vm14 = vmand %vm8657_vm6, %vm1237_vm12 }
 0x1a7   : > { %6938 = vmatprep.mubr.msk.bf16.mxu1 %vm8161_vm0, %v9997_v36  ;;  %6962 = vmatprep.mubr.msk.bf16.mxu0 %vm8161_vm0, %v9997_v36  ;;  %vm1192_vm5 = vcmp.gt.f32.partialorder %v1184_v9, 0.0 }
 0x1a8   : > { %6942 = vmatprep.subr.bf16.mxu1 %v9997_v36  ;;  %6972 = vmatprep.subr.bf16.mxu0 %v9997_v36  ;;  %v1200_v15 = vsel %vm1192_vm5, 1, %v9995_v3 }
 0x1a9   : > { %v1223_v23 = vrot.slane %v1200_v15, %v8650_v2  ;;  %v1185_v15 = vld [vmem:[%s8464_s16 + $0x5] sm:$0x1] }
 0x1aa   : > { %vm1193_vm11 = vcmp.gt.f32.partialorder %v1185_v15, 0.0 }
 0x1ab   : > { %vm1240_vm13 = vcmp.eq.s32.totalorder %v1223_v23, 1 }
 0x1ac   : > { %vm8691_vm15 = vmand %vm8657_vm6, %vm1240_vm13 }
 0x1ad   : > { %6963 = vmatmul.mubr.msk.bf16.vlgmr.msra.gmra.mxu0 %vm1324_vm1, %v8563_v17  ;;  %6939 = vmatmul.mubr.msk.bf16.vlgmr.msra.gmra.mxu1 %vm1324_vm1, %v8568_v21 }
 0x1ae   : > { %6974 = vmatprep.mubr.msk.bf16.mxu0 %vm8161_vm0, %v9997_v36  ;;  %6943 = vmatpush3.bf16.xpose.msra.mxu1 %v1467_v24 }
 0x1af   : > { %6944 = vmatprep.mubr.msk.bf16.mxu1 %vm8161_vm0, %v9997_v36  ;;  %6954 = vmatprep.subr.bf16.mxu1 %v9997_v36  ;;  %v6918_v41 = vpop.f32.mrf.mxu0 }
 0x1b0   : > { %v8620_v42 = vadd.f32 %v6918_v41, %v8617_v40 }
 0x1b1   : > { %v1144_v43 = vpop.f32.mrf.mxu0 }
 0x1b2   : > { %v1145_v54 = vadd.f32 %v8617_v40, %v1144_v43 }
 0x1b3   : > { %v6919_v44 = vpop.f32.mrf.mxu0 }
 0x1b4   : > { %v8623_v46 = vadd.f32 %v6919_v44, %v8617_v40  ;;  %v8636_v56 = vpack.c.bf16 %v1145_v54, %v1145_v54  ;;  %v1183_v44 = vld [vmem:[%s8464_s16 + $0x3] sm:$0x1] }
 0x1b5   : > { %6945 = vmatmul.mubr.msk.bf16.vlgmr.msra.gmra.mxu1 %vm1324_vm1, %v8586_v29  ;;  %v1147_v47 = vpop.f32.mrf.mxu0  ;;  %vm1191_vm3 = vcmp.gt.f32.partialorder %v1183_v44, 0.0 }
 0x1b6   : > { %6955 = vmatpush3.bf16.xpose.msra.mxu1 %v1559_v31  ;;  %6956 = vmatprep.mubr.msk.bf16.mxu1 %vm8161_vm0, %v9997_v36  ;;  %v1148_v55 = vadd.f32 %v8617_v40, %v1147_v47  ;;  %v1803_v59 = vsel %vm1801_vm2, %v8636_v56, 0  ;;  %v1202_v31 = vsel %vm1194_vm10, 1, %v9995_v3  ;;  %v1199_v6 = vsel %vm1191_vm3, 1, %v9995_v3 }
 0x1b7   : > { %6966 = vmatprep.subr.bf16.mxu1 %v9997_v36  ;;  %v6922_v48 = vpop.f32.mrf.mxu0  ;;  %6973 = vmatpush3.bf16.msra.mxu0 %v1803_v59  ;;  %v1231_v43 = vrot.slane %v1202_v31, %v8650_v2  ;;  %v1219_v20 = vrot.slane %v1199_v6, %v8650_v2 }
 0x1b8   : > { %v8626_v49 = vadd.f32 %v6922_v48, %v8617_v40  ;;  %v8638_v58 = vpack.c.bf16 %v1148_v55, %v1148_v55  ;;  %6984 = vmatprep.subr.bf16.mxu0 %v9997_v36  ;;  %v1215_v48 = vrot.slane %v1198_v34, %v8650_v2 }
 0x1b9   : > { %v1160_v50 = vpop.f32.mrf.mxu0  ;;  %vm1242_vm4 = vcmp.eq.s32.totalorder %v1231_v43, 1  ;;  %vm1239_vm12 = vcmp.eq.s32.totalorder %v1219_v20, 1  ;;  %v1201_v43 = vsel %vm1193_vm11, 1, %v9995_v3 }
 0x1ba   : > { %v8629_v51 = vadd.f32 %v8617_v40, %v1160_v50  ;;  %v1849_v61 = vsel %vm1801_vm2, %v8638_v58, 0  ;;  %vm1238_vm5 = vcmp.eq.s32.totalorder %v1215_v48, 1  ;;  %vm8713_vm7 = vmand %vm8657_vm6, %vm1242_vm4 }
 0x1bb   : > { %v6923_v52 = vpop.f32.mrf.mxu0  ;;  %vm8719_vm10 = vmand %vm8657_vm6, %vm1238_vm5 }
 0x1bc   : > { %v8632_v53 = vadd.f32 %v6923_v52, %v8617_v40  ;;  %vm8737_vm13 = vmand %vm8657_vm6, %vm1239_vm12 }
 0x1bd   : > { %6957 = vmatmul.mubr.msk.bf16.vlgmr.msra.gmra.mxu1 %vm1324_vm1, %v8599_v35  ;;  %v8679_v30 = vpop.f32.mrf.mxu0 }
 0x1be   : > { %6967 = vmatpush3.bf16.xpose.msra.mxu1 %v1651_v37  ;;  %6968 = vmatprep.mubr.msk.bf16.mxu1 %vm8161_vm0, %v9997_v36 }
 0x1bf   : > { %6978 = vmatprep.subr.bf16.mxu1 %v9997_v36 }
 0x1c5   : > { %6969 = vmatmul.mubr.msk.bf16.vlgmr.msra.gmra.mxu1 %vm1324_vm1, %v8608_v39 }
 0x1c6   : > { %6980 = vmatprep.mubr.msk.bf16.mxu1 %vm8161_vm0, %v9997_v36  ;;  %6979 = vmatpush3.bf16.msra.mxu1 %v1849_v61 }
 0x1c7   : > { %6990 = vmatprep.subr.bf16.mxu1 %v9997_v36 }
 0x25d   : > { %v1365_v24 = vpop.f32.mrf.mxu1 }
 0x25e   : > { %v8675_v25 = vsel %vm8666_vm8, %v1365_v24, -1e+30 }
 0x25f   : > { %v6928_v26 = vpop.f32.mrf.mxu1  ;;  %v1702_v28 = vsel %vm1701_vm9, %v8675_v25, -inf }
 0x260   : > { %1703 = vmax.xlane.f32.xlu0 %v1702_v28 }
 0x261   : > { %v1368_v32 = vpop.f32.mrf.mxu1 }
 0x263   : > { %v6929_v38 = vpop.f32.mrf.mxu1 }
 0x265   : > { %v1549_v47 = vpop.f32.mrf.mxu0  ;;  %v1411_v50 = vpop.f32.mrf.mxu1 }
 0x266   : > { %v8700_v52 = vsel %vm8685_vm14, %v1411_v50, -1e+30  ;;  %v8704_v54 = vsel %vm8691_vm15, %v1549_v47, -1e+30  ;;  %v1187_v50 = vld [vmem:[%s8464_s16 + $0x7] sm:$0x1] }
 0x267   : > { %v6952_v55 = vpop.f32.mrf.mxu0  ;;  %v6934_v59 = vpop.f32.mrf.mxu1  ;;  %v1705_v61 = vsel %vm1701_vm9, %v8700_v52, -inf  ;;  %v1714_v5 = vsel %vm1701_vm9, %v8704_v54, -inf  ;;  %vm1195_vm3 = vcmp.gt.f32.partialorder %v1187_v50, 0.0 }
 0x268   : > { %1706 = vmax.xlane.f32.xlu0 %v1705_v61  ;;  %v1227_v55 = vrot.slane %v1201_v43, %v8650_v2  ;;  %v1203_v6 = vsel %vm1195_vm3, 1, %v9995_v3 }
 0x269   : > { %v1552_v63 = vpop.f32.mrf.mxu0  ;;  %v1414_v0 = vpop.f32.mrf.mxu1  ;;  %v1235_v15 = vrot.slane %v1203_v6, %v8650_v2 }
 0x26a   : > { %vm1241_vm4 = vcmp.eq.s32.totalorder %v1227_v55, 1 }
 0x26b   : > { %v6953_v9 = vpop.f32.mrf.mxu0  ;;  %v6935_v12 = vpop.f32.mrf.mxu1  ;;  %vm8752_vm5 = vmand %vm8657_vm6, %vm1241_vm4  ;;  %vm1243_vm11 = vcmp.eq.s32.totalorder %v1235_v15, 1 }
 0x26c   : > { %1715 = vmax.xlane.f32.xlu0 %v1714_v5  ;;  %vm8762_vm12 = vmand %vm8657_vm6, %vm1243_vm11 }
 0x26d   : > { %v1641_v16 = vpop.f32.mrf.mxu0  ;;  %v1457_v22 = vpop.f32.mrf.mxu1 }
 0x26e   : > { %v8727_v23 = vsel %vm8713_vm7, %v1641_v16, -1e+30  ;;  %v1695_v24 = vsel %vm8719_vm10, %v1457_v22, -1e+30 }
 0x26f   : > { %v1720_v26 = vsel %vm1701_vm9, %v8727_v23, -inf  ;;  %v6964_v28 = vpop.f32.mrf.mxu0  ;;  %v6940_v31 = vpop.f32.mrf.mxu1  ;;  %v1708_v32 = vsel %vm1701_vm9, %v1695_v24, -inf }
 0x270   : > { %1721 = vmax.xlane.f32.xlu0 %v1720_v26  ;;  %1709 = vmax.xlane.f32.xlu1 %v1708_v32 }
 0x271   : > { %v1644_v34 = vpop.f32.mrf.mxu0  ;;  %v1460_v38 = vpop.f32.mrf.mxu1 }
 0x273   : > { %v6965_v44 = vpop.f32.mrf.mxu0  ;;  %v6941_v47 = vpop.f32.mrf.mxu1 }
 0x275   : > { %v1503_v59 = vpop.f32.mrf.mxu1 }
 0x276   : > { %v8745_v61 = vsel %vm8737_vm13, %v1503_v59, -1e+30 }
 0x277   : > { %v6946_v63 = vpop.f32.mrf.mxu1  ;;  %v1711_v0 = vsel %vm1701_vm9, %v8745_v61, -inf }
 0x278   : > { %1712 = vmax.xlane.f32.xlu1 %v1711_v0 }
 0x279   : > { %v1506_v5 = vpop.f32.mrf.mxu1 }
 0x27b   : > { %v6947_v9 = vpop.f32.mrf.mxu1 }
 0x27d   : > { %v1595_v16 = vpop.f32.mrf.mxu1 }
 0x27e   : > { %v1698_v20 = vsel %vm8752_vm5, %v1595_v16, -1e+30 }
 0x27f   : > { %v6958_v22 = vpop.f32.mrf.mxu1  ;;  %v1717_v26 = vsel %vm1701_vm9, %v1698_v20, -inf }
 0x280   : > { %1718 = vmax.xlane.f32.xlu1 %v1717_v26 }
 0x281   : > { %v1598_v28 = vpop.f32.mrf.mxu1 }
 0x283   : > { %v6959_v31 = vpop.f32.mrf.mxu1 }
 0x285   : > { %v1687_v34 = vpop.f32.mrf.mxu1 }
 0x286   : > { %v8768_v38 = vsel %vm8762_vm12, %v1687_v34, -1e+30 }
 0x287   : > { %v1723_v43 = vsel %vm1701_vm9, %v8768_v38, -inf  ;;  %v6970_v44 = vpop.f32.mrf.mxu1 }
 0x288   : > { %1724 = vmax.xlane.f32.xlu1 %v1723_v43 }
 0x289   : > { %v1690_v47 = vpop.f32.mrf.mxu1 }
 0x28b   : > { %v6971_v50 = vpop.f32.mrf.mxu1 }
 0x2e9   : > { %v1704_v55 = vpop.xlane.xlu0 %1703 }
 0x2ea   : > { %v1726_v59 = vsub.f32 %v8675_v25, %v1704_v55 }
 0x2ec   : > { %v1734_v13 = vmul.f32 1.442695, %v1726_v59 }
 0x2ee   : > { %7663 = vpow2.f32 %v1734_v13 }
 0x2f1   : > { %v1707_v63 = vpop.xlane.xlu0 %1706 }
 0x2f2   : > { %v1727_v0 = vsub.f32 %v8700_v52, %v1707_v63 }
 0x2f4   : > { %v1736_v5 = vmul.f32 1.442695, %v1727_v0 }
 0x2f5   : > { %v1716_v6 = vpop.xlane.xlu0 %1715 }
 0x2f6   : > { %7665 = vpow2.f32 %v1736_v5  ;;  %v1730_v9 = vsub.f32 %v8704_v54, %v1716_v6 }
 0x2f8   : > { %v1742_v25 = vmul.f32 1.442695, %v1730_v9 }
 0x2f9   : > { %v1710_v15 = vpop.xlane.xlu1 %1709  ;;  %v1722_v16 = vpop.xlane.xlu0 %1721 }
 0x2fa   : > { %v1728_v22 = vsub.f32 %v1695_v24, %v1710_v15  ;;  %v1732_v34 = vsub.f32 %v8727_v23, %v1722_v16 }
 0x2fb   : > { %v8775_v26 = vpop.eup %7663 }
 0x2fc   : > { %v1738_v28 = vmul.f32 1.442695, %v1728_v22  ;;  %v1750_v31 = vsel %vm1701_vm9, %v8775_v26, 0.0  ;;  %v1746_v52 = vmul.f32 1.442695, %v1732_v34 }
 0x2fd   : > { %1751 = vadd.xlane.f32.xlu0 %v1750_v31 }
 0x2fe   : > { %7667 = vpow2.f32 %v1738_v28 }
 0x2ff   : > { %7669 = vpow2.f32 %v1742_v25 }
 0x300   : > { %7671 = vpow2.f32 %v1746_v52 }
 0x301   : > { %v1713_v59 = vpop.xlane.xlu1 %1712 }
 0x302   : > { %v1729_v13 = vsub.f32 %v8745_v61, %v1713_v59 }
 0x303   : > { %v8780_v43 = vpop.eup %7665 }
 0x304   : > { %v1753_v54 = vsel %vm1701_vm9, %v8780_v43, 0.0  ;;  %v1740_v0 = vmul.f32 1.442695, %v1729_v13 }
 0x305   : > { %1754 = vadd.xlane.f32.xlu1 %v1753_v54  ;;  %v8842_v54 = vpack.c.bf16 %v8620_v42, %v8620_v42 }
 0x306   : > { %7673 = vpow2.f32 %v1740_v0 }
 0x307   : > { %v1895_v59 = vsel %vm1801_vm2, %v8842_v54, 0 }
 0x309   : > { %v1719_v63 = vpop.xlane.xlu1 %1718 }
 0x30a   : > { %v1731_v5 = vsub.f32 %v1698_v20, %v1719_v63 }
 0x30b   : > { %v8784_v24 = vpop.eup %7667 }
 0x30c   : > { %v1756_v44 = vsel %vm1701_vm9, %v8784_v24, 0.0  ;;  %v8788_v47 = vpop.eup %7669  ;;  %v1744_v6 = vmul.f32 1.442695, %v1731_v5 }
 0x30d   : > { %1757 = vadd.xlane.f32.xlu0 %v1756_v44  ;;  %v1762_v23 = vsel %vm1701_vm9, %v8788_v47, 0.0  ;;  %v8792_v50 = vpop.eup %7671 }
 0x30e   : > { %v1768_v55 = vsel %vm1701_vm9, %v8792_v50, 0.0  ;;  %7675 = vpow2.f32 %v1744_v6 }
 0x311   : > { %1763 = vadd.xlane.f32.xlu0 %v1762_v23  ;;  %v1725_v16 = vpop.xlane.xlu1 %1724 }
 0x312   : > { %v1733_v22 = vsub.f32 %v8768_v38, %v1725_v16 }
 0x313   : > { %v8805_v9 = vpop.eup %7673 }
 0x314   : > { %v1759_v61 = vsel %vm1701_vm9, %v8805_v9, 0.0  ;;  %v1748_v28 = vmul.f32 1.442695, %v1733_v22 }
 0x315   : > { %1769 = vadd.xlane.f32.xlu0 %v1768_v55 }
 0x316   : > { %2219 = vrot.lane.b32.xlu1 %v8519_v57, %s8163_s24  ;;  %7677 = vpow2.f32 %v1748_v28 }
 0x31b   : > { %v8811_v20 = vpop.eup %7675 }
 0x31c   : > { %v1765_v15 = vsel %vm1701_vm9, %v8811_v20, 0.0 }
 0x323   : > { %v8826_v31 = vpop.eup %7677 }
 0x324   : > { %v1771_v25 = vsel %vm1701_vm9, %v8826_v31, 0.0 }
 0x32b   : > { %2169 = vrot.lane.b32.xlu0 %v8511_v45, %s8163_s24 }
 0x32f   : > { %2269 = vrot.lane.b32.xlu0 %v8544_v8, %s8163_s24 }
 0x333   : > { %2267 = vrot.lane.b32.xlu0 %v8568_v21, %s8163_s24 }
 0x337   : > { %2369 = vrot.lane.b32.xlu0 %v8522_v60, %s8163_s24 }
 0x33a   : > { %1760 = vadd.xlane.f32.xlu1 %v1759_v61 }
 0x33b   : > { %2367 = vrot.lane.b32.xlu0 %v8542_v7, %s8163_s24 }
 0x33e   : > { %1766 = vadd.xlane.f32.xlu1 %v1765_v15 }
 0x33f   : > { %2469 = vrot.lane.b32.xlu0 %v8535_v4, %s8163_s24 }
 0x343   : > { %2467 = vrot.lane.b32.xlu0 %v8563_v17, %s8163_s24 }
 0x347   : > { %2671 = vrot.lane.b32.xlu0 %v8636_v56, %s8163_s24 }
 0x34f   : > { %2167 = vrot.lane.b32.xlu1 %v8525_v62, %s8163_s24 }
 0x373   : > { %1772 = vadd.xlane.f32.xlu1 %v1771_v25 }
 0x384   : > { %2217 = vrot.lane.b32.xlu1 %v8549_v11, %s8163_s24 }
 0x386   : > { %v1752_v34 = vpop.xlane.xlu0 %1751 }
 0x387   : > { %7679 = vrcp.f32 %v1752_v34 }
 0x388   : > { %2319 = vrot.lane.b32.xlu1 %v8566_v19, %s8163_s24 }
 0x38c   : > { %2317 = vrot.lane.b32.xlu1 %v8586_v29, %s8163_s24 }
 0x38e   : > { %v1755_v38 = vpop.xlane.xlu1 %1754 }
 0x38f   : > { %7681 = vrcp.f32 %v1755_v38 }
 0x390   : > { %2419 = vrot.lane.b32.xlu1 %v8582_v27, %s8163_s24 }
 0x394   : > { %v7680_v52 = vpop.eup %7679  ;;  %2417 = vrot.lane.b32.xlu1 %v8599_v35, %s8163_s24 }
 0x395   : > { %v1782_v44 = vmul.f32 %v7680_v52, %v8775_v26  ;;  %v8857_v26 = vpack.c.bf16 %v8623_v46, %v8623_v46 }
 0x396   : > { %v1758_v23 = vpop.xlane.xlu0 %1757 }
 0x397   : > { %v1790_v55 = vpack.c.bf16 %v1782_v44, %v1782_v44  ;;  %7683 = vrcp.f32 %v1758_v23  ;;  %v1941_v6 = vsel %vm1801_vm2, %v8857_v26, 0  ;;  %v2220_v23 = vpop.permute.xlu1 %2219 }
 0x398   : > { %2519 = vrot.lane.b32.xlu1 %v8595_v33, %s8163_s24 }
 0x399   : > { %6975 = vmatmul.mubr.msk.bf16.vlgmr.msra.gmra.mxu0 %vm1701_vm9, %v1790_v55 }
 0x39a   : > { %6985 = vmatpush3.bf16.msra.mxu0 %v1895_v59  ;;  %6986 = vmatprep.mubr.msk.bf16.mxu0 %vm8161_vm0, %v9997_v36  ;;  %v1764_v13 = vpop.xlane.xlu0 %1763 }
 0x39b   : > { %6996 = vmatprep.subr.bf16.mxu0 %v9997_v36  ;;  %7685 = vrcp.f32 %v1764_v13 }
 0x39c   : > { %v7682_v42 = vpop.eup %7681  ;;  %2517 = vrot.lane.b32.xlu1 %v8608_v39, %s8163_s24 }
 0x39d   : > { %v1783_v63 = vmul.f32 %v7682_v42, %v8780_v43  ;;  %v8872_v43 = vpack.c.bf16 %v8629_v51, %v8629_v51 }
 0x39e   : > { %v1770_v5 = vpop.xlane.xlu0 %1769 }
 0x39f   : > { %v1791_v0 = vpack.c.bf16 %v1783_v63, %v1783_v63  ;;  %7687 = vrcp.f32 %v1770_v5  ;;  %v1987_v22 = vsel %vm1801_vm2, %v8872_v43, 0 }
 0x3a0   : > { %2719 = vrot.lane.b32.xlu1 %v8638_v58, %s8163_s24 }
 0x3a1   : > { %6981 = vmatmul.mubr.msk.bf16.vlgmr.msra.gmra.mxu1 %vm1701_vm9, %v1791_v0  ;;  %v1164_v0 = vadd.f32 %v8617_v40, %v8679_v30 }
 0x3a2   : > { %6991 = vmatpush3.bf16.msra.mxu1 %v1941_v6  ;;  %6992 = vmatprep.mubr.msk.bf16.mxu1 %vm8161_vm0, %v9997_v36 }
 0x3a3   : > { %7002 = vmatprep.subr.bf16.mxu1 %v9997_v36 }
 0x3a4   : > { %2767 = vrot.lane.b32.xlu1 %v8842_v54, %s8163_s24  ;;  %v7684_v46 = vpop.eup %7683 }
 0x3a5   : > { %v1784_v61 = vmul.f32 %v7684_v46, %v8784_v24  ;;  %v8886_v24 = vpack.c.bf16 %v8626_v49, %v8626_v49  ;;  %v8907_v46 = vpack.c.bf16 %v1164_v0, %v1164_v0 }
 0x3a7   : > { %v1792_v15 = vpack.c.bf16 %v1784_v61, %v1784_v61  ;;  %v2079_v34 = vsel %vm1801_vm2, %v8886_v24, 0  ;;  %v2033_v40 = vsel %vm1801_vm2, %v8907_v46, 0 }
 0x3a8   : > { %2815 = vrot.lane.b32.xlu1 %v8857_v26, %s8163_s24  ;;  %v7686_v16 = vpop.eup %7685 }
 0x3a9   : > { %6987 = vmatmul.mubr.msk.bf16.vlgmr.msra.gmra.mxu0 %vm1701_vm9, %v1792_v15  ;;  %v1786_v51 = vmul.f32 %v7686_v16, %v8788_v47  ;;  %v2170_v47 = vpop.permute.xlu0 %2169 }
 0x3aa   : > { %6997 = vmatpush3.bf16.msra.mxu0 %v1987_v22  ;;  %6998 = vmatprep.mubr.msk.bf16.mxu0 %vm8161_vm0, %v9997_v36  ;;  %v2175_v49 = vsel %vm1324_vm1, %v2170_v47, 0 }
 0x3ab   : > { %7008 = vmatprep.subr.bf16.mxu0 %v9997_v36  ;;  %v1794_v28 = vpack.c.bf16 %v1786_v51, %v1786_v51 }
 0x3ac   : > { %v7688_v25 = vpop.eup %7687 }
 0x3ad   : > { %v1788_v38 = vmul.f32 %v7688_v25, %v8792_v50  ;;  %v2270_v44 = vpop.permute.xlu0 %2269 }
 0x3ae   : > { %v2275_v63 = vsel %vm1324_vm1, %v2270_v44, 0 }
 0x3af   : > { %v1796_v52 = vpack.c.bf16 %v1788_v38, %v1788_v38 }
 0x3b1   : > { %6999 = vmatmul.mubr.msk.bf16.vlgmr.msra.gmra.mxu0 %vm1701_vm9, %v1794_v28  ;;  %v2268_v55 = vpop.permute.xlu0 %2267 }
 0x3b2   : > { %7009 = vmatpush3.bf16.msra.mxu0 %v2079_v34  ;;  %7010 = vmatprep.mubr.msk.bf16.mxu0 %vm8161_vm0, %v9997_v36 }
 0x3b3   : > { %7020 = vmatprep.subr.bf16.mxu0 %v9997_v36 }
 0x3b5   : > { %v2370_v50 = vpop.permute.xlu0 %2369 }
 0x3b6   : > { %v2375_v15 = vsel %vm1324_vm1, %v2370_v50, 0  ;;  %v2225_v50 = vsel %vm1324_vm1, %v2220_v23, 0 }
 0x3b9   : > { %7011 = vmatmul.mubr.msk.bf16.vlgmr.msra.gmra.mxu0 %vm1701_vm9, %v1796_v52  ;;  %v2368_v5 = vpop.permute.xlu0 %2367 }
 0x3ba   : > { %7021 = vmatpush3.bf16.xpose.msra.mxu0 %v2175_v49  ;;  %7022 = vmatprep.mubr.msk.bf16.mxu0 %vm8161_vm0, %v9997_v36 }
 0x3bb   : > { %7032 = vmatprep.subr.bf16.mxu0 %v9997_v36 }
 0x3bd   : > { %v2470_v51 = vpop.permute.xlu0 %2469 }
 0x3be   : > { %v2475_v25 = vsel %vm1324_vm1, %v2470_v51, 0 }
 0x3c1   : > { %v2468_v28 = vpop.permute.xlu0 %2467 }
 0x3c3   : > { %v1761_v59 = vpop.xlane.xlu1 %1760 }
 0x3c4   : > { %7689 = vrcp.f32 %v1761_v59 }
 0x3c7   : > { %v1767_v13 = vpop.xlane.xlu1 %1766 }
 0x3c8   : > { %7691 = vrcp.f32 %v1767_v13 }
 0x3cb   : > { %v2168_v42 = vpop.permute.xlu1 %2167 }
 0x3cc   : > { %7023 = vmatmul.mubr.msk.bf16.vlgmr.msra.gmra.mxu0 %vm1324_vm1, %v2168_v42 }
 0x3cd   : > { %7033 = vmatpush3.bf16.xpose.msra.mxu0 %v2275_v63  ;;  %7034 = vmatprep.mubr.msk.bf16.mxu0 %vm8161_vm0, %v9997_v36 }
 0x3ce   : > { %7044 = vmatprep.subr.bf16.mxu0 %v9997_v36 }
 0x3d1   : > { %v7690_v6 = vpop.eup %7689 }
 0x3d2   : > { %v1785_v61 = vmul.f32 %v7690_v6, %v8805_v9  ;;  %v8924_v9 = vpack.c.bf16 %v8632_v53, %v8632_v53  ;;  %v2672_v53 = vpop.permute.xlu0 %2671 }
 0x3d4   : > { %7035 = vmatmul.mubr.msk.bf16.vlgmr.msra.gmra.mxu0 %vm1324_vm1, %v2268_v55  ;;  %v1793_v16 = vpack.c.bf16 %v1785_v61, %v1785_v61  ;;  %v2125_v38 = vsel %vm1801_vm2, %v8924_v9, 0 }
 0x3d5   : > { %v7692_v22 = vpop.eup %7691  ;;  %7045 = vmatpush3.bf16.xpose.msra.mxu0 %v2375_v15  ;;  %7046 = vmatprep.mubr.msk.bf16.mxu0 %vm8161_vm0, %v9997_v36 }
 0x3d6   : > { %6993 = vmatmul.mubr.msk.bf16.vlgmr.msra.gmra.mxu1 %vm1701_vm9, %v1793_v16  ;;  %7056 = vmatprep.subr.bf16.mxu0 %v9997_v36  ;;  %v1787_v30 = vmul.f32 %v7692_v22, %v8811_v20  ;;  %v2677_v20 = vsel %vm1801_vm2, %v2672_v53, 0 }
 0x3d7   : > { %7003 = vmatpush3.bf16.msra.mxu1 %v2033_v40  ;;  %7004 = vmatprep.mubr.msk.bf16.mxu1 %vm8161_vm0, %v9997_v36 }
 0x3d8   : > { %7014 = vmatprep.subr.bf16.mxu1 %v9997_v36  ;;  %v1795_v34 = vpack.c.bf16 %v1787_v30, %v1787_v30 }
 0x3dc   : > { %7047 = vmatmul.mubr.msk.bf16.vlgmr.msra.gmra.mxu0 %vm1324_vm1, %v2368_v5 }
 0x3dd   : > { %7057 = vmatpush3.bf16.xpose.msra.mxu0 %v2475_v25  ;;  %7058 = vmatprep.mubr.msk.bf16.mxu0 %vm8161_vm0, %v9997_v36 }
 0x3de   : > { %7005 = vmatmul.mubr.msk.bf16.vlgmr.msra.gmra.mxu1 %vm1701_vm9, %v1795_v34  ;;  %7068 = vmatprep.subr.bf16.mxu0 %v9997_v36 }
 0x3df   : > { %7015 = vmatpush3.bf16.msra.mxu1 %v2125_v38  ;;  %7016 = vmatprep.mubr.msk.bf16.mxu1 %vm8161_vm0, %v9997_v36 }
 0x3e0   : > { %7026 = vmatprep.subr.bf16.mxu1 %v9997_v36 }
 0x3e4   : > { %7059 = vmatmul.mubr.msk.bf16.vlgmr.msra.gmra.mxu0 %vm1324_vm1, %v2468_v28 }
 0x3e5   : > { %7069 = vmatpush3.bf16.msra.mxu0 %v2677_v20  ;;  %7070 = vmatprep.mubr.msk.bf16.mxu0 %vm8161_vm0, %v9997_v36 }
 0x3e6   : > { %7080 = vmatprep.subr.bf16.mxu0 %v9997_v36 }
 0x3fc   : > { %v1773_v47 = vpop.xlane.xlu1 %1772 }
 0x3fd   : > { %7693 = vrcp.f32 %v1773_v47 }
 0x400   : > { %v2218_v52 = vpop.permute.xlu1 %2217 }
 0x404   : > { %v2320_v49 = vpop.permute.xlu1 %2319 }
 0x405   : > { %v2325_v63 = vsel %vm1324_vm1, %v2320_v49, 0 }
 0x408   : > { %v2318_v13 = vpop.permute.xlu1 %2317 }
 0x40a   : > { %v7694_v44 = vpop.eup %7693 }
 0x40b   : > { %v1789_v55 = vmul.f32 %v7694_v44, %v8826_v31 }
 0x40c   : > { %v2420_v42 = vpop.permute.xlu1 %2419 }
 0x40d   : > { %v1797_v59 = vpack.c.bf16 %v1789_v55, %v1789_v55  ;;  %v2425_v23 = vsel %vm1324_vm1, %v2420_v42, 0 }
 0x40f   : > { %7017 = vmatmul.mubr.msk.bf16.vlgmr.msra.gmra.mxu1 %vm1701_vm9, %v1797_v59 }
 0x410   : > { %7027 = vmatpush3.bf16.xpose.msra.mxu1 %v2225_v50  ;;  %7028 = vmatprep.mubr.msk.bf16.mxu1 %vm8161_vm0, %v9997_v36  ;;  %v2418_v31 = vpop.permute.xlu1 %2417 }
 0x411   : > { %7038 = vmatprep.subr.bf16.mxu1 %v9997_v36 }
 0x414   : > { %v2520_v0 = vpop.permute.xlu1 %2519 }
 0x415   : > { %v2525_v6 = vsel %vm1324_vm1, %v2520_v0, 0 }
 0x417   : > { %7029 = vmatmul.mubr.msk.bf16.vlgmr.msra.gmra.mxu1 %vm1324_vm1, %v2218_v52 }
 0x418   : > { %7039 = vmatpush3.bf16.xpose.msra.mxu1 %v2325_v63  ;;  %7040 = vmatprep.mubr.msk.bf16.mxu1 %vm8161_vm0, %v9997_v36  ;;  %v2518_v5 = vpop.permute.xlu1 %2517 }
 0x419   : > { %7050 = vmatprep.subr.bf16.mxu1 %v9997_v36 }
 0x41c   : > { %v2720_v61 = vpop.permute.xlu1 %2719 }
 0x41d   : > { %v2725_v15 = vsel %vm1801_vm2, %v2720_v61, 0 }
 0x41f   : > { %7041 = vmatmul.mubr.msk.bf16.vlgmr.msra.gmra.mxu1 %vm1324_vm1, %v2318_v13 }
 0x420   : > { %7051 = vmatpush3.bf16.xpose.msra.mxu1 %v2425_v23  ;;  %7052 = vmatprep.mubr.msk.bf16.mxu1 %vm8161_vm0, %v9997_v36 }
 0x421   : > { %7062 = vmatprep.subr.bf16.mxu1 %v9997_v36 }
 0x427   : > { %7053 = vmatmul.mubr.msk.bf16.vlgmr.msra.gmra.mxu1 %vm1324_vm1, %v2418_v31 }
 0x428   : > { %7063 = vmatpush3.bf16.xpose.msra.mxu1 %v2525_v6  ;;  %7064 = vmatprep.mubr.msk.bf16.mxu1 %vm8161_vm0, %v9997_v36 }
 0x429   : > { %7074 = vmatprep.subr.bf16.mxu1 %v9997_v36 }
 0x42f   : > { %7065 = vmatmul.mubr.msk.bf16.vlgmr.msra.gmra.mxu1 %vm1324_vm1, %v2518_v5 }
 0x430   : > { %7075 = vmatpush3.bf16.msra.mxu1 %v2725_v15  ;;  %7076 = vmatprep.mubr.msk.bf16.mxu1 %vm8161_vm0, %v9997_v36 }
 0x431   : > { %7086 = vmatprep.subr.bf16.mxu1 %v9997_v36 }
 0x459   : > { %v8968_v16 = vpop.f32.mrf.mxu0 }
 0x45a   : > { %10060 = vst [vmem:[#allocation33_spill] sm:$0xff] %v8968_v16 }
 0x45b   : > { %v6976_v22 = vpop.f32.mrf.mxu0 }
 0x45d   : > { %v1842_v51 = vpop.f32.mrf.mxu0 }
 0x45f   : > { %v6977_v40 = vpop.f32.mrf.mxu0 }
 0x461   : > { %v8970_v30 = vpop.f32.mrf.mxu1 }
 0x463   : > { %v6982_v28 = vpop.f32.mrf.mxu1 }
 0x465   : > { %v1888_v25 = vpop.f32.mrf.mxu1 }
 0x467   : > { %v6983_v34 = vpop.f32.mrf.mxu1 }
 0x469   : > { %v8972_v38 = vpop.f32.mrf.mxu0 }
 0x46a   : > { %10061 = vst [vmem:[#allocation34_spill] sm:$0xff] %v8972_v38 }
 0x46b   : > { %v6988_v53 = vpop.f32.mrf.mxu0 }
 0x46d   : > { %v1934_v20 = vpop.f32.mrf.mxu0 }
 0x46f   : > { %v6989_v47 = vpop.f32.mrf.mxu0 }
 0x471   : > { %v8974_v52 = vpop.f32.mrf.mxu0 }
 0x472   : > { %10062 = vst [vmem:[#allocation35_spill] sm:$0xff] %v8974_v52 }
 0x473   : > { %v7000_v49 = vpop.f32.mrf.mxu0 }
 0x475   : > { %v2026_v44 = vpop.f32.mrf.mxu0 }
 0x477   : > { %v7001_v55 = vpop.f32.mrf.mxu0 }
 0x479   : > { %v8976_v59 = vpop.f32.mrf.mxu0 }
 0x47a   : > { %10063 = vst [vmem:[#allocation36_spill] sm:$0xff] %v8976_v59 }
 0x47b   : > { %v7012_v13 = vpop.f32.mrf.mxu0 }
 0x47d   : > { %v2118_v50 = vpop.f32.mrf.mxu0 }
 0x47f   : > { %v7013_v42 = vpop.f32.mrf.mxu0 }
 0x48c   : > { %v2211_v63 = vpop.f32.mrf.mxu0 }
 0x48d   : > { %v8980_v31 = vsel %vm8666_vm8, %v2211_v63, -1e+30 }
 0x48e   : > { %v7024_v23 = vpop.f32.mrf.mxu0  ;;  %v2575_v0 = vsel %vm1701_vm9, %v8980_v31, -inf }
 0x48f   : > { %2576 = vmax.xlane.f32.xlu0 %v2575_v0 }
 0x490   : > { %v2214_v5 = vpop.f32.mrf.mxu0 }
 0x492   : > { %v7025_v6 = vpop.f32.mrf.mxu0 }
 0x494   : > { %v2311_v61 = vpop.f32.mrf.mxu0 }
 0x495   : > { %v8986_v15 = vsel %vm8719_vm10, %v2311_v61, -1e+30 }
 0x496   : > { %v8988_v22 = vpop.f32.mrf.mxu1  ;;  %v7036_v51 = vpop.f32.mrf.mxu0  ;;  %v2581_v40 = vsel %vm1701_vm9, %v8986_v15, -inf }
 0x497   : > { %10064 = vst [vmem:[#allocation37_spill] sm:$0xff] %v8988_v22  ;;  %2582 = vmax.xlane.f32.xlu0 %v2581_v40 }
 0x498   : > { %v6994_v28 = vpop.f32.mrf.mxu1  ;;  %v2314_v25 = vpop.f32.mrf.mxu0 }
 0x49a   : > { %v1980_v34 = vpop.f32.mrf.mxu1  ;;  %v7037_v53 = vpop.f32.mrf.mxu0 }
 0x49c   : > { %v6995_v20 = vpop.f32.mrf.mxu1  ;;  %v2411_v47 = vpop.f32.mrf.mxu0 }
 0x49e   : > { %v8992_v49 = vpop.f32.mrf.mxu1  ;;  %v7048_v44 = vpop.f32.mrf.mxu0 }
 0x49f   : > { %10065 = vst [vmem:[#allocation38_spill] sm:$0xff] %v8992_v49 }
 0x4a0   : > { %v7006_v55 = vpop.f32.mrf.mxu1  ;;  %v2414_v13 = vpop.f32.mrf.mxu0 }
 0x4a2   : > { %v2072_v50 = vpop.f32.mrf.mxu1  ;;  %v7049_v42 = vpop.f32.mrf.mxu0 }
 0x4a4   : > { %v7007_v63 = vpop.f32.mrf.mxu1  ;;  %v2511_v23 = vpop.f32.mrf.mxu0 }
 0x4a6   : > { %v7060_v0 = vpop.f32.mrf.mxu0 }
 0x4a7   : > { %v2571_v0 = vsel %vm8691_vm15, %v2411_v47, -1e+30 }
 0x4a8   : > { %v2514_v5 = vpop.f32.mrf.mxu0 }
 0x4aa   : > { %v7061_v6 = vpop.f32.mrf.mxu0 }
 0x4cf   : > { %v8994_v61 = vpop.f32.mrf.mxu1 }
 0x4d0   : > { %10066 = vst [vmem:[#allocation39_spill] sm:$0xff] %v8994_v61 }
 0x4d1   : > { %v7018_v51 = vpop.f32.mrf.mxu1 }
 0x4d2   : > { %v2587_v51 = vsel %vm1701_vm9, %v2571_v0, -inf }
 0x4d3   : > { %v2164_v40 = vpop.f32.mrf.mxu1 }
 0x4d4   : > { %v9007_v40 = vsel %vm8713_vm7, %v2511_v23, -1e+30 }
 0x4d5   : > { %v7019_v28 = vpop.f32.mrf.mxu1 }
 0x4d7   : > { %v2261_v25 = vpop.f32.mrf.mxu1 }
 0x4d8   : > { %v2568_v34 = vsel %vm8685_vm14, %v2261_v25, -1e+30 }
 0x4d9   : > { %v7030_v53 = vpop.f32.mrf.mxu1  ;;  %v2578_v20 = vsel %vm1701_vm9, %v2568_v34, -inf }
 0x4da   : > { %2579 = vmax.xlane.f32.xlu1 %v2578_v20  ;;  %v2593_v20 = vsel %vm1701_vm9, %v9007_v40, -inf }
 0x4db   : > { %v2264_v44 = vpop.f32.mrf.mxu1 }
 0x4dd   : > { %v7031_v55 = vpop.f32.mrf.mxu1 }
 0x4df   : > { %v2361_v13 = vpop.f32.mrf.mxu1 }
 0x4e0   : > { %v2570_v50 = vsel %vm8737_vm13, %v2361_v13, -1e+30 }
 0x4e1   : > { %v7042_v42 = vpop.f32.mrf.mxu1  ;;  %v2584_v63 = vsel %vm1701_vm9, %v2570_v50, -inf }
 0x4e2   : > { %2585 = vmax.xlane.f32.xlu0 %v2584_v63 }
 0x4e3   : > { %v2364_v5 = vpop.f32.mrf.mxu1 }
 0x4e5   : > { %v7043_v6 = vpop.f32.mrf.mxu1 }
 0x4e6   : > { %2588 = vmax.xlane.f32.xlu0 %v2587_v51 }
 0x4e7   : > { %v2461_v28 = vpop.f32.mrf.mxu1 }
 0x4e8   : > { %v2572_v25 = vsel %vm8752_vm5, %v2461_v28, -1e+30 }
 0x4e9   : > { %v7054_v53 = vpop.f32.mrf.mxu1  ;;  %v2590_v47 = vsel %vm1701_vm9, %v2572_v25, -inf }
 0x4ea   : > { %2594 = vmax.xlane.f32.xlu0 %v2593_v20  ;;  %2591 = vmax.xlane.f32.xlu1 %v2590_v47 }
 0x4eb   : > { %v2464_v44 = vpop.f32.mrf.mxu1 }
 0x4ed   : > { %v7055_v55 = vpop.f32.mrf.mxu1 }
 0x4ef   : > { %v2561_v13 = vpop.f32.mrf.mxu1 }
 0x4f0   : > { %v9021_v51 = vsel %vm8762_vm12, %v2561_v13, -1e+30  ;;  %v2768_v13 = vpop.permute.xlu1 %2767 }
 0x4f1   : > { %v7066_v42 = vpop.f32.mrf.mxu1  ;;  %v2596_v53 = vsel %vm1701_vm9, %v9021_v51, -inf }
 0x4f3   : > { %v2564_v63 = vpop.f32.mrf.mxu1 }
 0x4f5   : > { %v7067_v23 = vpop.f32.mrf.mxu1 }
 0x4f6   : > { %v9028_v23 = vpop.permute.xlu1 %2815 }
 0x4fb   : > { %2911 = vrot.lane.b32.xlu1 %v8907_v46, %s8163_s24 }
 0x500   : > { %2863 = vrot.lane.b32.xlu0 %v8872_v43, %s8163_s24 }
 0x518   : > { %v2577_v5 = vpop.xlane.xlu0 %2576 }
 0x519   : > { %v2599_v6 = vsub.f32 %v8980_v31, %v2577_v5 }
 0x51b   : > { %v2607_v28 = vmul.f32 1.442695, %v2599_v6 }
 0x51d   : > { %7695 = vpow2.f32 %v2607_v28 }
 0x51f   : > { %2597 = vmax.xlane.f32.xlu1 %v2596_v53 }
 0x520   : > { %v2583_v20 = vpop.xlane.xlu0 %2582 }
 0x521   : > { %v2601_v47 = vsub.f32 %v8986_v15, %v2583_v20 }
 0x523   : > { %v2611_v44 = vmul.f32 1.442695, %v2601_v47 }
 0x525   : > { %7697 = vpow2.f32 %v2611_v44 }
 0x52a   : > { %v7696_v55 = vpop.eup %7695 }
 0x52b   : > { %v2623_v42 = vsel %vm1701_vm9, %v7696_v55, 0.0 }
 0x52c   : > { %2624 = vadd.xlane.f32.xlu0 %v2623_v42 }
 0x532   : > { %v7698_v31 = vpop.eup %7697 }
 0x533   : > { %v2629_v63 = vsel %vm1701_vm9, %v7698_v31, 0.0 }
 0x534   : > { %2630 = vadd.xlane.f32.xlu0 %v2629_v63 }
 0x563   : > { %v2580_v5 = vpop.xlane.xlu1 %2579 }
 0x564   : > { %v2600_v6 = vsub.f32 %v2568_v34, %v2580_v5 }
 0x566   : > { %v2609_v28 = vmul.f32 1.442695, %v2600_v6 }
 0x568   : > { %7699 = vpow2.f32 %v2609_v28 }
 0x56b   : > { %v2586_v53 = vpop.xlane.xlu0 %2585 }
 0x56c   : > { %v2602_v3 = vsub.f32 %v2570_v50, %v2586_v53 }
 0x56e   : > { %v2613_v15 = vmul.f32 1.442695, %v2602_v3 }
 0x56f   : > { %v2589_v20 = vpop.xlane.xlu0 %2588 }
 0x570   : > { %7701 = vpow2.f32 %v2613_v15  ;;  %v2603_v47 = vsub.f32 %v2571_v0, %v2589_v20 }
 0x572   : > { %v2615_v44 = vmul.f32 1.442695, %v2603_v47 }
 0x573   : > { %v2592_v50 = vpop.xlane.xlu1 %2591  ;;  %v2595_v6 = vpop.xlane.xlu0 %2594 }
 0x574   : > { %7703 = vpow2.f32 %v2615_v44  ;;  %v2604_v0 = vsub.f32 %v2572_v25, %v2592_v50  ;;  %v2605_v28 = vsub.f32 %v9007_v40, %v2595_v6  ;;  %v2773_v6 = vsel %vm1801_vm2, %v2768_v13, 0 }
 0x575   : > { %v9030_v42 = vpop.eup %7699 }
 0x576   : > { %v2626_v63 = vsel %vm1701_vm9, %v9030_v42, 0.0  ;;  %v2617_v53 = vmul.f32 1.442695, %v2604_v0  ;;  %v2619_v15 = vmul.f32 1.442695, %v2605_v28 }
 0x577   : > { %2627 = vadd.xlane.f32.xlu1 %v2626_v63  ;;  %v2864_v47 = vpop.permute.xlu0 %2863  ;;  %v2912_v28 = vpop.permute.xlu1 %2911 }
 0x578   : > { %7705 = vpow2.f32 %v2617_v53  ;;  %v10067_v53 = vmov 0.0  }
 0x579   : > { %7707 = vpow2.f32 %v2619_v15 }
 0x57d   : > { %v9034_v36 = vpop.eup %7701 }
 0x57e   : > { %v2632_v34 = vsel %vm1701_vm9, %v9034_v36, 0.0 }
 0x57f   : > { %2633 = vadd.xlane.f32.xlu1 %v2632_v34 }
 0x581   : > { %v9038_v5 = vpop.eup %7703 }
 0x582   : > { %v2635_v3 = vsel %vm1701_vm9, %v9038_v5, 0.0 }
 0x583   : > { %2636 = vadd.xlane.f32.xlu0 %v2635_v3 }
 0x585   : > { %v9047_v20 = vpop.eup %7705 }
 0x586   : > { %v2638_v44 = vsel %vm1701_vm9, %v9047_v20, 0.0  ;;  %v9051_v63 = vpop.eup %7707 }
 0x587   : > { %v2641_v25 = vsel %vm1701_vm9, %v9051_v63, 0.0 }
 0x590   : > { %3007 = vrot.lane.b32.xlu1 %v8924_v9, %s8163_s24 }
 0x599   : > { %2959 = vrot.lane.b32.xlu0 %v8886_v24, %s8163_s24 }
 0x5b4   : > { %2639 = vadd.xlane.f32.xlu1 %v2638_v44 }
 0x5b5   : > { %v2625_v34 = vpop.xlane.xlu0 %2624 }
 0x5b6   : > { %7709 = vrcp.f32 %v2625_v34  ;;  %v2598_v34 = vpop.xlane.xlu1 %2597 }
 0x5b7   : > { %v2606_v13 = vsub.f32 %v9021_v51, %v2598_v34 }
 0x5b8   : > { %2642 = vadd.xlane.f32.xlu0 %v2641_v25  ;;  %v2869_v25 = vsel %vm1801_vm2, %v2864_v47, 0 }
 0x5bd   : > { %v2631_v40 = vpop.xlane.xlu0 %2630 }
 0x5be   : > { %7711 = vrcp.f32 %v2631_v40 }
 0x5c3   : > { %v7710_v3 = vpop.eup %7709 }
 0x5c4   : > { %v2655_v50 = vmul.f32 %v7710_v3, %v7696_v55 }
 0x5c5   : > { %3107 = vrot.lane.b32.xlu1 %v8519_v57, %s8164_s23 }
 0x5c6   : > { %v2663_v0 = vpack.c.bf16 %v2655_v50, %v2655_v50 }
 0x5c8   : > { %7071 = vmatmul.mubr.msk.bf16.vlgmr.msra.gmra.mxu0 %vm1701_vm9, %v2663_v0 }
 0x5c9   : > { %7081 = vmatpush3.bf16.msra.mxu0 %v2773_v6  ;;  %7082 = vmatprep.mubr.msk.bf16.mxu0 %vm8161_vm0, %v10067_v53 }
 0x5ca   : > { %7092 = vmatprep.subr.bf16.mxu0 %v10067_v53 }
 0x5cb   : > { %v7712_v15 = vpop.eup %7711 }
 0x5cc   : > { %v2657_v44 = vmul.f32 %v7712_v15, %v7698_v31  ;;  %v2621_v31 = vmul.f32 1.442695, %v2606_v13 }
 0x5ce   : > { %3057 = vrot.lane.b32.xlu0 %v8511_v45, %s8164_s23  ;;  %v2665_v55 = vpack.c.bf16 %v2657_v44, %v2657_v44  ;;  %7713 = vpow2.f32 %v2621_v31  ;;  %v2821_v44 = vsel %vm1801_vm2, %v9028_v23, 0  ;;  %v2917_v23 = vsel %vm1801_vm2, %v2912_v28, 0 }
 0x5d0   : > { %7083 = vmatmul.mubr.msk.bf16.vlgmr.msra.gmra.mxu0 %vm1701_vm9, %v2665_v55 }
 0x5d1   : > { %7093 = vmatpush3.bf16.msra.mxu0 %v2869_v25  ;;  %7094 = vmatprep.mubr.msk.bf16.mxu0 %vm8161_vm0, %v10067_v53 }
 0x5d2   : > { %3055 = vrot.lane.b32.xlu0 %v8525_v62, %s8164_s23  ;;  %7104 = vmatprep.subr.bf16.mxu0 %v10067_v53 }
 0x5d6   : > { %3157 = vrot.lane.b32.xlu0 %v8544_v8, %s8164_s23 }
 0x5da   : > { %3155 = vrot.lane.b32.xlu0 %v8568_v21, %s8164_s23 }
 0x5db   : > { %v9080_v51 = vpop.eup %7713 }
 0x5dc   : > { %v2644_v47 = vsel %vm1701_vm9, %v9080_v51, 0.0 }
 0x5de   : > { %3257 = vrot.lane.b32.xlu0 %v8522_v60, %s8164_s23 }
 0x5e2   : > { %3255 = vrot.lane.b32.xlu0 %v8542_v7, %s8164_s23 }
 0x5e6   : > { %3357 = vrot.lane.b32.xlu0 %v8535_v4, %s8164_s23 }
 0x5e9   : > { %2645 = vadd.xlane.f32.xlu1 %v2644_v47 }
 0x5ea   : > { %3355 = vrot.lane.b32.xlu0 %v8563_v17, %s8164_s23 }
 0x5ee   : > { %3559 = vrot.lane.b32.xlu0 %v8636_v56, %s8164_s23 }
 0x5fa   : > { %3105 = vrot.lane.b32.xlu1 %v8549_v11, %s8164_s23 }
 0x5fe   : > { %3207 = vrot.lane.b32.xlu1 %v8566_v19, %s8164_s23 }
 0x600   : > { %v2628_v40 = vpop.xlane.xlu1 %2627 }
 0x601   : > { %7715 = vrcp.f32 %v2628_v40 }
 0x602   : > { %3205 = vrot.lane.b32.xlu1 %v8586_v29, %s8164_s23 }
 0x606   : > { %3307 = vrot.lane.b32.xlu1 %v8582_v27, %s8164_s23 }
 0x608   : > { %v2634_v3 = vpop.xlane.xlu1 %2633 }
 0x609   : > { %7717 = vrcp.f32 %v2634_v3 }
 0x60a   : > { %3305 = vrot.lane.b32.xlu1 %v8599_v35, %s8164_s23 }
 0x60c   : > { %v2637_v50 = vpop.xlane.xlu0 %2636 }
 0x60d   : > { %7719 = vrcp.f32 %v2637_v50 }
 0x60e   : > { %v7716_v0 = vpop.eup %7715  ;;  %3407 = vrot.lane.b32.xlu1 %v8595_v33, %s8164_s23 }
 0x60f   : > { %v2656_v6 = vmul.f32 %v7716_v0, %v9030_v42 }
 0x610   : > { %v2960_v31 = vpop.permute.xlu0 %2959 }
 0x611   : > { %v2664_v15 = vpack.c.bf16 %v2656_v6, %v2656_v6 }
 0x612   : > { %3405 = vrot.lane.b32.xlu1 %v8608_v39, %s8164_s23 }
 0x613   : > { %7077 = vmatmul.mubr.msk.bf16.vlgmr.msra.gmra.mxu1 %vm1701_vm9, %v2664_v15 }
 0x614   : > { %7087 = vmatpush3.bf16.msra.mxu1 %v2821_v44  ;;  %7088 = vmatprep.mubr.msk.bf16.mxu1 %vm8161_vm0, %v10067_v53 }
 0x615   : > { %7098 = vmatprep.subr.bf16.mxu1 %v10067_v53 }
 0x616   : > { %v7718_v34 = vpop.eup %7717  ;;  %3607 = vrot.lane.b32.xlu1 %v8638_v58, %s8164_s23 }
 0x617   : > { %v2658_v42 = vmul.f32 %v7718_v34, %v9034_v36  ;;  %v2965_v36 = vsel %vm1801_vm2, %v2960_v31, 0 }
 0x619   : > { %v2666_v55 = vpack.c.bf16 %v2658_v42, %v2658_v42 }
 0x61a   : > { %v7720_v25 = vpop.eup %7719  ;;  %3655 = vrot.lane.b32.xlu1 %v8842_v54, %s8164_s23 }
 0x61b   : > { %7089 = vmatmul.mubr.msk.bf16.vlgmr.msra.gmra.mxu1 %vm1701_vm9, %v2666_v55  ;;  %v2659_v13 = vmul.f32 %v7720_v25, %v9038_v5  ;;  %v3008_v5 = vpop.permute.xlu1 %3007 }
 0x61c   : > { %7099 = vmatpush3.bf16.msra.mxu1 %v2917_v23  ;;  %7100 = vmatprep.mubr.msk.bf16.mxu1 %vm8161_vm0, %v10067_v53  ;;  %v3013_v42 = vsel %vm1801_vm2, %v3008_v5, 0 }
 0x61d   : > { %v2667_v47 = vpack.c.bf16 %v2659_v13, %v2659_v13  ;;  %7110 = vmatprep.subr.bf16.mxu1 %v10067_v53 }
 0x61e   : > { %3703 = vrot.lane.b32.xlu1 %v8857_v26, %s8164_s23 }
 0x61f   : > { %7095 = vmatmul.mubr.msk.bf16.vlgmr.msra.gmra.mxu0 %vm1701_vm9, %v2667_v47 }
 0x620   : > { %7105 = vmatpush3.bf16.msra.mxu0 %v2965_v36  ;;  %7106 = vmatprep.mubr.msk.bf16.mxu0 %vm8161_vm0, %v10067_v53 }
 0x621   : > { %7116 = vmatprep.subr.bf16.mxu0 %v10067_v53 }
 0x63d   : > { %v2640_v28 = vpop.xlane.xlu1 %2639 }
 0x63e   : > { %7721 = vrcp.f32 %v2640_v28 }
 0x641   : > { %v2643_v40 = vpop.xlane.xlu0 %2642 }
 0x642   : > { %7723 = vrcp.f32 %v2643_v40  ;;  %v3108_v40 = vpop.permute.xlu1 %3107 }
 0x645   : > { %v3058_v3 = vpop.permute.xlu0 %3057 }
 0x646   : > { %v3063_v13 = vsel %vm1324_vm1, %v3058_v3, 0 }
 0x649   : > { %v3056_v50 = vpop.permute.xlu0 %3055 }
 0x64b   : > { %v7722_v0 = vpop.eup %7721 }
 0x64c   : > { %v2660_v6 = vmul.f32 %v7722_v0, %v9047_v20 }
 0x64d   : > { %v3158_v15 = vpop.permute.xlu0 %3157 }
 0x64e   : > { %v2668_v44 = vpack.c.bf16 %v2660_v6, %v2660_v6 }
 0x64f   : > { %v7724_v34 = vpop.eup %7723 }
 0x650   : > { %7101 = vmatmul.mubr.msk.bf16.vlgmr.msra.gmra.mxu1 %vm1701_vm9, %v2668_v44  ;;  %v2661_v55 = vmul.f32 %v7724_v34, %v9051_v63  ;;  %v3163_v63 = vsel %vm1324_vm1, %v3158_v15, 0 }
 0x651   : > { %7111 = vmatpush3.bf16.msra.mxu1 %v3013_v42  ;;  %7112 = vmatprep.mubr.msk.bf16.mxu1 %vm8161_vm0, %v10067_v53  ;;  %v3156_v23 = vpop.permute.xlu0 %3155 }
 0x652   : > { %v2669_v25 = vpack.c.bf16 %v2661_v55, %v2661_v55  ;;  %7122 = vmatprep.subr.bf16.mxu1 %v10067_v53 }
 0x654   : > { %7107 = vmatmul.mubr.msk.bf16.vlgmr.msra.gmra.mxu0 %vm1701_vm9, %v2669_v25  ;;  %v3113_v25 = vsel %vm1324_vm1, %v3108_v40, 0 }
 0x655   : > { %7117 = vmatpush3.bf16.xpose.msra.mxu0 %v3063_v13  ;;  %7118 = vmatprep.mubr.msk.bf16.mxu0 %vm8161_vm0, %v10067_v53  ;;  %v3258_v20 = vpop.permute.xlu0 %3257 }
 0x656   : > { %7128 = vmatprep.subr.bf16.mxu0 %v10067_v53  ;;  %v3263_v47 = vsel %vm1324_vm1, %v3258_v20, 0 }
 0x659   : > { %v3256_v31 = vpop.permute.xlu0 %3255 }
 0x65c   : > { %7119 = vmatmul.mubr.msk.bf16.vlgmr.msra.gmra.mxu0 %vm1324_vm1, %v3056_v50 }
 0x65d   : > { %7129 = vmatpush3.bf16.xpose.msra.mxu0 %v3163_v63  ;;  %7130 = vmatprep.mubr.msk.bf16.mxu0 %vm8161_vm0, %v10067_v53  ;;  %v3358_v36 = vpop.permute.xlu0 %3357 }
 0x65e   : > { %7140 = vmatprep.subr.bf16.mxu0 %v10067_v53  ;;  %v3363_v28 = vsel %vm1324_vm1, %v3358_v36, 0 }
 0x661   : > { %v3356_v5 = vpop.permute.xlu0 %3355 }
 0x664   : > { %7131 = vmatmul.mubr.msk.bf16.vlgmr.msra.gmra.mxu0 %vm1324_vm1, %v3156_v23 }
 0x665   : > { %7141 = vmatpush3.bf16.xpose.msra.mxu0 %v3263_v47  ;;  %7142 = vmatprep.mubr.msk.bf16.mxu0 %vm8161_vm0, %v10067_v53  ;;  %v3560_v3 = vpop.permute.xlu0 %3559 }
 0x666   : > { %7152 = vmatprep.subr.bf16.mxu0 %v10067_v53  ;;  %v3565_v0 = vsel %vm1801_vm2, %v3560_v3, 0 }
 0x66c   : > { %7143 = vmatmul.mubr.msk.bf16.vlgmr.msra.gmra.mxu0 %vm1324_vm1, %v3256_v31 }
 0x66d   : > { %7153 = vmatpush3.bf16.xpose.msra.mxu0 %v3363_v28  ;;  %7154 = vmatprep.mubr.msk.bf16.mxu0 %vm8161_vm0, %v10067_v53 }
 0x66e   : > { %7164 = vmatprep.subr.bf16.mxu0 %v10067_v53 }
 0x672   : > { %v2646_v50 = vpop.xlane.xlu1 %2645 }
 0x673   : > { %7725 = vrcp.f32 %v2646_v50 }
 0x674   : > { %7155 = vmatmul.mubr.msk.bf16.vlgmr.msra.gmra.mxu0 %vm1324_vm1, %v3356_v5 }
 0x675   : > { %7165 = vmatpush3.bf16.msra.mxu0 %v3565_v0  ;;  %7166 = vmatprep.mubr.msk.bf16.mxu0 %vm8161_vm0, %v10067_v53 }
 0x676   : > { %7176 = vmatprep.subr.bf16.mxu0 %v10067_v53  ;;  %v3106_v6 = vpop.permute.xlu1 %3105 }
 0x67a   : > { %v3208_v15 = vpop.permute.xlu1 %3207 }
 0x67b   : > { %v3213_v31 = vsel %vm1324_vm1, %v3208_v15, 0 }
 0x67e   : > { %v3206_v55 = vpop.permute.xlu1 %3205 }
 0x680   : > { %v7726_v44 = vpop.eup %7725 }
 0x681   : > { %v2662_v34 = vmul.f32 %v7726_v44, %v9080_v51 }
 0x682   : > { %v3308_v13 = vpop.permute.xlu1 %3307 }
 0x683   : > { %v2670_v42 = vpack.c.bf16 %v2662_v34, %v2662_v34  ;;  %v3313_v40 = vsel %vm1324_vm1, %v3308_v13, 0 }
 0x685   : > { %7113 = vmatmul.mubr.msk.bf16.vlgmr.msra.gmra.mxu1 %vm1701_vm9, %v2670_v42 }
 0x686   : > { %7123 = vmatpush3.bf16.xpose.msra.mxu1 %v3113_v25  ;;  %7124 = vmatprep.mubr.msk.bf16.mxu1 %vm8161_vm0, %v10067_v53  ;;  %v3306_v47 = vpop.permute.xlu1 %3305 }
 0x687   : > { %7134 = vmatprep.subr.bf16.mxu1 %v10067_v53 }
 0x688   : > { %v9167_v23 = vpop.f32.mrf.mxu0 }
 0x68a   : > { %v7072_v20 = vpop.f32.mrf.mxu0  ;;  %v3408_v3 = vpop.permute.xlu1 %3407 }
 0x68c   : > { %v2716_v63 = vpop.f32.mrf.mxu0 }
 0x68d   : > { %7125 = vmatmul.mubr.msk.bf16.vlgmr.msra.gmra.mxu1 %vm1324_vm1, %v3106_v6  ;;  %v3413_v6 = vsel %vm1324_vm1, %v3408_v3, 0 }
 0x68e   : > { %7135 = vmatpush3.bf16.xpose.msra.mxu1 %v3213_v31  ;;  %v7073_v51 = vpop.f32.mrf.mxu0  ;;  %7136 = vmatprep.mubr.msk.bf16.mxu1 %vm8161_vm0, %v10067_v53  ;;  %v3406_v0 = vpop.permute.xlu1 %3405 }
 0x68f   : > { %7146 = vmatprep.subr.bf16.mxu1 %v10067_v53 }
 0x690   : > { %v9174_v36 = vpop.f32.mrf.mxu0 }
 0x692   : > { %v7084_v5 = vpop.f32.mrf.mxu0  ;;  %v3608_v15 = vpop.permute.xlu1 %3607 }
 0x693   : > { %v3613_v44 = vsel %vm1801_vm2, %v3608_v15, 0 }
 0x694   : > { %v2812_v28 = vpop.f32.mrf.mxu0 }
 0x695   : > { %7137 = vmatmul.mubr.msk.bf16.vlgmr.msra.gmra.mxu1 %vm1324_vm1, %v3206_v55 }
 0x696   : > { %7147 = vmatpush3.bf16.xpose.msra.mxu1 %v3313_v40  ;;  %v7085_v50 = vpop.f32.mrf.mxu0  ;;  %7148 = vmatprep.mubr.msk.bf16.mxu1 %vm8161_vm0, %v10067_v53  ;;  %v3656_v49 = vpop.permute.xlu1 %3655 }
 0x697   : > { %7158 = vmatprep.subr.bf16.mxu1 %v10067_v53 }
 0x69d   : > { %7149 = vmatmul.mubr.msk.bf16.vlgmr.msra.gmra.mxu1 %vm1324_vm1, %v3306_v47 }
 0x69e   : > { %7159 = vmatpush3.bf16.xpose.msra.mxu1 %v3413_v6  ;;  %7160 = vmatprep.mubr.msk.bf16.mxu1 %vm8161_vm0, %v10067_v53 }
 0x69f   : > { %7170 = vmatprep.subr.bf16.mxu1 %v10067_v53 }
 0x6a5   : > { %7161 = vmatmul.mubr.msk.bf16.vlgmr.msra.gmra.mxu1 %vm1324_vm1, %v3406_v0 }
 0x6a6   : > { %7171 = vmatpush3.bf16.msra.mxu1 %v3613_v44  ;;  %7172 = vmatprep.mubr.msk.bf16.mxu1 %vm8161_vm0, %v10067_v53 }
 0x6a7   : > { %7182 = vmatprep.subr.bf16.mxu1 %v10067_v53 }
 0x6d3   : > { %v9191_v34 = vpop.f32.mrf.mxu1 }
 0x6d5   : > { %v7078_v42 = vpop.f32.mrf.mxu1 }
 0x6d7   : > { %v2764_v55 = vpop.f32.mrf.mxu1 }
 0x6d9   : > { %v7079_v25 = vpop.f32.mrf.mxu1 }
 0x6db   : > { %v9193_v13 = vpop.f32.mrf.mxu1 }
 0x6dd   : > { %v7090_v20 = vpop.f32.mrf.mxu1 }
 0x6df   : > { %v2860_v63 = vpop.f32.mrf.mxu1  ;;  %v9195_v31 = vpop.f32.mrf.mxu0 }
 0x6e1   : > { %v7091_v51 = vpop.f32.mrf.mxu1  ;;  %v7096_v47 = vpop.f32.mrf.mxu0 }
 0x6e3   : > { %v2908_v5 = vpop.f32.mrf.mxu0 }
 0x6e5   : > { %v7097_v28 = vpop.f32.mrf.mxu0 }
 0x710   : > { %v9197_v40 = vpop.f32.mrf.mxu1 }
 0x712   : > { %v7102_v50 = vpop.f32.mrf.mxu1 }
 0x714   : > { %v2956_v0 = vpop.f32.mrf.mxu1  ;;  %v9201_v6 = vpop.f32.mrf.mxu0 }
 0x716   : > { %v7103_v15 = vpop.f32.mrf.mxu1  ;;  %v7108_v44 = vpop.f32.mrf.mxu0 }
 0x718   : > { %v3004_v42 = vpop.f32.mrf.mxu0 }
 0x71a   : > { %v7109_v55 = vpop.f32.mrf.mxu0 }
 0x71c   : > { %v3099_v25 = vpop.f32.mrf.mxu0 }
 0x71d   : > { %v9205_v20 = vsel %vm8666_vm8, %v3099_v25, -1e+30 }
 0x71e   : > { %v7120_v63 = vpop.f32.mrf.mxu0  ;;  %v3463_v51 = vsel %vm1701_vm9, %v9205_v20, -inf }
 0x71f   : > { %3464 = vmax.xlane.f32.xlu0 %v3463_v51 }
 0x720   : > { %v3102_v47 = vpop.f32.mrf.mxu0 }
 0x722   : > { %v7121_v5 = vpop.f32.mrf.mxu0 }
 0x724   : > { %v3199_v28 = vpop.f32.mrf.mxu0 }
 0x725   : > { %v3457_v50 = vsel %vm8719_vm10, %v3199_v28, -1e+30 }
 0x726   : > { %v7132_v0 = vpop.f32.mrf.mxu0  ;;  %v3469_v15 = vsel %vm1701_vm9, %v3457_v50, -inf }
 0x727   : > { %3470 = vmax.xlane.f32.xlu0 %v3469_v15 }
 0x728   : > { %v3202_v44 = vpop.f32.mrf.mxu0 }
 0x72a   : > { %v7133_v42 = vpop.f32.mrf.mxu0 }
 0x72c   : > { %v3299_v55 = vpop.f32.mrf.mxu0 }
 0x72e   : > { %v7144_v25 = vpop.f32.mrf.mxu0 }
 0x730   : > { %v3302_v3 = vpop.f32.mrf.mxu0 }
 0x732   : > { %v7145_v63 = vpop.f32.mrf.mxu0 }
 0x734   : > { %v3399_v2 = vpop.f32.mrf.mxu0 }
 0x736   : > { %v7156_v1 = vpop.f32.mrf.mxu0 }
 0x738   : > { %v3402_v59 = vpop.f32.mrf.mxu0 }
 0x73a   : > { %v7157_v51 = vpop.f32.mrf.mxu0 }
 0x745   : > { %v9212_v47 = vpop.f32.mrf.mxu1 }
 0x747   : > { %v7114_v28 = vpop.f32.mrf.mxu1 }
 0x749   : > { %v3052_v0 = vpop.f32.mrf.mxu1 }
 0x74b   : > { %v7115_v61 = vpop.f32.mrf.mxu1 }
 0x74c   : > { %v3459_v61 = vsel %vm8691_vm15, %v3299_v55, -1e+30 }
 0x74d   : > { %v3149_v52 = vpop.f32.mrf.mxu1 }
 0x74e   : > { %v3456_v15 = vsel %vm8685_vm14, %v3149_v52, -1e+30  ;;  %v3475_v52 = vsel %vm1701_vm9, %v3459_v61, -inf }
 0x74f   : > { %v7126_v44 = vpop.f32.mrf.mxu1  ;;  %v3466_v3 = vsel %vm1701_vm9, %v3456_v15, -inf }
 0x750   : > { %3467 = vmax.xlane.f32.xlu1 %v3466_v3  ;;  %v9227_v44 = vsel %vm8713_vm7, %v3399_v2, -1e+30 }
 0x751   : > { %v3152_v42 = vpop.f32.mrf.mxu1 }
 0x753   : > { %v7127_v1 = vpop.f32.mrf.mxu1 }
 0x755   : > { %v3249_v59 = vpop.f32.mrf.mxu1 }
 0x756   : > { %v3458_v25 = vsel %vm8737_vm13, %v3249_v59, -1e+30  ;;  %v3481_v59 = vsel %vm1701_vm9, %v9227_v44, -inf }
 0x757   : > { %v7138_v63 = vpop.f32.mrf.mxu1  ;;  %v3472_v51 = vsel %vm1701_vm9, %v3458_v25, -inf }
 0x758   : > { %3473 = vmax.xlane.f32.xlu0 %v3472_v51 }
 0x759   : > { %v3252_v28 = vpop.f32.mrf.mxu1 }
 0x75b   : > { %v7139_v0 = vpop.f32.mrf.mxu1 }
 0x75c   : > { %3476 = vmax.xlane.f32.xlu0 %v3475_v52 }
 0x75d   : > { %v3349_v3 = vpop.f32.mrf.mxu1 }
 0x75e   : > { %v3460_v42 = vsel %vm8752_vm5, %v3349_v3, -1e+30 }
 0x75f   : > { %v7150_v1 = vpop.f32.mrf.mxu1  ;;  %v3478_v55 = vsel %vm1701_vm9, %v3460_v42, -inf }
 0x760   : > { %3482 = vmax.xlane.f32.xlu0 %v3481_v59  ;;  %3479 = vmax.xlane.f32.xlu1 %v3478_v55 }
 0x761   : > { %v3352_v63 = vpop.f32.mrf.mxu1 }
 0x763   : > { %v7151_v51 = vpop.f32.mrf.mxu1 }
 0x765   : > { %v3449_v28 = vpop.f32.mrf.mxu1 }
 0x766   : > { %v9240_v52 = vsel %vm8762_vm12, %v3449_v28, -1e+30 }
 0x767   : > { %v7162_v0 = vpop.f32.mrf.mxu1  ;;  %v3484_v3 = vsel %vm1701_vm9, %v9240_v52, -inf }
 0x769   : > { %v3452_v5 = vpop.f32.mrf.mxu1 }
 0x76b   : > { %v7163_v2 = vpop.f32.mrf.mxu1 }
 0x771   : > { %3799 = vrot.lane.b32.xlu1 %v8907_v46, %s8164_s23 }
 0x776   : > { %3751 = vrot.lane.b32.xlu0 %v8872_v43, %s8164_s23 }
 0x795   : > { %3485 = vmax.xlane.f32.xlu1 %v3484_v3 }
 0x7a8   : > { %v3465_v1 = vpop.xlane.xlu0 %3464 }
 0x7a9   : > { %v3487_v59 = vsub.f32 %v9205_v20, %v3465_v1  ;;  %v9253_v20 = vpop.permute.xlu1 %3703 }
 0x7ab   : > { %v3495_v55 = vmul.f32 1.442695, %v3487_v59 }
 0x7ad   : > { %7727 = vpow2.f32 %v3495_v55 }
 0x7b0   : > { %v3471_v5 = vpop.xlane.xlu0 %3470 }
 0x7b1   : > { %v3489_v63 = vsub.f32 %v3457_v50, %v3471_v5 }
 0x7b3   : > { %v3499_v51 = vmul.f32 1.442695, %v3489_v63 }
 0x7b5   : > { %7729 = vpow2.f32 %v3499_v51 }
 0x7ba   : > { %v9245_v0 = vpop.eup %7727 }
 0x7bb   : > { %v3511_v2 = vsel %vm1701_vm9, %v9245_v0, 0.0 }
 0x7bc   : > { %3512 = vadd.xlane.f32.xlu0 %v3511_v2 }
 0x7c2   : > { %v9249_v28 = vpop.eup %7729 }
 0x7c3   : > { %v3517_v3 = vsel %vm1701_vm9, %v9249_v28, 0.0 }
 0x7c4   : > { %3518 = vadd.xlane.f32.xlu0 %v3517_v3 }
 0x7d9   : > { %v3468_v1 = vpop.xlane.xlu1 %3467 }
 0x7da   : > { %v3488_v59 = vsub.f32 %v3456_v15, %v3468_v1 }
 0x7dc   : > { %v3497_v50 = vmul.f32 1.442695, %v3488_v59 }
 0x7de   : > { %7731 = vpow2.f32 %v3497_v50 }
 0x7e1   : > { %v3474_v55 = vpop.xlane.xlu0 %3473 }
 0x7e2   : > { %v3490_v5 = vsub.f32 %v3458_v25, %v3474_v55 }
 0x7e4   : > { %v3501_v63 = vmul.f32 1.442695, %v3490_v5 }
 0x7e5   : > { %v3477_v51 = vpop.xlane.xlu0 %3476 }
 0x7e6   : > { %7733 = vpow2.f32 %v3501_v63  ;;  %v3491_v38 = vsub.f32 %v3459_v61, %v3477_v51 }
 0x7e8   : > { %v3503_v2 = vmul.f32 1.442695, %v3491_v38 }
 0x7e9   : > { %v3480_v38 = vpop.xlane.xlu1 %3479  ;;  %v3483_v59 = vpop.xlane.xlu0 %3482 }
 0x7ea   : > { %7735 = vpow2.f32 %v3503_v2  ;;  %v3492_v61 = vsub.f32 %v3460_v42, %v3480_v38  ;;  %v3493_v50 = vsub.f32 %v9227_v44, %v3483_v59 }
 0x7eb   : > { %v9255_v22 = vpop.eup %7731 }
 0x7ec   : > { %v3514_v3 = vsel %vm1701_vm9, %v9255_v22, 0.0  ;;  %v3505_v55 = vmul.f32 1.442695, %v3492_v61  ;;  %v3507_v5 = vmul.f32 1.442695, %v3493_v50  ;;  %v3661_v50 = vsel %vm1801_vm2, %v3656_v49, 0 }
 0x7ed   : > { %3515 = vadd.xlane.f32.xlu1 %v3514_v3  ;;  %v3800_v44 = vpop.permute.xlu1 %3799  ;;  %v3752_v42 = vpop.permute.xlu0 %3751 }
 0x7ee   : > { %7737 = vpow2.f32 %v3505_v55  ;;  %v3757_v49 = vsel %vm1801_vm2, %v3752_v42, 0  ;;  %v3805_v55 = vsel %vm1801_vm2, %v3800_v44, 0 }
 0x7ef   : > { %7739 = vpow2.f32 %v3507_v5 }
 0x7f3   : > { %v9259_v16 = vpop.eup %7733 }
 0x7f4   : > { %v3520_v15 = vsel %vm1701_vm9, %v9259_v16, 0.0 }
 0x7f5   : > { %3521 = vadd.xlane.f32.xlu1 %v3520_v15 }
 0x7f7   : > { %v9263_v1 = vpop.eup %7735 }
 0x7f8   : > { %v3523_v25 = vsel %vm1701_vm9, %v9263_v1, 0.0 }
 0x7f9   : > { %3524 = vadd.xlane.f32.xlu0 %v3523_v25 }
 0x7fb   : > { %v9272_v63 = vpop.eup %7737 }
 0x7fc   : > { %v3526_v51 = vsel %vm1701_vm9, %v9272_v63, 0.0  ;;  %v9276_v2 = vpop.eup %7739 }
 0x7fd   : > { %v3529_v3 = vsel %vm1701_vm9, %v9276_v2, 0.0 }
 0x806   : > { %3895 = vrot.lane.b32.xlu1 %v8924_v9, %s8164_s23 }
 0x80f   : > { %3847 = vrot.lane.b32.xlu0 %v8886_v24, %s8164_s23 }
 0x81e   : > { %v3486_v15 = vpop.xlane.xlu1 %3485 }
 0x81f   : > { %v3494_v25 = vsub.f32 %v9240_v52, %v3486_v15 }
 0x821   : > { %v3509_v61 = vmul.f32 1.442695, %v3494_v25 }
 0x82a   : > { %3527 = vadd.xlane.f32.xlu1 %v3526_v51 }
 0x82e   : > { %3530 = vadd.xlane.f32.xlu0 %v3529_v3 }
 0x83b   : > { %3995 = vrot.lane.b32.xlu1 %v8519_v57, %s8165_s4 }
 0x844   : > { %3945 = vrot.lane.b32.xlu0 %v8511_v45, %s8165_s4 }
 0x845   : > { %v3513_v38 = vpop.xlane.xlu0 %3512 }
 0x846   : > { %7741 = vrcp.f32 %v3513_v38 }
 0x847   : > { %7743 = vpow2.f32 %v3509_v61 }
 0x848   : > { %3943 = vrot.lane.b32.xlu0 %v8525_v62, %s8165_s4 }
 0x84c   : > { %4045 = vrot.lane.b32.xlu0 %v8544_v8, %s8165_s4 }
 0x84d   : > { %v3519_v59 = vpop.xlane.xlu0 %3518 }
 0x84e   : > { %7745 = vrcp.f32 %v3519_v59 }
 0x850   : > { %4043 = vrot.lane.b32.xlu0 %v8568_v21, %s8165_s4 }
 0x853   : > { %v7742_v57 = vpop.eup %7741 }
 0x854   : > { %4145 = vrot.lane.b32.xlu0 %v8522_v60, %s8165_s4  ;;  %v3543_v45 = vmul.f32 %v7742_v57, %v9245_v0  ;;  %v9300_v62 = vpop.eup %7743 }
 0x855   : > { %v3532_v21 = vsel %vm1701_vm9, %v9300_v62, 0.0 }
 0x856   : > { %v3551_v52 = vpack.c.bf16 %v3543_v45, %v3543_v45 }
 0x858   : > { %4143 = vrot.lane.b32.xlu0 %v8542_v7, %s8165_s4  ;;  %7167 = vmatmul.mubr.msk.bf16.vlgmr.msra.gmra.mxu0 %vm1701_vm9, %v3551_v52 }
 0x859   : > { %7177 = vmatpush3.bf16.msra.mxu0 %v3661_v50  ;;  %7178 = vmatprep.mubr.msk.bf16.mxu0 %vm8161_vm0, %v10067_v53 }
 0x85a   : > { %7188 = vmatprep.subr.bf16.mxu0 %v10067_v53 }
 0x85b   : > { %v7746_v8 = vpop.eup %7745 }
 0x85c   : > { %4245 = vrot.lane.b32.xlu0 %v8535_v4, %s8165_s4  ;;  %v3545_v60 = vmul.f32 %v7746_v8, %v9249_v28 }
 0x85e   : > { %v3553_v7 = vpack.c.bf16 %v3545_v60, %v3545_v60 }
 0x85f   : > { %3533 = vadd.xlane.f32.xlu1 %v3532_v21 }
 0x860   : > { %4243 = vrot.lane.b32.xlu0 %v8563_v17, %s8165_s4  ;;  %7179 = vmatmul.mubr.msk.bf16.vlgmr.msra.gmra.mxu0 %vm1701_vm9, %v3553_v7 }
 0x861   : > { %7189 = vmatpush3.bf16.msra.mxu0 %v3757_v49  ;;  %7190 = vmatprep.mubr.msk.bf16.mxu0 %vm8161_vm0, %v10067_v53 }
 0x862   : > { %7200 = vmatprep.subr.bf16.mxu0 %v10067_v53 }
 0x870   : > { %3993 = vrot.lane.b32.xlu1 %v8549_v11, %s8165_s4 }
 0x874   : > { %4095 = vrot.lane.b32.xlu1 %v8566_v19, %s8165_s4 }
 0x876   : > { %v3516_v4 = vpop.xlane.xlu1 %3515 }
 0x877   : > { %7747 = vrcp.f32 %v3516_v4 }
 0x878   : > { %4093 = vrot.lane.b32.xlu1 %v8586_v29, %s8165_s4 }
 0x87c   : > { %4195 = vrot.lane.b32.xlu1 %v8582_v27, %s8165_s4  ;;  %v3709_v27 = vsel %vm1801_vm2, %v9253_v20, 0 }
 0x87e   : > { %v3522_v17 = vpop.xlane.xlu1 %3521 }
 0x87f   : > { %7749 = vrcp.f32 %v3522_v17 }
 0x880   : > { %4193 = vrot.lane.b32.xlu1 %v8599_v35, %s8165_s4 }
 0x882   : > { %v3525_v0 = vpop.xlane.xlu0 %3524 }
 0x883   : > { %7751 = vrcp.f32 %v3525_v0 }
 0x884   : > { %v7748_v28 = vpop.eup %7747  ;;  %4295 = vrot.lane.b32.xlu1 %v8595_v33, %s8165_s4 }
 0x885   : > { %v3544_v11 = vmul.f32 %v7748_v28, %v9255_v22 }
 0x886   : > { %v3848_v20 = vpop.permute.xlu0 %3847 }
 0x887   : > { %v3552_v19 = vpack.c.bf16 %v3544_v11, %v3544_v11  ;;  %v3853_v51 = vsel %vm1801_vm2, %v3848_v20, 0 }
 0x888   : > { %4293 = vrot.lane.b32.xlu1 %v8608_v39, %s8165_s4 }
 0x889   : > { %7173 = vmatmul.mubr.msk.bf16.vlgmr.msra.gmra.mxu1 %vm1701_vm9, %v3552_v19 }
 0x88a   : > { %7183 = vmatpush3.bf16.msra.mxu1 %v3709_v27  ;;  %7184 = vmatprep.mubr.msk.bf16.mxu1 %vm8161_vm0, %v10067_v53 }
 0x88b   : > { %7194 = vmatprep.subr.bf16.mxu1 %v10067_v53 }
 0x88c   : > { %v7750_v29 = vpop.eup %7749 }
 0x88d   : > { %v3546_v33 = vmul.f32 %v7750_v29, %v9259_v16  ;;  %v3896_v16 = vpop.permute.xlu1 %3895 }
 0x88e   : > { %v3901_v59 = vsel %vm1801_vm2, %v3896_v16, 0 }
 0x88f   : > { %v3554_v35 = vpack.c.bf16 %v3546_v33, %v3546_v33 }
 0x890   : > { %v7752_v22 = vpop.eup %7751 }
 0x891   : > { %7185 = vmatmul.mubr.msk.bf16.vlgmr.msra.gmra.mxu1 %vm1701_vm9, %v3554_v35  ;;  %v3547_v39 = vmul.f32 %v7752_v22, %v9263_v1 }
 0x892   : > { %7195 = vmatpush3.bf16.msra.mxu1 %v3805_v55  ;;  %7196 = vmatprep.mubr.msk.bf16.mxu1 %vm8161_vm0, %v10067_v53 }
 0x893   : > { %v3555_v5 = vpack.c.bf16 %v3547_v39, %v3547_v39  ;;  %7206 = vmatprep.subr.bf16.mxu1 %v10067_v53 }
 0x895   : > { %7191 = vmatmul.mubr.msk.bf16.vlgmr.msra.gmra.mxu0 %vm1701_vm9, %v3555_v5 }
 0x896   : > { %7201 = vmatpush3.bf16.msra.mxu0 %v3853_v51  ;;  %7202 = vmatprep.mubr.msk.bf16.mxu0 %vm8161_vm0, %v10067_v53 }
 0x897   : > { %7212 = vmatprep.subr.bf16.mxu0 %v10067_v53 }
 0x8b3   : > { %v3528_v1 = vpop.xlane.xlu1 %3527 }
 0x8b4   : > { %7753 = vrcp.f32 %v3528_v1 }
 0x8b7   : > { %v3531_v3 = vpop.xlane.xlu0 %3530  ;;  %v3996_v4 = vpop.permute.xlu1 %3995 }
 0x8b8   : > { %7755 = vrcp.f32 %v3531_v3  ;;  %v4001_v33 = vsel %vm1324_vm1, %v3996_v4, 0 }
 0x8bb   : > { %v3946_v44 = vpop.permute.xlu0 %3945 }
 0x8bc   : > { %v3951_v50 = vsel %vm1324_vm1, %v3946_v44, 0 }
 0x8bf   : > { %v3944_v15 = vpop.permute.xlu0 %3943 }
 0x8c1   : > { %v7754_v42 = vpop.eup %7753 }
 0x8c2   : > { %v3548_v25 = vmul.f32 %v7754_v42, %v9272_v63 }
 0x8c3   : > { %v4046_v45 = vpop.permute.xlu0 %4045 }
 0x8c4   : > { %v3556_v38 = vpack.c.bf16 %v3548_v25, %v3548_v25 }
 0x8c5   : > { %v7756_v61 = vpop.eup %7755 }
 0x8c6   : > { %7197 = vmatmul.mubr.msk.bf16.vlgmr.msra.gmra.mxu1 %vm1701_vm9, %v3556_v38  ;;  %v3549_v57 = vmul.f32 %v7756_v61, %v9276_v2  ;;  %v4051_v2 = vsel %vm1324_vm1, %v4046_v45, 0 }
 0x8c7   : > { %7207 = vmatpush3.bf16.msra.mxu1 %v3901_v59  ;;  %7208 = vmatprep.mubr.msk.bf16.mxu1 %vm8161_vm0, %v10067_v53  ;;  %v4044_v63 = vpop.permute.xlu0 %4043 }
 0x8c8   : > { %v3557_v52 = vpack.c.bf16 %v3549_v57, %v3549_v57  ;;  %7218 = vmatprep.subr.bf16.mxu1 %v10067_v53 }
 0x8ca   : > { %7203 = vmatmul.mubr.msk.bf16.vlgmr.msra.gmra.mxu0 %vm1701_vm9, %v3557_v52 }
 0x8cb   : > { %7213 = vmatpush3.bf16.xpose.msra.mxu0 %v3951_v50  ;;  %7214 = vmatprep.mubr.msk.bf16.mxu0 %vm8161_vm0, %v10067_v53  ;;  %v4146_v8 = vpop.permute.xlu0 %4145 }
 0x8cc   : > { %7224 = vmatprep.subr.bf16.mxu0 %v10067_v53  ;;  %v4151_v21 = vsel %vm1324_vm1, %v4146_v8, 0 }
 0x8cf   : > { %v4144_v60 = vpop.permute.xlu0 %4143 }
 0x8d2   : > { %7215 = vmatmul.mubr.msk.bf16.vlgmr.msra.gmra.mxu0 %vm1324_vm1, %v3944_v15 }
 0x8d3   : > { %7225 = vmatpush3.bf16.xpose.msra.mxu0 %v4051_v2  ;;  %7226 = vmatprep.mubr.msk.bf16.mxu0 %vm8161_vm0, %v10067_v53  ;;  %v4246_v7 = vpop.permute.xlu0 %4245 }
 0x8d4   : > { %7236 = vmatprep.subr.bf16.mxu0 %v10067_v53  ;;  %v4251_v49 = vsel %vm1324_vm1, %v4246_v7, 0 }
 0x8d7   : > { %v4244_v0 = vpop.permute.xlu0 %4243 }
 0x8da   : > { %7227 = vmatmul.mubr.msk.bf16.vlgmr.msra.gmra.mxu0 %vm1324_vm1, %v4044_v63 }
 0x8db   : > { %7237 = vmatpush3.bf16.xpose.msra.mxu0 %v4151_v21  ;;  %7238 = vmatprep.mubr.msk.bf16.mxu0 %vm8161_vm0, %v10067_v53 }
 0x8dc   : > { %7248 = vmatprep.subr.bf16.mxu0 %v10067_v53 }
 0x8e2   : > { %7239 = vmatmul.mubr.msk.bf16.vlgmr.msra.gmra.mxu0 %vm1324_vm1, %v4144_v60 }
 0x8e3   : > { %7249 = vmatpush3.bf16.xpose.msra.mxu0 %v4251_v49  ;;  %7250 = vmatprep.mubr.msk.bf16.mxu0 %vm8161_vm0, %v10067_v53 }
 0x8e4   : > { %7260 = vmatprep.subr.bf16.mxu0 %v10067_v53 }
 0x8e8   : > { %v3534_v17 = vpop.xlane.xlu1 %3533 }
 0x8e9   : > { %7757 = vrcp.f32 %v3534_v17 }
 0x8ea   : > { %7251 = vmatmul.mubr.msk.bf16.vlgmr.msra.gmra.mxu0 %vm1324_vm1, %v4244_v0 }
 0x8eb   : > { %7262 = vmatprep.mubr.msk.bf16.mxu0 %vm8161_vm0, %v10067_v53 }
 0x8ec   : > { %v3994_v28 = vpop.permute.xlu1 %3993 }
 0x8f0   : > { %v4096_v27 = vpop.permute.xlu1 %4095 }
 0x8f1   : > { %v4101_v22 = vsel %vm1324_vm1, %v4096_v27, 0 }
 0x8f4   : > { %v4094_v35 = vpop.permute.xlu1 %4093 }
 0x8f6   : > { %v7758_v11 = vpop.eup %7757 }
 0x8f7   : > { %v3550_v19 = vmul.f32 %v7758_v11, %v9300_v62 }
 0x8f8   : > { %v4196_v55 = vpop.permute.xlu1 %4195 }
 0x8f9   : > { %v3558_v29 = vpack.c.bf16 %v3550_v19, %v3550_v19  ;;  %v4201_v39 = vsel %vm1324_vm1, %v4196_v55, 0 }
 0x8fb   : > { %7209 = vmatmul.mubr.msk.bf16.vlgmr.msra.gmra.mxu1 %vm1701_vm9, %v3558_v29 }
 0x8fc   : > { %7219 = vmatpush3.bf16.xpose.msra.mxu1 %v4001_v33  ;;  %7220 = vmatprep.mubr.msk.bf16.mxu1 %vm8161_vm0, %v10067_v53  ;;  %v4194_v62 = vpop.permute.xlu1 %4193 }
 0x8fd   : > { %7230 = vmatprep.subr.bf16.mxu1 %v10067_v53 }
 0x900   : > { %v4296_v20 = vpop.permute.xlu1 %4295 }
 0x901   : > { %v4301_v5 = vsel %vm1324_vm1, %v4296_v20, 0 }
 0x903   : > { %7221 = vmatmul.mubr.msk.bf16.vlgmr.msra.gmra.mxu1 %vm1324_vm1, %v3994_v28 }
 0x904   : > { %7231 = vmatpush3.bf16.xpose.msra.mxu1 %v4101_v22  ;;  %7232 = vmatprep.mubr.msk.bf16.mxu1 %vm8161_vm0, %v10067_v53  ;;  %v4294_v16 = vpop.permute.xlu1 %4293 }
 0x905   : > { %7242 = vmatprep.subr.bf16.mxu1 %v10067_v53 }
 0x90b   : > { %7233 = vmatmul.mubr.msk.bf16.vlgmr.msra.gmra.mxu1 %vm1324_vm1, %v4094_v35 }
 0x90c   : > { %7243 = vmatpush3.bf16.xpose.msra.mxu1 %v4201_v39  ;;  %7244 = vmatprep.mubr.msk.bf16.mxu1 %vm8161_vm0, %v10067_v53 }
 0x90d   : > { %7254 = vmatprep.subr.bf16.mxu1 %v10067_v53 }
 0x913   : > { %7245 = vmatmul.mubr.msk.bf16.vlgmr.msra.gmra.mxu1 %vm1324_vm1, %v4194_v62 }
 0x914   : > { %7255 = vmatpush3.bf16.xpose.msra.mxu1 %v4301_v5  ;;  %7256 = vmatprep.mubr.msk.bf16.mxu1 %vm8161_vm0, %v10067_v53 }
 0x915   : > { %7266 = vmatprep.subr.bf16.mxu1 %v10067_v53 }
 0x918   : > { %v9399_v51 = vpop.f32.mrf.mxu0 }
 0x91a   : > { %v7168_v1 = vpop.f32.mrf.mxu0 }
 0x91b   : > { %7257 = vmatmul.mubr.msk.bf16.vlgmr.msra.gmra.mxu1 %vm1324_vm1, %v4294_v16 }
 0x91c   : > { %v3604_v3 = vpop.f32.mrf.mxu0  ;;  %7268 = vmatprep.mubr.msk.bf16.mxu1 %vm8161_vm0, %v10067_v53 }
 0x91e   : > { %v7169_v44 = vpop.f32.mrf.mxu0 }
 0x920   : > { %v9404_v42 = vpop.f32.mrf.mxu0 }
 0x922   : > { %v7180_v15 = vpop.f32.mrf.mxu0 }
 0x924   : > { %v3700_v25 = vpop.f32.mrf.mxu0 }
 0x926   : > { %v7181_v38 = vpop.f32.mrf.mxu0 }
 0x949   : > { %v9406_v61 = vpop.f32.mrf.mxu1 }
 0x94a   : > { %v7501_v59 = vpack.i.bf16 %v9406_v61, %v9399_v51 }
 0x94b   : > { %v7174_v57 = vpop.f32.mrf.mxu1 }
 0x94d   : > { %v3652_v45 = vpop.f32.mrf.mxu1 }
 0x94f   : > { %v7175_v52 = vpop.f32.mrf.mxu1 }
 0x951   : > { %v9410_v50 = vpop.f32.mrf.mxu1 }
 0x952   : > { %v7506_v63 = vpack.i.bf16 %v9410_v50, %v9404_v42 }
 0x953   : > { %v7186_v2 = vpop.f32.mrf.mxu1 }
 0x955   : > { %v3748_v8 = vpop.f32.mrf.mxu1  ;;  %v9414_v60 = vpop.f32.mrf.mxu0 }
 0x957   : > { %v7187_v21 = vpop.f32.mrf.mxu1  ;;  %v7192_v7 = vpop.f32.mrf.mxu0 }
 0x959   : > { %v3796_v49 = vpop.f32.mrf.mxu0 }
 0x95b   : > { %v7193_v4 = vpop.f32.mrf.mxu0 }
 0x986   : > { %v9416_v17 = vpop.f32.mrf.mxu1 }
 0x987   : > { %v7531_v0 = vpack.i.bf16 %v9416_v17, %v9414_v60  ;;  %v7582_v17 = vld [vmem:[#allocation11] sm:$0xff]  }
 0x988   : > { %v7198_v28 = vpop.f32.mrf.mxu1 }
 0x98a   : > { %v3844_v11 = vpop.f32.mrf.mxu1  ;;  %v9420_v19 = vpop.f32.mrf.mxu0 }
 0x98c   : > { %v7199_v27 = vpop.f32.mrf.mxu1  ;;  %v7204_v29 = vpop.f32.mrf.mxu0 }
 0x98e   : > { %v3892_v33 = vpop.f32.mrf.mxu0 }
 0x990   : > { %v7205_v35 = vpop.f32.mrf.mxu0 }
 0x992   : > { %v3987_v22 = vpop.f32.mrf.mxu0 }
 0x993   : > { %v9424_v55 = vsel %vm8666_vm8, %v3987_v22, -1e+30 }
 0x994   : > { %v4351_v62 = vsel %vm1701_vm9, %v9424_v55, -inf  ;;  %v7216_v39 = vpop.f32.mrf.mxu0 }
 0x995   : > { %4352 = vmax.xlane.f32.xlu0 %v4351_v62 }
 0x996   : > { %v3990_v20 = vpop.f32.mrf.mxu0 }
 0x998   : > { %v7217_v5 = vpop.f32.mrf.mxu0 }
 0x99a   : > { %v4087_v16 = vpop.f32.mrf.mxu0 }
 0x99b   : > { %v9430_v1 = vsel %vm8719_vm10, %v4087_v16, -1e+30 }
 0x99c   : > { %v4357_v3 = vsel %vm1701_vm9, %v9430_v1, -inf  ;;  %v7228_v44 = vpop.f32.mrf.mxu0 }
 0x99d   : > { %4358 = vmax.xlane.f32.xlu0 %v4357_v3 }
 0x99e   : > { %v4090_v18 = vpop.f32.mrf.mxu0 }
 0x9a0   : > { %v7229_v15 = vpop.f32.mrf.mxu0 }
 0x9a2   : > { %v4187_v25 = vpop.f32.mrf.mxu0 }
 0x9a3   : > { %v4347_v16 = vsel %vm8691_vm15, %v4187_v25, -1e+30 }
 0x9a4   : > { %v7240_v38 = vpop.f32.mrf.mxu0  ;;  %v4363_v3 = vsel %vm1701_vm9, %v4347_v16, -inf }
 0x9a6   : > { %v4190_v57 = vpop.f32.mrf.mxu0 }
 0x9a8   : > { %v7241_v45 = vpop.f32.mrf.mxu0 }
 0x9aa   : > { %v4287_v52 = vpop.f32.mrf.mxu0 }
 0x9ab   : > { %v4349_v18 = vsel %vm8713_vm7, %v4287_v52, -1e+30 }
 0x9ac   : > { %v7252_v2 = vpop.f32.mrf.mxu0  ;;  %v4369_v38 = vsel %vm1701_vm9, %v4349_v18, -inf }
 0x9ae   : > { %v4290_v8 = vpop.f32.mrf.mxu0 }
 0x9b0   : > { %v7253_v21 = vpop.f32.mrf.mxu0 }
 0x9bb   : > { %v9434_v7 = vpop.f32.mrf.mxu1 }
 0x9bc   : > { %v7536_v14 = vpack.i.bf16 %v9434_v7, %v9420_v19 }
 0x9bd   : > { %v7210_v49 = vpop.f32.mrf.mxu1 }
 0x9bf   : > { %v3940_v4 = vpop.f32.mrf.mxu1 }
 0x9c1   : > { %v7211_v28 = vpop.f32.mrf.mxu1 }
 0x9c3   : > { %v4037_v11 = vpop.f32.mrf.mxu1 }
 0x9c4   : > { %v4344_v27 = vsel %vm8685_vm14, %v4037_v11, -1e+30 }
 0x9c5   : > { %v4354_v29 = vsel %vm1701_vm9, %v4344_v27, -inf  ;;  %v7222_v33 = vpop.f32.mrf.mxu1 }
 0x9c6   : > { %4355 = vmax.xlane.f32.xlu1 %v4354_v29 }
 0x9c7   : > { %v4040_v35 = vpop.f32.mrf.mxu1 }
 0x9c9   : > { %v7223_v22 = vpop.f32.mrf.mxu1 }
 0x9cb   : > { %v4137_v62 = vpop.f32.mrf.mxu1 }
 0x9cc   : > { %v9443_v39 = vsel %vm8737_vm13, %v4137_v62, -1e+30 }
 0x9cd   : > { %v4360_v20 = vsel %vm1701_vm9, %v9443_v39, -inf  ;;  %v7234_v5 = vpop.f32.mrf.mxu1 }
 0x9ce   : > { %4361 = vmax.xlane.f32.xlu0 %v4360_v20 }
 0x9cf   : > { %v4140_v37 = vpop.f32.mrf.mxu1 }
 0x9d1   : > { %v7235_v44 = vpop.f32.mrf.mxu1 }
 0x9d2   : > { %4364 = vmax.xlane.f32.xlu0 %v4363_v3 }
 0x9d3   : > { %v4237_v15 = vpop.f32.mrf.mxu1 }
 0x9d4   : > { %v9454_v48 = vsel %vm8752_vm5, %v4237_v15, -1e+30 }
 0x9d5   : > { %v4366_v41 = vsel %vm1701_vm9, %v9454_v48, -inf  ;;  %v7246_v25 = vpop.f32.mrf.mxu1 }
 0x9d6   : > { %4370 = vmax.xlane.f32.xlu0 %v4369_v38  ;;  %4367 = vmax.xlane.f32.xlu1 %v4366_v41 }
 0x9d7   : > { %v4240_v57 = vpop.f32.mrf.mxu1 }
 0x9d9   : > { %v7247_v45 = vpop.f32.mrf.mxu1 }
 0x9db   : > { %v4337_v2 = vpop.f32.mrf.mxu1 }
 0x9dc   : > { %v9467_v12 = vsel %vm8762_vm12, %v4337_v2, -1e+30 }
 0x9dd   : > { %v7258_v8 = vpop.f32.mrf.mxu1  ;;  %v4372_v21 = vsel %vm1701_vm9, %v9467_v12, -inf }
 0x9df   : > { %v4340_v10 = vpop.f32.mrf.mxu1 }
 0x9e1   : > { %v7259_v52 = vpop.f32.mrf.mxu1 }
 0x9e7   : > { %4495 = vrot.lane.b32.xlu1 %v8638_v58, %s8165_s4 }
 0x9eb   : > { %4543 = vrot.lane.b32.xlu1 %v8842_v54, %s8165_s4 }
 0x9ec   : > { %4447 = vrot.lane.b32.xlu0 %v8636_v56, %s8165_s4 }
 0xa0f   : > { %4373 = vmax.xlane.f32.xlu1 %v4372_v21  ;;  %v7491_v21 = vpack.i.bf16 %v9191_v34, %v9167_v23 }
 0xa1e   : > { %v4353_v49 = vpop.xlane.xlu0 %4352 }
 0xa1f   : > { %v4375_v4 = vsub.f32 %v9424_v55, %v4353_v49 }
 0xa20   : > { %4591 = vrot.lane.b32.xlu1 %v8857_v26, %s8165_s4 }
 0xa21   : > { %v4383_v58 = vmul.f32 1.442695, %v4375_v4 }
 0xa23   : > { %7759 = vpow2.f32 %v4383_v58 }
 0xa26   : > { %v4359_v54 = vpop.xlane.xlu0 %4358 }
 0xa27   : > { %v4377_v28 = vsub.f32 %v9430_v1, %v4359_v54 }
 0xa29   : > { %v4387_v56 = vmul.f32 1.442695, %v4377_v28 }
 0xa2b   : > { %7761 = vpow2.f32 %v4387_v56 }
 0xa30   : > { %v9475_v32 = vpop.eup %7759 }
 0xa31   : > { %v4399_v11 = vsel %vm1701_vm9, %v9475_v32, 0.0 }
 0xa32   : > { %4400 = vadd.xlane.f32.xlu0 %v4399_v11 }
 0xa38   : > { %v9479_v29 = vpop.eup %7761 }
 0xa39   : > { %v4405_v55 = vsel %vm1701_vm9, %v9479_v29, 0.0 }
 0xa3a   : > { %4406 = vadd.xlane.f32.xlu0 %v4405_v55 }
 0xa4f   : > { %v4356_v26 = vpop.xlane.xlu1 %4355 }
 0xa50   : > { %v4376_v33 = vsub.f32 %v4344_v27, %v4356_v26  ;;  %4639 = vrot.lane.b32.xlu0 %v8872_v43, %s8165_s4 }
 0xa52   : > { %v4385_v1 = vmul.f32 1.442695, %v4376_v33 }
 0xa54   : > { %7763 = vpow2.f32 %v4385_v1 }
 0xa57   : > { %v4362_v35 = vpop.xlane.xlu0 %4361 }
 0xa58   : > { %v4378_v2 = vsub.f32 %v9443_v39, %v4362_v35 }
 0xa5a   : > { %v4389_v8 = vmul.f32 1.442695, %v4378_v2 }
 0xa5b   : > { %v4365_v22 = vpop.xlane.xlu0 %4364 }
 0xa5c   : > { %v4379_v62 = vsub.f32 %v4347_v16, %v4365_v22 }
 0xa5e   : > { %v4391_v20 = vmul.f32 1.442695, %v4379_v62 }
 0xa5f   : > { %v4371_v5 = vpop.xlane.xlu0 %4370  ;;  %v4368_v37 = vpop.xlane.xlu1 %4367 }
 0xa60   : > { %7765 = vpow2.f32 %v4391_v20  ;;  %v4381_v3 = vsub.f32 %v4349_v18, %v4371_v5  ;;  %v4380_v10 = vsub.f32 %v9454_v48, %v4368_v37 }
 0xa61   : > { %v9485_v44 = vpop.eup %7763 }
 0xa62   : > { %v4395_v15 = vmul.f32 1.442695, %v4381_v3  ;;  %v4402_v38 = vsel %vm1701_vm9, %v9485_v44, 0.0  ;;  %v4393_v52 = vmul.f32 1.442695, %v4380_v10 }
 0xa63   : > { %v4448_v27 = vpop.permute.xlu0 %4447  ;;  %v4496_v41 = vpop.permute.xlu1 %4495  ;;  %4403 = vadd.xlane.f32.xlu1 %v4402_v38 }
 0xa64   : > { %7767 = vpow2.f32 %v4395_v15  ;;  %v4453_v43 = vsel %vm1801_vm2, %v4448_v27, 0  ;;  %v4501_v25 = vsel %vm1801_vm2, %v4496_v41, 0 }
 0xa65   : > { %7261 = vmatpush3.bf16.msra.mxu0 %v4453_v43  ;;  %7267 = vmatpush3.bf16.msra.mxu1 %v4501_v25  ;;  %7769 = vpow2.f32 %v4389_v8 }
 0xa66   : > { %7272 = vmatprep.subr.bf16.mxu0 %v10067_v53  ;;  %7278 = vmatprep.subr.bf16.mxu1 %v10067_v53  ;;  %7771 = vpow2.f32 %v4393_v52 }
 0xa67   : > { %v4544_v39 = vpop.permute.xlu1 %4543 }
 0xa68   : > { %v4549_v11 = vsel %vm1801_vm2, %v4544_v39, 0 }
 0xa6d   : > { %v9493_v16 = vpop.eup %7765 }
 0xa6e   : > { %v4411_v18 = vsel %vm1701_vm9, %v9493_v16, 0.0 }
 0xa6f   : > { %4412 = vadd.xlane.f32.xlu0 %v4411_v18 }
 0xa71   : > { %v9497_v57 = vpop.eup %7767 }
 0xa72   : > { %v4417_v45 = vsel %vm1701_vm9, %v9497_v57, 0.0 }
 0xa73   : > { %4418 = vadd.xlane.f32.xlu0 %v4417_v45 }
 0xa74   : > { %4687 = vrot.lane.b32.xlu1 %v8907_v46, %s8165_s4  ;;  %v9514_v46 = vpop.eup %7769 }
 0xa75   : > { %v4408_v48 = vsel %vm1701_vm9, %v9514_v46, 0.0  ;;  %v9518_v49 = vpop.eup %7771 }
 0xa76   : > { %v4414_v4 = vsel %vm1701_vm9, %v9518_v49, 0.0 }
 0xa89   : > { %4735 = vrot.lane.b32.xlu0 %v8886_v24, %s8165_s4 }
 0xa8d   : > { %7492 = vrot.lane.b32.xlu0 %v7491_v21, %s8165_s4 }
 0xa91   : > { %7502 = vrot.lane.b32.xlu0 %v7501_v59, %s8164_s23 }
 0xa98   : > { %4409 = vadd.xlane.f32.xlu1 %v4408_v48  ;;  %v4374_v24 = vpop.xlane.xlu1 %4373  ;;  %v10068_v48 = vmov 0  }
 0xa99   : > { %v4382_v23 = vsub.f32 %v9467_v12, %v4374_v24  ;;  %v7496_v12 = vpack.i.bf16 %v9193_v13, %v9174_v36 }
 0xa9b   : > { %v4397_v34 = vmul.f32 1.442695, %v4382_v23 }
 0xa9c   : > { %4415 = vadd.xlane.f32.xlu1 %v4414_v4 }
 0xa9d   : > { %7773 = vpow2.f32 %v4397_v34 }
 0xaaa   : > { %v9523_v51 = vpop.eup %7773 }
 0xaab   : > { %v4420_v61 = vsel %vm1701_vm9, %v9523_v51, 0.0 }
 0xaac   : > { %4421 = vadd.xlane.f32.xlu1 %v4420_v61 }
 0xabb   : > { %v4401_v59 = vpop.xlane.xlu0 %4400 }
 0xabc   : > { %7775 = vrcp.f32 %v4401_v59 }
 0xabd   : > { %4783 = vrot.lane.b32.xlu1 %v8924_v9, %s8165_s4 }
 0xac1   : > { %7497 = vrot.lane.b32.xlu1 %v7496_v12, %s8165_s4 }
 0xac3   : > { %v4407_v58 = vpop.xlane.xlu0 %4406 }
 0xac4   : > { %7777 = vrcp.f32 %v4407_v58 }
 0xac5   : > { %7507 = vrot.lane.b32.xlu1 %v7506_v63, %s8164_s23  ;;  %v4592_v63 = vpop.permute.xlu1 %4591 }
 0xac6   : > { %v4597_v35 = vsel %vm1801_vm2, %v4592_v63, 0 }
 0xac7   : > { %v4640_v13 = vpop.permute.xlu0 %4639 }
 0xac8   : > { %v4645_v50 = vsel %vm1801_vm2, %v4640_v13, 0  ;;  %v7578_v13 = vld [vmem:[#allocation11 + $0x20] sm:$0xff]  }
 0xac9   : > { %v7776_v54 = vpop.eup %7775 }
 0xaca   : > { %v4431_v28 = vmul.f32 %v7776_v54, %v9475_v32  ;;  %v7575_v54 = vld [vmem:[#allocation11 + $0x38] sm:$0xff]  }
 0xacc   : > { %v4439_v56 = vpack.c.bf16 %v4431_v28, %v4431_v28  ;;  %v7576_v28 = vld [vmem:[#allocation11 + $0x30] sm:$0xff]  }
 0xace   : > { %7263 = vmatmul.mubr.msk.bf16.vlgmr.msra.gmra.mxu0 %vm1701_vm9, %v4439_v56 }
 0xacf   : > { %7273 = vmatpush3.bf16.msra.mxu0 %v4549_v11  ;;  %7274 = vmatprep.mubr.msk.bf16.mxu0 %vm8161_vm0, %v10067_v53  ;;  %v7577_v11 = vld [vmem:[#allocation11 + $0x28] sm:$0xff]  }
 0xad0   : > { %7284 = vmatprep.subr.bf16.mxu0 %v10067_v53 }
 0xad1   : > { %v7778_v9 = vpop.eup %7777 }
 0xad2   : > { %v4433_v36 = vmul.f32 %v7778_v9, %v9479_v29 }
 0xad4   : > { %v4441_v42 = vpack.c.bf16 %v4433_v36, %v4433_v36  ;;  %v10069_v36 = vpack.i.bf16 %v9197_v40, %v9195_v31  ;;  %v7581_v40 = vld [vmem:[#allocation11 + $0x8] sm:$0xff]  }
 0xad6   : > { %7275 = vmatmul.mubr.msk.bf16.vlgmr.msra.gmra.mxu0 %vm1701_vm9, %v4441_v42 }
 0xad7   : > { %7285 = vmatpush3.bf16.msra.mxu0 %v4645_v50  ;;  %7286 = vmatprep.mubr.msk.bf16.mxu0 %vm8161_vm0, %v10067_v53  ;;  %v7579_v50 = vld [vmem:[#allocation11 + $0x18] sm:$0xff]  }
 0xad8   : > { %7296 = vmatprep.subr.bf16.mxu0 %v10067_v53 }
 0xaec   : > { %v4404_v32 = vpop.xlane.xlu1 %4403 }
 0xaed   : > { %7779 = vrcp.f32 %v4404_v32 }
 0xaf0   : > { %v4688_v38 = vpop.permute.xlu1 %4687 }
 0xaf1   : > { %v4693_v45 = vsel %vm1801_vm2, %v4688_v38, 0 }
 0xaf8   : > { %v4413_v55 = vpop.xlane.xlu0 %4412 }
 0xaf9   : > { %7781 = vrcp.f32 %v4413_v55  ;;  %v7580_v55 = vld [vmem:[#allocation11 + $0x10] sm:$0xff]  }
 0xafa   : > { %v7780_v26 = vpop.eup %7779 }
 0xafb   : > { %v4432_v29 = vmul.f32 %v7780_v26, %v9485_v44 }
 0xafc   : > { %v4419_v33 = vpop.xlane.xlu0 %4418 }
 0xafd   : > { %v4440_v1 = vpack.c.bf16 %v4432_v29, %v4432_v29  ;;  %7783 = vrcp.f32 %v4419_v33 }
 0xaff   : > { %7269 = vmatmul.mubr.msk.bf16.vlgmr.msra.gmra.mxu1 %vm1701_vm9, %v4440_v1 }
 0xb00   : > { %7279 = vmatpush3.bf16.msra.mxu1 %v4597_v35  ;;  %7280 = vmatprep.mubr.msk.bf16.mxu1 %vm8161_vm0, %v10067_v53  ;;  %v4736_v20 = vpop.permute.xlu0 %4735 }
 0xb01   : > { %7290 = vmatprep.subr.bf16.mxu1 %v10067_v53  ;;  %v4741_v3 = vsel %vm1801_vm2, %v4736_v20, 0  ;;  %v10070_v20 = vpack.i.bf16 %v9212_v47, %v9201_v6 }
 0xb04   : > { %v7493_v47 = vpop.permute.xlu0 %7492 }
 0xb06   : > { %v7782_v22 = vpop.eup %7781 }
 0xb07   : > { %v4435_v62 = vmul.f32 %v7782_v22, %v9493_v16 }
 0xb09   : > { %v4443_v5 = vpack.c.bf16 %v4435_v62, %v4435_v62 }
 0xb0a   : > { %v7784_v37 = vpop.eup %7783 }
 0xb0b   : > { %7287 = vmatmul.mubr.msk.bf16.vlgmr.msra.gmra.mxu0 %vm1701_vm9, %v4443_v5  ;;  %v4437_v44 = vmul.f32 %v7784_v37, %v9497_v57 }
 0xb0c   : > { %7297 = vmatpush3.bf16.msra.mxu0 %v4741_v3  ;;  %7298 = vmatprep.mubr.msk.bf16.mxu0 %vm8161_vm0, %v10067_v53 }
 0xb0d   : > { %v4445_v15 = vpack.c.bf16 %v4437_v44, %v4437_v44  ;;  %7308 = vmatprep.subr.bf16.mxu0 %v7575_v54 }
 0xb13   : > { %7299 = vmatmul.mubr.msk.bf16.vlgmr.msra.gmra.mxu0 %vm1701_vm9, %v4445_v15 }
 0xb14   : > { %7309 = vmatpush3.bf16.msra.mxu0 %v7575_v54 }
 0xb15   : > { %7310 = vmatprep.subr.bf16.mxu0 %v7576_v28 }
 0xb18   : > { %7311 = vmatpush3.bf16.msra.mxu0 %v7576_v28  ;;  %v10073_v28 = vld [vmem:[#allocation34_spill] sm:$0xff] }
 0xb19   : > { %7312 = vmatprep.subr.bf16.mxu0 %v7577_v11 }
 0xb1c   : > { %7313 = vmatpush3.bf16.msra.mxu0 %v7577_v11 }
 0xb1d   : > { %7314 = vmatprep.subr.bf16.mxu0 %v7578_v13 }
 0xb20   : > { %7315 = vmatpush3.bf16.msra.mxu0 %v7578_v13 }
 0xb21   : > { %v4410_v27 = vpop.xlane.xlu1 %4409  ;;  %7316 = vmatprep.subr.bf16.mxu0 %v7579_v50 }
 0xb22   : > { %7785 = vrcp.f32 %v4410_v27 }
 0xb24   : > { %7317 = vmatpush3.bf16.msra.mxu0 %v7579_v50 }
 0xb25   : > { %v4416_v41 = vpop.xlane.xlu1 %4415  ;;  %7318 = vmatprep.subr.bf16.mxu0 %v7580_v55 }
 0xb26   : > { %7787 = vrcp.f32 %v4416_v41 }
 0xb28   : > { %7319 = vmatpush3.bf16.msra.mxu0 %v7580_v55 }
 0xb29   : > { %7320 = vmatprep.subr.bf16.mxu0 %v7581_v40 }
 0xb2c   : > { %7321 = vmatpush3.bf16.msra.mxu0 %v7581_v40  ;;  %v10074_v40 = vld [vmem:[#allocation38_spill] sm:$0xff] }
 0xb2d   : > { %7322 = vmatprep.subr.bf16.mxu0 %v7582_v17 }
 0xb2f   : > { %v7786_v43 = vpop.eup %7785 }
 0xb30   : > { %v4434_v25 = vmul.f32 %v7786_v43, %v9514_v46  ;;  %7323 = vmatpush3.bf16.msra.mxu0 %v7582_v17 }
 0xb32   : > { %v4442_v16 = vpack.c.bf16 %v4434_v25, %v4434_v25  ;;  %v7503_v25 = vpop.permute.xlu0 %7502 }
 0xb33   : > { %v7788_v18 = vpop.eup %7787 }
 0xb34   : > { %7281 = vmatmul.mubr.msk.bf16.vlgmr.msra.gmra.mxu1 %vm1701_vm9, %v4442_v16  ;;  %v4436_v57 = vmul.f32 %v7788_v18, %v9518_v49  ;;  %v7495_v16 = vunpack.i.h.bf16 %v7493_v47  ;;  %v7494_v18 = vunpack.i.l.bf16 %v7493_v47 }
 0xb35   : > { %7291 = vmatpush3.bf16.msra.mxu1 %v4693_v45  ;;  %v4422_v2 = vpop.xlane.xlu1 %4421  ;;  %7292 = vmatprep.mubr.msk.bf16.mxu1 %vm8161_vm0, %v10067_v53  ;;  %v7505_v45 = vunpack.i.h.bf16 %v7503_v25 }
 0xb36   : > { %7789 = vrcp.f32 %v4422_v2  ;;  %7302 = vmatprep.subr.bf16.mxu1 %v10067_v53  ;;  %v4444_v10 = vpack.c.bf16 %v4436_v57, %v4436_v57  ;;  %v7504_v2 = vunpack.i.l.bf16 %v7503_v25  ;;  %v4928_v7 = vsel %vm1324_vm1, %v8970_v30, %v7495_v16 }
 0xb39   : > { %v4784_v8 = vpop.permute.xlu1 %4783 }
 0xb3a   : > { %v4789_v52 = vsel %vm1801_vm2, %v4784_v8, 0  ;;  %vm4944_vm2 = vcmask 785408  }
 0xb3c   : > { %7293 = vmatmul.mubr.msk.bf16.vlgmr.msra.gmra.mxu1 %vm1701_vm9, %v4444_v10 }
 0xb3d   : > { %7303 = vmatpush3.bf16.msra.mxu1 %v4789_v52  ;;  %7304 = vmatprep.mubr.msk.bf16.mxu1 %vm8161_vm0, %v10067_v53  ;;  %vm4935_vm0 = vcmask 523264  }
 0xb43   : > { %v7790_v21 = vpop.eup %7789 }
 0xb44   : > { %v4438_v46 = vmul.f32 %v7790_v21, %v9523_v51  ;;  %v4937_v21 = vsel %vm4935_vm0, %v4928_v7, %v7505_v45 }
 0xb46   : > { %v4446_v39 = vpack.c.bf16 %v4438_v46, %v4438_v46 }
 0xb48   : > { %7305 = vmatmul.mubr.msk.bf16.vlgmr.msra.gmra.mxu1 %vm1701_vm9, %v4446_v39 }
 0xb49   : > { %5470 = vmatprep.mubr.bf16.mxu1 %v10068_v48 }
 0xb8e   : > { %v4489_v49 = vpop.f32.mrf.mxu0 }
 0xb90   : > { %v7264_v24 = vpop.f32.mrf.mxu0 }
 0xb91   : > { %v7498_v24 = vpop.permute.xlu1 %7497 }
 0xb92   : > { %v4492_v23 = vpop.f32.mrf.mxu0 }
 0xb94   : > { %v7265_v34 = vpop.f32.mrf.mxu0 }
 0xb95   : > { %v7508_v23 = vpop.permute.xlu1 %7507  ;;  %v7500_v34 = vunpack.i.h.bf16 %v7498_v24 }
 0xb96   : > { %v4585_v4 = vpop.f32.mrf.mxu0 }
 0xb98   : > { %v7276_v61 = vpop.f32.mrf.mxu0 }
 0xb99   : > { %v7510_v61 = vunpack.i.h.bf16 %v7508_v23 }
 0xb9a   : > { %v4588_v59 = vpop.f32.mrf.mxu0 }
 0xb9b   : > { %v7509_v59 = vunpack.i.l.bf16 %v7508_v23  ;;  %v7824_v23 = vld [vmem:[%s8456_s21 + $0x10] sm:$0xff] }
 0xb9c   : > { %v7277_v12 = vpop.f32.mrf.mxu0 }
 0xbbf   : > { %v4537_v58 = vpop.f32.mrf.mxu1 }
 0xbc0   : > { %v7511_v53 = vpack.i.bf16 %v4537_v58, %v4489_v49  ;;  %v10072_v58 = vld [vmem:[#allocation37_spill] sm:$0xff] }
 0xbc1   : > { %v7270_v56 = vpop.f32.mrf.mxu1  ;;  %v4930_v54 = vsel %vm1324_vm1, %v10072_v58, %v7500_v34 }
 0xbc2   : > { %7512 = vrot.lane.b32.xlu0 %v7511_v53, %s8163_s24 }
 0xbc3   : > { %v4540_v51 = vpop.f32.mrf.mxu1 }
 0xbc5   : > { %v7271_v9 = vpop.f32.mrf.mxu1 }
 0xbc6   : > { %7522 = vrot.lane.b32.xlu0 %v10069_v36, %s8165_s4  ;;  %v4939_v9 = vsel %vm4935_vm0, %v4930_v54, %v7510_v61 }
 0xbca   : > { %7532 = vrot.lane.b32.xlu0 %v7531_v0, %s8164_s23 }
 0xbcb   : > { %v4681_v42 = vpop.f32.mrf.mxu0 }
 0xbcd   : > { %v7288_v63 = vpop.f32.mrf.mxu0 }
 0xbcf   : > { %v4684_v32 = vpop.f32.mrf.mxu0 }
 0xbd1   : > { %v7289_v26 = vpop.f32.mrf.mxu0 }
 0xbd3   : > { %v4777_v31 = vpop.f32.mrf.mxu0 }
 0xbd5   : > { %v7300_v29 = vpop.f32.mrf.mxu0 }
 0xbd7   : > { %v4780_v33 = vpop.f32.mrf.mxu0 }
 0xbd8   : > { %v10075_v33 = vld [vmem:[#allocation35_spill] sm:$0xff] }
 0xbd9   : > { %v7301_v60 = vpop.f32.mrf.mxu0 }
 0xbf4   : > { %v4633_v0 = vpop.f32.mrf.mxu1 }
 0xbf5   : > { %v7516_v1 = vpack.i.bf16 %v4633_v0, %v4585_v4  ;;  %v7499_v4 = vunpack.i.l.bf16 %v7498_v24 }
 0xbf6   : > { %v7282_v35 = vpop.f32.mrf.mxu1 }
 0xbf7   : > { %7517 = vrot.lane.b32.xlu1 %v7516_v1, %s8163_s24  ;;  %v4929_v53 = vsel %vm1324_vm1, %v10073_v28, %v7499_v4 }
 0xbf8   : > { %v4636_v22 = vpop.f32.mrf.mxu1  ;;  %v4938_v11 = vsel %vm4935_vm0, %v4929_v53, %v7509_v59  ;;  %v7826_v59 = vld [vmem:[%s8456_s21 + $0x18] sm:$0xff] }
 0xbfa   : > { %v7283_v62 = vpop.f32.mrf.mxu1 }
 0xbfb   : > { %7527 = vrot.lane.b32.xlu1 %v10070_v20, %s8165_s4 }
 0xbfc   : > { %v4729_v5 = vpop.f32.mrf.mxu1 }
 0xbfd   : > { %v7541_v37 = vpack.i.bf16 %v4729_v5, %v4681_v42 }
 0xbfe   : > { %v7294_v3 = vpop.f32.mrf.mxu1 }
 0xbff   : > { %7537 = vrot.lane.b32.xlu1 %v7536_v14, %s8164_s23  ;;  %7542 = vrot.lane.b32.xlu0 %v7541_v37, %s8163_s24  ;;  %v10071_v14 = vld [vmem:[#allocation33_spill] sm:$0xff]  ;;  %s9899_s23 = scalar_lea.vmem [#allocation16], %s6362_s11  ;;  %s10085_s11 = sld [smem:[#allocation26_spill]] }
 0xc00   : > { %v4732_v44 = vpop.f32.mrf.mxu1  ;;  %v4927_v57 = vsel %vm1324_vm1, %v10071_v14, %v7494_v18  ;;  %s6175_s14 = sshll.u32 %s9899_s23, 4  ;;  %s9919_s14 = int_to_ptr.vmem [resolvable:$true] %s6175_s14 }
 0xc01   : > { %v4936_v52 = vsel %vm4935_vm0, %v4927_v57, %v7504_v2  ;;  %v6486_v57 = vld [vmem:[%s9977_s9] ss:$0 sm:$0xff] }
 0xc02   : > { %v7295_v15 = vpop.f32.mrf.mxu1 }
 0xc05   : > { %s6595_s17 = sshll.u32 %s10085_s11, 10 }
 0xc06   : > { %s9917_s29 = scalar_lea.hbm %s10087_s12, %s6595_s17 }
 0xc08   : > { %v4825_v38 = vpop.f32.mrf.mxu1 }
 0xc09   : > { %v7546_v27 = vpack.i.bf16 %v4825_v38, %v4777_v31 }
 0xc0a   : > { %v7306_v41 = vpop.f32.mrf.mxu1 }
 0xc0b   : > { %7547 = vrot.lane.b32.xlu1 %v7546_v27, %s8163_s24  ;;  %v10076_v41 = vld [vmem:[#allocation39_spill] sm:$0xff]  ;;  %s10084_s24 = sld [smem:[#allocation52_spill]] }
 0xc0c   : > { %v4828_v43 = vpop.f32.mrf.mxu1 }
 0xc0e   : > { %v7307_v6 = vpop.f32.mrf.mxu1 }
 0xc0f   : > { %v10077_v6 = vld [vmem:[#allocation36_spill] sm:$0xff] }
 0xc34   : > { %v7513_v19 = vpop.permute.xlu0 %7512 }
 0xc35   : > { %v7515_v8 = vunpack.i.h.bf16 %v7513_v19  ;;  %v7514_v10 = vunpack.i.l.bf16 %v7513_v19 }
 0xc37   : > { %v4945_v46 = vsel %vm4944_vm2, %v4936_v52, %v7514_v10  ;;  %v4946_v39 = vsel %vm4944_vm2, %v4937_v21, %v7515_v8 }
 0xc38   : > { %v4953_v49 = vpack.c.bf16 %v4946_v39, %v4945_v46  ;;  %v7523_v30 = vpop.permute.xlu0 %7522  ;;  %v7823_v46 = vld [vmem:[%s8456_s21] sm:$0xff] }
 0xc39   : > { %v7525_v63 = vunpack.i.h.bf16 %v7523_v30  ;;  %v7524_v32 = vunpack.i.l.bf16 %v7523_v30  ;;  %v7825_v30 = vld [vmem:[%s8456_s21 + $0x8] sm:$0xff] }
 0xc3a   : > { %7324 = vmatprep.mubr.bf16.mxu0 %v4953_v49 }
 0xc3b   : > { %v4932_v29 = vsel %vm1324_vm1, %v10074_v40, %v7525_v63  ;;  %v4931_v60 = vsel %vm1324_vm1, %v10075_v33, %v7524_v32  ;;  %v7829_v63 = vld [vmem:[%s8456_s21 + $0x28] sm:$0xff]  ;;  %v7585_v40 = vld [vmem:[#allocation13 + $0xe4] ss:$16 sps:$4 sm:$0xff]  }
 0xc3c   : > { %v7533_v36 = vpop.permute.xlu0 %7532  ;;  %v7588_v33 = vld [vmem:[#allocation13 + $0xec] ss:$16 sps:$4 sm:$0xff]   ;;  %5438 = vmatprep.subr.bf16.mxu1 %v7585_v40 }
 0xc3d   : > { %v7535_v55 = vunpack.i.h.bf16 %v7533_v36  ;;  %v7534_v26 = vunpack.i.l.bf16 %v7533_v36  ;;  %5511 = vmatprep.subr.bf16.mxu0 %v7588_v33  ;;  %v7631_v40 = vld [vmem:[#allocation14 + $0x78] sm:$0xff]  }
 0xc3f   : > { %v4940_v35 = vsel %vm4935_vm0, %v4931_v60, %v7534_v26  ;;  %v4941_v22 = vsel %vm4935_vm0, %v4932_v29, %v7535_v55  ;;  %v7830_v55 = vld [vmem:[%s8456_s21 + $0x38] sm:$0xff] }
 0xc40   : > { %v7586_v29 = vld [vmem:[#allocation13 + $0xe8] ss:$16 sps:$4 sm:$0xff]  }
 0xc69   : > { %v7518_v12 = vpop.permute.xlu1 %7517 }
 0xc6a   : > { %v7520_v56 = vunpack.i.h.bf16 %v7518_v12  ;;  %v7519_v51 = vunpack.i.l.bf16 %v7518_v12 }
 0xc6c   : > { %v4948_v13 = vsel %vm4944_vm2, %v4939_v9, %v7520_v56  ;;  %v4947_v42 = vsel %vm4944_vm2, %v4938_v11, %v7519_v51  ;;  %v7827_v51 = vld [vmem:[%s8456_s21 + $0x20] sm:$0xff] }
 0xc6d   : > { %v4954_v50 = vpack.c.bf16 %v4948_v13, %v4947_v42  ;;  %v7528_v17 = vpop.permute.xlu1 %7527  ;;  %v7828_v13 = vld [vmem:[%s8456_s21 + $0x30] sm:$0xff]  ;;  %s8043_s21 = scalar_lea.vmem %s9919_s14, 1024 }
 0xc6e   : > { %v7530_v3 = vunpack.i.h.bf16 %v7528_v17  ;;  %v7529_v44 = vunpack.i.l.bf16 %v7528_v17  ;;  %p8044_p1 = scmp.ne.s32.totalorder %s9919_s14, %s8043_s21 }
 0xc6f   : > { %7325 = vmatmul.mubr.bf16.vlgmr.msra.gmra.mxu0 %v4954_v50 }
 0xc70   : > { %v4934_v43 = vsel %vm1324_vm1, %v10076_v41, %v7530_v3  ;;  %v4933_v47 = vsel %vm1324_vm1, %v10077_v6, %v7529_v44  ;;  %5512 = vmatpush1.bf16.msra.mxu0 %v7586_v29  ;;  %v7594_v6 = vld [vmem:[#allocation13 + $0xcc] ss:$16 sps:$4 sm:$0xff]   ;;  %p8045_p3 = pnand %p8044_p1, %p8400_p11 }
 0xc71   : > { %v7543_v31 = vpop.permute.xlu0 %7542  ;;  %v7538_v37 = vpop.permute.xlu1 %7537  ;;  %5513 = vmatprep.subr.bf16.mxu0 %v7594_v6  ;;  %v9675_v29 = vld [vmem:[#allocation14 + $0xf8] sm:$0xff]   ;;  %v9682_v6 = vld [vmem:[%s9978_s10] ss:$0 sm:$0xff] }
 0xc72   : > { %v7545_v0 = vunpack.i.h.bf16 %v7543_v31  ;;  %v7544_v1 = vunpack.i.l.bf16 %v7543_v31  ;;  %v7540_v15 = vunpack.i.h.bf16 %v7538_v37  ;;  %v7539_v38 = vunpack.i.l.bf16 %v7538_v37  ;;  %v7583_v31 = vld [vmem:[#allocation13 + $0xe0] ss:$16 sps:$4 sm:$0xff]   ;;  %p8046_p10 = pneg %p8045_p3 }
 0xc73   : > { %5439 = vmatpush1.bf16.msra.mxu1 %v7583_v31  ;;  %v7628_v31 = vld [vmem:[#allocation13 + $0x8] ss:$16 sps:$4 sm:$0xff]  }
 0xc74   : > { %v4949_v62 = vsel %vm4944_vm2, %v4940_v35, %v7544_v1  ;;  %v4950_v20 = vsel %vm4944_vm2, %v4941_v22, %v7545_v0  ;;  %v4942_v18 = vsel %vm4935_vm0, %v4933_v47, %v7539_v38  ;;  %v4943_v45 = vsel %vm4935_vm0, %v4934_v43, %v7540_v15  ;;  %v7591_v43 = vld [vmem:[#allocation13 + $0xc4] ss:$16 sps:$4 sm:$0xff]  }
 0xc75   : > { %v4955_v5 = vpack.c.bf16 %v4950_v20, %v4949_v62  ;;  %5440 = vmatprep.subr.bf16.mxu1 %v7591_v43 }
 0xc77   : > { %7328 = vmatprep.mubr.bf16.mxu0 %v4955_v5 }
 0xc7d   : > { %v7548_v27 = vpop.permute.xlu1 %7547 }
 0xc7e   : > { %v7550_v25 = vunpack.i.h.bf16 %v7548_v27  ;;  %v7549_v16 = vunpack.i.l.bf16 %v7548_v27 }
 0xc80   : > { %v4952_v2 = vsel %vm4944_vm2, %v4943_v45, %v7550_v25  ;;  %v4951_v19 = vsel %vm4944_vm2, %v4942_v18, %v7549_v16  ;;  %v7589_v25 = vld [vmem:[#allocation13 + $0xc0] ss:$16 sps:$4 sm:$0xff]   ;;  %v7592_v16 = vld [vmem:[#allocation13 + $0xc8] ss:$16 sps:$4 sm:$0xff]  }
 0xc81   : > { %v4956_v7 = vpack.c.bf16 %v4952_v2, %v4951_v19  ;;  %5441 = vmatpush1.bf16.msra.mxu1 %v7589_v25  ;;  %5514 = vmatpush1.bf16.msra.mxu0 %v7592_v16  ;;  %v7597_v2 = vld [vmem:[#allocation13 + $0xa4] ss:$16 sps:$4 sm:$0xff]   ;;  %v7600_v19 = vld [vmem:[#allocation13 + $0xac] ss:$16 sps:$4 sm:$0xff]  }
 0xc82   : > { %5442 = vmatprep.subr.bf16.mxu1 %v7597_v2  ;;  %5515 = vmatprep.subr.bf16.mxu0 %v7600_v19 }
 0xc83   : > { %7329 = vmatmul.mubr.bf16.gmra.mxu0 %v4956_v7 }
 0xc84   : > { %5543 = vmatprep.mubr.bf16.mxu0 %v10068_v48 }
 0xd2f   : > { %v7326_v14 = vpop.f32.mrf.mxu0 }
 0xd30   : > { %v5071_v21 = vadd.f32 %v7326_v14, %v6486_v57 }
 0xd31   : > { %v5062_v8 = vpop.f32.mrf.mxu0 }
 0xd32   : > { %v5063_v10 = vadd.f32 %v6486_v57, %v5062_v8  ;;  %v5095_v34 = vadd.f32 %v7824_v23, %v5071_v21  ;;  %v7598_v8 = vld [vmem:[#allocation13 + $0xa8] ss:$16 sps:$4 sm:$0xff]  }
 0xd33   : > { %v7327_v52 = vpop.f32.mrf.mxu0  ;;  %5516 = vmatpush1.bf16.msra.mxu0 %v7598_v8 }
 0xd34   : > { %v5093_v39 = vadd.f32 %v7823_v46, %v5063_v10  ;;  %v5074_v4 = vadd.f32 %v7327_v52, %v6486_v57 }
 0xd35   : > { %v5065_v49 = vpop.f32.mrf.mxu0 }
 0xd36   : > { %v5066_v24 = vadd.f32 %v6486_v57, %v5065_v49  ;;  %5103 = vadd.xlane.f32.xlu0 %v5093_v39  ;;  %v5096_v12 = vadd.f32 %v7826_v59, %v5074_v4  ;;  %v7603_v49 = vld [vmem:[#allocation13 + $0x84] ss:$16 sps:$4 sm:$0xff]   ;;  %v7604_v4 = vld [vmem:[#allocation13 + $0x88] ss:$16 sps:$4 sm:$0xff]  }
 0xd38   : > { %v5094_v61 = vadd.f32 %v7825_v30, %v5066_v24  ;;  %v7606_v24 = vld [vmem:[#allocation13 + $0x8c] ss:$16 sps:$4 sm:$0xff]  }
 0xd39   : > { %5517 = vmatprep.subr.bf16.mxu0 %v7606_v24 }
 0xd3a   : > { %5107 = vadd.xlane.f32.xlu0 %v5095_v34  ;;  %5105 = vadd.xlane.f32.xlu1 %v5094_v61 }
 0xd3b   : > { %5518 = vmatpush1.bf16.msra.mxu0 %v7604_v4 }
 0xd3e   : > { %5109 = vadd.xlane.f32.xlu0 %v5096_v12 }
 0xd43   : > { %v7330_v58 = vpop.f32.mrf.mxu0 }
 0xd44   : > { %v5087_v56 = vadd.f32 %v7330_v58, %v6486_v57  ;;  %v7609_v58 = vld [vmem:[#allocation13 + $0x64] ss:$16 sps:$4 sm:$0xff]  }
 0xd45   : > { %v5078_v54 = vpop.f32.mrf.mxu0 }
 0xd46   : > { %v5079_v28 = vadd.f32 %v6486_v57, %v5078_v54  ;;  %v5099_v42 = vadd.f32 %v7828_v13, %v5087_v56  ;;  %v7612_v54 = vld [vmem:[#allocation13 + $0x6c] ss:$16 sps:$4 sm:$0xff]   ;;  %v7621_v13 = vld [vmem:[#allocation13 + $0x24] ss:$16 sps:$4 sm:$0xff]  }
 0xd47   : > { %v7331_v53 = vpop.f32.mrf.mxu0  ;;  %5519 = vmatprep.subr.bf16.mxu0 %v7612_v54  ;;  %v7633_v54 = vld [vmem:[#allocation14 + $0x38] sm:$0xff]  }
 0xd48   : > { %v5097_v11 = vadd.f32 %v7827_v51, %v5079_v28  ;;  %v5090_v50 = vadd.f32 %v7331_v53, %v6486_v57  ;;  %v7607_v28 = vld [vmem:[#allocation13 + $0x60] ss:$16 sps:$4 sm:$0xff]   ;;  %v7610_v53 = vld [vmem:[#allocation13 + $0x68] ss:$16 sps:$4 sm:$0xff]   ;;  %v7615_v51 = vld [vmem:[#allocation13 + $0x44] ss:$16 sps:$4 sm:$0xff]  }
 0xd49   : > { %v5081_v9 = vpop.f32.mrf.mxu0  ;;  %5520 = vmatpush1.bf16.msra.mxu0 %v7610_v53  ;;  %v7635_v53 = vld [vmem:[#allocation14 + $0x70] sm:$0xff]  }
 0xd4a   : > { %v5082_v36 = vadd.f32 %v6486_v57, %v5081_v9  ;;  %5111 = vadd.xlane.f32.xlu0 %v5097_v11  ;;  %v9639_v26 = vadd.f32 %v7830_v55, %v5090_v50  ;;  %v7595_v57 = vld [vmem:[#allocation13 + $0xa0] ss:$16 sps:$4 sm:$0xff]   ;;  %v7630_v55 = vld [vmem:[#allocation13 + $0xc] ss:$16 sps:$4 sm:$0xff]  }
 0xd4b   : > { %5443 = vmatpush1.bf16.msra.mxu1 %v7595_v57  ;;  %v7613_v9 = vld [vmem:[#allocation13 + $0x40] ss:$16 sps:$4 sm:$0xff]  }
 0xd4c   : > { %v5098_v32 = vadd.f32 %v7829_v63, %v5082_v36  ;;  %5444 = vmatprep.subr.bf16.mxu1 %v7603_v49  ;;  %v7616_v36 = vld [vmem:[#allocation13 + $0x48] ss:$16 sps:$4 sm:$0xff]   ;;  %v7619_v50 = vld [vmem:[#allocation13 + $0x20] ss:$16 sps:$4 sm:$0xff]  }
 0xd4d   : > { %v7622_v63 = vld [vmem:[#allocation13 + $0x28] ss:$16 sps:$4 sm:$0xff]  }
 0xd4e   : > { %5113 = vadd.xlane.f32.xlu1 %v5098_v32  ;;  %5115 = vadd.xlane.f32.xlu0 %v5099_v42 }
 0xd52   : > { %5117 = vadd.xlane.f32.xlu1 %v9639_v26 }
 0xdbf   : > { %v5104_v60 = vpop.xlane.xlu0 %5103 }
 0xdc0   : > { %v5120_v17 = vmul.f32 0.0078125, %v5104_v60 }
 0xdc2   : > { %v9642_v0 = vsub.f32 %v5093_v39, %v5120_v17 }
 0xdc3   : > { %v5108_v1 = vpop.xlane.xlu0 %5107  ;;  %v5106_v35 = vpop.xlane.xlu1 %5105 }
 0xdc4   : > { %v5122_v22 = vmul.f32 0.0078125, %v5108_v1  ;;  %v5121_v62 = vmul.f32 0.0078125, %v5106_v35  ;;  %v5136_v20 = vmul.f32 %v9642_v0, %v9642_v0 }
 0xdc6   : > { %v9646_v5 = vsub.f32 %v5095_v34, %v5122_v22  ;;  %v9648_v37 = vsub.f32 %v5094_v61, %v5121_v62  ;;  %5144 = vadd.xlane.f32.xlu0 %v5136_v20  ;;  %v7601_v34 = vld [vmem:[#allocation13 + $0x80] ss:$16 sps:$4 sm:$0xff]  }
 0xdc7   : > { %v5110_v3 = vpop.xlane.xlu0 %5109  ;;  %5445 = vmatpush1.bf16.msra.mxu1 %v7601_v34 }
 0xdc8   : > { %v5123_v44 = vmul.f32 0.0078125, %v5110_v3  ;;  %v5137_v15 = vmul.f32 %v9648_v37, %v9648_v37  ;;  %v5138_v38 = vmul.f32 %v9646_v5, %v9646_v5  ;;  %5446 = vmatprep.subr.bf16.mxu1 %v7609_v58 }
 0xdca   : > { %v9654_v27 = vsub.f32 %v5096_v12, %v5123_v44  ;;  %5146 = vadd.xlane.f32.xlu1 %v5137_v15  ;;  %5148 = vadd.xlane.f32.xlu0 %v5138_v38 }
 0xdcb   : > { %5447 = vmatpush1.bf16.msra.mxu1 %v7607_v28  ;;  %v9703_v28 = vld [vmem:[#allocation14 + $0xb8] sm:$0xff]  }
 0xdcc   : > { %v5139_v41 = vmul.f32 %v9654_v27, %v9654_v27  ;;  %5448 = vmatprep.subr.bf16.mxu1 %v7615_v51 }
 0xdce   : > { %5150 = vadd.xlane.f32.xlu1 %v5139_v41 }
 0xdcf   : > { %5449 = vmatpush1.bf16.msra.mxu1 %v7613_v9  ;;  %v9714_v9 = vld [vmem:[#allocation14 + $0xb0] sm:$0xff]  }
 0xdd0   : > { %5450 = vmatprep.subr.bf16.mxu1 %v7621_v13  ;;  %v9717_v13 = vld [vmem:[#allocation14 + $0xe8] sm:$0xff]  }
 0xdd3   : > { %v5112_v47 = vpop.xlane.xlu0 %5111  ;;  %5451 = vmatpush1.bf16.msra.mxu1 %v7619_v50 }
 0xdd4   : > { %v5124_v18 = vmul.f32 0.0078125, %v5112_v47 }
 0xdd6   : > { %v9658_v45 = vsub.f32 %v5097_v11, %v5124_v18  ;;  %v7618_v11 = vld [vmem:[#allocation13 + $0x4c] ss:$16 sps:$4 sm:$0xff]  }
 0xdd7   : > { %v5114_v7 = vpop.xlane.xlu1 %5113  ;;  %v5116_v14 = vpop.xlane.xlu0 %5115  ;;  %5521 = vmatprep.subr.bf16.mxu0 %v7618_v11  ;;  %v7637_v11 = vld [vmem:[#allocation14 + $0x30] sm:$0xff]  }
 0xdd8   : > { %v5125_v10 = vmul.f32 0.0078125, %v5114_v7  ;;  %v5126_v52 = vmul.f32 0.0078125, %v5116_v14  ;;  %v5140_v21 = vmul.f32 %v9658_v45, %v9658_v45  ;;  %5522 = vmatpush1.bf16.msra.mxu0 %v7616_v36  ;;  %v9689_v14 = vld [vmem:[%s10078_s27] ss:$0 sm:$0xff]  ;;  %v7639_v36 = vld [vmem:[#allocation14 + $0x68] sm:$0xff]   ;;  %s6160_s27 = scalar_lea.sflag [#allocation4], %s8450_s2 }
 0xdda   : > { %v9662_v46 = vsub.f32 %v5098_v32, %v5125_v10  ;;  %v9664_v39 = vsub.f32 %v5099_v42, %v5126_v52  ;;  %5152 = vadd.xlane.f32.xlu0 %v5140_v21  ;;  %v7624_v42 = vld [vmem:[#allocation13 + $0x2c] ss:$16 sps:$4 sm:$0xff]   ;;  %v7627_v32 = vld [vmem:[#allocation13 + $0x4] ss:$16 sps:$4 sm:$0xff]  }
 0xddb   : > { %v5118_v23 = vpop.xlane.xlu1 %5117  ;;  %5523 = vmatprep.subr.bf16.mxu0 %v7624_v42  ;;  %5452 = vmatprep.subr.bf16.mxu1 %v7627_v32  ;;  %v9725_v32 = vld [vmem:[#allocation14 + $0xa8] sm:$0xff]  }
 0xddc   : > { %v5127_v30 = vmul.f32 0.0078125, %v5118_v23  ;;  %v5141_v61 = vmul.f32 %v9662_v46, %v9662_v46  ;;  %v5142_v59 = vmul.f32 %v9664_v39, %v9664_v39  ;;  %5524 = vmatpush1.bf16.msra.mxu0 %v7622_v63  ;;  %v7641_v63 = vld [vmem:[#allocation14 + $0x28] sm:$0xff]  }
 0xddd   : > { %5525 = vmatprep.subr.bf16.mxu0 %v7630_v55 }
 0xdde   : > { %v9671_v12 = vsub.f32 %v9639_v26, %v5127_v30  ;;  %5154 = vadd.xlane.f32.xlu1 %v5141_v61  ;;  %5156 = vadd.xlane.f32.xlu0 %v5142_v59  ;;  %v7625_v26 = vld [vmem:[#allocation13] ss:$16 sps:$4 sm:$0xff]  }
 0xddf   : > { %5453 = vmatpush1.bf16.msra.mxu1 %v7625_v26  ;;  %v7643_v26 = vld [vmem:[#allocation14 + $0x60] sm:$0xff]  }
 0xde0   : > { %v5143_v56 = vmul.f32 %v9671_v12, %v9671_v12  ;;  %5526 = vmatpush1.bf16.msra.mxu0 %v7628_v31  ;;  %6772 = vmatprep.subr.bf16.mxu1 %v7631_v40  ;;  %v9728_v31 = vld [vmem:[#allocation14 + $0xe0] sm:$0xff]  }
 0xde1   : > { %6812 = vmatprep.subr.bf16.mxu0 %v9675_v29 }
 0xde2   : > { %5158 = vadd.xlane.f32.xlu1 %v5143_v56 }
 0xe4f   : > { %v5145_v33 = vpop.xlane.xlu0 %5144 }
 0xe50   : > { %v5160_v60 = vmul.f32 0.0078125, %v5145_v33  ;;  %v7645_v33 = vld [vmem:[#allocation14 + $0x20] sm:$0xff]  }
 0xe52   : > { %v5168_v17 = vadd.f32 1e-05, %v5160_v60  ;;  %v9734_v60 = vld [vmem:[#allocation14 + $0xa0] sm:$0xff]  }
 0xe53   : > { %v5147_v1 = vpop.xlane.xlu1 %5146  ;;  %v5149_v35 = vpop.xlane.xlu0 %5148 }
 0xe54   : > { %7791 = vrsqrt.f32 %v5168_v17  ;;  %v5161_v22 = vmul.f32 0.0078125, %v5147_v1  ;;  %v5162_v62 = vmul.f32 0.0078125, %v5149_v35  ;;  %v7647_v1 = vld [vmem:[#allocation14 + $0x58] sm:$0xff]  }
 0xe55   : > { %v9737_v35 = vld [vmem:[#allocation14 + $0xd8] sm:$0xff]  }
 0xe56   : > { %v5169_v20 = vadd.f32 1e-05, %v5161_v22  ;;  %v5170_v3 = vadd.f32 1e-05, %v5162_v62 }
 0xe57   : > { %v5151_v44 = vpop.xlane.xlu1 %5150 }
 0xe58   : > { %7793 = vrsqrt.f32 %v5169_v20  ;;  %v5163_v15 = vmul.f32 0.0078125, %v5151_v44  ;;  %v9743_v44 = vld [vmem:[#allocation14 + $0x98] sm:$0xff]  }
 0xe59   : > { %7795 = vrsqrt.f32 %v5170_v3  ;;  %v7649_v3 = vld [vmem:[#allocation14 + $0x18] sm:$0xff]  }
 0xe5a   : > { %v5171_v38 = vadd.f32 1e-05, %v5163_v15 }
 0xe5c   : > { %7797 = vrsqrt.f32 %v5171_v38 }
 0xe61   : > { %v7792_v41 = vpop.eup %7791 }
 0xe62   : > { %v5184_v43 = vmul.f32 %v7792_v41, %v9642_v0 }
 0xe63   : > { %v5153_v47 = vpop.xlane.xlu0 %5152 }
 0xe64   : > { %v5164_v25 = vmul.f32 0.0078125, %v5153_v47  ;;  %v5198_v18 = vmul.f32 %v9682_v6, %v5184_v43 }
 0xe65   : > { %v7794_v16 = vpop.eup %7793 }
 0xe66   : > { %v7796_v2 = vpop.eup %7795  ;;  %v5185_v19 = vmul.f32 %v7794_v16, %v9648_v37  ;;  %v5172_v7 = vadd.f32 1e-05, %v5164_v25  ;;  %v9693_v49 = vadd.f32 %v9689_v14, %v5198_v18 }
 0xe67   : > { %v5155_v0 = vpop.xlane.xlu1 %5154  ;;  %v5157_v57 = vpop.xlane.xlu0 %5156  ;;  %v5186_v24 = vmul.f32 %v7796_v2, %v9646_v5  ;;  %v9705_v5 = vld [vmem:[#allocation14 + $0xf0] sm:$0xff]  }
 0xe68   : > { %7799 = vrsqrt.f32 %v5172_v7  ;;  %v5165_v8 = vmul.f32 0.0078125, %v5155_v0  ;;  %v5166_v10 = vmul.f32 0.0078125, %v5157_v57  ;;  %v5199_v52 = vmul.f32 %v9682_v6, %v5185_v19  ;;  %v7651_v2 = vld [vmem:[#allocation14 + $0x50] sm:$0xff]   ;;  %v7657_v0 = vld [vmem:[#allocation14 + $0x8] sm:$0xff]  }
 0xe69   : > { %v7798_v21 = vpop.eup %7797  ;;  %v9769_v19 = vld [vmem:[#allocation14 + $0xd0] sm:$0xff]   ;;  %v9777_v57 = vld [vmem:[#allocation14 + $0x88] sm:$0xff]  }
 0xe6a   : > { %v5173_v37 = vadd.f32 1e-05, %v5165_v8  ;;  %v5174_v23 = vadd.f32 1e-05, %v5166_v10  ;;  %v9697_v34 = vadd.f32 %v9689_v14, %v5199_v52  ;;  %v5187_v4 = vmul.f32 %v7798_v21, %v9654_v27  ;;  %v7653_v7 = vld [vmem:[#allocation14 + $0x10] sm:$0xff]   ;;  %v7659_v8 = vld [vmem:[#allocation14 + $0x40] sm:$0xff]  }
 0xe6b   : > { %v5159_v30 = vpop.xlane.xlu1 %5158  ;;  %v5200_v27 = vmul.f32 %v9682_v6, %v5186_v24  ;;  %v9781_v10 = vld [vmem:[#allocation14 + $0xc0] sm:$0xff]  }
 0xe6c   : > { %7801 = vrsqrt.f32 %v5173_v37  ;;  %v5167_v61 = vmul.f32 0.0078125, %v5159_v30  ;;  %v5220_v59 = vpack.c.bf16 %v9697_v34, %v9693_v49  ;;  %v5201_v58 = vmul.f32 %v9682_v6, %v5187_v4  ;;  %v7661_v52 = vld [vmem:[#allocation14] sm:$0xff]   ;;  %v5256_v30 = vld [vmem:[%s10080_s30] sm:$0xf]  ;;  %s8047_s30 = sshll.u32 %s8166_s20, 4  ;;  %s8048_s30 = int_to_ptr.vmem [resolvable:$false] %s8047_s30 }
 0xe6d   : > { %7803 = vrsqrt.f32 %v5174_v23  ;;  %v9720_v42 = vadd.f32 %v9689_v14, %v5200_v27  ;;  %v9783_v21 = vld [vmem:[#allocation14 + $0x80] sm:$0xff]   ;;  %s8049_s26 = scalar_lea.vmem %s8048_s30, 2048  ;;  %p8050_p13 = scmp.lt.s32.totalorder %s9919_s14, %s8048_s30 }
 0xe6e   : > { %v5175_v56 = vadd.f32 1e-05, %v5167_v61  ;;  %5471 = vmatmul.mubr.bf16.vlgmr.msra.gmra.mxu1 %v5220_v59  ;;  %5544 = vmatmul.mubr.bf16.vlgmr.msra.gmra.mxu0 %v5220_v59  ;;  %v9711_v51 = vadd.f32 %v9689_v14, %v5201_v58  ;;  %v10079_v24 = vld [vmem:[#allocation31_spill] sm:$0xff]  ;;  %p8051_p2 = scmp.lt.s32.totalorder %s8049_s26, %s8043_s21 }
 0xe6f   : > { %5480 = vmatprep.mubr.bf16.mxu1 %v10068_v48  ;;  %5553 = vmatprep.mubr.bf16.mxu0 %v10068_v48  ;;  %v5264_v37 = vsub.s32 1, %v10079_v24  ;;  %v5272_v23 = vsub.s32 3, %v10079_v24  ;;  %v5268_v4 = vsub.s32 2, %v10079_v24 }
 0xe70   : > { %7805 = vrsqrt.f32 %v5175_v56  ;;  %6773 = vmatpush3.bf16.msra.mxu1 %v7633_v54  ;;  %6813 = vmatpush3.bf16.msra.mxu0 %v9703_v28  ;;  %v5221_v50 = vpack.c.bf16 %v9711_v51, %v9720_v42  ;;  %p8052_p5 = por %p8051_p2, %p8050_p13 }
 0xe71   : > { %6774 = vmatprep.subr.bf16.mxu1 %v7635_v53  ;;  %6814 = vmatprep.subr.bf16.mxu0 %v9705_v5  ;;  %v9794_v58 = vrot.slane %v5256_v30, %v5264_v37  ;;  %v9796_v54 = vrot.slane %v5256_v30, %v5272_v23  ;;  %v10081_v53 = vld [vmem:[#allocation32_spill] sm:$0xff] }
 0xe72   : > { %v9799_v56 = vrot.slane %v5256_v30, %v10081_v53  ;;  %p8053_p9 = pnand %p8052_p5, %p8046_p10 }
 0xe74   : > { %6775 = vmatpush3.bf16.msra.mxu1 %v7637_v11  ;;  %6815 = vmatpush3.bf16.msra.mxu0 %v9714_v9 }
 0xe75   : > { %v7800_v55 = vpop.eup %7799  ;;  %6776 = vmatprep.subr.bf16.mxu1 %v7639_v36  ;;  %6816 = vmatprep.subr.bf16.mxu0 %v9717_v13 }
 0xe76   : > { %5481 = vmatmul.mubr.bf16.gmra.mxu1 %v5221_v50  ;;  %5554 = vmatmul.mubr.bf16.gmra.mxu0 %v5221_v50  ;;  %v5188_v40 = vmul.f32 %v7800_v55, %v9658_v45 }
 0xe77   : > { %5490 = vmatprep.mubr.bf16.mxu1 %v10068_v48  ;;  %5563 = vmatprep.mubr.bf16.mxu0 %v10068_v48 }
 0xe78   : > { %6777 = vmatpush3.bf16.msra.mxu1 %v7641_v63  ;;  %6817 = vmatpush3.bf16.msra.mxu0 %v9725_v32  ;;  %v5202_v45 = vmul.f32 %v9682_v6, %v5188_v40 }
 0xe79   : > { %v7802_v17 = vpop.eup %7801  ;;  %6778 = vmatprep.subr.bf16.mxu1 %v7643_v26  ;;  %6818 = vmatprep.subr.bf16.mxu0 %v9728_v31 }
 0xe7a   : > { %v5189_v22 = vmul.f32 %v7802_v17, %v9662_v46  ;;  %v7804_v62 = vpop.eup %7803  ;;  %v9747_v38 = vadd.f32 %v9689_v14, %v5202_v45 }
 0xe7b   : > { %v5190_v41 = vmul.f32 %v7804_v62, %v9664_v39 }
 0xe7c   : > { %v5203_v20 = vmul.f32 %v9682_v6, %v5189_v22  ;;  %6779 = vmatpush3.bf16.msra.mxu1 %v7645_v33  ;;  %6819 = vmatpush3.bf16.msra.mxu0 %v9734_v60 }
 0xe7d   : > { %v7806_v15 = vpop.eup %7805  ;;  %6780 = vmatprep.subr.bf16.mxu1 %v7647_v1  ;;  %6820 = vmatprep.subr.bf16.mxu0 %v9737_v35  ;;  %v5204_v16 = vmul.f32 %v9682_v6, %v5190_v41 }
 0xe7e   : > { %v9750_v46 = vadd.f32 %v9689_v14, %v5203_v20  ;;  %v5191_v43 = vmul.f32 %v7806_v15, %v9671_v12 }
 0xe7f   : > { %v9765_v12 = vadd.f32 %v9689_v14, %v5204_v16 }
 0xe80   : > { %v5222_v47 = vpack.c.bf16 %v9750_v46, %v9747_v38  ;;  %v5205_v25 = vmul.f32 %v9682_v6, %v5191_v43  ;;  %6781 = vmatpush3.bf16.msra.mxu1 %v7649_v3  ;;  %6821 = vmatpush3.bf16.msra.mxu0 %v9743_v44  ;;  %v9771_v6 = vld [vmem:[#allocation14 + $0x90] sm:$0xff]  }
 0xe81   : > { %6782 = vmatprep.subr.bf16.mxu1 %v7651_v2  ;;  %6822 = vmatprep.subr.bf16.mxu0 %v9769_v19 }
 0xe82   : > { %5491 = vmatmul.mubr.bf16.gmra.mxu1 %v5222_v47  ;;  %5564 = vmatmul.mubr.bf16.gmra.mxu0 %v5222_v47  ;;  %v9762_v39 = vadd.f32 %v9689_v14, %v5205_v25  ;;  %v9775_v14 = vld [vmem:[#allocation14 + $0xc8] sm:$0xff]  }
 0xe83   : > { %5500 = vmatprep.mubr.bf16.mxu1 %v10068_v48  ;;  %5573 = vmatprep.mubr.bf16.mxu0 %v10068_v48  ;;  %v7655_v48 = vld [vmem:[#allocation14 + $0x48] sm:$0xff]  }
 0xe84   : > { %v5223_v18 = vpack.c.bf16 %v9762_v39, %v9765_v12  ;;  %6783 = vmatpush3.bf16.msra.mxu1 %v7653_v7  ;;  %6823 = vmatpush3.bf16.msra.mxu0 %v9771_v6 }
 0xe85   : > { %6784 = vmatprep.subr.bf16.mxu1 %v7655_v48  ;;  %6824 = vmatprep.subr.bf16.mxu0 %v9775_v14 }
 0xe88   : > { %6785 = vmatpush3.bf16.msra.mxu1 %v7657_v0  ;;  %6825 = vmatpush3.bf16.msra.mxu0 %v9777_v57 }
 0xe89   : > { %6786 = vmatprep.subr.bf16.mxu1 %v7659_v8  ;;  %6826 = vmatprep.subr.bf16.mxu0 %v9781_v10 }
 0xe8a   : > { %5501 = vmatmul.mubr.bf16.gmra.mxu1 %v5223_v18  ;;  %5574 = vmatmul.mubr.bf16.gmra.mxu0 %v5223_v18 }
 0xe8c   : > { %6787 = vmatpush3.bf16.msra.mxu1 %v7661_v52  ;;  %6827 = vmatpush3.bf16.msra.mxu0 %v9783_v21 }
 0xe8d   : > { %7332 = vmatprep.subr.bf16.mxu1 %v9675_v29  ;;  %v9801_v29 = vrot.slane %v5256_v30, %v5268_v4 }
 0xf2e   : > { %v5472_v61 = vpop.f32.mrf.mxu1  ;;  %v5545_v59 = vpop.f32.mrf.mxu0 }
 0xf2f   : > { %v5473_v33 = vadd.f32 %v5472_v61, %v9799_v56  ;;  %v5546_v17 = vadd.f32 %v5545_v59, %v9801_v29 }
 0xf30   : > { %v5474_v27 = vpop.f32.mrf.mxu1  ;;  %v5547_v11 = vpop.f32.mrf.mxu0 }
 0xf31   : > { %v5475_v63 = vadd.f32 %v5474_v27, %v9794_v58  ;;  %v5548_v55 = vadd.f32 %v5547_v11, %v9796_v54  ;;  %v5584_v18 = vmax.f32 %v5473_v33, 0.0  ;;  %v5586_v2 = vmax.f32 %v5546_v17, 0.0 }
 0xf32   : > { %v5476_v36 = vpop.f32.mrf.mxu1  ;;  %v5549_v50 = vpop.f32.mrf.mxu0 }
 0xf33   : > { %v5477_v26 = vadd.f32 %v5476_v36, %v9799_v56  ;;  %v5550_v40 = vadd.f32 %v5549_v50, %v9801_v29  ;;  %v5585_v43 = vmax.f32 %v5475_v63, 0.0  ;;  %v5587_v47 = vmax.f32 %v5548_v55, 0.0 }
 0xf34   : > { %v5478_v1 = vpop.f32.mrf.mxu1  ;;  %v5551_v22 = vpop.f32.mrf.mxu0 }
 0xf35   : > { %v5479_v45 = vadd.f32 %v5478_v1, %v9794_v58  ;;  %v5552_v62 = vadd.f32 %v5551_v22, %v9796_v54  ;;  %v5588_v20 = vmax.f32 %v5477_v26, 0.0  ;;  %v5590_v3 = vmax.f32 %v5550_v40, 0.0 }
 0xf36   : > { %v5482_v15 = vpop.f32.mrf.mxu1  ;;  %v5555_v41 = vpop.f32.mrf.mxu0 }
 0xf37   : > { %v5589_v25 = vmax.f32 %v5479_v45, 0.0  ;;  %v5591_v16 = vmax.f32 %v5552_v62, 0.0  ;;  %v5616_v52 = vpack.c.bf16 %v5588_v20, %v5584_v18  ;;  %v5618_v24 = vpack.c.bf16 %v5590_v3, %v5586_v2 }
 0xf38   : > { %v5484_v7 = vpop.f32.mrf.mxu1  ;;  %v5557_v48 = vpop.f32.mrf.mxu0  ;;  %v5483_v53 = vadd.f32 %v5482_v15, %v9799_v56  ;;  %v5556_v27 = vadd.f32 %v5555_v41, %v9801_v29 }
 0xf39   : > { %v5617_v0 = vpack.c.bf16 %v5589_v25, %v5585_v43  ;;  %v5619_v8 = vpack.c.bf16 %v5591_v16, %v5587_v47  ;;  %v5485_v37 = vadd.f32 %v5484_v7, %v9794_v58  ;;  %v5558_v30 = vadd.f32 %v5557_v48, %v9796_v54 }
 0xf3a   : > { %v5486_v23 = vpop.f32.mrf.mxu1  ;;  %v5559_v4 = vpop.f32.mrf.mxu0  ;;  %v5592_v22 = vmax.f32 %v5483_v53, 0.0  ;;  %v5594_v45 = vmax.f32 %v5556_v27, 0.0 }
 0xf3b   : > { %v5487_v61 = vadd.f32 %v5486_v23, %v9799_v56  ;;  %v5560_v59 = vadd.f32 %v5559_v4, %v9801_v29  ;;  %5927 = vmatprep.mubr.bf16.mxu1 %v5617_v0  ;;  %5992 = vmatprep.mubr.bf16.mxu0 %v5619_v8  ;;  %v5593_v40 = vmax.f32 %v5485_v37, 0.0  ;;  %v5595_v33 = vmax.f32 %v5558_v30, 0.0 }
 0xf3c   : > { %v5488_v11 = vpop.f32.mrf.mxu1  ;;  %v5561_v36 = vpop.f32.mrf.mxu0  ;;  %5928 = vmatmul.mubr.bf16.vlgmr.msra.gmra.mxu1 %v5616_v52  ;;  %5993 = vmatmul.mubr.bf16.vlgmr.msra.gmra.mxu0 %v5618_v24 }
 0xf3d   : > { %v5489_v50 = vadd.f32 %v5488_v11, %v9794_v58  ;;  %v5562_v63 = vadd.f32 %v5561_v36, %v9796_v54  ;;  %7340 = vmatpush3.bf16.msra.mxu1 %v9703_v28  ;;  %v5596_v55 = vmax.f32 %v5487_v61, 0.0  ;;  %v5598_v26 = vmax.f32 %v5560_v59, 0.0 }
 0xf3e   : > { %7333 = vmatprep.subr.bf16.mxu1 %v9705_v5 }
 0xf3f   : > { %v5597_v17 = vmax.f32 %v5489_v50, 0.0  ;;  %v5599_v1 = vmax.f32 %v5562_v63, 0.0  ;;  %v5620_v3 = vpack.c.bf16 %v5596_v55, %v5592_v22  ;;  %v5622_v15 = vpack.c.bf16 %v5598_v26, %v5594_v45 }
 0xf41   : > { %v5621_v62 = vpack.c.bf16 %v5597_v17, %v5593_v40  ;;  %v5623_v20 = vpack.c.bf16 %v5599_v1, %v5595_v33  ;;  %7341 = vmatpush3.bf16.msra.mxu1 %v9714_v9 }
 0xf42   : > { %v5492_v41 = vpop.f32.mrf.mxu1  ;;  %v5565_v43 = vpop.f32.mrf.mxu0  ;;  %7334 = vmatprep.subr.bf16.mxu1 %v9717_v13 }
 0xf43   : > { %5935 = vmatprep.mubr.bf16.mxu1 %v5621_v62  ;;  %6000 = vmatprep.mubr.bf16.mxu0 %v5623_v20  ;;  %v5493_v18 = vadd.f32 %v5492_v41, %v9799_v56 }
 0xf44   : > { %v5494_v28 = vpop.f32.mrf.mxu1  ;;  %v5567_v5 = vpop.f32.mrf.mxu0  ;;  %5936 = vmatmul.mubr.bf16.gmra.mxu1 %v5620_v3  ;;  %6001 = vmatmul.mubr.bf16.gmra.mxu0 %v5622_v15 }
 0xf45   : > { %7342 = vmatpush3.bf16.msra.mxu1 %v9725_v32  ;;  %v5495_v9 = vadd.f32 %v5494_v28, %v9794_v58  ;;  %v5568_v11 = vadd.f32 %v5567_v5, %v9796_v54 }
 0xf46   : > { %v5496_v47 = vpop.f32.mrf.mxu1  ;;  %v5569_v25 = vpop.f32.mrf.mxu0  ;;  %7335 = vmatprep.subr.bf16.mxu1 %v9728_v31  ;;  %v5600_v31 = vmax.f32 %v5493_v18, 0.0 }
 0xf47   : > { %v5497_v16 = vadd.f32 %v5496_v47, %v9799_v56  ;;  %v5601_v32 = vmax.f32 %v5495_v9, 0.0  ;;  %v5603_v40 = vmax.f32 %v5568_v11, 0.0 }
 0xf48   : > { %v5498_v2 = vpop.f32.mrf.mxu1  ;;  %v5571_v13 = vpop.f32.mrf.mxu0 }
 0xf49   : > { %v5499_v7 = vadd.f32 %v5498_v2, %v9794_v58  ;;  %7343 = vmatpush3.bf16.msra.mxu1 %v9734_v60  ;;  %v5604_v48 = vmax.f32 %v5497_v16, 0.0  ;;  %v5572_v61 = vadd.f32 %v5571_v13, %v9796_v54 }
 0xf4a   : > { %v5502_v0 = vpop.f32.mrf.mxu1  ;;  %v5575_v8 = vpop.f32.mrf.mxu0  ;;  %7336 = vmatprep.subr.bf16.mxu1 %v9737_v35 }
 0xf4b   : > { %v5605_v52 = vmax.f32 %v5499_v7, 0.0  ;;  %v5624_v4 = vpack.c.bf16 %v5604_v48, %v5600_v31  ;;  %v5503_v35 = vadd.f32 %v5502_v0, %v9799_v56  ;;  %v5576_v15 = vadd.f32 %v5575_v8, %v9801_v29 }
 0xf4c   : > { %v5504_v24 = vpop.f32.mrf.mxu1  ;;  %v5577_v37 = vpop.f32.mrf.mxu0 }
 0xf4d   : > { %v5625_v23 = vpack.c.bf16 %v5605_v52, %v5601_v32  ;;  %7344 = vmatpush3.bf16.msra.mxu1 %v9743_v44  ;;  %v5505_v60 = vadd.f32 %v5504_v24, %v9794_v58  ;;  %v5608_v55 = vmax.f32 %v5503_v35, 0.0  ;;  %v5578_v1 = vadd.f32 %v5577_v37, %v9796_v54 }
 0xf4e   : > { %v5506_v30 = vpop.f32.mrf.mxu1  ;;  %7337 = vmatprep.subr.bf16.mxu1 %v9769_v19  ;;  %v5579_v53 = vpop.f32.mrf.mxu0  ;;  %v5607_v19 = vmax.f32 %v5572_v61, 0.0 }
 0xf4f   : > { %v5507_v59 = vadd.f32 %v5506_v30, %v9799_v56  ;;  %5943 = vmatprep.mubr.bf16.mxu1 %v5625_v23  ;;  %v5609_v50 = vmax.f32 %v5505_v60, 0.0  ;;  %v5570_v56 = vadd.f32 %v5569_v25, %v9801_v29  ;;  %v5611_v62 = vmax.f32 %v5578_v1, 0.0 }
 0xf50   : > { %v5508_v27 = vpop.f32.mrf.mxu1  ;;  %5944 = vmatmul.mubr.bf16.gmra.mxu1 %v5624_v4  ;;  %v5581_v26 = vpop.f32.mrf.mxu0  ;;  %v5580_v3 = vadd.f32 %v5579_v53, %v9801_v29 }
 0xf51   : > { %v5509_v44 = vadd.f32 %v5508_v27, %v9794_v58  ;;  %7345 = vmatpush3.bf16.msra.mxu1 %v9771_v6  ;;  %v5612_v36 = vmax.f32 %v5507_v59, 0.0  ;;  %v5627_v58 = vpack.c.bf16 %v5607_v19, %v5603_v40  ;;  %v5582_v6 = vadd.f32 %v5581_v26, %v9796_v54 }
 0xf52   : > { %7338 = vmatprep.subr.bf16.mxu1 %v9775_v14  ;;  %v5566_v14 = vadd.f32 %v5565_v43, %v9801_v29  ;;  %v5606_v22 = vmax.f32 %v5570_v56, 0.0  ;;  %v5614_v41 = vmax.f32 %v5580_v3, 0.0  ;;  %v5610_v43 = vmax.f32 %v5576_v15, 0.0 }
 0xf53   : > { %v5613_v63 = vmax.f32 %v5509_v44, 0.0  ;;  %v5628_v17 = vpack.c.bf16 %v5612_v36, %v5608_v55  ;;  %v5615_v45 = vmax.f32 %v5582_v6, 0.0 }
 0xf54   : > { %v5630_v28 = vpack.c.bf16 %v5614_v41, %v5610_v43 }
 0xf55   : > { %v5629_v33 = vpack.c.bf16 %v5613_v63, %v5609_v50  ;;  %7346 = vmatpush3.bf16.msra.mxu1 %v9777_v57  ;;  %v5602_v57 = vmax.f32 %v5566_v14, 0.0 }
 0xf56   : > { %7339 = vmatprep.subr.bf16.mxu1 %v9781_v10  ;;  %v5631_v10 = vpack.c.bf16 %v5615_v45, %v5611_v62 }
 0xf57   : > { %5951 = vmatprep.mubr.bf16.mxu1 %v5629_v33  ;;  %v5626_v20 = vpack.c.bf16 %v5606_v22, %v5602_v57 }
 0xf58   : > { %5952 = vmatmul.mubr.bf16.gmra.mxu1 %v5628_v17 }
 0xf59   : > { %6008 = vmatprep.mubr.bf16.mxu1 %v5627_v58  ;;  %7347 = vmatpush3.bf16.msra.mxu1 %v9783_v21  ;;  %v9853_v21 = vld [vmem:[%s10082_s1] ss:$0 sm:$0xff] }
 0xf60   : > { %6009 = vmatmul.mubr.bf16.vlgmr.msra.gmra.mxu1 %v5626_v20 }
 0xf61   : > { %6016 = vmatprep.mubr.bf16.mxu1 %v5631_v10 }
 0xf68   : > { %6017 = vmatmul.mubr.bf16.gmra.mxu1 %v5630_v28 }
 0xffc   : > { %v6788_v54 = vpop.f32.mrf.mxu1  ;;  %v6828_v5 = vpop.f32.mrf.mxu0 }
 0xffe   : > { %v6789_v47 = vpop.f32.mrf.mxu1  ;;  %v6829_v25 = vpop.f32.mrf.mxu0 }
 0xfff   : > { %v6790_v9 = vadd.f32 %v6789_v47, %v6788_v54  ;;  %v6830_v2 = vadd.f32 %v6829_v25, %v6828_v5 }
0x1000   : > { %v6791_v16 = vpop.f32.mrf.mxu1  ;;  %v6831_v18 = vpop.f32.mrf.mxu0 }
0x1001   : > { %v5930_v29 = vadd.f32 %v6790_v9, %v9853_v21 }
0x1002   : > { %v6792_v13 = vpop.f32.mrf.mxu1  ;;  %v6832_v7 = vpop.f32.mrf.mxu0 }
0x1003   : > { %v5995_v48 = vadd.f32 %v6830_v2, %v5930_v29  ;;  %v6793_v0 = vadd.f32 %v6792_v13, %v6791_v16  ;;  %v6833_v31 = vadd.f32 %v6832_v7, %v6831_v18 }
0x1004   : > { %v6794_v8 = vpop.f32.mrf.mxu1  ;;  %v6834_v32 = vpop.f32.mrf.mxu0 }
0x1005   : > { %v5933_v52 = vadd.f32 %v6793_v0, %v9853_v21  ;;  %v9858_v24 = vadd.f32 %v5995_v48, %v9693_v49 }
0x1006   : > { %v6795_v37 = vpop.f32.mrf.mxu1  ;;  %v6835_v23 = vpop.f32.mrf.mxu0 }
0x1007   : > { %v5998_v4 = vadd.f32 %v6833_v31, %v5933_v52  ;;  %v6796_v30 = vadd.f32 %v6795_v37, %v6794_v8  ;;  %6035 = vadd.xlane.f32.xlu0 %v9858_v24  ;;  %v6836_v35 = vadd.f32 %v6835_v23, %v6834_v32 }
0x1008   : > { %v6797_v61 = vpop.f32.mrf.mxu1  ;;  %v6837_v60 = vpop.f32.mrf.mxu0 }
0x1009   : > { %v5938_v59 = vadd.f32 %v6796_v30, %v9853_v21  ;;  %v6026_v53 = vadd.f32 %v5998_v4, %v9697_v34 }
0x100a   : > { %v6798_v27 = vpop.f32.mrf.mxu1  ;;  %v6838_v11 = vpop.f32.mrf.mxu0 }
0x100b   : > { %v6003_v44 = vadd.f32 %v6836_v35, %v5938_v59  ;;  %v6799_v36 = vadd.f32 %v6798_v27, %v6797_v61  ;;  %6037 = vadd.xlane.f32.xlu1 %v6026_v53  ;;  %v6839_v19 = vadd.f32 %v6838_v11, %v6837_v60 }
0x100d   : > { %v5941_v49 = vadd.f32 %v6799_v36, %v9853_v21  ;;  %v6027_v50 = vadd.f32 %v6003_v44, %v9720_v42 }
0x100f   : > { %v6006_v63 = vadd.f32 %v6839_v19, %v5941_v49  ;;  %6039 = vadd.xlane.f32.xlu0 %v6027_v50 }
0x1010   : > { %v6800_v55 = vpop.f32.mrf.mxu1 }
0x1011   : > { %v6028_v26 = vadd.f32 %v6006_v63, %v9711_v51 }
0x1012   : > { %v6801_v40 = vpop.f32.mrf.mxu1 }
0x1013   : > { %6041 = vadd.xlane.f32.xlu1 %v6028_v26  ;;  %v6802_v14 = vadd.f32 %v6801_v40, %v6800_v55 }
0x1014   : > { %v6803_v33 = vpop.f32.mrf.mxu1 }
0x1015   : > { %v5946_v45 = vadd.f32 %v6802_v14, %v9853_v21 }
0x1016   : > { %v6804_v56 = vpop.f32.mrf.mxu1 }
0x1017   : > { %v6805_v57 = vadd.f32 %v6804_v56, %v6803_v33 }
0x1018   : > { %v6806_v34 = vpop.f32.mrf.mxu1 }
0x1019   : > { %v5949_v51 = vadd.f32 %v6805_v57, %v9853_v21 }
0x101a   : > { %v6807_v17 = vpop.f32.mrf.mxu1 }
0x101b   : > { %v6808_v10 = vadd.f32 %v6807_v17, %v6806_v34 }
0x101c   : > { %v6809_v58 = vpop.f32.mrf.mxu1 }
0x101d   : > { %v5954_v5 = vadd.f32 %v6808_v10, %v9853_v21 }
0x101e   : > { %v6810_v6 = vpop.f32.mrf.mxu1 }
0x101f   : > { %v6811_v47 = vadd.f32 %v6810_v6, %v6809_v58 }
0x1020   : > { %v6840_v1 = vpop.f32.mrf.mxu1 }
0x1021   : > { %v5957_v2 = vadd.f32 %v6811_v47, %v9853_v21 }
0x1022   : > { %v6841_v22 = vpop.f32.mrf.mxu1 }
0x1023   : > { %v6842_v42 = vadd.f32 %v6841_v22, %v6840_v1 }
0x1024   : > { %v6843_v62 = vpop.f32.mrf.mxu1 }
0x1025   : > { %v6011_v20 = vadd.f32 %v6842_v42, %v5946_v45 }
0x1026   : > { %v6844_v3 = vpop.f32.mrf.mxu1 }
0x1027   : > { %v6845_v15 = vadd.f32 %v6844_v3, %v6843_v62  ;;  %v6029_v41 = vadd.f32 %v6011_v20, %v9747_v38 }
0x1028   : > { %v6846_v43 = vpop.f32.mrf.mxu1 }
0x1029   : > { %v6014_v28 = vadd.f32 %v6845_v15, %v5949_v51  ;;  %6043 = vadd.xlane.f32.xlu0 %v6029_v41  ;;  %v6562_v51 = vld [vmem:[%s10083_s13] ss:$0 sm:$0xff] }
0x102a   : > { %v6847_v54 = vpop.f32.mrf.mxu1  ;;  %v6563_v15 = vld [vmem:[%s10084_s24] ss:$0 sm:$0xff] }
0x102b   : > { %v6848_v25 = vadd.f32 %v6847_v54, %v6846_v43  ;;  %v6030_v9 = vadd.f32 %v6014_v28, %v9750_v46 }
0x102c   : > { %v6849_v16 = vpop.f32.mrf.mxu1 }
0x102d   : > { %v6019_v18 = vadd.f32 %v6848_v25, %v5954_v5  ;;  %6045 = vadd.xlane.f32.xlu1 %v6030_v9 }
0x102e   : > { %v6850_v29 = vpop.f32.mrf.mxu1 }
0x102f   : > { %v6851_v13 = vadd.f32 %v6850_v29, %v6849_v16  ;;  %v6031_v7 = vadd.f32 %v6019_v18, %v9765_v12 }
0x1031   : > { %v6022_v38 = vadd.f32 %v6851_v13, %v5957_v2  ;;  %6047 = vadd.xlane.f32.xlu0 %v6031_v7 }
0x1033   : > { %v6032_v48 = vadd.f32 %v6022_v38, %v9762_v39 }
0x1035   : > { %6049 = vadd.xlane.f32.xlu1 %v6032_v48 }
0x1090   : > { %v6036_v0 = vpop.xlane.xlu0 %6035 }
0x1091   : > { %v6051_v8 = vmul.f32 0.0078125, %v6036_v0 }
0x1093   : > { %v6059_v32 = vsub.f32 %v9858_v24, %v6051_v8 }
0x1094   : > { %v6038_v52 = vpop.xlane.xlu1 %6037 }
0x1095   : > { %v6052_v46 = vmul.f32 0.0078125, %v6038_v52  ;;  %v6067_v31 = vmul.f32 %v6059_v32, %v6059_v32 }
0x1097   : > { %v6060_v37 = vsub.f32 %v6026_v53, %v6052_v46  ;;  %6075 = vadd.xlane.f32.xlu0 %v6067_v31 }
0x1098   : > { %v6040_v23 = vpop.xlane.xlu0 %6039 }
0x1099   : > { %v6053_v4 = vmul.f32 0.0078125, %v6040_v23  ;;  %v6068_v21 = vmul.f32 %v6060_v37, %v6060_v37 }
0x109b   : > { %v6061_v30 = vsub.f32 %v6027_v50, %v6053_v4  ;;  %6077 = vadd.xlane.f32.xlu1 %v6068_v21 }
0x109c   : > { %v6042_v12 = vpop.xlane.xlu1 %6041 }
0x109d   : > { %v6054_v61 = vmul.f32 0.0078125, %v6042_v12  ;;  %v6069_v60 = vmul.f32 %v6061_v30, %v6061_v30 }
0x109f   : > { %v6062_v59 = vsub.f32 %v6028_v26, %v6054_v61  ;;  %6079 = vadd.xlane.f32.xlu0 %v6069_v60 }
0x10a1   : > { %v6070_v39 = vmul.f32 %v6062_v59, %v6062_v59 }
0x10a3   : > { %6081 = vadd.xlane.f32.xlu1 %v6070_v39 }
0x10b2   : > { %v6044_v35 = vpop.xlane.xlu0 %6043 }
0x10b3   : > { %v6055_v27 = vmul.f32 0.0078125, %v6044_v35 }
0x10b5   : > { %v9875_v24 = vsub.f32 %v6029_v41, %v6055_v27 }
0x10b6   : > { %v6046_v11 = vpop.xlane.xlu1 %6045 }
0x10b7   : > { %v6056_v44 = vmul.f32 0.0078125, %v6046_v11  ;;  %v6071_v53 = vmul.f32 %v9875_v24, %v9875_v24 }
0x10b9   : > { %v9879_v36 = vsub.f32 %v6030_v9, %v6056_v44  ;;  %6083 = vadd.xlane.f32.xlu0 %v6071_v53 }
0x10ba   : > { %v6048_v49 = vpop.xlane.xlu0 %6047 }
0x10bb   : > { %v6057_v19 = vmul.f32 0.0078125, %v6048_v49  ;;  %v6072_v50 = vmul.f32 %v9879_v36, %v9879_v36 }
0x10bd   : > { %v9883_v63 = vsub.f32 %v6031_v7, %v6057_v19  ;;  %6085 = vadd.xlane.f32.xlu1 %v6072_v50 }
0x10be   : > { %v6050_v55 = vpop.xlane.xlu1 %6049 }
0x10bf   : > { %v6058_v26 = vmul.f32 0.0078125, %v6050_v55  ;;  %v6073_v40 = vmul.f32 %v9883_v63, %v9883_v63 }
0x10c1   : > { %v9887_v33 = vsub.f32 %v6032_v48, %v6058_v26  ;;  %6087 = vadd.xlane.f32.xlu0 %v6073_v40 }
0x10c3   : > { %v6074_v56 = vmul.f32 %v9887_v33, %v9887_v33 }
0x10c5   : > { %6089 = vadd.xlane.f32.xlu1 %v6074_v56 }
0x1120   : > { %v6076_v34 = vpop.xlane.xlu0 %6075 }
0x1121   : > { %v6091_v17 = vmul.f32 0.0078125, %v6076_v34 }
0x1123   : > { %v6099_v58 = vadd.f32 1e-05, %v6091_v17 }
0x1124   : > { %v6078_v6 = vpop.xlane.xlu1 %6077 }
0x1125   : > { %7807 = vrsqrt.f32 %v6099_v58  ;;  %v6092_v14 = vmul.f32 0.0078125, %v6078_v6 }
0x1127   : > { %v6100_v1 = vadd.f32 1e-05, %v6092_v14 }
0x1128   : > { %v6080_v22 = vpop.xlane.xlu0 %6079 }
0x1129   : > { %7809 = vrsqrt.f32 %v6100_v1  ;;  %v6093_v45 = vmul.f32 0.0078125, %v6080_v22 }
0x112b   : > { %v6101_v57 = vadd.f32 1e-05, %v6093_v45 }
0x112c   : > { %v6082_v42 = vpop.xlane.xlu1 %6081 }
0x112d   : > { %7811 = vrsqrt.f32 %v6101_v57  ;;  %v6094_v62 = vmul.f32 0.0078125, %v6082_v42 }
0x112f   : > { %v6102_v20 = vadd.f32 1e-05, %v6094_v62 }
0x1131   : > { %7813 = vrsqrt.f32 %v6102_v20 }
0x1132   : > { %v7808_v3 = vpop.eup %7807 }
0x1133   : > { %v6115_v10 = vmul.f32 %v7808_v3, %v6059_v32 }
0x1135   : > { %v6129_v41 = vmul.f32 %v6562_v51, %v6115_v10 }
0x1136   : > { %v7810_v43 = vpop.eup %7809 }
0x1137   : > { %v6143_v28 = vadd.f32 %v6563_v15, %v6129_v41  ;;  %v6116_v54 = vmul.f32 %v7810_v43, %v6060_v37 }
0x1139   : > { %6151 = vst [vmem:[%s9899_s23] sm:$0xff] %v6143_v28  ;;  %v6130_v5 = vmul.f32 %v6562_v51, %v6116_v54 }
0x113a   : > { %v7812_v47 = vpop.eup %7811 }
0x113b   : > { %v6144_v25 = vadd.f32 %v6563_v15, %v6130_v5  ;;  %v6117_v9 = vmul.f32 %v7812_v47, %v6061_v30 }
0x113d   : > { %6152 = vst [vmem:[%s9899_s23 + $0x8] sm:$0xff] %v6144_v25  ;;  %v6131_v16 = vmul.f32 %v6562_v51, %v6117_v9 }
0x113e   : > { %v7814_v18 = vpop.eup %7813 }
0x113f   : > { %v6145_v29 = vadd.f32 %v6563_v15, %v6131_v16  ;;  %v6118_v2 = vmul.f32 %v7814_v18, %v6062_v59 }
0x1141   : > { %6153 = vst [vmem:[%s9899_s23 + $0x10] sm:$0xff] %v6145_v29  ;;  %v6132_v13 = vmul.f32 %v6562_v51, %v6118_v2 }
0x1142   : > { %v6084_v7 = vpop.xlane.xlu0 %6083 }
0x1143   : > { %v6146_v38 = vadd.f32 %v6563_v15, %v6132_v13  ;;  %v6095_v48 = vmul.f32 0.0078125, %v6084_v7 }
0x1145   : > { %6154 = vst [vmem:[%s9899_s23 + $0x18] sm:$0xff] %v6146_v38  ;;  %v6103_v0 = vadd.f32 1e-05, %v6095_v48 }
0x1146   : > { %v6086_v8 = vpop.xlane.xlu1 %6085 }
0x1147   : > { %7815 = vrsqrt.f32 %v6103_v0  ;;  %v6096_v32 = vmul.f32 0.0078125, %v6086_v8 }
0x1149   : > { %v6104_v52 = vadd.f32 1e-05, %v6096_v32 }
0x114a   : > { %v6088_v46 = vpop.xlane.xlu0 %6087 }
0x114b   : > { %7817 = vrsqrt.f32 %v6104_v52  ;;  %v6097_v31 = vmul.f32 0.0078125, %v6088_v46 }
0x114d   : > { %v6105_v37 = vadd.f32 1e-05, %v6097_v31 }
0x114e   : > { %v6090_v23 = vpop.xlane.xlu1 %6089 }
0x114f   : > { %7819 = vrsqrt.f32 %v6105_v37  ;;  %v6098_v4 = vmul.f32 0.0078125, %v6090_v23 }
0x1151   : > { %v6106_v21 = vadd.f32 1e-05, %v6098_v4 }
0x1153   : > { %7821 = vrsqrt.f32 %v6106_v21 }
0x1154   : > { %v7816_v30 = vpop.eup %7815 }
0x1155   : > { %v6119_v12 = vmul.f32 %v7816_v30, %v9875_v24 }
0x1157   : > { %v6133_v61 = vmul.f32 %v6562_v51, %v6119_v12 }
0x1158   : > { %v7818_v60 = vpop.eup %7817 }
0x1159   : > { %v6147_v59 = vadd.f32 %v6563_v15, %v6133_v61  ;;  %v6120_v39 = vmul.f32 %v7818_v60, %v9879_v36 }
0x115b   : > { %6155 = vst [vmem:[%s9899_s23 + $0x20] sm:$0xff] %v6147_v59  ;;  %v6134_v35 = vmul.f32 %v6562_v51, %v6120_v39 }
0x115c   : > { %v7820_v27 = vpop.eup %7819 }
0x115d   : > { %v6148_v11 = vadd.f32 %v6563_v15, %v6134_v35  ;;  %v6121_v44 = vmul.f32 %v7820_v27, %v9883_v63 }
0x115f   : > { %6156 = vst [vmem:[%s9899_s23 + $0x28] sm:$0xff] %v6148_v11  ;;  %v6135_v53 = vmul.f32 %v6562_v51, %v6121_v44 }
0x1160   : > { %v7822_v49 = vpop.eup %7821 }
0x1161   : > { %v6149_v24 = vadd.f32 %v6563_v15, %v6135_v53  ;;  %v6122_v19 = vmul.f32 %v7822_v49, %v9887_v33 }
0x1163   : > { %6157 = vst [vmem:[%s9899_s23 + $0x30] sm:$0xff] %v6149_v24  ;;  %v6136_v50 = vmul.f32 %v6562_v51, %v6122_v19 }
0x1165   : > { %v6150_v36 = vadd.f32 %v6563_v15, %v6136_v50 }
0x1167   : > { %6158 = vst [vmem:[%s9899_s23 + $0x38] sm:$0xff] %v6150_v36 }
0x1168   : > { %8056 = shalt.err (!%p8053_p9)
}
0x1169   : > { %s8057_s16 = scalar_lea.hbm %s9917_s29, 1024  ;;  %s8061_s18 = scalar_lea.hbm %s10087_s12, 2048 }
0x116a   : > { %p8058_p6 = scmp.ne.s32.totalorder %s9917_s29, %s8057_s16  ;;  %p8062_p12 = scmp.lt.s32.totalorder %s9917_s29, %s10087_s12 }
0x116b   : > { %p8063_p7 = scmp.lt.s32.totalorder %s8061_s18, %s8057_s16 }
0x116c   : > { %p8059_p8 = pnand %p8058_p6, %p8400_p11 }
0x116d   : > { %p8064_p1 = por %p8063_p7, %p8062_p12 }
0x116e   : > { %p8060_p4 = pneg %p8059_p8 }
0x1170   : > { %p8065_p3 = pnand %p8064_p1, %p8060_p4 }
0x1172   : > { %8068 = shalt.err (!%p8065_p3)
}
0x1173   : > { %s8167_s15 = smov 128   ;;  %s8168_s24 = smov 8  }
0x1174   : > { %7376 = dma.vmem_to_hbm [thread:$0]  (%p8400_p11), %s9919_s14, 1024, %s9917_s29, %s6160_s27, %s8167_s15, %s8167_s15, %s8168_s24  }
0x1175 PF: > { %s10088_s23 = sld [smem:[#allocation24_spill]]  ;;  %p10090_p10 = scmp.ge.s32.totalorder %s8143_s19, 2 }
0x1177   : > { %p7405_p13 = pnand %p10090_p10, %p8407_p0 }
0x1179   : > { %p7406_p2 = pneg %p7405_p13 }
0x117b   : > { %s6190_s17 = sand.u32 1, %s10088_s23  }
0x117c   : > { %s6191_s8 = scalar_lea.sflag [#allocation4], %s6190_s17 }
0x117d   : > { %8118 = dma.done.wait (%p7406_p2), %s6191_s8, 1024  }
0x117e   : > { %8120 = vsyncadd (%p7406_p2), %s6191_s8, 4294966272  ;;  %s40_s19 = sadd.s32 1, %s8143_s19   ;;  %s10091_s6 = sld [smem:[#allocation25_spill]] }
0x117f   : > { %p37_p5 = scmp.ge.s32.totalorder %s40_s19, 4   ;;  %s10092_s29 = sld [smem:[#allocation29_spill]] }
0x1180   : > { %s10093_s2 = sld [smem:[#allocation27_spill]]  ;;  %s10094_s27 = smov %s8127_s28 }
0x1181   : > { %s10096_s30 = smov %s8139_s0 }
0x1182   :  { %39 = sbr.rel (!%p37_p5) target bundleno = 26 (0x1a), region = 174 }
0x1184   : > { %s10095_s28 = smov %s10091_s6 }
0x1186   : > { %s10097_s0 = smov %s10093_s2 }
0x1187   :  { %6196 = vsyncpa [#allocation3], 1 }
0x1188   :  { %6198 = vsyncpa [#allocation3 + $0x1], 1 }
0x1189   :  { %6199 = vsyncpa [#allocation6], 1 }
0x118a   :  { %6201 = vsyncpa [#allocation6 + $0x1], 1 }
0x118b   :  { %6202 = vsyncpa [#allocation9], 1 }
0x118c   :  { %6203 = vsyncpa [#allocation12], 1 }
0x118d   :  { %6204 = vsyncpa [#allocation15], 1 }
0x118e   :  { %6205 = vsyncpa [#allocation4], 1 }
0x118f   :  { %6207 = vsyncpa [#allocation4 + $0x1], 1 }

// kernel: tpu_custom_call.1
= control target key start
LH: loop header
LB: loop body
LE: loop exit
PB: predicated region body
PF: predicated region fallthrough
CT: control target
= control target key end

     0   :  { %s9968_s0 = inlined_call_operand.hbm [shape: f32[2,64,128], index: 0, kind: input, shape index: {}]   ;;  %s9969_s1 = inlined_call_operand.hbm [shape: f32[2,8,1,8], index: 1, kind: input, shape index: {}]   ;;  %s9970_s2 = inlined_call_operand.hbm [shape: bf16[128,128], index: 2, kind: input, shape index: {}]   ;;  %s9971_s3 = inlined_call_operand.vmem [shape: f32[1,128], index: 3, kind: input, shape index: {}]   ;;  %s9972_s4 = inlined_call_operand.hbm [shape: bf16[128,128], index: 4, kind: input, shape index: {}]   ;;  %s9973_s5 = inlined_call_operand.vmem [shape: f32[1,128], index: 5, kind: input, shape index: {}]   ;;  %s9974_s6 = inlined_call_operand.hbm [shape: bf16[128,128], index: 6, kind: input, shape index: {}]   ;;  %s9975_s7 = inlined_call_operand.vmem [shape: f32[1,128], index: 7, kind: input, shape index: {}]   ;;  %s9976_s8 = inlined_call_operand.hbm [shape: bf16[128,128], index: 8, kind: input, shape index: {}]   ;;  %s9977_s9 = inlined_call_operand.vmem [shape: f32[1,128], index: 9, kind: input, shape index: {}]   ;;  %s9978_s10 = inlined_call_operand.vmem [shape: f32[1,128], index: 10, kind: input, shape index: {}]   ;;  %s9979_s11 = inlined_call_operand.vmem [shape: f32[1,128], index: 11, kind: input, shape index: {}]   ;;  %s9980_s12 = inlined_call_operand.hbm [shape: bf16[128,512], index: 12, kind: input, shape index: {}]   ;;  %s9981_s13 = inlined_call_operand.vmem [shape: f32[1,512], index: 13, kind: input, shape index: {}]   ;;  %s9982_s14 = inlined_call_operand.hbm [shape: bf16[512,128], index: 14, kind: input, shape index: {}]   ;;  %s9983_s15 = inlined_call_operand.vmem [shape: f32[1,128], index: 15, kind: input, shape index: {}]   ;;  %s9984_s16 = inlined_call_operand.vmem [shape: f32[1,128], index: 16, kind: input, shape index: {}]   ;;  %s9985_s17 = inlined_call_operand.vmem [shape: f32[1,128], index: 17, kind: input, shape index: {}]   ;;  %s9986_s18 = inlined_call_operand.hbm [shape: f32[2,64,128], index: 18, kind: output, shape index: {}]  }
   0x1   :  { %10002 = sst [smem:[#allocation40_spill]] %s9968_s0 }
   0x2   :  { %10003 = sst [smem:[#allocation41_spill]] %s9969_s1 }
   0x3   :  { %10004 = sst [smem:[#allocation42_spill]] %s9970_s2 }
   0x4   :  { %10005 = sst [smem:[#allocation43_spill]] %s9972_s4 }
   0x5   :  { %10006 = sst [smem:[#allocation44_spill]] %s9974_s6 }
   0x6   :  { %10007 = sst [smem:[#allocation45_spill]] %s9976_s8 }
   0x7   :  { %10008 = sst [smem:[#allocation46_spill]] %s9979_s11 }
   0x8   :  { %10009 = sst [smem:[#allocation47_spill]] %s9980_s12 }
   0x9   :  { %10010 = sst [smem:[#allocation48_spill]] %s9981_s13 }
   0xa   :  { %10011 = sst [smem:[#allocation49_spill]] %s9982_s14 }
   0xb   :  { %10012 = sst [smem:[#allocation50_spill]] %s9983_s15 }
   0xc   :  { %10013 = sst [smem:[#allocation51_spill]] %s9984_s16 }
   0xd   :  { %10014 = sst [smem:[#allocation52_spill]] %s9985_s17 }
   0xe   :  { %10015 = sst [smem:[#allocation53_spill]] %s9986_s18 }
   0xf   :  { %23 = vsyncpa [#allocation3], 0 }
  0x10   :  { %25 = vsyncpa [#allocation3 + $0x1], 0 }
  0x11   :  { %26 = vsyncpa [#allocation6], 0 }
  0x12   :  { %28 = vsyncpa [#allocation6 + $0x1], 0 }
  0x13   :  { %29 = vsyncpa [#allocation9], 0 }
  0x14   :  { %30 = vsyncpa [#allocation12], 0 }
  0x15   :  { %31 = vsyncpa [#allocation15], 0 }
  0x16   :  { %32 = vsyncpa [#allocation4], 0 }
  0x17   :  { %34 = vsyncpa [#allocation4 + $0x1], 0  ;;  %s8264_s27 = smov 0   ;;  %s8266_s28 = smov 0  }
  0x18   :  { %s8268_s29 = smov 0   ;;  %s8270_s30 = smov 0  }
  0x19   :  { %s8272_s0 = smov 0   ;;  %s8274_s19 = smov 0  }
  0x1a LB: > { %10016 = sst [smem:[#allocation24_spill]] %s8123_s27  ;;  %s8295_s1 = sadd.s32 4294967295, %s8143_s19   ;;  %s8143_s19 = sphi %s8274_s19, %s40_s19   ;;  %s8139_s0 = sphi %s8272_s0, %s10097_s0   ;;  %s8135_s30 = sphi %s8270_s30, %s10096_s30   ;;  %s8131_s29 = sphi %s8268_s29, %s10092_s29   ;;  %s8127_s28 = sphi %s8266_s28, %s10095_s28   ;;  %s8123_s27 = sphi %s8264_s27, %s10094_s27  }
  0x1b   : > { %10017 = sst [smem:[#allocation25_spill]] %s8131_s29  ;;  %p6347_p0 = scmp.ge.s32.totalorder %s8143_s19, 1 }
  0x1c   : > { %10018 = sst [smem:[#allocation26_spill]] %s8135_s30  ;;  %p75_p1 = scmp.eq.s32.totalorder %s8295_s1, 0 }
  0x1d   : > { %p477_p2 = scmp.lt.s32.totalorder %s8143_s19, 3  ;;  %s8145_s21 = smov [#allocation7]  }
  0x1e   : > { %s489_s22 = sshll.u32 %s8145_s21, 4  ;;  %s8146_s23 = smov [#allocation8]   ;;  %s490_s22 = int_to_ptr.vmem [resolvable:$true] %s489_s22 }
  0x1f   : > { %p8300_p3 = pnand %p6347_p0, %p477_p2  ;;  %s505_s24 = sshll.u32 %s8146_s23, 4  ;;  %s506_s24 = int_to_ptr.vmem [resolvable:$true] %s505_s24 }
  0x20   : > { %s8147_s25 = smov [#allocation11]   ;;  %s7842_s21 = scalar_lea.vmem %s490_s22, 1024 }
  0x21   : > { %p7378_p4 = pneg %p8300_p3  ;;  %s537_s26 = sshll.u32 %s8147_s25, 4  ;;  %s538_s26 = int_to_ptr.vmem [resolvable:$true] %s537_s26 }
  0x22   : > { %p7843_p8 = scmp.ne.s32.totalorder %s490_s22, %s7842_s21  ;;  %p7850_p11 = scmp.lt.s32.totalorder %s490_s22, %s490_s22 }
  0x23   : > { %p8309_p6 = pnand %p7378_p4, %p75_p1  ;;  %p7851_p12 = scmp.lt.s32.totalorder %s7842_s21, %s7842_s21 }
  0x25   : > { %p8315_p7 = pneg %p8309_p6  ;;  %p7852_p13 = por %p7851_p12, %p7850_p11 }
  0x27   : > { %p7845_p9 = pnand %p7843_p8, %p8315_p7 }
  0x29   : > { %p7846_p10 = pneg %p7845_p9 }
  0x2b   : > { %p7853_p0 = pnand %p7852_p13, %p7846_p10 }
  0x2d   : > { %7856 = shalt.err (!%p7853_p0)
}
  0x2e   : > { %s8148_s23 = smov 64   ;;  %s8149_s25 = smov 4  }
  0x2f   : > { %s10022_s16 = sld [smem:[#allocation42_spill]]  ;;  %s7868_s15 = scalar_lea.vmem %s506_s24, 1024 }
  0x30   : > { %p7869_p2 = scmp.ne.s32.totalorder %s506_s24, %s7868_s15  ;;  %p7876_p9 = scmp.lt.s32.totalorder %s506_s24, %s506_s24 }
  0x31   : > { %p7877_p10 = scmp.lt.s32.totalorder %s7868_s15, %s7868_s15 }
  0x32   : > { %p7871_p4 = pnand %p7869_p2, %p8315_p7 }
  0x33   : > { %p7878_p11 = por %p7877_p10, %p7876_p9 }
  0x34   : > { %p7872_p8 = pneg %p7871_p4 }
  0x35   : > { %7381 = dma.hbm_to_vmem [thread:$0]  (!%p8309_p6), %s10022_s16, 1024, %s490_s22, [#allocation6], %s8148_s23, %s8148_s23, %s8149_s25  }
  0x36   : > { %p7879_p12 = pnand %p7878_p11, %p7872_p8 }
  0x38   : > { %7882 = shalt.err (!%p7879_p12)
}
  0x39   : > { %s10023_s4 = sld [smem:[#allocation43_spill]]  ;;  %s7894_s16 = scalar_lea.vmem %s538_s26, 1024 }
  0x3a   : > { %p7895_p13 = scmp.ne.s32.totalorder %s538_s26, %s7894_s16  ;;  %p7902_p4 = scmp.lt.s32.totalorder %s538_s26, %s538_s26 }
  0x3b   : > { %p7903_p9 = scmp.lt.s32.totalorder %s7894_s16, %s7894_s16 }
  0x3c   : > { %p7897_p0 = pnand %p7895_p13, %p8315_p7 }
  0x3d   : > { %p7904_p8 = por %p7903_p9, %p7902_p4 }
  0x3e   : > { %p7898_p2 = pneg %p7897_p0 }
  0x3f   : > { %7384 = dma.hbm_to_vmem [thread:$0]  (!%p8309_p6), %s10023_s4, 1024, %s506_s24, [#allocation9], %s8148_s23, %s8148_s23, %s8149_s25  }
  0x40   : > { %p7905_p10 = pnand %p7904_p8, %p7898_p2 }
  0x42   : > { %7908 = shalt.err (!%p7905_p10)
}
  0x43   : > { %s10024_s8 = sld [smem:[#allocation45_spill]]  ;;  %s8150_s17 = smov [#allocation10]  }
  0x44   : > { %s521_s30 = sshll.u32 %s8150_s17, 4  ;;  %s8151_s22 = smov [#allocation13]   ;;  %s522_s30 = int_to_ptr.vmem [resolvable:$true] %s521_s30 }
  0x45   : > { %s559_s24 = sshll.u32 %s8151_s22, 4  ;;  %s7920_s21 = scalar_lea.vmem %s522_s30, 1024  ;;  %s560_s24 = int_to_ptr.vmem [resolvable:$true] %s559_s24 }
  0x46   : > { %p7921_p11 = scmp.ne.s32.totalorder %s522_s30, %s7920_s21  ;;  %p7928_p0 = scmp.lt.s32.totalorder %s522_s30, %s522_s30 }
  0x47   : > { %p7929_p2 = scmp.lt.s32.totalorder %s7920_s21, %s7920_s21 }
  0x48   : > { %p7923_p12 = pnand %p7921_p11, %p8315_p7 }
  0x49   : > { %7390 = dma.hbm_to_vmem [thread:$0]  (!%p8309_p6), %s10024_s8, 1024, %s538_s26, [#allocation12], %s8148_s23, %s8148_s23, %s8149_s25  }
  0x4a   : > { %p7924_p13 = pneg %p7923_p12  ;;  %p7930_p4 = por %p7929_p2, %p7928_p0 }
  0x4c   : > { %p7931_p9 = pnand %p7930_p4, %p7924_p13 }
  0x4e   : > { %7934 = shalt.err (!%p7931_p9)
}
  0x4f   : > { %s10025_s6 = sld [smem:[#allocation44_spill]]  ;;  %s7946_s15 = scalar_lea.vmem %s560_s24, 4096 }
  0x50   : > { %p7947_p8 = scmp.ne.s32.totalorder %s560_s24, %s7946_s15  ;;  %p7954_p12 = scmp.lt.s32.totalorder %s560_s24, %s560_s24 }
  0x51   : > { %p7955_p0 = scmp.lt.s32.totalorder %s7946_s15, %s7946_s15 }
  0x52   : > { %p7949_p10 = pnand %p7947_p8, %p8315_p7 }
  0x53   : > { %p7956_p13 = por %p7955_p0, %p7954_p12 }
  0x54   : > { %p7950_p11 = pneg %p7949_p10 }
  0x55   : > { %7387 = dma.hbm_to_vmem [thread:$0]  (!%p8309_p6), %s10025_s6, 1024, %s522_s30, [#allocation9], %s8148_s23, %s8148_s23, %s8149_s25  }
  0x56   : > { %p7957_p2 = pnand %p7956_p13, %p7950_p11 }
  0x58   : > { %7960 = shalt.err (!%p7957_p2)
}
  0x59   : > { %s8152_s13 = smov 256   ;;  %s9988_s17 = smov 16  }
  0x5a   : > { %s10026_s12 = sld [smem:[#allocation47_spill]]  ;;  %s8154_s30 = smov [#allocation14]  }
  0x5b   : > { %s575_s26 = sshll.u32 %s8154_s30, 4  ;;  %s576_s26 = int_to_ptr.vmem [resolvable:$true] %s575_s26 }
  0x5c   : > { %s7972_s16 = scalar_lea.vmem %s576_s26, 4096  ;;  %p7980_p10 = scmp.lt.s32.totalorder %s576_s26, %s576_s26 }
  0x5d   : > { %p7973_p4 = scmp.ne.s32.totalorder %s576_s26, %s7972_s16  ;;  %p7981_p11 = scmp.lt.s32.totalorder %s7972_s16, %s7972_s16 }
  0x5f   : > { %p7975_p9 = pnand %p7973_p4, %p8315_p7  ;;  %p7982_p12 = por %p7981_p11, %p7980_p10 }
  0x60   : > { %7393 = dma.hbm_to_vmem [thread:$0]  (!%p8309_p6), %s10026_s12, 4096, %s560_s24, [#allocation12], %s8152_s13, %s8152_s13, %s9988_s17  }
  0x61   : > { %p7976_p8 = pneg %p7975_p9 }
  0x63   : > { %p7983_p0 = pnand %p7982_p12, %p7976_p8 }
  0x65   : > { %7986 = shalt.err (!%p7983_p0)
}
  0x66   : > { %s10027_s14 = sld [smem:[#allocation49_spill]]  ;;  %s6346_s18 = sadd.s32 4294967294, %s8143_s19  }
  0x67   : > { %s52_s2 = sadd.s32 1, %s8139_s0  ;;  %s61_s13 = sadd.s32 1, %s8131_s29 }
  0x68   : > { %p54_p7 = scmp.ge.s32.totalorder %s52_s2, 2  ;;  %p68_p13 = scmp.ne.s32.totalorder %s8131_s29, %s8127_s28 }
  0x69   : > { %p69_p2 = scmp.eq.s32.totalorder %s8143_s19, 0  ;;  %p74_p9 = scmp.ne.s32.totalorder %s8127_s28, %s8123_s27 }
  0x6a   : > { %s10099_s2 = smov (%p54_p7, %s52_s2), 0  ;;  %p470_p12 = scmp.eq.s32.totalorder %s6346_s18, 1 }
  0x6b   : > { %10028 = sst [smem:[#allocation27_spill]] %s10099_s2  ;;  %p8385_p4 = por %p69_p2, %p68_p13 }
  0x6c   : > { %7396 = dma.hbm_to_vmem [thread:$0]  (!%p8309_p6), %s10027_s14, 4096, %s576_s26, [#allocation15], %s8148_s23, %s8148_s23, %s8149_s25  }
  0x6d   : > { %s56_s23 = ssub.s32 %s8139_s0, %s10099_s2  ;;  %p464_p6 = scmp.eq.s32.totalorder %s8295_s1, 1 }
  0x6e   : > { %p59_p8 = scmp.eq.s32.totalorder %s56_s23, 0  ;;  %p8396_p10 = por %p75_p1, %p74_p9 }
  0x6f   : > { %p8400_p11 = por %p464_p6, %p68_p13  ;;  %p8407_p0 = por %p470_p12, %p74_p9 }
  0x70   : > { %s8405_s30 = scalar_select %p59_p8, %s8131_s29, %s61_s13  }
  0x71   : > { %s10031_s21 = scalar_select %p8400_p11, 1, 0 }
  0x72   : > { %10033 = sst [smem:[#allocation29_spill]] %s8405_s30  ;;  %p7414_p7 = scmp.lt.s32.totalorder %s8143_s19, 2 }
  0x73   : > { %10032 = sst [smem:[#allocation28_spill]] %s10031_s21  ;;  %s8413_s16 = sand.u32 1, %s8131_s29  }
  0x74   : > { %s10034_s26 = scalar_select %p8407_p0, 1, 0 }
  0x75   : > { %s6569_s15 = sshll.u32 %s8139_s0, 10  ;;  %s6355_s24 = sshll.u32 %s8413_s16, 6 }
  0x76   : > { %10035 = sst [smem:[#allocation30_spill]] %s10034_s26  ;;  %s602_s8 = scalar_lea.vmem [#allocation2], %s6355_s24 }
  0x77   : > { %s10036_s4 = sld [smem:[#allocation40_spill]]  ;;  %s611_s12 = sshll.u32 %s602_s8, 4  ;;  %s612_s12 = int_to_ptr.vmem [resolvable:$true] %s611_s12 }
  0x78   : > { %p8422_p13 = pnand %p7414_p7, %p8385_p4  ;;  %s599_s13 = scalar_lea.sflag [#allocation3], %s8413_s16 }
  0x79   : > { %s8000_s14 = scalar_lea.vmem %s612_s12, 1024 }
  0x7a   : > { %p7989_p2 = pneg %p8422_p13  ;;  %p8001_p9 = scmp.ne.s32.totalorder %s612_s12, %s8000_s14 }
  0x7c   : > { %p8003_p6 = pnand %p8001_p9, %p7989_p2 }
  0x7d   : > { %s610_s6 = scalar_lea.hbm %s10036_s4, %s6569_s15  ;;  %s8155_s4 = smov [#allocation2]  }
  0x7e   : > { %p8004_p8 = pneg %p8003_p6  ;;  %s8005_s17 = sshll.u32 %s8155_s4, 4  ;;  %s8006_s17 = int_to_ptr.vmem [resolvable:$false] %s8005_s17 }
  0x7f   : > { %s8007_s8 = scalar_lea.vmem %s8006_s17, 2048  ;;  %p8008_p4 = scmp.lt.s32.totalorder %s612_s12, %s8006_s17 }
  0x80   : > { %p8009_p12 = scmp.lt.s32.totalorder %s8007_s8, %s8000_s14 }
  0x82   : > { %p8010_p7 = por %p8009_p12, %p8008_p4 }
  0x84   : > { %p8011_p5 = pnand %p8010_p7, %p8004_p8 }
  0x86   : > { %8014 = shalt.err (!%p8011_p5)
}
  0x87   : > { %s8156_s22 = smov 128   ;;  %s8157_s15 = smov 8  }
  0x88   : > { %7400 = dma.hbm_to_vmem [thread:$0]  (!%p8422_p13), %s610_s6, 1024, %s612_s12, %s599_s13, %s8156_s22, %s8156_s22, %s8157_s15  }
  0x89   : > { %s621_s24 = sand.u32 1, %s8143_s19   ;;  %s6358_s23 = sshll.u32 %s8413_s16, 3 }
  0x8a   : > { %s6570_s2 = sshll.u32 %s8139_s0, 7  ;;  %s625_s4 = scalar_lea.vmem [#allocation5], %s6358_s23 }
  0x8b   : > { %s634_s30 = sshll.u32 %s625_s4, 4  ;;  %s10038_s14 = sld [smem:[#allocation41_spill]]  ;;  %s635_s30 = int_to_ptr.vmem [resolvable:$true] %s634_s30 }
  0x8c   : > { %s622_s26 = scalar_lea.sflag [#allocation6], %s621_s24  ;;  %s8028_s27 = scalar_lea.vmem %s635_s30, 128 }
  0x8d   : > { %p8029_p5 = scmp.ne.s32.totalorder %s635_s30, %s8028_s27  ;;  %s8158_s21 = smov [#allocation5]  }
  0x8e   : > { %s8033_s11 = sshll.u32 %s8158_s21, 4  ;;  %s8034_s11 = int_to_ptr.vmem [resolvable:$false] %s8033_s11 }
  0x8f   : > { %p8031_p9 = pnand %p8029_p5, %p7989_p2  ;;  %s8035_s6 = scalar_lea.vmem %s8034_s11, 256 }
  0x90   : > { %p8036_p8 = scmp.lt.s32.totalorder %s635_s30, %s8034_s11  ;;  %p8037_p4 = scmp.lt.s32.totalorder %s8035_s6, %s8028_s27 }
  0x91   : > { %s633_s8 = scalar_lea.hbm %s10038_s14, %s6570_s2  ;;  %p8032_p6 = pneg %p8031_p9 }
  0x92   : > { %p8038_p12 = por %p8037_p4, %p8036_p8 }
  0x94   : > { %p8039_p7 = pnand %p8038_p12, %p8032_p6 }
  0x96   : > { %8042 = shalt.err (!%p8039_p7)
}
  0x97   : > { %s8159_s12 = smov 1   ;;  %s10039_s29 = smov 16  }
  0x98   : > { %7403 = dma.hbm_to_vmem [thread:$0]  (!%p8422_p13), %s633_s8, 128, %s635_s30, %s622_s26, %s10039_s29, %s10039_s29, %s8159_s12  }
  0x99   : > { %646 = sbr.rel (%p8300_p3) target bundleno = 4469 (0x1175), region = 92 }
  0x9e   : > { %s8450_s2 = sand.u32 1, %s8127_s28  }
  0x9f   : > { %s6362_s11 = sshll.u32 %s8450_s2, 6  ;;  %s649_s27 = scalar_lea.sflag [#allocation3], %s8450_s2 }
  0xa0   : > { %s8456_s21 = scalar_lea.vmem [#allocation2], %s6362_s11 }
  0xa1   : > { %8094 = dma.done.wait (%p8396_p10), %s649_s27, 1024  }
  0xa2   : > { %8096 = vsyncadd (%p8396_p10), %s649_s27, 4294966272  ;;  %s657_s20 = sand.u32 1, %s8295_s1   ;;  %s6363_s30 = sshll.u32 %s8450_s2, 3 }
  0xa3   : > { %s658_s26 = scalar_lea.sflag [#allocation6], %s657_s20  ;;  %s8464_s16 = scalar_lea.vmem [#allocation5], %s6363_s30 }
  0xa4   : > { %8098 = dma.done.wait (%p8396_p10), %s658_s26, 128  }
  0xa5   : > { %8100 = vsyncadd (%p8396_p10), %s658_s26, 4294967168 }
  0xa6   : > { %8102 = dma.done.wait (%p75_p1), [#allocation6], 1024  }
  0xa7   : > { %8104 = vsyncadd (%p75_p1), [#allocation6], 4294966272 }
  0xa8   : > { %8106 = dma.done.wait (%p75_p1), [#allocation9], 2048  }
  0xa9   : > { %8108 = vsyncadd (%p75_p1), [#allocation9], 4294965248 }
  0xaa   : > { %8110 = dma.done.wait (%p75_p1), [#allocation12], 5120  }
  0xab   : > { %8112 = vsyncadd (%p75_p1), [#allocation12], 4294962176 }
  0xac   : > { %8114 = dma.done.wait (%p75_p1), [#allocation15], 4096  }
  0xad   : > { %8116 = vsyncadd (%p75_p1), [#allocation15], 4294963200  ;;  %v7551_v0 = vld [vmem:[#allocation8 + $0x38] sm:$0xff]   ;;  %v7552_v1 = vld [vmem:[#allocation8 + $0x30] sm:$0xff]   ;;  %v9997_v36 = vmov 0.0   ;;  %vm8161_vm0 = vmmov 0  }
  0xae   : > { %6876 = vmatprep.subr.bf16.mxu1 %v7551_v0  ;;  %v7553_v2 = vld [vmem:[#allocation7 + $0x38] sm:$0xff]   ;;  %v7554_v3 = vld [vmem:[#allocation8 + $0x28] sm:$0xff]   ;;  %v7555_v4 = vld [vmem:[#allocation7 + $0x30] sm:$0xff]   ;;  %vm1324_vm1 = vcmask 261120   ;;  %vm1801_vm2 = vcmask 1043456   ;;  %vm1701_vm9 = vcmask 64512  }
  0xaf   : > { %6877 = vmatpush3.bf16.msra.mxu1 %v7551_v0  ;;  %6852 = vmatprep.subr.bf16.mxu0 %v7553_v2  ;;  %v7557_v5 = vld [vmem:[#allocation7 + $0x28] sm:$0xff]   ;;  %v7556_v6 = vld [vmem:[#allocation8 + $0x20] sm:$0xff]   ;;  %v7558_v8 = vld [vmem:[#allocation8 + $0x18] sm:$0xff]   ;;  %s8163_s24 = smov 96   ;;  %s8164_s23 = smov 64  }
  0xb0   : > { %6878 = vmatprep.subr.bf16.mxu1 %v7552_v1  ;;  %6853 = vmatpush3.bf16.msra.mxu0 %v7553_v2  ;;  %v7559_v7 = vld [vmem:[#allocation7 + $0x20] sm:$0xff]   ;;  %v7561_v9 = vld [vmem:[#allocation7 + $0x18] sm:$0xff]   ;;  %v747_v10 = vld [vmem:[%s8456_s21] sm:$0xff]  ;;  %s8165_s4 = smov 32   ;;  %s10078_s27 = sld [smem:[#allocation46_spill]] }
  0xb1   : > { %6854 = vmatprep.subr.bf16.mxu0 %v7555_v4  ;;  %v748_v11 = vld [vmem:[%s8456_s21 + $0x8] sm:$0xff]  ;;  %v7560_v12 = vld [vmem:[#allocation8 + $0x10] sm:$0xff]   ;;  %v7562_v15 = vld [vmem:[#allocation8 + $0x8] sm:$0xff]   ;;  %s10080_s30 = sld [smem:[#allocation48_spill]]  ;;  %s8166_s20 = smov [#allocation16]  }
  0xb2   : > { %v755_v13 = vpack.c.bf16 %v748_v11, %v747_v10  ;;  %v7563_v14 = vld [vmem:[#allocation7 + $0x10] sm:$0xff]   ;;  %v7565_v16 = vld [vmem:[#allocation7 + $0x8] sm:$0xff]   ;;  %v7564_v17 = vld [vmem:[#allocation8] sm:$0xff]   ;;  %s10082_s1 = sld [smem:[#allocation50_spill]] }
  0xb3   : > { %6879 = vmatpush3.bf16.msra.mxu1 %v7552_v1  ;;  %v749_v18 = vld [vmem:[%s8456_s21 + $0x10] sm:$0xff]  ;;  %v750_v19 = vld [vmem:[%s8456_s21 + $0x18] sm:$0xff]  ;;  %v751_v21 = vld [vmem:[%s8456_s21 + $0x20] sm:$0xff]  ;;  %s10083_s13 = sld [smem:[#allocation51_spill]] }
  0xb4   : > { %6880 = vmatprep.subr.bf16.mxu1 %v7554_v3  ;;  %6855 = vmatpush3.bf16.msra.mxu0 %v7555_v4  ;;  %v7566_v20 = vld [vmem:[#allocation7] sm:$0xff]   ;;  %v752_v22 = vld [vmem:[%s8456_s21 + $0x28] sm:$0xff]  ;;  %v756_v24 = vpack.c.bf16 %v750_v19, %v749_v18  ;;  %v7568_v26 = vld [vmem:[#allocation10 + $0x30] sm:$0xff]   ;;  %s10087_s12 = sld [smem:[#allocation53_spill]] }
  0xb5   : > { %6856 = vmatprep.subr.bf16.mxu0 %v7557_v5  ;;  %6892 = vmatprep.mubr.bf16.mxu1 %v755_v13  ;;  %v7567_v23 = vld [vmem:[#allocation10 + $0x38] sm:$0xff]   ;;  %v757_v25 = vpack.c.bf16 %v752_v22, %v751_v21  ;;  %v753_v27 = vld [vmem:[%s8456_s21 + $0x30] sm:$0xff]  ;;  %v754_v28 = vld [vmem:[%s8456_s21 + $0x38] sm:$0xff] }
  0xb6   : > { %6868 = vmatprep.mubr.bf16.mxu0 %v755_v13  ;;  %v7569_v29 = vld [vmem:[#allocation10 + $0x28] sm:$0xff]   ;;  %v758_v30 = vpack.c.bf16 %v754_v28, %v753_v27  ;;  %v7570_v31 = vld [vmem:[#allocation10 + $0x20] sm:$0xff]   ;;  %v7571_v32 = vld [vmem:[#allocation10 + $0x18] sm:$0xff]  }
  0xb7   : > { %6881 = vmatpush3.bf16.msra.mxu1 %v7554_v3  ;;  %v7572_v33 = vld [vmem:[#allocation10 + $0x10] sm:$0xff]   ;;  %v7573_v34 = vld [vmem:[#allocation10 + $0x8] sm:$0xff]   ;;  %v7574_v35 = vld [vmem:[#allocation10] sm:$0xff]  }
  0xb8   : > { %6882 = vmatprep.subr.bf16.mxu1 %v7556_v6  ;;  %6857 = vmatpush3.bf16.msra.mxu0 %v7557_v5  ;;  %v8503_v38 = vld [vmem:[%s9973_s5] ss:$0 sm:$0xff] }
  0xb9   : > { %6858 = vmatprep.subr.bf16.mxu0 %v7559_v7  ;;  %v8509_v42 = vld [vmem:[%s9971_s3] ss:$0 sm:$0xff] }
  0xbb   : > { %6883 = vmatpush3.bf16.msra.mxu1 %v7556_v6 }
  0xbc   : > { %6884 = vmatprep.subr.bf16.mxu1 %v7558_v8  ;;  %6859 = vmatpush3.bf16.msra.mxu0 %v7559_v7 }
  0xbd   : > { %6860 = vmatprep.subr.bf16.mxu0 %v7561_v9 }
  0xbf   : > { %6885 = vmatpush3.bf16.msra.mxu1 %v7558_v8 }
  0xc0   : > { %6886 = vmatprep.subr.bf16.mxu1 %v7560_v12  ;;  %6861 = vmatpush3.bf16.msra.mxu0 %v7561_v9 }
  0xc1   : > { %6862 = vmatprep.subr.bf16.mxu0 %v7563_v14 }
  0xc3   : > { %6887 = vmatpush3.bf16.msra.mxu1 %v7560_v12 }
  0xc4   : > { %6888 = vmatprep.subr.bf16.mxu1 %v7562_v15  ;;  %6863 = vmatpush3.bf16.msra.mxu0 %v7563_v14 }
  0xc5   : > { %6864 = vmatprep.subr.bf16.mxu0 %v7565_v16 }
  0xc7   : > { %6889 = vmatpush3.bf16.msra.mxu1 %v7562_v15 }
  0xc8   : > { %6890 = vmatprep.subr.bf16.mxu1 %v7564_v17  ;;  %6865 = vmatpush3.bf16.msra.mxu0 %v7565_v16 }
  0xc9   : > { %6866 = vmatprep.subr.bf16.mxu0 %v7566_v20 }
  0xcb   : > { %6891 = vmatpush3.bf16.msra.mxu1 %v7564_v17 }
  0xcc   : > { %6867 = vmatpush3.bf16.msra.mxu0 %v7566_v20  ;;  %6924 = vmatprep.subr.bf16.mxu1 %v9997_v36 }
  0xcd   : > { %6900 = vmatprep.subr.bf16.mxu0 %v7567_v23 }
  0xce   : > { %6893 = vmatmul.mubr.bf16.vlgmr.msra.gmra.mxu1 %v756_v24 }
  0xcf   : > { %6896 = vmatprep.mubr.bf16.mxu1 %v757_v25  ;;  %6869 = vmatmul.mubr.bf16.vlgmr.msra.gmra.mxu0 %v756_v24 }
  0xd0   : > { %6872 = vmatprep.mubr.bf16.mxu0 %v757_v25  ;;  %6901 = vmatpush3.bf16.msra.mxu0 %v7567_v23 }
  0xd1   : > { %6902 = vmatprep.subr.bf16.mxu0 %v7568_v26 }
  0xd4   : > { %6903 = vmatpush3.bf16.msra.mxu0 %v7568_v26 }
  0xd5   : > { %6904 = vmatprep.subr.bf16.mxu0 %v7569_v29 }
  0xd6   : > { %6897 = vmatmul.mubr.bf16.gmra.mxu1 %v758_v30 }
  0xd7   : > { %6873 = vmatmul.mubr.bf16.gmra.mxu0 %v758_v30  ;;  %6926 = vmatprep.mubr.msk.bf16.mxu1 %vm8161_vm0, %v9997_v36 }
  0xd8   : > { %6905 = vmatpush3.bf16.msra.mxu0 %v7569_v29  ;;  %6916 = vmatprep.mubr.bf16.mxu0 %v755_v13 }
  0xd9   : > { %6906 = vmatprep.subr.bf16.mxu0 %v7570_v31 }
  0xdc   : > { %6907 = vmatpush3.bf16.msra.mxu0 %v7570_v31 }
  0xdd   : > { %6908 = vmatprep.subr.bf16.mxu0 %v7571_v32 }
  0xe0   : > { %6909 = vmatpush3.bf16.msra.mxu0 %v7571_v32 }
  0xe1   : > { %6910 = vmatprep.subr.bf16.mxu0 %v7572_v33 }
  0xe4   : > { %6911 = vmatpush3.bf16.msra.mxu0 %v7572_v33 }
  0xe5   : > { %6912 = vmatprep.subr.bf16.mxu0 %v7573_v34 }
  0xe8   : > { %6913 = vmatpush3.bf16.msra.mxu0 %v7573_v34 }
  0xe9   : > { %6914 = vmatprep.subr.bf16.mxu0 %v7574_v35 }
  0xec   : > { %6915 = vmatpush3.bf16.msra.mxu0 %v7574_v35 }
  0xed   : > { %6948 = vmatprep.subr.bf16.mxu0 %v9997_v36 }
  0xef   : > { %6917 = vmatmul.mubr.bf16.vlgmr.msra.gmra.mxu0 %v756_v24 }
  0xf0   : > { %6920 = vmatprep.mubr.bf16.mxu0 %v757_v25 }
  0xf7   : > { %6921 = vmatmul.mubr.bf16.gmra.mxu0 %v758_v30 }
  0xf8   : > { %6950 = vmatprep.mubr.msk.bf16.mxu0 %vm8161_vm0, %v9997_v36 }
 0x18e   : > { %v6894_v37 = vpop.f32.mrf.mxu1 }
 0x18f   : > { %v6870_v40 = vpop.f32.mrf.mxu0  ;;  %v1017_v2 = vadd.f32 %v6894_v37, %v8503_v38 }
 0x190   : > { %v1008_v39 = vpop.f32.mrf.mxu1  ;;  %v873_v10 = vadd.f32 %v6870_v40, %v8509_v42  ;;  %v8617_v40 = vld [vmem:[%s9975_s7] ss:$0 sm:$0xff] }
 0x191   : > { %v1009_v41 = vadd.f32 %v8503_v38, %v1008_v39  ;;  %v864_v44 = vpop.f32.mrf.mxu0  ;;  %v8544_v8 = vpack.c.bf16 %v1017_v2, %v1017_v2 }
 0x192   : > { %v6895_v43 = vpop.f32.mrf.mxu1  ;;  %v865_v47 = vadd.f32 %v8509_v42, %v864_v44  ;;  %v897_v16 = vmul.f32 0.17677669, %v873_v10 }
 0x193   : > { %v8511_v45 = vpack.c.bf16 %v1009_v41, %v1009_v41  ;;  %v6871_v48 = vpop.f32.mrf.mxu0  ;;  %v1020_v14 = vadd.f32 %v6895_v43, %v8503_v38  ;;  %v1421_v15 = vsel %vm1324_vm1, %v8544_v8, 0 }
 0x194   : > { %v1011_v46 = vpop.f32.mrf.mxu1  ;;  %v895_v53 = vmul.f32 0.17677669, %v865_v47  ;;  %v8568_v21 = vpack.c.bf16 %v897_v16, %v897_v16  ;;  %v876_v22 = vadd.f32 %v6871_v48, %v8509_v42  ;;  %v1186_v16 = vld [vmem:[%s8464_s16 + $0x6] sm:$0x1] }
 0x195   : > { %v1012_v49 = vadd.f32 %v8503_v38, %v1011_v46  ;;  %v1329_v51 = vsel %vm1324_vm1, %v8511_v45, 0  ;;  %v867_v52 = vpop.f32.mrf.mxu0  ;;  %v8566_v19 = vpack.c.bf16 %v1020_v14, %v1020_v14  ;;  %vm1194_vm10 = vcmp.gt.f32.partialorder %v1186_v16, 0.0 }
 0x196   : > { %v6898_v50 = vpop.f32.mrf.mxu1  ;;  %6925 = vmatpush3.bf16.xpose.msra.mxu1 %v1329_v51  ;;  %v8525_v62 = vpack.c.bf16 %v895_v53, %v895_v53  ;;  %v868_v63 = vadd.f32 %v8509_v42, %v867_v52  ;;  %v898_v26 = vmul.f32 0.17677669, %v876_v22  ;;  %v1182_v22 = vld [vmem:[%s8464_s16 + $0x2] sm:$0x1] }
 0x197   : > { %v6874_v55 = vpop.f32.mrf.mxu0  ;;  %6930 = vmatprep.subr.bf16.mxu1 %v9997_v36  ;;  %v8519_v57 = vpack.c.bf16 %v1012_v49, %v1012_v49  ;;  %v1033_v59 = vadd.f32 %v6898_v50, %v8503_v38  ;;  %v1467_v24 = vsel %vm1324_vm1, %v8566_v19, 0  ;;  %vm1190_vm11 = vcmp.gt.f32.partialorder %v1182_v22, 0.0 }
 0x198   : > { %v1024_v54 = vpop.f32.mrf.mxu1  ;;  %v896_v5 = vmul.f32 0.17677669, %v868_v63  ;;  %v889_v6 = vadd.f32 %v6874_v55, %v8509_v42  ;;  %v8586_v29 = vpack.c.bf16 %v898_v26, %v898_v26  ;;  %v1175_v63 = vlaneseq }
 0x199   : > { %v1025_v56 = vadd.f32 %v8503_v38, %v1024_v54  ;;  %v880_v58 = vpop.f32.mrf.mxu0  ;;  %v1375_v3 = vsel %vm1324_vm1, %v8519_v57, 0  ;;  %v8535_v4 = vpack.c.bf16 %v1033_v59, %v1033_v59 }
 0x19a   : > { %v881_v61 = vadd.f32 %v8509_v42, %v880_v58  ;;  %v8549_v11 = vpack.c.bf16 %v896_v5, %v896_v5  ;;  %v901_v12 = vmul.f32 0.17677669, %v889_v6  ;;  %v6899_v13 = vpop.f32.mrf.mxu1  ;;  %v1181_v6 = vld [vmem:[%s8464_s16 + $0x1] sm:$0x1]  ;;  %v1178_v10 = vand.u32 127, %v1175_v63 }
 0x19b   : > { %v8522_v60 = vpack.c.bf16 %v1025_v56, %v1025_v56  ;;  %v1605_v9 = vsel %vm1324_vm1, %v8535_v4, 0  ;;  %v6875_v20 = vpop.f32.mrf.mxu0  ;;  %v1036_v30 = vadd.f32 %v6899_v13, %v8503_v38  ;;  %vm1189_vm4 = vcmp.gt.f32.partialorder %v1181_v6, 0.0 }
 0x19c   : > { %v899_v0 = vmul.f32 0.17677669, %v881_v61  ;;  %v8563_v17 = vpack.c.bf16 %v901_v12, %v901_v12  ;;  %v1027_v18 = vpop.f32.mrf.mxu1  ;;  %v892_v34 = vadd.f32 %v6875_v20, %v8509_v42 }
 0x19d   : > { %v1513_v1 = vsel %vm1324_vm1, %v8522_v60, 0  ;;  %6927 = vmatmul.mubr.msk.bf16.vlgmr.msra.gmra.mxu1 %vm1324_vm1, %v8525_v62  ;;  %v1028_v23 = vadd.f32 %v8503_v38, %v1027_v18  ;;  %v883_v25 = vpop.f32.mrf.mxu0  ;;  %v8595_v33 = vpack.c.bf16 %v1036_v30, %v1036_v30 }
 0x19e   : > { %6949 = vmatpush3.bf16.xpose.msra.mxu0 %v1513_v1  ;;  %6931 = vmatpush3.bf16.xpose.msra.mxu1 %v1375_v3  ;;  %v8542_v7 = vpack.c.bf16 %v899_v0, %v899_v0  ;;  %v884_v28 = vadd.f32 %v8509_v42, %v883_v25  ;;  %v902_v38 = vmul.f32 0.17677669, %v892_v34  ;;  %v1180_v0 = vld [vmem:[%s8464_s16] sm:$0x1]  ;;  %v8647_v1 = vshrl.u32 %v1175_v63, 7 }
 0x19f   : > { %6932 = vmatprep.mubr.msk.bf16.mxu1 %vm8161_vm0, %v9997_v36  ;;  %6936 = vmatprep.subr.bf16.mxu1 %v9997_v36  ;;  %v8582_v27 = vpack.c.bf16 %v1028_v23, %v1028_v23  ;;  %v1651_v37 = vsel %vm1324_vm1, %v8595_v33, 0  ;;  %vm1188_vm3 = vcmp.gt.f32.partialorder %v1180_v0, 0.0  ;;  %v9995_v3 = vmov 0  }
 0x1a0   : > { %6960 = vmatprep.subr.bf16.mxu0 %v9997_v36  ;;  %v900_v32 = vmul.f32 0.17677669, %v884_v28  ;;  %v8608_v39 = vpack.c.bf16 %v902_v38, %v902_v38  ;;  %10040 = vst [vmem:[#allocation31_spill] sm:$0xff] %v8647_v1  ;;  %v8650_v2 = vsub.s32 0, %v8647_v1  ;;  %v1196_v5 = vsel %vm1188_vm3, 1, %v9995_v3 }
 0x1a1   : > { %v1559_v31 = vsel %vm1324_vm1, %v8582_v27, 0  ;;  %vm8657_vm6 = vcmp.ge.s32.totalorder %v8647_v1, %v1178_v10  ;;  %v1197_v14 = vsel %vm1189_vm4, 1, %v9995_v3  ;;  %v1198_v34 = vsel %vm1190_vm11, 1, %v9995_v3 }
 0x1a2   : > { %v8599_v35 = vpack.c.bf16 %v900_v32, %v900_v32  ;;  %10041 = vst [vmem:[#allocation32_spill] sm:$0xff] %v8650_v2  ;;  %v1207_v12 = vrot.slane %v1196_v5, %v8650_v2  ;;  %v1211_v20 = vrot.slane %v1197_v14, %v8650_v2 }
 0x1a4   : > { %vm1236_vm7 = vcmp.eq.s32.totalorder %v1207_v12, 1  ;;  %vm1237_vm12 = vcmp.eq.s32.totalorder %v1211_v20, 1 }
 0x1a5   : > { %6951 = vmatmul.mubr.msk.bf16.vlgmr.msra.gmra.mxu0 %vm1324_vm1, %v8542_v7  ;;  %6933 = vmatmul.mubr.msk.bf16.vlgmr.msra.gmra.mxu1 %vm1324_vm1, %v8549_v11  ;;  %vm8666_vm8 = vmand %vm8657_vm6, %vm1236_vm7 }
 0x1a6   : > { %6961 = vmatpush3.bf16.xpose.msra.mxu0 %v1605_v9  ;;  %6937 = vmatpush3.bf16.xpose.msra.mxu1 %v1421_v15  ;;  %v1184_v9 = vld [vmem:[%s8464_s16 + $0x4] sm:$0x1]  ;;  %vm8685_vm14 = vmand %vm8657_vm6, %vm1237_vm12 }
 0x1a7   : > { %6938 = vmatprep.mubr.msk.bf16.mxu1 %vm8161_vm0, %v9997_v36  ;;  %6962 = vmatprep.mubr.msk.bf16.mxu0 %vm8161_vm0, %v9997_v36  ;;  %vm1192_vm5 = vcmp.gt.f32.partialorder %v1184_v9, 0.0 }
 0x1a8   : > { %6942 = vmatprep.subr.bf16.mxu1 %v9997_v36  ;;  %6972 = vmatprep.subr.bf16.mxu0 %v9997_v36  ;;  %v1200_v15 = vsel %vm1192_vm5, 1, %v9995_v3 }
 0x1a9   : > { %v1223_v23 = vrot.slane %v1200_v15, %v8650_v2  ;;  %v1185_v15 = vld [vmem:[%s8464_s16 + $0x5] sm:$0x1] }
 0x1aa   : > { %vm1193_vm11 = vcmp.gt.f32.partialorder %v1185_v15, 0.0 }
 0x1ab   : > { %vm1240_vm13 = vcmp.eq.s32.totalorder %v1223_v23, 1 }
 0x1ac   : > { %vm8691_vm15 = vmand %vm8657_vm6, %vm1240_vm13 }
 0x1ad   : > { %6963 = vmatmul.mubr.msk.bf16.vlgmr.msra.gmra.mxu0 %vm1324_vm1, %v8563_v17  ;;  %6939 = vmatmul.mubr.msk.bf16.vlgmr.msra.gmra.mxu1 %vm1324_vm1, %v8568_v21 }
 0x1ae   : > { %6974 = vmatprep.mubr.msk.bf16.mxu0 %vm8161_vm0, %v9997_v36  ;;  %6943 = vmatpush3.bf16.xpose.msra.mxu1 %v1467_v24 }
 0x1af   : > { %6944 = vmatprep.mubr.msk.bf16.mxu1 %vm8161_vm0, %v9997_v36  ;;  %6954 = vmatprep.subr.bf16.mxu1 %v9997_v36  ;;  %v6918_v41 = vpop.f32.mrf.mxu0 }
 0x1b0   : > { %v8620_v42 = vadd.f32 %v6918_v41, %v8617_v40 }
 0x1b1   : > { %v1144_v43 = vpop.f32.mrf.mxu0 }
 0x1b2   : > { %v1145_v54 = vadd.f32 %v8617_v40, %v1144_v43 }
 0x1b3   : > { %v6919_v44 = vpop.f32.mrf.mxu0 }
 0x1b4   : > { %v8623_v46 = vadd.f32 %v6919_v44, %v8617_v40  ;;  %v8636_v56 = vpack.c.bf16 %v1145_v54, %v1145_v54  ;;  %v1183_v44 = vld [vmem:[%s8464_s16 + $0x3] sm:$0x1] }
 0x1b5   : > { %6945 = vmatmul.mubr.msk.bf16.vlgmr.msra.gmra.mxu1 %vm1324_vm1, %v8586_v29  ;;  %v1147_v47 = vpop.f32.mrf.mxu0  ;;  %vm1191_vm3 = vcmp.gt.f32.partialorder %v1183_v44, 0.0 }
 0x1b6   : > { %6955 = vmatpush3.bf16.xpose.msra.mxu1 %v1559_v31  ;;  %6956 = vmatprep.mubr.msk.bf16.mxu1 %vm8161_vm0, %v9997_v36  ;;  %v1148_v55 = vadd.f32 %v8617_v40, %v1147_v47  ;;  %v1803_v59 = vsel %vm1801_vm2, %v8636_v56, 0  ;;  %v1202_v31 = vsel %vm1194_vm10, 1, %v9995_v3  ;;  %v1199_v6 = vsel %vm1191_vm3, 1, %v9995_v3 }
 0x1b7   : > { %6966 = vmatprep.subr.bf16.mxu1 %v9997_v36  ;;  %v6922_v48 = vpop.f32.mrf.mxu0  ;;  %6973 = vmatpush3.bf16.msra.mxu0 %v1803_v59  ;;  %v1231_v43 = vrot.slane %v1202_v31, %v8650_v2  ;;  %v1219_v20 = vrot.slane %v1199_v6, %v8650_v2 }
 0x1b8   : > { %v8626_v49 = vadd.f32 %v6922_v48, %v8617_v40  ;;  %v8638_v58 = vpack.c.bf16 %v1148_v55, %v1148_v55  ;;  %6984 = vmatprep.subr.bf16.mxu0 %v9997_v36  ;;  %v1215_v48 = vrot.slane %v1198_v34, %v8650_v2 }
 0x1b9   : > { %v1160_v50 = vpop.f32.mrf.mxu0  ;;  %vm1242_vm4 = vcmp.eq.s32.totalorder %v1231_v43, 1  ;;  %vm1239_vm12 = vcmp.eq.s32.totalorder %v1219_v20, 1  ;;  %v1201_v43 = vsel %vm1193_vm11, 1, %v9995_v3 }
 0x1ba   : > { %v8629_v51 = vadd.f32 %v8617_v40, %v1160_v50  ;;  %v1849_v61 = vsel %vm1801_vm2, %v8638_v58, 0  ;;  %vm1238_vm5 = vcmp.eq.s32.totalorder %v1215_v48, 1  ;;  %vm8713_vm7 = vmand %vm8657_vm6, %vm1242_vm4 }
 0x1bb   : > { %v6923_v52 = vpop.f32.mrf.mxu0  ;;  %vm8719_vm10 = vmand %vm8657_vm6, %vm1238_vm5 }
 0x1bc   : > { %v8632_v53 = vadd.f32 %v6923_v52, %v8617_v40  ;;  %vm8737_vm13 = vmand %vm8657_vm6, %vm1239_vm12 }
 0x1bd   : > { %6957 = vmatmul.mubr.msk.bf16.vlgmr.msra.gmra.mxu1 %vm1324_vm1, %v8599_v35  ;;  %v8679_v30 = vpop.f32.mrf.mxu0 }
 0x1be   : > { %6967 = vmatpush3.bf16.xpose.msra.mxu1 %v1651_v37  ;;  %6968 = vmatprep.mubr.msk.bf16.mxu1 %vm8161_vm0, %v9997_v36 }
 0x1bf   : > { %6978 = vmatprep.subr.bf16.mxu1 %v9997_v36 }
 0x1c5   : > { %6969 = vmatmul.mubr.msk.bf16.vlgmr.msra.gmra.mxu1 %vm1324_vm1, %v8608_v39 }
 0x1c6   : > { %6980 = vmatprep.mubr.msk.bf16.mxu1 %vm8161_vm0, %v9997_v36  ;;  %6979 = vmatpush3.bf16.msra.mxu1 %v1849_v61 }
 0x1c7   : > { %6990 = vmatprep.subr.bf16.mxu1 %v9997_v36 }
 0x25d   : > { %v1365_v24 = vpop.f32.mrf.mxu1 }
 0x25e   : > { %v8675_v25 = vsel %vm8666_vm8, %v1365_v24, -1e+30 }
 0x25f   : > { %v6928_v26 = vpop.f32.mrf.mxu1  ;;  %v1702_v28 = vsel %vm1701_vm9, %v8675_v25, -inf }
 0x260   : > { %1703 = vmax.xlane.f32.xlu0 %v1702_v28 }
 0x261   : > { %v1368_v32 = vpop.f32.mrf.mxu1 }
 0x263   : > { %v6929_v38 = vpop.f32.mrf.mxu1 }
 0x265   : > { %v1549_v47 = vpop.f32.mrf.mxu0  ;;  %v1411_v50 = vpop.f32.mrf.mxu1 }
 0x266   : > { %v8700_v52 = vsel %vm8685_vm14, %v1411_v50, -1e+30  ;;  %v8704_v54 = vsel %vm8691_vm15, %v1549_v47, -1e+30  ;;  %v1187_v50 = vld [vmem:[%s8464_s16 + $0x7] sm:$0x1] }
 0x267   : > { %v6952_v55 = vpop.f32.mrf.mxu0  ;;  %v6934_v59 = vpop.f32.mrf.mxu1  ;;  %v1705_v61 = vsel %vm1701_vm9, %v8700_v52, -inf  ;;  %v1714_v5 = vsel %vm1701_vm9, %v8704_v54, -inf  ;;  %vm1195_vm3 = vcmp.gt.f32.partialorder %v1187_v50, 0.0 }
 0x268   : > { %1706 = vmax.xlane.f32.xlu0 %v1705_v61  ;;  %v1227_v55 = vrot.slane %v1201_v43, %v8650_v2  ;;  %v1203_v6 = vsel %vm1195_vm3, 1, %v9995_v3 }
 0x269   : > { %v1552_v63 = vpop.f32.mrf.mxu0  ;;  %v1414_v0 = vpop.f32.mrf.mxu1  ;;  %v1235_v15 = vrot.slane %v1203_v6, %v8650_v2 }
 0x26a   : > { %vm1241_vm4 = vcmp.eq.s32.totalorder %v1227_v55, 1 }
 0x26b   : > { %v6953_v9 = vpop.f32.mrf.mxu0  ;;  %v6935_v12 = vpop.f32.mrf.mxu1  ;;  %vm8752_vm5 = vmand %vm8657_vm6, %vm1241_vm4  ;;  %vm1243_vm11 = vcmp.eq.s32.totalorder %v1235_v15, 1 }
 0x26c   : > { %1715 = vmax.xlane.f32.xlu0 %v1714_v5  ;;  %vm8762_vm12 = vmand %vm8657_vm6, %vm1243_vm11 }
 0x26d   : > { %v1641_v16 = vpop.f32.mrf.mxu0  ;;  %v1457_v22 = vpop.f32.mrf.mxu1 }
 0x26e   : > { %v8727_v23 = vsel %vm8713_vm7, %v1641_v16, -1e+30  ;;  %v1695_v24 = vsel %vm8719_vm10, %v1457_v22, -1e+30 }
 0x26f   : > { %v1720_v26 = vsel %vm1701_vm9, %v8727_v23, -inf  ;;  %v6964_v28 = vpop.f32.mrf.mxu0  ;;  %v6940_v31 = vpop.f32.mrf.mxu1  ;;  %v1708_v32 = vsel %vm1701_vm9, %v1695_v24, -inf }
 0x270   : > { %1721 = vmax.xlane.f32.xlu0 %v1720_v26  ;;  %1709 = vmax.xlane.f32.xlu1 %v1708_v32 }
 0x271   : > { %v1644_v34 = vpop.f32.mrf.mxu0  ;;  %v1460_v38 = vpop.f32.mrf.mxu1 }
 0x273   : > { %v6965_v44 = vpop.f32.mrf.mxu0  ;;  %v6941_v47 = vpop.f32.mrf.mxu1 }
 0x275   : > { %v1503_v59 = vpop.f32.mrf.mxu1 }
 0x276   : > { %v8745_v61 = vsel %vm8737_vm13, %v1503_v59, -1e+30 }
 0x277   : > { %v6946_v63 = vpop.f32.mrf.mxu1  ;;  %v1711_v0 = vsel %vm1701_vm9, %v8745_v61, -inf }
 0x278   : > { %1712 = vmax.xlane.f32.xlu1 %v1711_v0 }
 0x279   : > { %v1506_v5 = vpop.f32.mrf.mxu1 }
 0x27b   : > { %v6947_v9 = vpop.f32.mrf.mxu1 }
 0x27d   : > { %v1595_v16 = vpop.f32.mrf.mxu1 }
 0x27e   : > { %v1698_v20 = vsel %vm8752_vm5, %v1595_v16, -1e+30 }
 0x27f   : > { %v6958_v22 = vpop.f32.mrf.mxu1  ;;  %v1717_v26 = vsel %vm1701_vm9, %v1698_v20, -inf }
 0x280   : > { %1718 = vmax.xlane.f32.xlu1 %v1717_v26 }
 0x281   : > { %v1598_v28 = vpop.f32.mrf.mxu1 }
 0x283   : > { %v6959_v31 = vpop.f32.mrf.mxu1 }
 0x285   : > { %v1687_v34 = vpop.f32.mrf.mxu1 }
 0x286   : > { %v8768_v38 = vsel %vm8762_vm12, %v1687_v34, -1e+30 }
 0x287   : > { %v1723_v43 = vsel %vm1701_vm9, %v8768_v38, -inf  ;;  %v6970_v44 = vpop.f32.mrf.mxu1 }
 0x288   : > { %1724 = vmax.xlane.f32.xlu1 %v1723_v43 }
 0x289   : > { %v1690_v47 = vpop.f32.mrf.mxu1 }
 0x28b   : > { %v6971_v50 = vpop.f32.mrf.mxu1 }
 0x2e9   : > { %v1704_v55 = vpop.xlane.xlu0 %1703 }
 0x2ea   : > { %v1726_v59 = vsub.f32 %v8675_v25, %v1704_v55 }
 0x2ec   : > { %v1734_v13 = vmul.f32 1.442695, %v1726_v59 }
 0x2ee   : > { %7663 = vpow2.f32 %v1734_v13 }
 0x2f1   : > { %v1707_v63 = vpop.xlane.xlu0 %1706 }
 0x2f2   : > { %v1727_v0 = vsub.f32 %v8700_v52, %v1707_v63 }
 0x2f4   : > { %v1736_v5 = vmul.f32 1.442695, %v1727_v0 }
 0x2f5   : > { %v1716_v6 = vpop.xlane.xlu0 %1715 }
 0x2f6   : > { %7665 = vpow2.f32 %v1736_v5  ;;  %v1730_v9 = vsub.f32 %v8704_v54, %v1716_v6 }
 0x2f8   : > { %v1742_v25 = vmul.f32 1.442695, %v1730_v9 }
 0x2f9   : > { %v1710_v15 = vpop.xlane.xlu1 %1709  ;;  %v1722_v16 = vpop.xlane.xlu0 %1721 }
 0x2fa   : > { %v1728_v22 = vsub.f32 %v1695_v24, %v1710_v15  ;;  %v1732_v34 = vsub.f32 %v8727_v23, %v1722_v16 }
 0x2fb   : > { %v8775_v26 = vpop.eup %7663 }
 0x2fc   : > { %v1738_v28 = vmul.f32 1.442695, %v1728_v22  ;;  %v1750_v31 = vsel %vm1701_vm9, %v8775_v26, 0.0  ;;  %v1746_v52 = vmul.f32 1.442695, %v1732_v34 }
 0x2fd   : > { %1751 = vadd.xlane.f32.xlu0 %v1750_v31 }
 0x2fe   : > { %7667 = vpow2.f32 %v1738_v28 }
 0x2ff   : > { %7669 = vpow2.f32 %v1742_v25 }
 0x300   : > { %7671 = vpow2.f32 %v1746_v52 }
 0x301   : > { %v1713_v59 = vpop.xlane.xlu1 %1712 }
 0x302   : > { %v1729_v13 = vsub.f32 %v8745_v61, %v1713_v59 }
 0x303   : > { %v8780_v43 = vpop.eup %7665 }
 0x304   : > { %v1753_v54 = vsel %vm1701_vm9, %v8780_v43, 0.0  ;;  %v1740_v0 = vmul.f32 1.442695, %v1729_v13 }
 0x305   : > { %1754 = vadd.xlane.f32.xlu1 %v1753_v54  ;;  %v8842_v54 = vpack.c.bf16 %v8620_v42, %v8620_v42 }
 0x306   : > { %7673 = vpow2.f32 %v1740_v0 }
 0x307   : > { %v1895_v59 = vsel %vm1801_vm2, %v8842_v54, 0 }
 0x309   : > { %v1719_v63 = vpop.xlane.xlu1 %1718 }
 0x30a   : > { %v1731_v5 = vsub.f32 %v1698_v20, %v1719_v63 }
 0x30b   : > { %v8784_v24 = vpop.eup %7667 }
 0x30c   : > { %v1756_v44 = vsel %vm1701_vm9, %v8784_v24, 0.0  ;;  %v8788_v47 = vpop.eup %7669  ;;  %v1744_v6 = vmul.f32 1.442695, %v1731_v5 }
 0x30d   : > { %1757 = vadd.xlane.f32.xlu0 %v1756_v44  ;;  %v1762_v23 = vsel %vm1701_vm9, %v8788_v47, 0.0  ;;  %v8792_v50 = vpop.eup %7671 }
 0x30e   : > { %v1768_v55 = vsel %vm1701_vm9, %v8792_v50, 0.0  ;;  %7675 = vpow2.f32 %v1744_v6 }
 0x311   : > { %1763 = vadd.xlane.f32.xlu0 %v1762_v23  ;;  %v1725_v16 = vpop.xlane.xlu1 %1724 }
 0x312   : > { %v1733_v22 = vsub.f32 %v8768_v38, %v1725_v16 }
 0x313   : > { %v8805_v9 = vpop.eup %7673 }
 0x314   : > { %v1759_v61 = vsel %vm1701_vm9, %v8805_v9, 0.0  ;;  %v1748_v28 = vmul.f32 1.442695, %v1733_v22 }
 0x315   : > { %1769 = vadd.xlane.f32.xlu0 %v1768_v55 }
 0x316   : > { %2219 = vrot.lane.b32.xlu1 %v8519_v57, %s8163_s24  ;;  %7677 = vpow2.f32 %v1748_v28 }
 0x31b   : > { %v8811_v20 = vpop.eup %7675 }
 0x31c   : > { %v1765_v15 = vsel %vm1701_vm9, %v8811_v20, 0.0 }
 0x323   : > { %v8826_v31 = vpop.eup %7677 }
 0x324   : > { %v1771_v25 = vsel %vm1701_vm9, %v8826_v31, 0.0 }
 0x32b   : > { %2169 = vrot.lane.b32.xlu0 %v8511_v45, %s8163_s24 }
 0x32f   : > { %2269 = vrot.lane.b32.xlu0 %v8544_v8, %s8163_s24 }
 0x333   : > { %2267 = vrot.lane.b32.xlu0 %v8568_v21, %s8163_s24 }
 0x337   : > { %2369 = vrot.lane.b32.xlu0 %v8522_v60, %s8163_s24 }
 0x33a   : > { %1760 = vadd.xlane.f32.xlu1 %v1759_v61 }
 0x33b   : > { %2367 = vrot.lane.b32.xlu0 %v8542_v7, %s8163_s24 }
 0x33e   : > { %1766 = vadd.xlane.f32.xlu1 %v1765_v15 }
 0x33f   : > { %2469 = vrot.lane.b32.xlu0 %v8535_v4, %s8163_s24 }
 0x343   : > { %2467 = vrot.lane.b32.xlu0 %v8563_v17, %s8163_s24 }
 0x347   : > { %2671 = vrot.lane.b32.xlu0 %v8636_v56, %s8163_s24 }
 0x34f   : > { %2167 = vrot.lane.b32.xlu1 %v8525_v62, %s8163_s24 }
 0x373   : > { %1772 = vadd.xlane.f32.xlu1 %v1771_v25 }
 0x384   : > { %2217 = vrot.lane.b32.xlu1 %v8549_v11, %s8163_s24 }
 0x386   : > { %v1752_v34 = vpop.xlane.xlu0 %1751 }
 0x387   : > { %7679 = vrcp.f32 %v1752_v34 }
 0x388   : > { %2319 = vrot.lane.b32.xlu1 %v8566_v19, %s8163_s24 }
 0x38c   : > { %2317 = vrot.lane.b32.xlu1 %v8586_v29, %s8163_s24 }
 0x38e   : > { %v1755_v38 = vpop.xlane.xlu1 %1754 }
 0x38f   : > { %7681 = vrcp.f32 %v1755_v38 }
 0x390   : > { %2419 = vrot.lane.b32.xlu1 %v8582_v27, %s8163_s24 }
 0x394   : > { %v7680_v52 = vpop.eup %7679  ;;  %2417 = vrot.lane.b32.xlu1 %v8599_v35, %s8163_s24 }
 0x395   : > { %v1782_v44 = vmul.f32 %v7680_v52, %v8775_v26  ;;  %v8857_v26 = vpack.c.bf16 %v8623_v46, %v8623_v46 }
 0x396   : > { %v1758_v23 = vpop.xlane.xlu0 %1757 }
 0x397   : > { %v1790_v55 = vpack.c.bf16 %v1782_v44, %v1782_v44  ;;  %7683 = vrcp.f32 %v1758_v23  ;;  %v1941_v6 = vsel %vm1801_vm2, %v8857_v26, 0  ;;  %v2220_v23 = vpop.permute.xlu1 %2219 }
 0x398   : > { %2519 = vrot.lane.b32.xlu1 %v8595_v33, %s8163_s24 }
 0x399   : > { %6975 = vmatmul.mubr.msk.bf16.vlgmr.msra.gmra.mxu0 %vm1701_vm9, %v1790_v55 }
 0x39a   : > { %6985 = vmatpush3.bf16.msra.mxu0 %v1895_v59  ;;  %6986 = vmatprep.mubr.msk.bf16.mxu0 %vm8161_vm0, %v9997_v36  ;;  %v1764_v13 = vpop.xlane.xlu0 %1763 }
 0x39b   : > { %6996 = vmatprep.subr.bf16.mxu0 %v9997_v36  ;;  %7685 = vrcp.f32 %v1764_v13 }
 0x39c   : > { %v7682_v42 = vpop.eup %7681  ;;  %2517 = vrot.lane.b32.xlu1 %v8608_v39, %s8163_s24 }
 0x39d   : > { %v1783_v63 = vmul.f32 %v7682_v42, %v8780_v43  ;;  %v8872_v43 = vpack.c.bf16 %v8629_v51, %v8629_v51 }
 0x39e   : > { %v1770_v5 = vpop.xlane.xlu0 %1769 }
 0x39f   : > { %v1791_v0 = vpack.c.bf16 %v1783_v63, %v1783_v63  ;;  %7687 = vrcp.f32 %v1770_v5  ;;  %v1987_v22 = vsel %vm1801_vm2, %v8872_v43, 0 }
 0x3a0   : > { %2719 = vrot.lane.b32.xlu1 %v8638_v58, %s8163_s24 }
 0x3a1   : > { %6981 = vmatmul.mubr.msk.bf16.vlgmr.msra.gmra.mxu1 %vm1701_vm9, %v1791_v0  ;;  %v1164_v0 = vadd.f32 %v8617_v40, %v8679_v30 }
 0x3a2   : > { %6991 = vmatpush3.bf16.msra.mxu1 %v1941_v6  ;;  %6992 = vmatprep.mubr.msk.bf16.mxu1 %vm8161_vm0, %v9997_v36 }
 0x3a3   : > { %7002 = vmatprep.subr.bf16.mxu1 %v9997_v36 }
 0x3a4   : > { %2767 = vrot.lane.b32.xlu1 %v8842_v54, %s8163_s24  ;;  %v7684_v46 = vpop.eup %7683 }
 0x3a5   : > { %v1784_v61 = vmul.f32 %v7684_v46, %v8784_v24  ;;  %v8886_v24 = vpack.c.bf16 %v8626_v49, %v8626_v49  ;;  %v8907_v46 = vpack.c.bf16 %v1164_v0, %v1164_v0 }
 0x3a7   : > { %v1792_v15 = vpack.c.bf16 %v1784_v61, %v1784_v61  ;;  %v2079_v34 = vsel %vm1801_vm2, %v8886_v24, 0  ;;  %v2033_v40 = vsel %vm1801_vm2, %v8907_v46, 0 }
 0x3a8   : > { %2815 = vrot.lane.b32.xlu1 %v8857_v26, %s8163_s24  ;;  %v7686_v16 = vpop.eup %7685 }
 0x3a9   : > { %6987 = vmatmul.mubr.msk.bf16.vlgmr.msra.gmra.mxu0 %vm1701_vm9, %v1792_v15  ;;  %v1786_v51 = vmul.f32 %v7686_v16, %v8788_v47  ;;  %v2170_v47 = vpop.permute.xlu0 %2169 }
 0x3aa   : > { %6997 = vmatpush3.bf16.msra.mxu0 %v1987_v22  ;;  %6998 = vmatprep.mubr.msk.bf16.mxu0 %vm8161_vm0, %v9997_v36  ;;  %v2175_v49 = vsel %vm1324_vm1, %v2170_v47, 0 }
 0x3ab   : > { %7008 = vmatprep.subr.bf16.mxu0 %v9997_v36  ;;  %v1794_v28 = vpack.c.bf16 %v1786_v51, %v1786_v51 }
 0x3ac   : > { %v7688_v25 = vpop.eup %7687 }
 0x3ad   : > { %v1788_v38 = vmul.f32 %v7688_v25, %v8792_v50  ;;  %v2270_v44 = vpop.permute.xlu0 %2269 }
 0x3ae   : > { %v2275_v63 = vsel %vm1324_vm1, %v2270_v44, 0 }
 0x3af   : > { %v1796_v52 = vpack.c.bf16 %v1788_v38, %v1788_v38 }
 0x3b1   : > { %6999 = vmatmul.mubr.msk.bf16.vlgmr.msra.gmra.mxu0 %vm1701_vm9, %v1794_v28  ;;  %v2268_v55 = vpop.permute.xlu0 %2267 }
 0x3b2   : > { %7009 = vmatpush3.bf16.msra.mxu0 %v2079_v34  ;;  %7010 = vmatprep.mubr.msk.bf16.mxu0 %vm8161_vm0, %v9997_v36 }
 0x3b3   : > { %7020 = vmatprep.subr.bf16.mxu0 %v9997_v36 }
 0x3b5   : > { %v2370_v50 = vpop.permute.xlu0 %2369 }
 0x3b6   : > { %v2375_v15 = vsel %vm1324_vm1, %v2370_v50, 0  ;;  %v2225_v50 = vsel %vm1324_vm1, %v2220_v23, 0 }
 0x3b9   : > { %7011 = vmatmul.mubr.msk.bf16.vlgmr.msra.gmra.mxu0 %vm1701_vm9, %v1796_v52  ;;  %v2368_v5 = vpop.permute.xlu0 %2367 }
 0x3ba   : > { %7021 = vmatpush3.bf16.xpose.msra.mxu0 %v2175_v49  ;;  %7022 = vmatprep.mubr.msk.bf16.mxu0 %vm8161_vm0, %v9997_v36 }
 0x3bb   : > { %7032 = vmatprep.subr.bf16.mxu0 %v9997_v36 }
 0x3bd   : > { %v2470_v51 = vpop.permute.xlu0 %2469 }
 0x3be   : > { %v2475_v25 = vsel %vm1324_vm1, %v2470_v51, 0 }
 0x3c1   : > { %v2468_v28 = vpop.permute.xlu0 %2467 }
 0x3c3   : > { %v1761_v59 = vpop.xlane.xlu1 %1760 }
 0x3c4   : > { %7689 = vrcp.f32 %v1761_v59 }
 0x3c7   : > { %v1767_v13 = vpop.xlane.xlu1 %1766 }
 0x3c8   : > { %7691 = vrcp.f32 %v1767_v13 }
 0x3cb   : > { %v2168_v42 = vpop.permute.xlu1 %2167 }
 0x3cc   : > { %7023 = vmatmul.mubr.msk.bf16.vlgmr.msra.gmra.mxu0 %vm1324_vm1, %v2168_v42 }
 0x3cd   : > { %7033 = vmatpush3.bf16.xpose.msra.mxu0 %v2275_v63  ;;  %7034 = vmatprep.mubr.msk.bf16.mxu0 %vm8161_vm0, %v9997_v36 }
 0x3ce   : > { %7044 = vmatprep.subr.bf16.mxu0 %v9997_v36 }
 0x3d1   : > { %v7690_v6 = vpop.eup %7689 }
 0x3d2   : > { %v1785_v61 = vmul.f32 %v7690_v6, %v8805_v9  ;;  %v8924_v9 = vpack.c.bf16 %v8632_v53, %v8632_v53  ;;  %v2672_v53 = vpop.permute.xlu0 %2671 }
 0x3d4   : > { %7035 = vmatmul.mubr.msk.bf16.vlgmr.msra.gmra.mxu0 %vm1324_vm1, %v2268_v55  ;;  %v1793_v16 = vpack.c.bf16 %v1785_v61, %v1785_v61  ;;  %v2125_v38 = vsel %vm1801_vm2, %v8924_v9, 0 }
 0x3d5   : > { %v7692_v22 = vpop.eup %7691  ;;  %7045 = vmatpush3.bf16.xpose.msra.mxu0 %v2375_v15  ;;  %7046 = vmatprep.mubr.msk.bf16.mxu0 %vm8161_vm0, %v9997_v36 }
 0x3d6   : > { %6993 = vmatmul.mubr.msk.bf16.vlgmr.msra.gmra.mxu1 %vm1701_vm9, %v1793_v16  ;;  %7056 = vmatprep.subr.bf16.mxu0 %v9997_v36  ;;  %v1787_v30 = vmul.f32 %v7692_v22, %v8811_v20  ;;  %v2677_v20 = vsel %vm1801_vm2, %v2672_v53, 0 }
 0x3d7   : > { %7003 = vmatpush3.bf16.msra.mxu1 %v2033_v40  ;;  %7004 = vmatprep.mubr.msk.bf16.mxu1 %vm8161_vm0, %v9997_v36 }
 0x3d8   : > { %7014 = vmatprep.subr.bf16.mxu1 %v9997_v36  ;;  %v1795_v34 = vpack.c.bf16 %v1787_v30, %v1787_v30 }
 0x3dc   : > { %7047 = vmatmul.mubr.msk.bf16.vlgmr.msra.gmra.mxu0 %vm1324_vm1, %v2368_v5 }
 0x3dd   : > { %7057 = vmatpush3.bf16.xpose.msra.mxu0 %v2475_v25  ;;  %7058 = vmatprep.mubr.msk.bf16.mxu0 %vm8161_vm0, %v9997_v36 }
 0x3de   : > { %7005 = vmatmul.mubr.msk.bf16.vlgmr.msra.gmra.mxu1 %vm1701_vm9, %v1795_v34  ;;  %7068 = vmatprep.subr.bf16.mxu0 %v9997_v36 }
 0x3df   : > { %7015 = vmatpush3.bf16.msra.mxu1 %v2125_v38  ;;  %7016 = vmatprep.mubr.msk.bf16.mxu1 %vm8161_vm0, %v9997_v36 }
 0x3e0   : > { %7026 = vmatprep.subr.bf16.mxu1 %v9997_v36 }
 0x3e4   : > { %7059 = vmatmul.mubr.msk.bf16.vlgmr.msra.gmra.mxu0 %vm1324_vm1, %v2468_v28 }
 0x3e5   : > { %7069 = vmatpush3.bf16.msra.mxu0 %v2677_v20  ;;  %7070 = vmatprep.mubr.msk.bf16.mxu0 %vm8161_vm0, %v9997_v36 }
 0x3e6   : > { %7080 = vmatprep.subr.bf16.mxu0 %v9997_v36 }
 0x3fc   : > { %v1773_v47 = vpop.xlane.xlu1 %1772 }
 0x3fd   : > { %7693 = vrcp.f32 %v1773_v47 }
 0x400   : > { %v2218_v52 = vpop.permute.xlu1 %2217 }
 0x404   : > { %v2320_v49 = vpop.permute.xlu1 %2319 }
 0x405   : > { %v2325_v63 = vsel %vm1324_vm1, %v2320_v49, 0 }
 0x408   : > { %v2318_v13 = vpop.permute.xlu1 %2317 }
 0x40a   : > { %v7694_v44 = vpop.eup %7693 }
 0x40b   : > { %v1789_v55 = vmul.f32 %v7694_v44, %v8826_v31 }
 0x40c   : > { %v2420_v42 = vpop.permute.xlu1 %2419 }
 0x40d   : > { %v1797_v59 = vpack.c.bf16 %v1789_v55, %v1789_v55  ;;  %v2425_v23 = vsel %vm1324_vm1, %v2420_v42, 0 }
 0x40f   : > { %7017 = vmatmul.mubr.msk.bf16.vlgmr.msra.gmra.mxu1 %vm1701_vm9, %v1797_v59 }
 0x410   : > { %7027 = vmatpush3.bf16.xpose.msra.mxu1 %v2225_v50  ;;  %7028 = vmatprep.mubr.msk.bf16.mxu1 %vm8161_vm0, %v9997_v36  ;;  %v2418_v31 = vpop.permute.xlu1 %2417 }
 0x411   : > { %7038 = vmatprep.subr.bf16.mxu1 %v9997_v36 }
 0x414   : > { %v2520_v0 = vpop.permute.xlu1 %2519 }
 0x415   : > { %v2525_v6 = vsel %vm1324_vm1, %v2520_v0, 0 }
 0x417   : > { %7029 = vmatmul.mubr.msk.bf16.vlgmr.msra.gmra.mxu1 %vm1324_vm1, %v2218_v52 }
 0x418   : > { %7039 = vmatpush3.bf16.xpose.msra.mxu1 %v2325_v63  ;;  %7040 = vmatprep.mubr.msk.bf16.mxu1 %vm8161_vm0, %v9997_v36  ;;  %v2518_v5 = vpop.permute.xlu1 %2517 }
 0x419   : > { %7050 = vmatprep.subr.bf16.mxu1 %v9997_v36 }
 0x41c   : > { %v2720_v61 = vpop.permute.xlu1 %2719 }
 0x41d   : > { %v2725_v15 = vsel %vm1801_vm2, %v2720_v61, 0 }
 0x41f   : > { %7041 = vmatmul.mubr.msk.bf16.vlgmr.msra.gmra.mxu1 %vm1324_vm1, %v2318_v13 }
 0x420   : > { %7051 = vmatpush3.bf16.xpose.msra.mxu1 %v2425_v23  ;;  %7052 = vmatprep.mubr.msk.bf16.mxu1 %vm8161_vm0, %v9997_v36 }
 0x421   : > { %7062 = vmatprep.subr.bf16.mxu1 %v9997_v36 }
 0x427   : > { %7053 = vmatmul.mubr.msk.bf16.vlgmr.msra.gmra.mxu1 %vm1324_vm1, %v2418_v31 }
 0x428   : > { %7063 = vmatpush3.bf16.xpose.msra.mxu1 %v2525_v6  ;;  %7064 = vmatprep.mubr.msk.bf16.mxu1 %vm8161_vm0, %v9997_v36 }
 0x429   : > { %7074 = vmatprep.subr.bf16.mxu1 %v9997_v36 }
 0x42f   : > { %7065 = vmatmul.mubr.msk.bf16.vlgmr.msra.gmra.mxu1 %vm1324_vm1, %v2518_v5 }
 0x430   : > { %7075 = vmatpush3.bf16.msra.mxu1 %v2725_v15  ;;  %7076 = vmatprep.mubr.msk.bf16.mxu1 %vm8161_vm0, %v9997_v36 }
 0x431   : > { %7086 = vmatprep.subr.bf16.mxu1 %v9997_v36 }
 0x459   : > { %v8968_v16 = vpop.f32.mrf.mxu0 }
 0x45a   : > { %10060 = vst [vmem:[#allocation33_spill] sm:$0xff] %v8968_v16 }
 0x45b   : > { %v6976_v22 = vpop.f32.mrf.mxu0 }
 0x45d   : > { %v1842_v51 = vpop.f32.mrf.mxu0 }
 0x45f   : > { %v6977_v40 = vpop.f32.mrf.mxu0 }
 0x461   : > { %v8970_v30 = vpop.f32.mrf.mxu1 }
 0x463   : > { %v6982_v28 = vpop.f32.mrf.mxu1 }
 0x465   : > { %v1888_v25 = vpop.f32.mrf.mxu1 }
 0x467   : > { %v6983_v34 = vpop.f32.mrf.mxu1 }
 0x469   : > { %v8972_v38 = vpop.f32.mrf.mxu0 }
 0x46a   : > { %10061 = vst [vmem:[#allocation34_spill] sm:$0xff] %v8972_v38 }
 0x46b   : > { %v6988_v53 = vpop.f32.mrf.mxu0 }
 0x46d   : > { %v1934_v20 = vpop.f32.mrf.mxu0 }
 0x46f   : > { %v6989_v47 = vpop.f32.mrf.mxu0 }
 0x471   : > { %v8974_v52 = vpop.f32.mrf.mxu0 }
 0x472   : > { %10062 = vst [vmem:[#allocation35_spill] sm:$0xff] %v8974_v52 }
 0x473   : > { %v7000_v49 = vpop.f32.mrf.mxu0 }
 0x475   : > { %v2026_v44 = vpop.f32.mrf.mxu0 }
 0x477   : > { %v7001_v55 = vpop.f32.mrf.mxu0 }
 0x479   : > { %v8976_v59 = vpop.f32.mrf.mxu0 }
 0x47a   : > { %10063 = vst [vmem:[#allocation36_spill] sm:$0xff] %v8976_v59 }
 0x47b   : > { %v7012_v13 = vpop.f32.mrf.mxu0 }
 0x47d   : > { %v2118_v50 = vpop.f32.mrf.mxu0 }
 0x47f   : > { %v7013_v42 = vpop.f32.mrf.mxu0 }
 0x48c   : > { %v2211_v63 = vpop.f32.mrf.mxu0 }
 0x48d   : > { %v8980_v31 = vsel %vm8666_vm8, %v2211_v63, -1e+30 }
 0x48e   : > { %v7024_v23 = vpop.f32.mrf.mxu0  ;;  %v2575_v0 = vsel %vm1701_vm9, %v8980_v31, -inf }
 0x48f   : > { %2576 = vmax.xlane.f32.xlu0 %v2575_v0 }
 0x490   : > { %v2214_v5 = vpop.f32.mrf.mxu0 }
 0x492   : > { %v7025_v6 = vpop.f32.mrf.mxu0 }
 0x494   : > { %v2311_v61 = vpop.f32.mrf.mxu0 }
 0x495   : > { %v8986_v15 = vsel %vm8719_vm10, %v2311_v61, -1e+30 }
 0x496   : > { %v8988_v22 = vpop.f32.mrf.mxu1  ;;  %v7036_v51 = vpop.f32.mrf.mxu0  ;;  %v2581_v40 = vsel %vm1701_vm9, %v8986_v15, -inf }
 0x497   : > { %10064 = vst [vmem:[#allocation37_spill] sm:$0xff] %v8988_v22  ;;  %2582 = vmax.xlane.f32.xlu0 %v2581_v40 }
 0x498   : > { %v6994_v28 = vpop.f32.mrf.mxu1  ;;  %v2314_v25 = vpop.f32.mrf.mxu0 }
 0x49a   : > { %v1980_v34 = vpop.f32.mrf.mxu1  ;;  %v7037_v53 = vpop.f32.mrf.mxu0 }
 0x49c   : > { %v6995_v20 = vpop.f32.mrf.mxu1  ;;  %v2411_v47 = vpop.f32.mrf.mxu0 }
 0x49e   : > { %v8992_v49 = vpop.f32.mrf.mxu1  ;;  %v7048_v44 = vpop.f32.mrf.mxu0 }
 0x49f   : > { %10065 = vst [vmem:[#allocation38_spill] sm:$0xff] %v8992_v49 }
 0x4a0   : > { %v7006_v55 = vpop.f32.mrf.mxu1  ;;  %v2414_v13 = vpop.f32.mrf.mxu0 }
 0x4a2   : > { %v2072_v50 = vpop.f32.mrf.mxu1  ;;  %v7049_v42 = vpop.f32.mrf.mxu0 }
 0x4a4   : > { %v7007_v63 = vpop.f32.mrf.mxu1  ;;  %v2511_v23 = vpop.f32.mrf.mxu0 }
 0x4a6   : > { %v7060_v0 = vpop.f32.mrf.mxu0 }
 0x4a7   : > { %v2571_v0 = vsel %vm8691_vm15, %v2411_v47, -1e+30 }
 0x4a8   : > { %v2514_v5 = vpop.f32.mrf.mxu0 }
 0x4aa   : > { %v7061_v6 = vpop.f32.mrf.mxu0 }
 0x4cf   : > { %v8994_v61 = vpop.f32.mrf.mxu1 }
 0x4d0   : > { %10066 = vst [vmem:[#allocation39_spill] sm:$0xff] %v8994_v61 }
 0x4d1   : > { %v7018_v51 = vpop.f32.mrf.mxu1 }
 0x4d2   : > { %v2587_v51 = vsel %vm1701_vm9, %v2571_v0, -inf }
 0x4d3   : > { %v2164_v40 = vpop.f32.mrf.mxu1 }
 0x4d4   : > { %v9007_v40 = vsel %vm8713_vm7, %v2511_v23, -1e+30 }
 0x4d5   : > { %v7019_v28 = vpop.f32.mrf.mxu1 }
 0x4d7   : > { %v2261_v25 = vpop.f32.mrf.mxu1 }
 0x4d8   : > { %v2568_v34 = vsel %vm8685_vm14, %v2261_v25, -1e+30 }
 0x4d9   : > { %v7030_v53 = vpop.f32.mrf.mxu1  ;;  %v2578_v20 = vsel %vm1701_vm9, %v2568_v34, -inf }
 0x4da   : > { %2579 = vmax.xlane.f32.xlu1 %v2578_v20  ;;  %v2593_v20 = vsel %vm1701_vm9, %v9007_v40, -inf }
 0x4db   : > { %v2264_v44 = vpop.f32.mrf.mxu1 }
 0x4dd   : > { %v7031_v55 = vpop.f32.mrf.mxu1 }
 0x4df   : > { %v2361_v13 = vpop.f32.mrf.mxu1 }
 0x4e0   : > { %v2570_v50 = vsel %vm8737_vm13, %v2361_v13, -1e+30 }
 0x4e1   : > { %v7042_v42 = vpop.f32.mrf.mxu1  ;;  %v2584_v63 = vsel %vm1701_vm9, %v2570_v50, -inf }
 0x4e2   : > { %2585 = vmax.xlane.f32.xlu0 %v2584_v63 }
 0x4e3   : > { %v2364_v5 = vpop.f32.mrf.mxu1 }
 0x4e5   : > { %v7043_v6 = vpop.f32.mrf.mxu1 }
 0x4e6   : > { %2588 = vmax.xlane.f32.xlu0 %v2587_v51 }
 0x4e7   : > { %v2461_v28 = vpop.f32.mrf.mxu1 }
 0x4e8   : > { %v2572_v25 = vsel %vm8752_vm5, %v2461_v28, -1e+30 }
 0x4e9   : > { %v7054_v53 = vpop.f32.mrf.mxu1  ;;  %v2590_v47 = vsel %vm1701_vm9, %v2572_v25, -inf }
 0x4ea   : > { %2594 = vmax.xlane.f32.xlu0 %v2593_v20  ;;  %2591 = vmax.xlane.f32.xlu1 %v2590_v47 }
 0x4eb   : > { %v2464_v44 = vpop.f32.mrf.mxu1 }
 0x4ed   : > { %v7055_v55 = vpop.f32.mrf.mxu1 }
 0x4ef   : > { %v2561_v13 = vpop.f32.mrf.mxu1 }
 0x4f0   : > { %v9021_v51 = vsel %vm8762_vm12, %v2561_v13, -1e+30  ;;  %v2768_v13 = vpop.permute.xlu1 %2767 }
 0x4f1   : > { %v7066_v42 = vpop.f32.mrf.mxu1  ;;  %v2596_v53 = vsel %vm1701_vm9, %v9021_v51, -inf }
 0x4f3   : > { %v2564_v63 = vpop.f32.mrf.mxu1 }
 0x4f5   : > { %v7067_v23 = vpop.f32.mrf.mxu1 }
 0x4f6   : > { %v9028_v23 = vpop.permute.xlu1 %2815 }
 0x4fb   : > { %2911 = vrot.lane.b32.xlu1 %v8907_v46, %s8163_s24 }
 0x500   : > { %2863 = vrot.lane.b32.xlu0 %v8872_v43, %s8163_s24 }
 0x518   : > { %v2577_v5 = vpop.xlane.xlu0 %2576 }
 0x519   : > { %v2599_v6 = vsub.f32 %v8980_v31, %v2577_v5 }
 0x51b   : > { %v2607_v28 = vmul.f32 1.442695, %v2599_v6 }
 0x51d   : > { %7695 = vpow2.f32 %v2607_v28 }
 0x51f   : > { %2597 = vmax.xlane.f32.xlu1 %v2596_v53 }
 0x520   : > { %v2583_v20 = vpop.xlane.xlu0 %2582 }
 0x521   : > { %v2601_v47 = vsub.f32 %v8986_v15, %v2583_v20 }
 0x523   : > { %v2611_v44 = vmul.f32 1.442695, %v2601_v47 }
 0x525   : > { %7697 = vpow2.f32 %v2611_v44 }
 0x52a   : > { %v7696_v55 = vpop.eup %7695 }
 0x52b   : > { %v2623_v42 = vsel %vm1701_vm9, %v7696_v55, 0.0 }
 0x52c   : > { %2624 = vadd.xlane.f32.xlu0 %v2623_v42 }
 0x532   : > { %v7698_v31 = vpop.eup %7697 }
 0x533   : > { %v2629_v63 = vsel %vm1701_vm9, %v7698_v31, 0.0 }
 0x534   : > { %2630 = vadd.xlane.f32.xlu0 %v2629_v63 }
 0x563   : > { %v2580_v5 = vpop.xlane.xlu1 %2579 }
 0x564   : > { %v2600_v6 = vsub.f32 %v2568_v34, %v2580_v5 }
 0x566   : > { %v2609_v28 = vmul.f32 1.442695, %v2600_v6 }
 0x568   : > { %7699 = vpow2.f32 %v2609_v28 }
 0x56b   : > { %v2586_v53 = vpop.xlane.xlu0 %2585 }
 0x56c   : > { %v2602_v3 = vsub.f32 %v2570_v50, %v2586_v53 }
 0x56e   : > { %v2613_v15 = vmul.f32 1.442695, %v2602_v3 }
 0x56f   : > { %v2589_v20 = vpop.xlane.xlu0 %2588 }
 0x570   : > { %7701 = vpow2.f32 %v2613_v15  ;;  %v2603_v47 = vsub.f32 %v2571_v0, %v2589_v20 }
 0x572   : > { %v2615_v44 = vmul.f32 1.442695, %v2603_v47 }
 0x573   : > { %v2592_v50 = vpop.xlane.xlu1 %2591  ;;  %v2595_v6 = vpop.xlane.xlu0 %2594 }
 0x574   : > { %7703 = vpow2.f32 %v2615_v44  ;;  %v2604_v0 = vsub.f32 %v2572_v25, %v2592_v50  ;;  %v2605_v28 = vsub.f32 %v9007_v40, %v2595_v6  ;;  %v2773_v6 = vsel %vm1801_vm2, %v2768_v13, 0 }
 0x575   : > { %v9030_v42 = vpop.eup %7699 }
 0x576   : > { %v2626_v63 = vsel %vm1701_vm9, %v9030_v42, 0.0  ;;  %v2617_v53 = vmul.f32 1.442695, %v2604_v0  ;;  %v2619_v15 = vmul.f32 1.442695, %v2605_v28 }
 0x577   : > { %2627 = vadd.xlane.f32.xlu1 %v2626_v63  ;;  %v2864_v47 = vpop.permute.xlu0 %2863  ;;  %v2912_v28 = vpop.permute.xlu1 %2911 }
 0x578   : > { %7705 = vpow2.f32 %v2617_v53  ;;  %v10067_v53 = vmov 0.0  }
 0x579   : > { %7707 = vpow2.f32 %v2619_v15 }
 0x57d   : > { %v9034_v36 = vpop.eup %7701 }
 0x57e   : > { %v2632_v34 = vsel %vm1701_vm9, %v9034_v36, 0.0 }
 0x57f   : > { %2633 = vadd.xlane.f32.xlu1 %v2632_v34 }
 0x581   : > { %v9038_v5 = vpop.eup %7703 }
 0x582   : > { %v2635_v3 = vsel %vm1701_vm9, %v9038_v5, 0.0 }
 0x583   : > { %2636 = vadd.xlane.f32.xlu0 %v2635_v3 }
 0x585   : > { %v9047_v20 = vpop.eup %7705 }
 0x586   : > { %v2638_v44 = vsel %vm1701_vm9, %v9047_v20, 0.0  ;;  %v9051_v63 = vpop.eup %7707 }
 0x587   : > { %v2641_v25 = vsel %vm1701_vm9, %v9051_v63, 0.0 }
 0x590   : > { %3007 = vrot.lane.b32.xlu1 %v8924_v9, %s8163_s24 }
 0x599   : > { %2959 = vrot.lane.b32.xlu0 %v8886_v24, %s8163_s24 }
 0x5b4   : > { %2639 = vadd.xlane.f32.xlu1 %v2638_v44 }
 0x5b5   : > { %v2625_v34 = vpop.xlane.xlu0 %2624 }
 0x5b6   : > { %7709 = vrcp.f32 %v2625_v34  ;;  %v2598_v34 = vpop.xlane.xlu1 %2597 }
 0x5b7   : > { %v2606_v13 = vsub.f32 %v9021_v51, %v2598_v34 }
 0x5b8   : > { %2642 = vadd.xlane.f32.xlu0 %v2641_v25  ;;  %v2869_v25 = vsel %vm1801_vm2, %v2864_v47, 0 }
 0x5bd   : > { %v2631_v40 = vpop.xlane.xlu0 %2630 }
 0x5be   : > { %7711 = vrcp.f32 %v2631_v40 }
 0x5c3   : > { %v7710_v3 = vpop.eup %7709 }
 0x5c4   : > { %v2655_v50 = vmul.f32 %v7710_v3, %v7696_v55 }
 0x5c5   : > { %3107 = vrot.lane.b32.xlu1 %v8519_v57, %s8164_s23 }
 0x5c6   : > { %v2663_v0 = vpack.c.bf16 %v2655_v50, %v2655_v50 }
 0x5c8   : > { %7071 = vmatmul.mubr.msk.bf16.vlgmr.msra.gmra.mxu0 %vm1701_vm9, %v2663_v0 }
 0x5c9   : > { %7081 = vmatpush3.bf16.msra.mxu0 %v2773_v6  ;;  %7082 = vmatprep.mubr.msk.bf16.mxu0 %vm8161_vm0, %v10067_v53 }
 0x5ca   : > { %7092 = vmatprep.subr.bf16.mxu0 %v10067_v53 }
 0x5cb   : > { %v7712_v15 = vpop.eup %7711 }
 0x5cc   : > { %v2657_v44 = vmul.f32 %v7712_v15, %v7698_v31  ;;  %v2621_v31 = vmul.f32 1.442695, %v2606_v13 }
 0x5ce   : > { %3057 = vrot.lane.b32.xlu0 %v8511_v45, %s8164_s23  ;;  %v2665_v55 = vpack.c.bf16 %v2657_v44, %v2657_v44  ;;  %7713 = vpow2.f32 %v2621_v31  ;;  %v2821_v44 = vsel %vm1801_vm2, %v9028_v23, 0  ;;  %v2917_v23 = vsel %vm1801_vm2, %v2912_v28, 0 }
 0x5d0   : > { %7083 = vmatmul.mubr.msk.bf16.vlgmr.msra.gmra.mxu0 %vm1701_vm9, %v2665_v55 }
 0x5d1   : > { %7093 = vmatpush3.bf16.msra.mxu0 %v2869_v25  ;;  %7094 = vmatprep.mubr.msk.bf16.mxu0 %vm8161_vm0, %v10067_v53 }
 0x5d2   : > { %3055 = vrot.lane.b32.xlu0 %v8525_v62, %s8164_s23  ;;  %7104 = vmatprep.subr.bf16.mxu0 %v10067_v53 }
 0x5d6   : > { %3157 = vrot.lane.b32.xlu0 %v8544_v8, %s8164_s23 }
 0x5da   : > { %3155 = vrot.lane.b32.xlu0 %v8568_v21, %s8164_s23 }
 0x5db   : > { %v9080_v51 = vpop.eup %7713 }
 0x5dc   : > { %v2644_v47 = vsel %vm1701_vm9, %v9080_v51, 0.0 }
 0x5de   : > { %3257 = vrot.lane.b32.xlu0 %v8522_v60, %s8164_s23 }
 0x5e2   : > { %3255 = vrot.lane.b32.xlu0 %v8542_v7, %s8164_s23 }
 0x5e6   : > { %3357 = vrot.lane.b32.xlu0 %v8535_v4, %s8164_s23 }
 0x5e9   : > { %2645 = vadd.xlane.f32.xlu1 %v2644_v47 }
 0x5ea   : > { %3355 = vrot.lane.b32.xlu0 %v8563_v17, %s8164_s23 }
 0x5ee   : > { %3559 = vrot.lane.b32.xlu0 %v8636_v56, %s8164_s23 }
 0x5fa   : > { %3105 = vrot.lane.b32.xlu1 %v8549_v11, %s8164_s23 }
 0x5fe   : > { %3207 = vrot.lane.b32.xlu1 %v8566_v19, %s8164_s23 }
 0x600   : > { %v2628_v40 = vpop.xlane.xlu1 %2627 }
 0x601   : > { %7715 = vrcp.f32 %v2628_v40 }
 0x602   : > { %3205 = vrot.lane.b32.xlu1 %v8586_v29, %s8164_s23 }
 0x606   : > { %3307 = vrot.lane.b32.xlu1 %v8582_v27, %s8164_s23 }
 0x608   : > { %v2634_v3 = vpop.xlane.xlu1 %2633 }
 0x609   : > { %7717 = vrcp.f32 %v2634_v3 }
 0x60a   : > { %3305 = vrot.lane.b32.xlu1 %v8599_v35, %s8164_s23 }
 0x60c   : > { %v2637_v50 = vpop.xlane.xlu0 %2636 }
 0x60d   : > { %7719 = vrcp.f32 %v2637_v50 }
 0x60e   : > { %v7716_v0 = vpop.eup %7715  ;;  %3407 = vrot.lane.b32.xlu1 %v8595_v33, %s8164_s23 }
 0x60f   : > { %v2656_v6 = vmul.f32 %v7716_v0, %v9030_v42 }
 0x610   : > { %v2960_v31 = vpop.permute.xlu0 %2959 }
 0x611   : > { %v2664_v15 = vpack.c.bf16 %v2656_v6, %v2656_v6 }
 0x612   : > { %3405 = vrot.lane.b32.xlu1 %v8608_v39, %s8164_s23 }
 0x613   : > { %7077 = vmatmul.mubr.msk.bf16.vlgmr.msra.gmra.mxu1 %vm1701_vm9, %v2664_v15 }
 0x614   : > { %7087 = vmatpush3.bf16.msra.mxu1 %v2821_v44  ;;  %7088 = vmatprep.mubr.msk.bf16.mxu1 %vm8161_vm0, %v10067_v53 }
 0x615   : > { %7098 = vmatprep.subr.bf16.mxu1 %v10067_v53 }
 0x616   : > { %v7718_v34 = vpop.eup %7717  ;;  %3607 = vrot.lane.b32.xlu1 %v8638_v58, %s8164_s23 }
 0x617   : > { %v2658_v42 = vmul.f32 %v7718_v34, %v9034_v36  ;;  %v2965_v36 = vsel %vm1801_vm2, %v2960_v31, 0 }
 0x619   : > { %v2666_v55 = vpack.c.bf16 %v2658_v42, %v2658_v42 }
 0x61a   : > { %v7720_v25 = vpop.eup %7719  ;;  %3655 = vrot.lane.b32.xlu1 %v8842_v54, %s8164_s23 }
 0x61b   : > { %7089 = vmatmul.mubr.msk.bf16.vlgmr.msra.gmra.mxu1 %vm1701_vm9, %v2666_v55  ;;  %v2659_v13 = vmul.f32 %v7720_v25, %v9038_v5  ;;  %v3008_v5 = vpop.permute.xlu1 %3007 }
 0x61c   : > { %7099 = vmatpush3.bf16.msra.mxu1 %v2917_v23  ;;  %7100 = vmatprep.mubr.msk.bf16.mxu1 %vm8161_vm0, %v10067_v53  ;;  %v3013_v42 = vsel %vm1801_vm2, %v3008_v5, 0 }
 0x61d   : > { %v2667_v47 = vpack.c.bf16 %v2659_v13, %v2659_v13  ;;  %7110 = vmatprep.subr.bf16.mxu1 %v10067_v53 }
 0x61e   : > { %3703 = vrot.lane.b32.xlu1 %v8857_v26, %s8164_s23 }
 0x61f   : > { %7095 = vmatmul.mubr.msk.bf16.vlgmr.msra.gmra.mxu0 %vm1701_vm9, %v2667_v47 }
 0x620   : > { %7105 = vmatpush3.bf16.msra.mxu0 %v2965_v36  ;;  %7106 = vmatprep.mubr.msk.bf16.mxu0 %vm8161_vm0, %v10067_v53 }
 0x621   : > { %7116 = vmatprep.subr.bf16.mxu0 %v10067_v53 }
 0x63d   : > { %v2640_v28 = vpop.xlane.xlu1 %2639 }
 0x63e   : > { %7721 = vrcp.f32 %v2640_v28 }
 0x641   : > { %v2643_v40 = vpop.xlane.xlu0 %2642 }
 0x642   : > { %7723 = vrcp.f32 %v2643_v40  ;;  %v3108_v40 = vpop.permute.xlu1 %3107 }
 0x645   : > { %v3058_v3 = vpop.permute.xlu0 %3057 }
 0x646   : > { %v3063_v13 = vsel %vm1324_vm1, %v3058_v3, 0 }
 0x649   : > { %v3056_v50 = vpop.permute.xlu0 %3055 }
 0x64b   : > { %v7722_v0 = vpop.eup %7721 }
 0x64c   : > { %v2660_v6 = vmul.f32 %v7722_v0, %v9047_v20 }
 0x64d   : > { %v3158_v15 = vpop.permute.xlu0 %3157 }
 0x64e   : > { %v2668_v44 = vpack.c.bf16 %v2660_v6, %v2660_v6 }
 0x64f   : > { %v7724_v34 = vpop.eup %7723 }
 0x650   : > { %7101 = vmatmul.mubr.msk.bf16.vlgmr.msra.gmra.mxu1 %vm1701_vm9, %v2668_v44  ;;  %v2661_v55 = vmul.f32 %v7724_v34, %v9051_v63  ;;  %v3163_v63 = vsel %vm1324_vm1, %v3158_v15, 0 }
 0x651   : > { %7111 = vmatpush3.bf16.msra.mxu1 %v3013_v42  ;;  %7112 = vmatprep.mubr.msk.bf16.mxu1 %vm8161_vm0, %v10067_v53  ;;  %v3156_v23 = vpop.permute.xlu0 %3155 }
 0x652   : > { %v2669_v25 = vpack.c.bf16 %v2661_v55, %v2661_v55  ;;  %7122 = vmatprep.subr.bf16.mxu1 %v10067_v53 }
 0x654   : > { %7107 = vmatmul.mubr.msk.bf16.vlgmr.msra.gmra.mxu0 %vm1701_vm9, %v2669_v25  ;;  %v3113_v25 = vsel %vm1324_vm1, %v3108_v40, 0 }
 0x655   : > { %7117 = vmatpush3.bf16.xpose.msra.mxu0 %v3063_v13  ;;  %7118 = vmatprep.mubr.msk.bf16.mxu0 %vm8161_vm0, %v10067_v53  ;;  %v3258_v20 = vpop.permute.xlu0 %3257 }
 0x656   : > { %7128 = vmatprep.subr.bf16.mxu0 %v10067_v53  ;;  %v3263_v47 = vsel %vm1324_vm1, %v3258_v20, 0 }
 0x659   : > { %v3256_v31 = vpop.permute.xlu0 %3255 }
 0x65c   : > { %7119 = vmatmul.mubr.msk.bf16.vlgmr.msra.gmra.mxu0 %vm1324_vm1, %v3056_v50 }
 0x65d   : > { %7129 = vmatpush3.bf16.xpose.msra.mxu0 %v3163_v63  ;;  %7130 = vmatprep.mubr.msk.bf16.mxu0 %vm8161_vm0, %v10067_v53  ;;  %v3358_v36 = vpop.permute.xlu0 %3357 }
 0x65e   : > { %7140 = vmatprep.subr.bf16.mxu0 %v10067_v53  ;;  %v3363_v28 = vsel %vm1324_vm1, %v3358_v36, 0 }
 0x661   : > { %v3356_v5 = vpop.permute.xlu0 %3355 }
 0x664   : > { %7131 = vmatmul.mubr.msk.bf16.vlgmr.msra.gmra.mxu0 %vm1324_vm1, %v3156_v23 }
 0x665   : > { %7141 = vmatpush3.bf16.xpose.msra.mxu0 %v3263_v47  ;;  %7142 = vmatprep.mubr.msk.bf16.mxu0 %vm8161_vm0, %v10067_v53  ;;  %v3560_v3 = vpop.permute.xlu0 %3559 }
 0x666   : > { %7152 = vmatprep.subr.bf16.mxu0 %v10067_v53  ;;  %v3565_v0 = vsel %vm1801_vm2, %v3560_v3, 0 }
 0x66c   : > { %7143 = vmatmul.mubr.msk.bf16.vlgmr.msra.gmra.mxu0 %vm1324_vm1, %v3256_v31 }
 0x66d   : > { %7153 = vmatpush3.bf16.xpose.msra.mxu0 %v3363_v28  ;;  %7154 = vmatprep.mubr.msk.bf16.mxu0 %vm8161_vm0, %v10067_v53 }
 0x66e   : > { %7164 = vmatprep.subr.bf16.mxu0 %v10067_v53 }
 0x672   : > { %v2646_v50 = vpop.xlane.xlu1 %2645 }
 0x673   : > { %7725 = vrcp.f32 %v2646_v50 }
 0x674   : > { %7155 = vmatmul.mubr.msk.bf16.vlgmr.msra.gmra.mxu0 %vm1324_vm1, %v3356_v5 }
 0x675   : > { %7165 = vmatpush3.bf16.msra.mxu0 %v3565_v0  ;;  %7166 = vmatprep.mubr.msk.bf16.mxu0 %vm8161_vm0, %v10067_v53 }
 0x676   : > { %7176 = vmatprep.subr.bf16.mxu0 %v10067_v53  ;;  %v3106_v6 = vpop.permute.xlu1 %3105 }
 0x67a   : > { %v3208_v15 = vpop.permute.xlu1 %3207 }
 0x67b   : > { %v3213_v31 = vsel %vm1324_vm1, %v3208_v15, 0 }
 0x67e   : > { %v3206_v55 = vpop.permute.xlu1 %3205 }
 0x680   : > { %v7726_v44 = vpop.eup %7725 }
 0x681   : > { %v2662_v34 = vmul.f32 %v7726_v44, %v9080_v51 }
 0x682   : > { %v3308_v13 = vpop.permute.xlu1 %3307 }
 0x683   : > { %v2670_v42 = vpack.c.bf16 %v2662_v34, %v2662_v34  ;;  %v3313_v40 = vsel %vm1324_vm1, %v3308_v13, 0 }
 0x685   : > { %7113 = vmatmul.mubr.msk.bf16.vlgmr.msra.gmra.mxu1 %vm1701_vm9, %v2670_v42 }
 0x686   : > { %7123 = vmatpush3.bf16.xpose.msra.mxu1 %v3113_v25  ;;  %7124 = vmatprep.mubr.msk.bf16.mxu1 %vm8161_vm0, %v10067_v53  ;;  %v3306_v47 = vpop.permute.xlu1 %3305 }
 0x687   : > { %7134 = vmatprep.subr.bf16.mxu1 %v10067_v53 }
 0x688   : > { %v9167_v23 = vpop.f32.mrf.mxu0 }
 0x68a   : > { %v7072_v20 = vpop.f32.mrf.mxu0  ;;  %v3408_v3 = vpop.permute.xlu1 %3407 }
 0x68c   : > { %v2716_v63 = vpop.f32.mrf.mxu0 }
 0x68d   : > { %7125 = vmatmul.mubr.msk.bf16.vlgmr.msra.gmra.mxu1 %vm1324_vm1, %v3106_v6  ;;  %v3413_v6 = vsel %vm1324_vm1, %v3408_v3, 0 }
 0x68e   : > { %7135 = vmatpush3.bf16.xpose.msra.mxu1 %v3213_v31  ;;  %v7073_v51 = vpop.f32.mrf.mxu0  ;;  %7136 = vmatprep.mubr.msk.bf16.mxu1 %vm8161_vm0, %v10067_v53  ;;  %v3406_v0 = vpop.permute.xlu1 %3405 }
 0x68f   : > { %7146 = vmatprep.subr.bf16.mxu1 %v10067_v53 }
 0x690   : > { %v9174_v36 = vpop.f32.mrf.mxu0 }
 0x692   : > { %v7084_v5 = vpop.f32.mrf.mxu0  ;;  %v3608_v15 = vpop.permute.xlu1 %3607 }
 0x693   : > { %v3613_v44 = vsel %vm1801_vm2, %v3608_v15, 0 }
 0x694   : > { %v2812_v28 = vpop.f32.mrf.mxu0 }
 0x695   : > { %7137 = vmatmul.mubr.msk.bf16.vlgmr.msra.gmra.mxu1 %vm1324_vm1, %v3206_v55 }
 0x696   : > { %7147 = vmatpush3.bf16.xpose.msra.mxu1 %v3313_v40  ;;  %v7085_v50 = vpop.f32.mrf.mxu0  ;;  %7148 = vmatprep.mubr.msk.bf16.mxu1 %vm8161_vm0, %v10067_v53  ;;  %v3656_v49 = vpop.permute.xlu1 %3655 }
 0x697   : > { %7158 = vmatprep.subr.bf16.mxu1 %v10067_v53 }
 0x69d   : > { %7149 = vmatmul.mubr.msk.bf16.vlgmr.msra.gmra.mxu1 %vm1324_vm1, %v3306_v47 }
 0x69e   : > { %7159 = vmatpush3.bf16.xpose.msra.mxu1 %v3413_v6  ;;  %7160 = vmatprep.mubr.msk.bf16.mxu1 %vm8161_vm0, %v10067_v53 }
 0x69f   : > { %7170 = vmatprep.subr.bf16.mxu1 %v10067_v53 }
 0x6a5   : > { %7161 = vmatmul.mubr.msk.bf16.vlgmr.msra.gmra.mxu1 %vm1324_vm1, %v3406_v0 }
 0x6a6   : > { %7171 = vmatpush3.bf16.msra.mxu1 %v3613_v44  ;;  %7172 = vmatprep.mubr.msk.bf16.mxu1 %vm8161_vm0, %v10067_v53 }
 0x6a7   : > { %7182 = vmatprep.subr.bf16.mxu1 %v10067_v53 }
 0x6d3   : > { %v9191_v34 = vpop.f32.mrf.mxu1 }
 0x6d5   : > { %v7078_v42 = vpop.f32.mrf.mxu1 }
 0x6d7   : > { %v2764_v55 = vpop.f32.mrf.mxu1 }
 0x6d9   : > { %v7079_v25 = vpop.f32.mrf.mxu1 }
 0x6db   : > { %v9193_v13 = vpop.f32.mrf.mxu1 }
 0x6dd   : > { %v7090_v20 = vpop.f32.mrf.mxu1 }
 0x6df   : > { %v2860_v63 = vpop.f32.mrf.mxu1  ;;  %v9195_v31 = vpop.f32.mrf.mxu0 }
 0x6e1   : > { %v7091_v51 = vpop.f32.mrf.mxu1  ;;  %v7096_v47 = vpop.f32.mrf.mxu0 }
 0x6e3   : > { %v2908_v5 = vpop.f32.mrf.mxu0 }
 0x6e5   : > { %v7097_v28 = vpop.f32.mrf.mxu0 }
 0x710   : > { %v9197_v40 = vpop.f32.mrf.mxu1 }
 0x712   : > { %v7102_v50 = vpop.f32.mrf.mxu1 }
 0x714   : > { %v2956_v0 = vpop.f32.mrf.mxu1  ;;  %v9201_v6 = vpop.f32.mrf.mxu0 }
 0x716   : > { %v7103_v15 = vpop.f32.mrf.mxu1  ;;  %v7108_v44 = vpop.f32.mrf.mxu0 }
 0x718   : > { %v3004_v42 = vpop.f32.mrf.mxu0 }
 0x71a   : > { %v7109_v55 = vpop.f32.mrf.mxu0 }
 0x71c   : > { %v3099_v25 = vpop.f32.mrf.mxu0 }
 0x71d   : > { %v9205_v20 = vsel %vm8666_vm8, %v3099_v25, -1e+30 }
 0x71e   : > { %v7120_v63 = vpop.f32.mrf.mxu0  ;;  %v3463_v51 = vsel %vm1701_vm9, %v9205_v20, -inf }
 0x71f   : > { %3464 = vmax.xlane.f32.xlu0 %v3463_v51 }
 0x720   : > { %v3102_v47 = vpop.f32.mrf.mxu0 }
 0x722   : > { %v7121_v5 = vpop.f32.mrf.mxu0 }
 0x724   : > { %v3199_v28 = vpop.f32.mrf.mxu0 }
 0x725   : > { %v3457_v50 = vsel %vm8719_vm10, %v3199_v28, -1e+30 }
 0x726   : > { %v7132_v0 = vpop.f32.mrf.mxu0  ;;  %v3469_v15 = vsel %vm1701_vm9, %v3457_v50, -inf }
 0x727   : > { %3470 = vmax.xlane.f32.xlu0 %v3469_v15 }
 0x728   : > { %v3202_v44 = vpop.f32.mrf.mxu0 }
 0x72a   : > { %v7133_v42 = vpop.f32.mrf.mxu0 }
 0x72c   : > { %v3299_v55 = vpop.f32.mrf.mxu0 }
 0x72e   : > { %v7144_v25 = vpop.f32.mrf.mxu0 }
 0x730   : > { %v3302_v3 = vpop.f32.mrf.mxu0 }
 0x732   : > { %v7145_v63 = vpop.f32.mrf.mxu0 }
 0x734   : > { %v3399_v2 = vpop.f32.mrf.mxu0 }
 0x736   : > { %v7156_v1 = vpop.f32.mrf.mxu0 }
 0x738   : > { %v3402_v59 = vpop.f32.mrf.mxu0 }
 0x73a   : > { %v7157_v51 = vpop.f32.mrf.mxu0 }
 0x745   : > { %v9212_v47 = vpop.f32.mrf.mxu1 }
 0x747   : > { %v7114_v28 = vpop.f32.mrf.mxu1 }
 0x749   : > { %v3052_v0 = vpop.f32.mrf.mxu1 }
 0x74b   : > { %v7115_v61 = vpop.f32.mrf.mxu1 }
 0x74c   : > { %v3459_v61 = vsel %vm8691_vm15, %v3299_v55, -1e+30 }
 0x74d   : > { %v3149_v52 = vpop.f32.mrf.mxu1 }
 0x74e   : > { %v3456_v15 = vsel %vm8685_vm14, %v3149_v52, -1e+30  ;;  %v3475_v52 = vsel %vm1701_vm9, %v3459_v61, -inf }
 0x74f   : > { %v7126_v44 = vpop.f32.mrf.mxu1  ;;  %v3466_v3 = vsel %vm1701_vm9, %v3456_v15, -inf }
 0x750   : > { %3467 = vmax.xlane.f32.xlu1 %v3466_v3  ;;  %v9227_v44 = vsel %vm8713_vm7, %v3399_v2, -1e+30 }
 0x751   : > { %v3152_v42 = vpop.f32.mrf.mxu1 }
 0x753   : > { %v7127_v1 = vpop.f32.mrf.mxu1 }
 0x755   : > { %v3249_v59 = vpop.f32.mrf.mxu1 }
 0x756   : > { %v3458_v25 = vsel %vm8737_vm13, %v3249_v59, -1e+30  ;;  %v3481_v59 = vsel %vm1701_vm9, %v9227_v44, -inf }
 0x757   : > { %v7138_v63 = vpop.f32.mrf.mxu1  ;;  %v3472_v51 = vsel %vm1701_vm9, %v3458_v25, -inf }
 0x758   : > { %3473 = vmax.xlane.f32.xlu0 %v3472_v51 }
 0x759   : > { %v3252_v28 = vpop.f32.mrf.mxu1 }
 0x75b   : > { %v7139_v0 = vpop.f32.mrf.mxu1 }
 0x75c   : > { %3476 = vmax.xlane.f32.xlu0 %v3475_v52 }
 0x75d   : > { %v3349_v3 = vpop.f32.mrf.mxu1 }
 0x75e   : > { %v3460_v42 = vsel %vm8752_vm5, %v3349_v3, -1e+30 }
 0x75f   : > { %v7150_v1 = vpop.f32.mrf.mxu1  ;;  %v3478_v55 = vsel %vm1701_vm9, %v3460_v42, -inf }
 0x760   : > { %3482 = vmax.xlane.f32.xlu0 %v3481_v59  ;;  %3479 = vmax.xlane.f32.xlu1 %v3478_v55 }
 0x761   : > { %v3352_v63 = vpop.f32.mrf.mxu1 }
 0x763   : > { %v7151_v51 = vpop.f32.mrf.mxu1 }
 0x765   : > { %v3449_v28 = vpop.f32.mrf.mxu1 }
 0x766   : > { %v9240_v52 = vsel %vm8762_vm12, %v3449_v28, -1e+30 }
 0x767   : > { %v7162_v0 = vpop.f32.mrf.mxu1  ;;  %v3484_v3 = vsel %vm1701_vm9, %v9240_v52, -inf }
 0x769   : > { %v3452_v5 = vpop.f32.mrf.mxu1 }
 0x76b   : > { %v7163_v2 = vpop.f32.mrf.mxu1 }
 0x771   : > { %3799 = vrot.lane.b32.xlu1 %v8907_v46, %s8164_s23 }
 0x776   : > { %3751 = vrot.lane.b32.xlu0 %v8872_v43, %s8164_s23 }
 0x795   : > { %3485 = vmax.xlane.f32.xlu1 %v3484_v3 }
 0x7a8   : > { %v3465_v1 = vpop.xlane.xlu0 %3464 }
 0x7a9   : > { %v3487_v59 = vsub.f32 %v9205_v20, %v3465_v1  ;;  %v9253_v20 = vpop.permute.xlu1 %3703 }
 0x7ab   : > { %v3495_v55 = vmul.f32 1.442695, %v3487_v59 }
 0x7ad   : > { %7727 = vpow2.f32 %v3495_v55 }
 0x7b0   : > { %v3471_v5 = vpop.xlane.xlu0 %3470 }
 0x7b1   : > { %v3489_v63 = vsub.f32 %v3457_v50, %v3471_v5 }
 0x7b3   : > { %v3499_v51 = vmul.f32 1.442695, %v3489_v63 }
 0x7b5   : > { %7729 = vpow2.f32 %v3499_v51 }
 0x7ba   : > { %v9245_v0 = vpop.eup %7727 }
 0x7bb   : > { %v3511_v2 = vsel %vm1701_vm9, %v9245_v0, 0.0 }
 0x7bc   : > { %3512 = vadd.xlane.f32.xlu0 %v3511_v2 }
 0x7c2   : > { %v9249_v28 = vpop.eup %7729 }
 0x7c3   : > { %v3517_v3 = vsel %vm1701_vm9, %v9249_v28, 0.0 }
 0x7c4   : > { %3518 = vadd.xlane.f32.xlu0 %v3517_v3 }
 0x7d9   : > { %v3468_v1 = vpop.xlane.xlu1 %3467 }
 0x7da   : > { %v3488_v59 = vsub.f32 %v3456_v15, %v3468_v1 }
 0x7dc   : > { %v3497_v50 = vmul.f32 1.442695, %v3488_v59 }
 0x7de   : > { %7731 = vpow2.f32 %v3497_v50 }
 0x7e1   : > { %v3474_v55 = vpop.xlane.xlu0 %3473 }
 0x7e2   : > { %v3490_v5 = vsub.f32 %v3458_v25, %v3474_v55 }
 0x7e4   : > { %v3501_v63 = vmul.f32 1.442695, %v3490_v5 }
 0x7e5   : > { %v3477_v51 = vpop.xlane.xlu0 %3476 }
 0x7e6   : > { %7733 = vpow2.f32 %v3501_v63  ;;  %v3491_v38 = vsub.f32 %v3459_v61, %v3477_v51 }
 0x7e8   : > { %v3503_v2 = vmul.f32 1.442695, %v3491_v38 }
 0x7e9   : > { %v3480_v38 = vpop.xlane.xlu1 %3479  ;;  %v3483_v59 = vpop.xlane.xlu0 %3482 }
 0x7ea   : > { %7735 = vpow2.f32 %v3503_v2  ;;  %v3492_v61 = vsub.f32 %v3460_v42, %v3480_v38  ;;  %v3493_v50 = vsub.f32 %v9227_v44, %v3483_v59 }
 0x7eb   : > { %v9255_v22 = vpop.eup %7731 }
 0x7ec   : > { %v3514_v3 = vsel %vm1701_vm9, %v9255_v22, 0.0  ;;  %v3505_v55 = vmul.f32 1.442695, %v3492_v61  ;;  %v3507_v5 = vmul.f32 1.442695, %v3493_v50  ;;  %v3661_v50 = vsel %vm1801_vm2, %v3656_v49, 0 }
 0x7ed   : > { %3515 = vadd.xlane.f32.xlu1 %v3514_v3  ;;  %v3800_v44 = vpop.permute.xlu1 %3799  ;;  %v3752_v42 = vpop.permute.xlu0 %3751 }
 0x7ee   : > { %7737 = vpow2.f32 %v3505_v55  ;;  %v3757_v49 = vsel %vm1801_vm2, %v3752_v42, 0  ;;  %v3805_v55 = vsel %vm1801_vm2, %v3800_v44, 0 }
 0x7ef   : > { %7739 = vpow2.f32 %v3507_v5 }
 0x7f3   : > { %v9259_v16 = vpop.eup %7733 }
 0x7f4   : > { %v3520_v15 = vsel %vm1701_vm9, %v9259_v16, 0.0 }
 0x7f5   : > { %3521 = vadd.xlane.f32.xlu1 %v3520_v15 }
 0x7f7   : > { %v9263_v1 = vpop.eup %7735 }
 0x7f8   : > { %v3523_v25 = vsel %vm1701_vm9, %v9263_v1, 0.0 }
 0x7f9   : > { %3524 = vadd.xlane.f32.xlu0 %v3523_v25 }
 0x7fb   : > { %v9272_v63 = vpop.eup %7737 }
 0x7fc   : > { %v3526_v51 = vsel %vm1701_vm9, %v9272_v63, 0.0  ;;  %v9276_v2 = vpop.eup %7739 }
 0x7fd   : > { %v3529_v3 = vsel %vm1701_vm9, %v9276_v2, 0.0 }
 0x806   : > { %3895 = vrot.lane.b32.xlu1 %v8924_v9, %s8164_s23 }
 0x80f   : > { %3847 = vrot.lane.b32.xlu0 %v8886_v24, %s8164_s23 }
 0x81e   : > { %v3486_v15 = vpop.xlane.xlu1 %3485 }
 0x81f   : > { %v3494_v25 = vsub.f32 %v9240_v52, %v3486_v15 }
 0x821   : > { %v3509_v61 = vmul.f32 1.442695, %v3494_v25 }
 0x82a   : > { %3527 = vadd.xlane.f32.xlu1 %v3526_v51 }
 0x82e   : > { %3530 = vadd.xlane.f32.xlu0 %v3529_v3 }
 0x83b   : > { %3995 = vrot.lane.b32.xlu1 %v8519_v57, %s8165_s4 }
 0x844   : > { %3945 = vrot.lane.b32.xlu0 %v8511_v45, %s8165_s4 }
 0x845   : > { %v3513_v38 = vpop.xlane.xlu0 %3512 }
 0x846   : > { %7741 = vrcp.f32 %v3513_v38 }
 0x847   : > { %7743 = vpow2.f32 %v3509_v61 }
 0x848   : > { %3943 = vrot.lane.b32.xlu0 %v8525_v62, %s8165_s4 }
 0x84c   : > { %4045 = vrot.lane.b32.xlu0 %v8544_v8, %s8165_s4 }
 0x84d   : > { %v3519_v59 = vpop.xlane.xlu0 %3518 }
 0x84e   : > { %7745 = vrcp.f32 %v3519_v59 }
 0x850   : > { %4043 = vrot.lane.b32.xlu0 %v8568_v21, %s8165_s4 }
 0x853   : > { %v7742_v57 = vpop.eup %7741 }
 0x854   : > { %4145 = vrot.lane.b32.xlu0 %v8522_v60, %s8165_s4  ;;  %v3543_v45 = vmul.f32 %v7742_v57, %v9245_v0  ;;  %v9300_v62 = vpop.eup %7743 }
 0x855   : > { %v3532_v21 = vsel %vm1701_vm9, %v9300_v62, 0.0 }
 0x856   : > { %v3551_v52 = vpack.c.bf16 %v3543_v45, %v3543_v45 }
 0x858   : > { %4143 = vrot.lane.b32.xlu0 %v8542_v7, %s8165_s4  ;;  %7167 = vmatmul.mubr.msk.bf16.vlgmr.msra.gmra.mxu0 %vm1701_vm9, %v3551_v52 }
 0x859   : > { %7177 = vmatpush3.bf16.msra.mxu0 %v3661_v50  ;;  %7178 = vmatprep.mubr.msk.bf16.mxu0 %vm8161_vm0, %v10067_v53 }
 0x85a   : > { %7188 = vmatprep.subr.bf16.mxu0 %v10067_v53 }
 0x85b   : > { %v7746_v8 = vpop.eup %7745 }
 0x85c   : > { %4245 = vrot.lane.b32.xlu0 %v8535_v4, %s8165_s4  ;;  %v3545_v60 = vmul.f32 %v7746_v8, %v9249_v28 }
 0x85e   : > { %v3553_v7 = vpack.c.bf16 %v3545_v60, %v3545_v60 }
 0x85f   : > { %3533 = vadd.xlane.f32.xlu1 %v3532_v21 }
 0x860   : > { %4243 = vrot.lane.b32.xlu0 %v8563_v17, %s8165_s4  ;;  %7179 = vmatmul.mubr.msk.bf16.vlgmr.msra.gmra.mxu0 %vm1701_vm9, %v3553_v7 }
 0x861   : > { %7189 = vmatpush3.bf16.msra.mxu0 %v3757_v49  ;;  %7190 = vmatprep.mubr.msk.bf16.mxu0 %vm8161_vm0, %v10067_v53 }
 0x862   : > { %7200 = vmatprep.subr.bf16.mxu0 %v10067_v53 }
 0x870   : > { %3993 = vrot.lane.b32.xlu1 %v8549_v11, %s8165_s4 }
 0x874   : > { %4095 = vrot.lane.b32.xlu1 %v8566_v19, %s8165_s4 }
 0x876   : > { %v3516_v4 = vpop.xlane.xlu1 %3515 }
 0x877   : > { %7747 = vrcp.f32 %v3516_v4 }
 0x878   : > { %4093 = vrot.lane.b32.xlu1 %v8586_v29, %s8165_s4 }
 0x87c   : > { %4195 = vrot.lane.b32.xlu1 %v8582_v27, %s8165_s4  ;;  %v3709_v27 = vsel %vm1801_vm2, %v9253_v20, 0 }
 0x87e   : > { %v3522_v17 = vpop.xlane.xlu1 %3521 }
 0x87f   : > { %7749 = vrcp.f32 %v3522_v17 }
 0x880   : > { %4193 = vrot.lane.b32.xlu1 %v8599_v35, %s8165_s4 }
 0x882   : > { %v3525_v0 = vpop.xlane.xlu0 %3524 }
 0x883   : > { %7751 = vrcp.f32 %v3525_v0 }
 0x884   : > { %v7748_v28 = vpop.eup %7747  ;;  %4295 = vrot.lane.b32.xlu1 %v8595_v33, %s8165_s4 }
 0x885   : > { %v3544_v11 = vmul.f32 %v7748_v28, %v9255_v22 }
 0x886   : > { %v3848_v20 = vpop.permute.xlu0 %3847 }
 0x887   : > { %v3552_v19 = vpack.c.bf16 %v3544_v11, %v3544_v11  ;;  %v3853_v51 = vsel %vm1801_vm2, %v3848_v20, 0 }
 0x888   : > { %4293 = vrot.lane.b32.xlu1 %v8608_v39, %s8165_s4 }
 0x889   : > { %7173 = vmatmul.mubr.msk.bf16.vlgmr.msra.gmra.mxu1 %vm1701_vm9, %v3552_v19 }
 0x88a   : > { %7183 = vmatpush3.bf16.msra.mxu1 %v3709_v27  ;;  %7184 = vmatprep.mubr.msk.bf16.mxu1 %vm8161_vm0, %v10067_v53 }
 0x88b   : > { %7194 = vmatprep.subr.bf16.mxu1 %v10067_v53 }
 0x88c   : > { %v7750_v29 = vpop.eup %7749 }
 0x88d   : > { %v3546_v33 = vmul.f32 %v7750_v29, %v9259_v16  ;;  %v3896_v16 = vpop.permute.xlu1 %3895 }
 0x88e   : > { %v3901_v59 = vsel %vm1801_vm2, %v3896_v16, 0 }
 0x88f   : > { %v3554_v35 = vpack.c.bf16 %v3546_v33, %v3546_v33 }
 0x890   : > { %v7752_v22 = vpop.eup %7751 }
 0x891   : > { %7185 = vmatmul.mubr.msk.bf16.vlgmr.msra.gmra.mxu1 %vm1701_vm9, %v3554_v35  ;;  %v3547_v39 = vmul.f32 %v7752_v22, %v9263_v1 }
 0x892   : > { %7195 = vmatpush3.bf16.msra.mxu1 %v3805_v55  ;;  %7196 = vmatprep.mubr.msk.bf16.mxu1 %vm8161_vm0, %v10067_v53 }
 0x893   : > { %v3555_v5 = vpack.c.bf16 %v3547_v39, %v3547_v39  ;;  %7206 = vmatprep.subr.bf16.mxu1 %v10067_v53 }
 0x895   : > { %7191 = vmatmul.mubr.msk.bf16.vlgmr.msra.gmra.mxu0 %vm1701_vm9, %v3555_v5 }
 0x896   : > { %7201 = vmatpush3.bf16.msra.mxu0 %v3853_v51  ;;  %7202 = vmatprep.mubr.msk.bf16.mxu0 %vm8161_vm0, %v10067_v53 }
 0x897   : > { %7212 = vmatprep.subr.bf16.mxu0 %v10067_v53 }
 0x8b3   : > { %v3528_v1 = vpop.xlane.xlu1 %3527 }
 0x8b4   : > { %7753 = vrcp.f32 %v3528_v1 }
 0x8b7   : > { %v3531_v3 = vpop.xlane.xlu0 %3530  ;;  %v3996_v4 = vpop.permute.xlu1 %3995 }
 0x8b8   : > { %7755 = vrcp.f32 %v3531_v3  ;;  %v4001_v33 = vsel %vm1324_vm1, %v3996_v4, 0 }
 0x8bb   : > { %v3946_v44 = vpop.permute.xlu0 %3945 }
 0x8bc   : > { %v3951_v50 = vsel %vm1324_vm1, %v3946_v44, 0 }
 0x8bf   : > { %v3944_v15 = vpop.permute.xlu0 %3943 }
 0x8c1   : > { %v7754_v42 = vpop.eup %7753 }
 0x8c2   : > { %v3548_v25 = vmul.f32 %v7754_v42, %v9272_v63 }
 0x8c3   : > { %v4046_v45 = vpop.permute.xlu0 %4045 }
 0x8c4   : > { %v3556_v38 = vpack.c.bf16 %v3548_v25, %v3548_v25 }
 0x8c5   : > { %v7756_v61 = vpop.eup %7755 }
 0x8c6   : > { %7197 = vmatmul.mubr.msk.bf16.vlgmr.msra.gmra.mxu1 %vm1701_vm9, %v3556_v38  ;;  %v3549_v57 = vmul.f32 %v7756_v61, %v9276_v2  ;;  %v4051_v2 = vsel %vm1324_vm1, %v4046_v45, 0 }
 0x8c7   : > { %7207 = vmatpush3.bf16.msra.mxu1 %v3901_v59  ;;  %7208 = vmatprep.mubr.msk.bf16.mxu1 %vm8161_vm0, %v10067_v53  ;;  %v4044_v63 = vpop.permute.xlu0 %4043 }
 0x8c8   : > { %v3557_v52 = vpack.c.bf16 %v3549_v57, %v3549_v57  ;;  %7218 = vmatprep.subr.bf16.mxu1 %v10067_v53 }
 0x8ca   : > { %7203 = vmatmul.mubr.msk.bf16.vlgmr.msra.gmra.mxu0 %vm1701_vm9, %v3557_v52 }
 0x8cb   : > { %7213 = vmatpush3.bf16.xpose.msra.mxu0 %v3951_v50  ;;  %7214 = vmatprep.mubr.msk.bf16.mxu0 %vm8161_vm0, %v10067_v53  ;;  %v4146_v8 = vpop.permute.xlu0 %4145 }
 0x8cc   : > { %7224 = vmatprep.subr.bf16.mxu0 %v10067_v53  ;;  %v4151_v21 = vsel %vm1324_vm1, %v4146_v8, 0 }
 0x8cf   : > { %v4144_v60 = vpop.permute.xlu0 %4143 }
 0x8d2   : > { %7215 = vmatmul.mubr.msk.bf16.vlgmr.msra.gmra.mxu0 %vm1324_vm1, %v3944_v15 }
 0x8d3   : > { %7225 = vmatpush3.bf16.xpose.msra.mxu0 %v4051_v2  ;;  %7226 = vmatprep.mubr.msk.bf16.mxu0 %vm8161_vm0, %v10067_v53  ;;  %v4246_v7 = vpop.permute.xlu0 %4245 }
 0x8d4   : > { %7236 = vmatprep.subr.bf16.mxu0 %v10067_v53  ;;  %v4251_v49 = vsel %vm1324_vm1, %v4246_v7, 0 }
 0x8d7   : > { %v4244_v0 = vpop.permute.xlu0 %4243 }
 0x8da   : > { %7227 = vmatmul.mubr.msk.bf16.vlgmr.msra.gmra.mxu0 %vm1324_vm1, %v4044_v63 }
 0x8db   : > { %7237 = vmatpush3.bf16.xpose.msra.mxu0 %v4151_v21  ;;  %7238 = vmatprep.mubr.msk.bf16.mxu0 %vm8161_vm0, %v10067_v53 }
 0x8dc   : > { %7248 = vmatprep.subr.bf16.mxu0 %v10067_v53 }
 0x8e2   : > { %7239 = vmatmul.mubr.msk.bf16.vlgmr.msra.gmra.mxu0 %vm1324_vm1, %v4144_v60 }
 0x8e3   : > { %7249 = vmatpush3.bf16.xpose.msra.mxu0 %v4251_v49  ;;  %7250 = vmatprep.mubr.msk.bf16.mxu0 %vm8161_vm0, %v10067_v53 }
 0x8e4   : > { %7260 = vmatprep.subr.bf16.mxu0 %v10067_v53 }
 0x8e8   : > { %v3534_v17 = vpop.xlane.xlu1 %3533 }
 0x8e9   : > { %7757 = vrcp.f32 %v3534_v17 }
 0x8ea   : > { %7251 = vmatmul.mubr.msk.bf16.vlgmr.msra.gmra.mxu0 %vm1324_vm1, %v4244_v0 }
 0x8eb   : > { %7262 = vmatprep.mubr.msk.bf16.mxu0 %vm8161_vm0, %v10067_v53 }
 0x8ec   : > { %v3994_v28 = vpop.permute.xlu1 %3993 }
 0x8f0   : > { %v4096_v27 = vpop.permute.xlu1 %4095 }
 0x8f1   : > { %v4101_v22 = vsel %vm1324_vm1, %v4096_v27, 0 }
 0x8f4   : > { %v4094_v35 = vpop.permute.xlu1 %4093 }
 0x8f6   : > { %v7758_v11 = vpop.eup %7757 }
 0x8f7   : > { %v3550_v19 = vmul.f32 %v7758_v11, %v9300_v62 }
 0x8f8   : > { %v4196_v55 = vpop.permute.xlu1 %4195 }
 0x8f9   : > { %v3558_v29 = vpack.c.bf16 %v3550_v19, %v3550_v19  ;;  %v4201_v39 = vsel %vm1324_vm1, %v4196_v55, 0 }
 0x8fb   : > { %7209 = vmatmul.mubr.msk.bf16.vlgmr.msra.gmra.mxu1 %vm1701_vm9, %v3558_v29 }
 0x8fc   : > { %7219 = vmatpush3.bf16.xpose.msra.mxu1 %v4001_v33  ;;  %7220 = vmatprep.mubr.msk.bf16.mxu1 %vm8161_vm0, %v10067_v53  ;;  %v4194_v62 = vpop.permute.xlu1 %4193 }
 0x8fd   : > { %7230 = vmatprep.subr.bf16.mxu1 %v10067_v53 }
 0x900   : > { %v4296_v20 = vpop.permute.xlu1 %4295 }
 0x901   : > { %v4301_v5 = vsel %vm1324_vm1, %v4296_v20, 0 }
 0x903   : > { %7221 = vmatmul.mubr.msk.bf16.vlgmr.msra.gmra.mxu1 %vm1324_vm1, %v3994_v28 }
 0x904   : > { %7231 = vmatpush3.bf16.xpose.msra.mxu1 %v4101_v22  ;;  %7232 = vmatprep.mubr.msk.bf16.mxu1 %vm8161_vm0, %v10067_v53  ;;  %v4294_v16 = vpop.permute.xlu1 %4293 }
 0x905   : > { %7242 = vmatprep.subr.bf16.mxu1 %v10067_v53 }
 0x90b   : > { %7233 = vmatmul.mubr.msk.bf16.vlgmr.msra.gmra.mxu1 %vm1324_vm1, %v4094_v35 }
 0x90c   : > { %7243 = vmatpush3.bf16.xpose.msra.mxu1 %v4201_v39  ;;  %7244 = vmatprep.mubr.msk.bf16.mxu1 %vm8161_vm0, %v10067_v53 }
 0x90d   : > { %7254 = vmatprep.subr.bf16.mxu1 %v10067_v53 }
 0x913   : > { %7245 = vmatmul.mubr.msk.bf16.vlgmr.msra.gmra.mxu1 %vm1324_vm1, %v4194_v62 }
 0x914   : > { %7255 = vmatpush3.bf16.xpose.msra.mxu1 %v4301_v5  ;;  %7256 = vmatprep.mubr.msk.bf16.mxu1 %vm8161_vm0, %v10067_v53 }
 0x915   : > { %7266 = vmatprep.subr.bf16.mxu1 %v10067_v53 }
 0x918   : > { %v9399_v51 = vpop.f32.mrf.mxu0 }
 0x91a   : > { %v7168_v1 = vpop.f32.mrf.mxu0 }
 0x91b   : > { %7257 = vmatmul.mubr.msk.bf16.vlgmr.msra.gmra.mxu1 %vm1324_vm1, %v4294_v16 }
 0x91c   : > { %v3604_v3 = vpop.f32.mrf.mxu0  ;;  %7268 = vmatprep.mubr.msk.bf16.mxu1 %vm8161_vm0, %v10067_v53 }
 0x91e   : > { %v7169_v44 = vpop.f32.mrf.mxu0 }
 0x920   : > { %v9404_v42 = vpop.f32.mrf.mxu0 }
 0x922   : > { %v7180_v15 = vpop.f32.mrf.mxu0 }
 0x924   : > { %v3700_v25 = vpop.f32.mrf.mxu0 }
 0x926   : > { %v7181_v38 = vpop.f32.mrf.mxu0 }
 0x949   : > { %v9406_v61 = vpop.f32.mrf.mxu1 }
 0x94a   : > { %v7501_v59 = vpack.i.bf16 %v9406_v61, %v9399_v51 }
 0x94b   : > { %v7174_v57 = vpop.f32.mrf.mxu1 }
 0x94d   : > { %v3652_v45 = vpop.f32.mrf.mxu1 }
 0x94f   : > { %v7175_v52 = vpop.f32.mrf.mxu1 }
 0x951   : > { %v9410_v50 = vpop.f32.mrf.mxu1 }
 0x952   : > { %v7506_v63 = vpack.i.bf16 %v9410_v50, %v9404_v42 }
 0x953   : > { %v7186_v2 = vpop.f32.mrf.mxu1 }
 0x955   : > { %v3748_v8 = vpop.f32.mrf.mxu1  ;;  %v9414_v60 = vpop.f32.mrf.mxu0 }
 0x957   : > { %v7187_v21 = vpop.f32.mrf.mxu1  ;;  %v7192_v7 = vpop.f32.mrf.mxu0 }
 0x959   : > { %v3796_v49 = vpop.f32.mrf.mxu0 }
 0x95b   : > { %v7193_v4 = vpop.f32.mrf.mxu0 }
 0x986   : > { %v9416_v17 = vpop.f32.mrf.mxu1 }
 0x987   : > { %v7531_v0 = vpack.i.bf16 %v9416_v17, %v9414_v60  ;;  %v7582_v17 = vld [vmem:[#allocation11] sm:$0xff]  }
 0x988   : > { %v7198_v28 = vpop.f32.mrf.mxu1 }
 0x98a   : > { %v3844_v11 = vpop.f32.mrf.mxu1  ;;  %v9420_v19 = vpop.f32.mrf.mxu0 }
 0x98c   : > { %v7199_v27 = vpop.f32.mrf.mxu1  ;;  %v7204_v29 = vpop.f32.mrf.mxu0 }
 0x98e   : > { %v3892_v33 = vpop.f32.mrf.mxu0 }
 0x990   : > { %v7205_v35 = vpop.f32.mrf.mxu0 }
 0x992   : > { %v3987_v22 = vpop.f32.mrf.mxu0 }
 0x993   : > { %v9424_v55 = vsel %vm8666_vm8, %v3987_v22, -1e+30 }
 0x994   : > { %v4351_v62 = vsel %vm1701_vm9, %v9424_v55, -inf  ;;  %v7216_v39 = vpop.f32.mrf.mxu0 }
 0x995   : > { %4352 = vmax.xlane.f32.xlu0 %v4351_v62 }
 0x996   : > { %v3990_v20 = vpop.f32.mrf.mxu0 }
 0x998   : > { %v7217_v5 = vpop.f32.mrf.mxu0 }
 0x99a   : > { %v4087_v16 = vpop.f32.mrf.mxu0 }
 0x99b   : > { %v9430_v1 = vsel %vm8719_vm10, %v4087_v16, -1e+30 }
 0x99c   : > { %v4357_v3 = vsel %vm1701_vm9, %v9430_v1, -inf  ;;  %v7228_v44 = vpop.f32.mrf.mxu0 }
 0x99d   : > { %4358 = vmax.xlane.f32.xlu0 %v4357_v3 }
 0x99e   : > { %v4090_v18 = vpop.f32.mrf.mxu0 }
 0x9a0   : > { %v7229_v15 = vpop.f32.mrf.mxu0 }
 0x9a2   : > { %v4187_v25 = vpop.f32.mrf.mxu0 }
 0x9a3   : > { %v4347_v16 = vsel %vm8691_vm15, %v4187_v25, -1e+30 }
 0x9a4   : > { %v7240_v38 = vpop.f32.mrf.mxu0  ;;  %v4363_v3 = vsel %vm1701_vm9, %v4347_v16, -inf }
 0x9a6   : > { %v4190_v57 = vpop.f32.mrf.mxu0 }
 0x9a8   : > { %v7241_v45 = vpop.f32.mrf.mxu0 }
 0x9aa   : > { %v4287_v52 = vpop.f32.mrf.mxu0 }
 0x9ab   : > { %v4349_v18 = vsel %vm8713_vm7, %v4287_v52, -1e+30 }
 0x9ac   : > { %v7252_v2 = vpop.f32.mrf.mxu0  ;;  %v4369_v38 = vsel %vm1701_vm9, %v4349_v18, -inf }
 0x9ae   : > { %v4290_v8 = vpop.f32.mrf.mxu0 }
 0x9b0   : > { %v7253_v21 = vpop.f32.mrf.mxu0 }
 0x9bb   : > { %v9434_v7 = vpop.f32.mrf.mxu1 }
 0x9bc   : > { %v7536_v14 = vpack.i.bf16 %v9434_v7, %v9420_v19 }
 0x9bd   : > { %v7210_v49 = vpop.f32.mrf.mxu1 }
 0x9bf   : > { %v3940_v4 = vpop.f32.mrf.mxu1 }
 0x9c1   : > { %v7211_v28 = vpop.f32.mrf.mxu1 }
 0x9c3   : > { %v4037_v11 = vpop.f32.mrf.mxu1 }
 0x9c4   : > { %v4344_v27 = vsel %vm8685_vm14, %v4037_v11, -1e+30 }
 0x9c5   : > { %v4354_v29 = vsel %vm1701_vm9, %v4344_v27, -inf  ;;  %v7222_v33 = vpop.f32.mrf.mxu1 }
 0x9c6   : > { %4355 = vmax.xlane.f32.xlu1 %v4354_v29 }
 0x9c7   : > { %v4040_v35 = vpop.f32.mrf.mxu1 }
 0x9c9   : > { %v7223_v22 = vpop.f32.mrf.mxu1 }
 0x9cb   : > { %v4137_v62 = vpop.f32.mrf.mxu1 }
 0x9cc   : > { %v9443_v39 = vsel %vm8737_vm13, %v4137_v62, -1e+30 }
 0x9cd   : > { %v4360_v20 = vsel %vm1701_vm9, %v9443_v39, -inf  ;;  %v7234_v5 = vpop.f32.mrf.mxu1 }
 0x9ce   : > { %4361 = vmax.xlane.f32.xlu0 %v4360_v20 }
 0x9cf   : > { %v4140_v37 = vpop.f32.mrf.mxu1 }
 0x9d1   : > { %v7235_v44 = vpop.f32.mrf.mxu1 }
 0x9d2   : > { %4364 = vmax.xlane.f32.xlu0 %v4363_v3 }
 0x9d3   : > { %v4237_v15 = vpop.f32.mrf.mxu1 }
 0x9d4   : > { %v9454_v48 = vsel %vm8752_vm5, %v4237_v15, -1e+30 }
 0x9d5   : > { %v4366_v41 = vsel %vm1701_vm9, %v9454_v48, -inf  ;;  %v7246_v25 = vpop.f32.mrf.mxu1 }
 0x9d6   : > { %4370 = vmax.xlane.f32.xlu0 %v4369_v38  ;;  %4367 = vmax.xlane.f32.xlu1 %v4366_v41 }
 0x9d7   : > { %v4240_v57 = vpop.f32.mrf.mxu1 }
 0x9d9   : > { %v7247_v45 = vpop.f32.mrf.mxu1 }
 0x9db   : > { %v4337_v2 = vpop.f32.mrf.mxu1 }
 0x9dc   : > { %v9467_v12 = vsel %vm8762_vm12, %v4337_v2, -1e+30 }
 0x9dd   : > { %v7258_v8 = vpop.f32.mrf.mxu1  ;;  %v4372_v21 = vsel %vm1701_vm9, %v9467_v12, -inf }
 0x9df   : > { %v4340_v10 = vpop.f32.mrf.mxu1 }
 0x9e1   : > { %v7259_v52 = vpop.f32.mrf.mxu1 }
 0x9e7   : > { %4495 = vrot.lane.b32.xlu1 %v8638_v58, %s8165_s4 }
 0x9eb   : > { %4543 = vrot.lane.b32.xlu1 %v8842_v54, %s8165_s4 }
 0x9ec   : > { %4447 = vrot.lane.b32.xlu0 %v8636_v56, %s8165_s4 }
 0xa0f   : > { %4373 = vmax.xlane.f32.xlu1 %v4372_v21  ;;  %v7491_v21 = vpack.i.bf16 %v9191_v34, %v9167_v23 }
 0xa1e   : > { %v4353_v49 = vpop.xlane.xlu0 %4352 }
 0xa1f   : > { %v4375_v4 = vsub.f32 %v9424_v55, %v4353_v49 }
 0xa20   : > { %4591 = vrot.lane.b32.xlu1 %v8857_v26, %s8165_s4 }
 0xa21   : > { %v4383_v58 = vmul.f32 1.442695, %v4375_v4 }
 0xa23   : > { %7759 = vpow2.f32 %v4383_v58 }
 0xa26   : > { %v4359_v54 = vpop.xlane.xlu0 %4358 }
 0xa27   : > { %v4377_v28 = vsub.f32 %v9430_v1, %v4359_v54 }
 0xa29   : > { %v4387_v56 = vmul.f32 1.442695, %v4377_v28 }
 0xa2b   : > { %7761 = vpow2.f32 %v4387_v56 }
 0xa30   : > { %v9475_v32 = vpop.eup %7759 }
 0xa31   : > { %v4399_v11 = vsel %vm1701_vm9, %v9475_v32, 0.0 }
 0xa32   : > { %4400 = vadd.xlane.f32.xlu0 %v4399_v11 }
 0xa38   : > { %v9479_v29 = vpop.eup %7761 }
 0xa39   : > { %v4405_v55 = vsel %vm1701_vm9, %v9479_v29, 0.0 }
 0xa3a   : > { %4406 = vadd.xlane.f32.xlu0 %v4405_v55 }
 0xa4f   : > { %v4356_v26 = vpop.xlane.xlu1 %4355 }
 0xa50   : > { %v4376_v33 = vsub.f32 %v4344_v27, %v4356_v26  ;;  %4639 = vrot.lane.b32.xlu0 %v8872_v43, %s8165_s4 }
 0xa52   : > { %v4385_v1 = vmul.f32 1.442695, %v4376_v33 }
 0xa54   : > { %7763 = vpow2.f32 %v4385_v1 }
 0xa57   : > { %v4362_v35 = vpop.xlane.xlu0 %4361 }
 0xa58   : > { %v4378_v2 = vsub.f32 %v9443_v39, %v4362_v35 }
 0xa5a   : > { %v4389_v8 = vmul.f32 1.442695, %v4378_v2 }
 0xa5b   : > { %v4365_v22 = vpop.xlane.xlu0 %4364 }
 0xa5c   : > { %v4379_v62 = vsub.f32 %v4347_v16, %v4365_v22 }
 0xa5e   : > { %v4391_v20 = vmul.f32 1.442695, %v4379_v62 }
 0xa5f   : > { %v4371_v5 = vpop.xlane.xlu0 %4370  ;;  %v4368_v37 = vpop.xlane.xlu1 %4367 }
 0xa60   : > { %7765 = vpow2.f32 %v4391_v20  ;;  %v4381_v3 = vsub.f32 %v4349_v18, %v4371_v5  ;;  %v4380_v10 = vsub.f32 %v9454_v48, %v4368_v37 }
 0xa61   : > { %v9485_v44 = vpop.eup %7763 }
 0xa62   : > { %v4395_v15 = vmul.f32 1.442695, %v4381_v3  ;;  %v4402_v38 = vsel %vm1701_vm9, %v9485_v44, 0.0  ;;  %v4393_v52 = vmul.f32 1.442695, %v4380_v10 }
 0xa63   : > { %v4448_v27 = vpop.permute.xlu0 %4447  ;;  %v4496_v41 = vpop.permute.xlu1 %4495  ;;  %4403 = vadd.xlane.f32.xlu1 %v4402_v38 }
 0xa64   : > { %7767 = vpow2.f32 %v4395_v15  ;;  %v4453_v43 = vsel %vm1801_vm2, %v4448_v27, 0  ;;  %v4501_v25 = vsel %vm1801_vm2, %v4496_v41, 0 }
 0xa65   : > { %7261 = vmatpush3.bf16.msra.mxu0 %v4453_v43  ;;  %7267 = vmatpush3.bf16.msra.mxu1 %v4501_v25  ;;  %7769 = vpow2.f32 %v4389_v8 }
 0xa66   : > { %7272 = vmatprep.subr.bf16.mxu0 %v10067_v53  ;;  %7278 = vmatprep.subr.bf16.mxu1 %v10067_v53  ;;  %7771 = vpow2.f32 %v4393_v52 }
 0xa67   : > { %v4544_v39 = vpop.permute.xlu1 %4543 }
 0xa68   : > { %v4549_v11 = vsel %vm1801_vm2, %v4544_v39, 0 }
 0xa6d   : > { %v9493_v16 = vpop.eup %7765 }
 0xa6e   : > { %v4411_v18 = vsel %vm1701_vm9, %v9493_v16, 0.0 }
 0xa6f   : > { %4412 = vadd.xlane.f32.xlu0 %v4411_v18 }
 0xa71   : > { %v9497_v57 = vpop.eup %7767 }
 0xa72   : > { %v4417_v45 = vsel %vm1701_vm9, %v9497_v57, 0.0 }
 0xa73   : > { %4418 = vadd.xlane.f32.xlu0 %v4417_v45 }
 0xa74   : > { %4687 = vrot.lane.b32.xlu1 %v8907_v46, %s8165_s4  ;;  %v9514_v46 = vpop.eup %7769 }
 0xa75   : > { %v4408_v48 = vsel %vm1701_vm9, %v9514_v46, 0.0  ;;  %v9518_v49 = vpop.eup %7771 }
 0xa76   : > { %v4414_v4 = vsel %vm1701_vm9, %v9518_v49, 0.0 }
 0xa89   : > { %4735 = vrot.lane.b32.xlu0 %v8886_v24, %s8165_s4 }
 0xa8d   : > { %7492 = vrot.lane.b32.xlu0 %v7491_v21, %s8165_s4 }
 0xa91   : > { %7502 = vrot.lane.b32.xlu0 %v7501_v59, %s8164_s23 }
 0xa98   : > { %4409 = vadd.xlane.f32.xlu1 %v4408_v48  ;;  %v4374_v24 = vpop.xlane.xlu1 %4373  ;;  %v10068_v48 = vmov 0  }
 0xa99   : > { %v4382_v23 = vsub.f32 %v9467_v12, %v4374_v24  ;;  %v7496_v12 = vpack.i.bf16 %v9193_v13, %v9174_v36 }
 0xa9b   : > { %v4397_v34 = vmul.f32 1.442695, %v4382_v23 }
 0xa9c   : > { %4415 = vadd.xlane.f32.xlu1 %v4414_v4 }
 0xa9d   : > { %7773 = vpow2.f32 %v4397_v34 }
 0xaaa   : > { %v9523_v51 = vpop.eup %7773 }
 0xaab   : > { %v4420_v61 = vsel %vm1701_vm9, %v9523_v51, 0.0 }
 0xaac   : > { %4421 = vadd.xlane.f32.xlu1 %v4420_v61 }
 0xabb   : > { %v4401_v59 = vpop.xlane.xlu0 %4400 }
 0xabc   : > { %7775 = vrcp.f32 %v4401_v59 }
 0xabd   : > { %4783 = vrot.lane.b32.xlu1 %v8924_v9, %s8165_s4 }
 0xac1   : > { %7497 = vrot.lane.b32.xlu1 %v7496_v12, %s8165_s4 }
 0xac3   : > { %v4407_v58 = vpop.xlane.xlu0 %4406 }
 0xac4   : > { %7777 = vrcp.f32 %v4407_v58 }
 0xac5   : > { %7507 = vrot.lane.b32.xlu1 %v7506_v63, %s8164_s23  ;;  %v4592_v63 = vpop.permute.xlu1 %4591 }
 0xac6   : > { %v4597_v35 = vsel %vm1801_vm2, %v4592_v63, 0 }
 0xac7   : > { %v4640_v13 = vpop.permute.xlu0 %4639 }
 0xac8   : > { %v4645_v50 = vsel %vm1801_vm2, %v4640_v13, 0  ;;  %v7578_v13 = vld [vmem:[#allocation11 + $0x20] sm:$0xff]  }
 0xac9   : > { %v7776_v54 = vpop.eup %7775 }
 0xaca   : > { %v4431_v28 = vmul.f32 %v7776_v54, %v9475_v32  ;;  %v7575_v54 = vld [vmem:[#allocation11 + $0x38] sm:$0xff]  }
 0xacc   : > { %v4439_v56 = vpack.c.bf16 %v4431_v28, %v4431_v28  ;;  %v7576_v28 = vld [vmem:[#allocation11 + $0x30] sm:$0xff]  }
 0xace   : > { %7263 = vmatmul.mubr.msk.bf16.vlgmr.msra.gmra.mxu0 %vm1701_vm9, %v4439_v56 }
 0xacf   : > { %7273 = vmatpush3.bf16.msra.mxu0 %v4549_v11  ;;  %7274 = vmatprep.mubr.msk.bf16.mxu0 %vm8161_vm0, %v10067_v53  ;;  %v7577_v11 = vld [vmem:[#allocation11 + $0x28] sm:$0xff]  }
 0xad0   : > { %7284 = vmatprep.subr.bf16.mxu0 %v10067_v53 }
 0xad1   : > { %v7778_v9 = vpop.eup %7777 }
 0xad2   : > { %v4433_v36 = vmul.f32 %v7778_v9, %v9479_v29 }
 0xad4   : > { %v4441_v42 = vpack.c.bf16 %v4433_v36, %v4433_v36  ;;  %v10069_v36 = vpack.i.bf16 %v9197_v40, %v9195_v31  ;;  %v7581_v40 = vld [vmem:[#allocation11 + $0x8] sm:$0xff]  }
 0xad6   : > { %7275 = vmatmul.mubr.msk.bf16.vlgmr.msra.gmra.mxu0 %vm1701_vm9, %v4441_v42 }
 0xad7   : > { %7285 = vmatpush3.bf16.msra.mxu0 %v4645_v50  ;;  %7286 = vmatprep.mubr.msk.bf16.mxu0 %vm8161_vm0, %v10067_v53  ;;  %v7579_v50 = vld [vmem:[#allocation11 + $0x18] sm:$0xff]  }
 0xad8   : > { %7296 = vmatprep.subr.bf16.mxu0 %v10067_v53 }
 0xaec   : > { %v4404_v32 = vpop.xlane.xlu1 %4403 }
 0xaed   : > { %7779 = vrcp.f32 %v4404_v32 }
 0xaf0   : > { %v4688_v38 = vpop.permute.xlu1 %4687 }
 0xaf1   : > { %v4693_v45 = vsel %vm1801_vm2, %v4688_v38, 0 }
 0xaf8   : > { %v4413_v55 = vpop.xlane.xlu0 %4412 }
 0xaf9   : > { %7781 = vrcp.f32 %v4413_v55  ;;  %v7580_v55 = vld [vmem:[#allocation11 + $0x10] sm:$0xff]  }
 0xafa   : > { %v7780_v26 = vpop.eup %7779 }
 0xafb   : > { %v4432_v29 = vmul.f32 %v7780_v26, %v9485_v44 }
 0xafc   : > { %v4419_v33 = vpop.xlane.xlu0 %4418 }
 0xafd   : > { %v4440_v1 = vpack.c.bf16 %v4432_v29, %v4432_v29  ;;  %7783 = vrcp.f32 %v4419_v33 }
 0xaff   : > { %7269 = vmatmul.mubr.msk.bf16.vlgmr.msra.gmra.mxu1 %vm1701_vm9, %v4440_v1 }
 0xb00   : > { %7279 = vmatpush3.bf16.msra.mxu1 %v4597_v35  ;;  %7280 = vmatprep.mubr.msk.bf16.mxu1 %vm8161_vm0, %v10067_v53  ;;  %v4736_v20 = vpop.permute.xlu0 %4735 }
 0xb01   : > { %7290 = vmatprep.subr.bf16.mxu1 %v10067_v53  ;;  %v4741_v3 = vsel %vm1801_vm2, %v4736_v20, 0  ;;  %v10070_v20 = vpack.i.bf16 %v9212_v47, %v9201_v6 }
 0xb04   : > { %v7493_v47 = vpop.permute.xlu0 %7492 }
 0xb06   : > { %v7782_v22 = vpop.eup %7781 }
 0xb07   : > { %v4435_v62 = vmul.f32 %v7782_v22, %v9493_v16 }
 0xb09   : > { %v4443_v5 = vpack.c.bf16 %v4435_v62, %v4435_v62 }
 0xb0a   : > { %v7784_v37 = vpop.eup %7783 }
 0xb0b   : > { %7287 = vmatmul.mubr.msk.bf16.vlgmr.msra.gmra.mxu0 %vm1701_vm9, %v4443_v5  ;;  %v4437_v44 = vmul.f32 %v7784_v37, %v9497_v57 }
 0xb0c   : > { %7297 = vmatpush3.bf16.msra.mxu0 %v4741_v3  ;;  %7298 = vmatprep.mubr.msk.bf16.mxu0 %vm8161_vm0, %v10067_v53 }
 0xb0d   : > { %v4445_v15 = vpack.c.bf16 %v4437_v44, %v4437_v44  ;;  %7308 = vmatprep.subr.bf16.mxu0 %v7575_v54 }
 0xb13   : > { %7299 = vmatmul.mubr.msk.bf16.vlgmr.msra.gmra.mxu0 %vm1701_vm9, %v4445_v15 }
 0xb14   : > { %7309 = vmatpush3.bf16.msra.mxu0 %v7575_v54 }
 0xb15   : > { %7310 = vmatprep.subr.bf16.mxu0 %v7576_v28 }
 0xb18   : > { %7311 = vmatpush3.bf16.msra.mxu0 %v7576_v28  ;;  %v10073_v28 = vld [vmem:[#allocation34_spill] sm:$0xff] }
 0xb19   : > { %7312 = vmatprep.subr.bf16.mxu0 %v7577_v11 }
 0xb1c   : > { %7313 = vmatpush3.bf16.msra.mxu0 %v7577_v11 }
 0xb1d   : > { %7314 = vmatprep.subr.bf16.mxu0 %v7578_v13 }
 0xb20   : > { %7315 = vmatpush3.bf16.msra.mxu0 %v7578_v13 }
 0xb21   : > { %v4410_v27 = vpop.xlane.xlu1 %4409  ;;  %7316 = vmatprep.subr.bf16.mxu0 %v7579_v50 }
 0xb22   : > { %7785 = vrcp.f32 %v4410_v27 }
 0xb24   : > { %7317 = vmatpush3.bf16.msra.mxu0 %v7579_v50 }
 0xb25   : > { %v4416_v41 = vpop.xlane.xlu1 %4415  ;;  %7318 = vmatprep.subr.bf16.mxu0 %v7580_v55 }
 0xb26   : > { %7787 = vrcp.f32 %v4416_v41 }
 0xb28   : > { %7319 = vmatpush3.bf16.msra.mxu0 %v7580_v55 }
 0xb29   : > { %7320 = vmatprep.subr.bf16.mxu0 %v7581_v40 }
 0xb2c   : > { %7321 = vmatpush3.bf16.msra.mxu0 %v7581_v40  ;;  %v10074_v40 = vld [vmem:[#allocation38_spill] sm:$0xff] }
 0xb2d   : > { %7322 = vmatprep.subr.bf16.mxu0 %v7582_v17 }
 0xb2f   : > { %v7786_v43 = vpop.eup %7785 }
 0xb30   : > { %v4434_v25 = vmul.f32 %v7786_v43, %v9514_v46  ;;  %7323 = vmatpush3.bf16.msra.mxu0 %v7582_v17 }
 0xb32   : > { %v4442_v16 = vpack.c.bf16 %v4434_v25, %v4434_v25  ;;  %v7503_v25 = vpop.permute.xlu0 %7502 }
 0xb33   : > { %v7788_v18 = vpop.eup %7787 }
 0xb34   : > { %7281 = vmatmul.mubr.msk.bf16.vlgmr.msra.gmra.mxu1 %vm1701_vm9, %v4442_v16  ;;  %v4436_v57 = vmul.f32 %v7788_v18, %v9518_v49  ;;  %v7495_v16 = vunpack.i.h.bf16 %v7493_v47  ;;  %v7494_v18 = vunpack.i.l.bf16 %v7493_v47 }
 0xb35   : > { %7291 = vmatpush3.bf16.msra.mxu1 %v4693_v45  ;;  %v4422_v2 = vpop.xlane.xlu1 %4421  ;;  %7292 = vmatprep.mubr.msk.bf16.mxu1 %vm8161_vm0, %v10067_v53  ;;  %v7505_v45 = vunpack.i.h.bf16 %v7503_v25 }
 0xb36   : > { %7789 = vrcp.f32 %v4422_v2  ;;  %7302 = vmatprep.subr.bf16.mxu1 %v10067_v53  ;;  %v4444_v10 = vpack.c.bf16 %v4436_v57, %v4436_v57  ;;  %v7504_v2 = vunpack.i.l.bf16 %v7503_v25  ;;  %v4928_v7 = vsel %vm1324_vm1, %v8970_v30, %v7495_v16 }
 0xb39   : > { %v4784_v8 = vpop.permute.xlu1 %4783 }
 0xb3a   : > { %v4789_v52 = vsel %vm1801_vm2, %v4784_v8, 0  ;;  %vm4944_vm2 = vcmask 785408  }
 0xb3c   : > { %7293 = vmatmul.mubr.msk.bf16.vlgmr.msra.gmra.mxu1 %vm1701_vm9, %v4444_v10 }
 0xb3d   : > { %7303 = vmatpush3.bf16.msra.mxu1 %v4789_v52  ;;  %7304 = vmatprep.mubr.msk.bf16.mxu1 %vm8161_vm0, %v10067_v53  ;;  %vm4935_vm0 = vcmask 523264  }
 0xb43   : > { %v7790_v21 = vpop.eup %7789 }
 0xb44   : > { %v4438_v46 = vmul.f32 %v7790_v21, %v9523_v51  ;;  %v4937_v21 = vsel %vm4935_vm0, %v4928_v7, %v7505_v45 }
 0xb46   : > { %v4446_v39 = vpack.c.bf16 %v4438_v46, %v4438_v46 }
 0xb48   : > { %7305 = vmatmul.mubr.msk.bf16.vlgmr.msra.gmra.mxu1 %vm1701_vm9, %v4446_v39 }
 0xb49   : > { %5470 = vmatprep.mubr.bf16.mxu1 %v10068_v48 }
 0xb8e   : > { %v4489_v49 = vpop.f32.mrf.mxu0 }
 0xb90   : > { %v7264_v24 = vpop.f32.mrf.mxu0 }
 0xb91   : > { %v7498_v24 = vpop.permute.xlu1 %7497 }
 0xb92   : > { %v4492_v23 = vpop.f32.mrf.mxu0 }
 0xb94   : > { %v7265_v34 = vpop.f32.mrf.mxu0 }
 0xb95   : > { %v7508_v23 = vpop.permute.xlu1 %7507  ;;  %v7500_v34 = vunpack.i.h.bf16 %v7498_v24 }
 0xb96   : > { %v4585_v4 = vpop.f32.mrf.mxu0 }
 0xb98   : > { %v7276_v61 = vpop.f32.mrf.mxu0 }
 0xb99   : > { %v7510_v61 = vunpack.i.h.bf16 %v7508_v23 }
 0xb9a   : > { %v4588_v59 = vpop.f32.mrf.mxu0 }
 0xb9b   : > { %v7509_v59 = vunpack.i.l.bf16 %v7508_v23  ;;  %v7824_v23 = vld [vmem:[%s8456_s21 + $0x10] sm:$0xff] }
 0xb9c   : > { %v7277_v12 = vpop.f32.mrf.mxu0 }
 0xbbf   : > { %v4537_v58 = vpop.f32.mrf.mxu1 }
 0xbc0   : > { %v7511_v53 = vpack.i.bf16 %v4537_v58, %v4489_v49  ;;  %v10072_v58 = vld [vmem:[#allocation37_spill] sm:$0xff] }
 0xbc1   : > { %v7270_v56 = vpop.f32.mrf.mxu1  ;;  %v4930_v54 = vsel %vm1324_vm1, %v10072_v58, %v7500_v34 }
 0xbc2   : > { %7512 = vrot.lane.b32.xlu0 %v7511_v53, %s8163_s24 }
 0xbc3   : > { %v4540_v51 = vpop.f32.mrf.mxu1 }
 0xbc5   : > { %v7271_v9 = vpop.f32.mrf.mxu1 }
 0xbc6   : > { %7522 = vrot.lane.b32.xlu0 %v10069_v36, %s8165_s4  ;;  %v4939_v9 = vsel %vm4935_vm0, %v4930_v54, %v7510_v61 }
 0xbca   : > { %7532 = vrot.lane.b32.xlu0 %v7531_v0, %s8164_s23 }
 0xbcb   : > { %v4681_v42 = vpop.f32.mrf.mxu0 }
 0xbcd   : > { %v7288_v63 = vpop.f32.mrf.mxu0 }
 0xbcf   : > { %v4684_v32 = vpop.f32.mrf.mxu0 }
 0xbd1   : > { %v7289_v26 = vpop.f32.mrf.mxu0 }
 0xbd3   : > { %v4777_v31 = vpop.f32.mrf.mxu0 }
 0xbd5   : > { %v7300_v29 = vpop.f32.mrf.mxu0 }
 0xbd7   : > { %v4780_v33 = vpop.f32.mrf.mxu0 }
 0xbd8   : > { %v10075_v33 = vld [vmem:[#allocation35_spill] sm:$0xff] }
 0xbd9   : > { %v7301_v60 = vpop.f32.mrf.mxu0 }
 0xbf4   : > { %v4633_v0 = vpop.f32.mrf.mxu1 }
 0xbf5   : > { %v7516_v1 = vpack.i.bf16 %v4633_v0, %v4585_v4  ;;  %v7499_v4 = vunpack.i.l.bf16 %v7498_v24 }
 0xbf6   : > { %v7282_v35 = vpop.f32.mrf.mxu1 }
 0xbf7   : > { %7517 = vrot.lane.b32.xlu1 %v7516_v1, %s8163_s24  ;;  %v4929_v53 = vsel %vm1324_vm1, %v10073_v28, %v7499_v4 }
 0xbf8   : > { %v4636_v22 = vpop.f32.mrf.mxu1  ;;  %v4938_v11 = vsel %vm4935_vm0, %v4929_v53, %v7509_v59  ;;  %v7826_v59 = vld [vmem:[%s8456_s21 + $0x18] sm:$0xff] }
 0xbfa   : > { %v7283_v62 = vpop.f32.mrf.mxu1 }
 0xbfb   : > { %7527 = vrot.lane.b32.xlu1 %v10070_v20, %s8165_s4 }
 0xbfc   : > { %v4729_v5 = vpop.f32.mrf.mxu1 }
 0xbfd   : > { %v7541_v37 = vpack.i.bf16 %v4729_v5, %v4681_v42 }
 0xbfe   : > { %v7294_v3 = vpop.f32.mrf.mxu1 }
 0xbff   : > { %7537 = vrot.lane.b32.xlu1 %v7536_v14, %s8164_s23  ;;  %7542 = vrot.lane.b32.xlu0 %v7541_v37, %s8163_s24  ;;  %v10071_v14 = vld [vmem:[#allocation33_spill] sm:$0xff]  ;;  %s9899_s23 = scalar_lea.vmem [#allocation16], %s6362_s11  ;;  %s10085_s11 = sld [smem:[#allocation26_spill]] }
 0xc00   : > { %v4732_v44 = vpop.f32.mrf.mxu1  ;;  %v4927_v57 = vsel %vm1324_vm1, %v10071_v14, %v7494_v18  ;;  %s6175_s14 = sshll.u32 %s9899_s23, 4  ;;  %s9919_s14 = int_to_ptr.vmem [resolvable:$true] %s6175_s14 }
 0xc01   : > { %v4936_v52 = vsel %vm4935_vm0, %v4927_v57, %v7504_v2  ;;  %v6486_v57 = vld [vmem:[%s9977_s9] ss:$0 sm:$0xff] }
 0xc02   : > { %v7295_v15 = vpop.f32.mrf.mxu1 }
 0xc05   : > { %s6595_s17 = sshll.u32 %s10085_s11, 10 }
 0xc06   : > { %s9917_s29 = scalar_lea.hbm %s10087_s12, %s6595_s17 }
 0xc08   : > { %v4825_v38 = vpop.f32.mrf.mxu1 }
 0xc09   : > { %v7546_v27 = vpack.i.bf16 %v4825_v38, %v4777_v31 }
 0xc0a   : > { %v7306_v41 = vpop.f32.mrf.mxu1 }
 0xc0b   : > { %7547 = vrot.lane.b32.xlu1 %v7546_v27, %s8163_s24  ;;  %v10076_v41 = vld [vmem:[#allocation39_spill] sm:$0xff]  ;;  %s10084_s24 = sld [smem:[#allocation52_spill]] }
 0xc0c   : > { %v4828_v43 = vpop.f32.mrf.mxu1 }
 0xc0e   : > { %v7307_v6 = vpop.f32.mrf.mxu1 }
 0xc0f   : > { %v10077_v6 = vld [vmem:[#allocation36_spill] sm:$0xff] }
 0xc34   : > { %v7513_v19 = vpop.permute.xlu0 %7512 }
 0xc35   : > { %v7515_v8 = vunpack.i.h.bf16 %v7513_v19  ;;  %v7514_v10 = vunpack.i.l.bf16 %v7513_v19 }
 0xc37   : > { %v4945_v46 = vsel %vm4944_vm2, %v4936_v52, %v7514_v10  ;;  %v4946_v39 = vsel %vm4944_vm2, %v4937_v21, %v7515_v8 }
 0xc38   : > { %v4953_v49 = vpack.c.bf16 %v4946_v39, %v4945_v46  ;;  %v7523_v30 = vpop.permute.xlu0 %7522  ;;  %v7823_v46 = vld [vmem:[%s8456_s21] sm:$0xff] }
 0xc39   : > { %v7525_v63 = vunpack.i.h.bf16 %v7523_v30  ;;  %v7524_v32 = vunpack.i.l.bf16 %v7523_v30  ;;  %v7825_v30 = vld [vmem:[%s8456_s21 + $0x8] sm:$0xff] }
 0xc3a   : > { %7324 = vmatprep.mubr.bf16.mxu0 %v4953_v49 }
 0xc3b   : > { %v4932_v29 = vsel %vm1324_vm1, %v10074_v40, %v7525_v63  ;;  %v4931_v60 = vsel %vm1324_vm1, %v10075_v33, %v7524_v32  ;;  %v7829_v63 = vld [vmem:[%s8456_s21 + $0x28] sm:$0xff]  ;;  %v7585_v40 = vld [vmem:[#allocation13 + $0xe4] ss:$16 sps:$4 sm:$0xff]  }
 0xc3c   : > { %v7533_v36 = vpop.permute.xlu0 %7532  ;;  %v7588_v33 = vld [vmem:[#allocation13 + $0xec] ss:$16 sps:$4 sm:$0xff]   ;;  %5438 = vmatprep.subr.bf16.mxu1 %v7585_v40 }
 0xc3d   : > { %v7535_v55 = vunpack.i.h.bf16 %v7533_v36  ;;  %v7534_v26 = vunpack.i.l.bf16 %v7533_v36  ;;  %5511 = vmatprep.subr.bf16.mxu0 %v7588_v33  ;;  %v7631_v40 = vld [vmem:[#allocation14 + $0x78] sm:$0xff]  }
 0xc3f   : > { %v4940_v35 = vsel %vm4935_vm0, %v4931_v60, %v7534_v26  ;;  %v4941_v22 = vsel %vm4935_vm0, %v4932_v29, %v7535_v55  ;;  %v7830_v55 = vld [vmem:[%s8456_s21 + $0x38] sm:$0xff] }
 0xc40   : > { %v7586_v29 = vld [vmem:[#allocation13 + $0xe8] ss:$16 sps:$4 sm:$0xff]  }
 0xc69   : > { %v7518_v12 = vpop.permute.xlu1 %7517 }
 0xc6a   : > { %v7520_v56 = vunpack.i.h.bf16 %v7518_v12  ;;  %v7519_v51 = vunpack.i.l.bf16 %v7518_v12 }
 0xc6c   : > { %v4948_v13 = vsel %vm4944_vm2, %v4939_v9, %v7520_v56  ;;  %v4947_v42 = vsel %vm4944_vm2, %v4938_v11, %v7519_v51  ;;  %v7827_v51 = vld [vmem:[%s8456_s21 + $0x20] sm:$0xff] }
 0xc6d   : > { %v4954_v50 = vpack.c.bf16 %v4948_v13, %v4947_v42  ;;  %v7528_v17 = vpop.permute.xlu1 %7527  ;;  %v7828_v13 = vld [vmem:[%s8456_s21 + $0x30] sm:$0xff]  ;;  %s8043_s21 = scalar_lea.vmem %s9919_s14, 1024 }
 0xc6e   : > { %v7530_v3 = vunpack.i.h.bf16 %v7528_v17  ;;  %v7529_v44 = vunpack.i.l.bf16 %v7528_v17  ;;  %p8044_p1 = scmp.ne.s32.totalorder %s9919_s14, %s8043_s21 }
 0xc6f   : > { %7325 = vmatmul.mubr.bf16.vlgmr.msra.gmra.mxu0 %v4954_v50 }
 0xc70   : > { %v4934_v43 = vsel %vm1324_vm1, %v10076_v41, %v7530_v3  ;;  %v4933_v47 = vsel %vm1324_vm1, %v10077_v6, %v7529_v44  ;;  %5512 = vmatpush1.bf16.msra.mxu0 %v7586_v29  ;;  %v7594_v6 = vld [vmem:[#allocation13 + $0xcc] ss:$16 sps:$4 sm:$0xff]   ;;  %p8045_p3 = pnand %p8044_p1, %p8400_p11 }
 0xc71   : > { %v7543_v31 = vpop.permute.xlu0 %7542  ;;  %v7538_v37 = vpop.permute.xlu1 %7537  ;;  %5513 = vmatprep.subr.bf16.mxu0 %v7594_v6  ;;  %v9675_v29 = vld [vmem:[#allocation14 + $0xf8] sm:$0xff]   ;;  %v9682_v6 = vld [vmem:[%s9978_s10] ss:$0 sm:$0xff] }
 0xc72   : > { %v7545_v0 = vunpack.i.h.bf16 %v7543_v31  ;;  %v7544_v1 = vunpack.i.l.bf16 %v7543_v31  ;;  %v7540_v15 = vunpack.i.h.bf16 %v7538_v37  ;;  %v7539_v38 = vunpack.i.l.bf16 %v7538_v37  ;;  %v7583_v31 = vld [vmem:[#allocation13 + $0xe0] ss:$16 sps:$4 sm:$0xff]   ;;  %p8046_p10 = pneg %p8045_p3 }
 0xc73   : > { %5439 = vmatpush1.bf16.msra.mxu1 %v7583_v31  ;;  %v7628_v31 = vld [vmem:[#allocation13 + $0x8] ss:$16 sps:$4 sm:$0xff]  }
 0xc74   : > { %v4949_v62 = vsel %vm4944_vm2, %v4940_v35, %v7544_v1  ;;  %v4950_v20 = vsel %vm4944_vm2, %v4941_v22, %v7545_v0  ;;  %v4942_v18 = vsel %vm4935_vm0, %v4933_v47, %v7539_v38  ;;  %v4943_v45 = vsel %vm4935_vm0, %v4934_v43, %v7540_v15  ;;  %v7591_v43 = vld [vmem:[#allocation13 + $0xc4] ss:$16 sps:$4 sm:$0xff]  }
 0xc75   : > { %v4955_v5 = vpack.c.bf16 %v4950_v20, %v4949_v62  ;;  %5440 = vmatprep.subr.bf16.mxu1 %v7591_v43 }
 0xc77   : > { %7328 = vmatprep.mubr.bf16.mxu0 %v4955_v5 }
 0xc7d   : > { %v7548_v27 = vpop.permute.xlu1 %7547 }
 0xc7e   : > { %v7550_v25 = vunpack.i.h.bf16 %v7548_v27  ;;  %v7549_v16 = vunpack.i.l.bf16 %v7548_v27 }
 0xc80   : > { %v4952_v2 = vsel %vm4944_vm2, %v4943_v45, %v7550_v25  ;;  %v4951_v19 = vsel %vm4944_vm2, %v4942_v18, %v7549_v16  ;;  %v7589_v25 = vld [vmem:[#allocation13 + $0xc0] ss:$16 sps:$4 sm:$0xff]   ;;  %v7592_v16 = vld [vmem:[#allocation13 + $0xc8] ss:$16 sps:$4 sm:$0xff]  }
 0xc81   : > { %v4956_v7 = vpack.c.bf16 %v4952_v2, %v4951_v19  ;;  %5441 = vmatpush1.bf16.msra.mxu1 %v7589_v25  ;;  %5514 = vmatpush1.bf16.msra.mxu0 %v7592_v16  ;;  %v7597_v2 = vld [vmem:[#allocation13 + $0xa4] ss:$16 sps:$4 sm:$0xff]   ;;  %v7600_v19 = vld [vmem:[#allocation13 + $0xac] ss:$16 sps:$4 sm:$0xff]  }
 0xc82   : > { %5442 = vmatprep.subr.bf16.mxu1 %v7597_v2  ;;  %5515 = vmatprep.subr.bf16.mxu0 %v7600_v19 }
 0xc83   : > { %7329 = vmatmul.mubr.bf16.gmra.mxu0 %v4956_v7 }
 0xc84   : > { %5543 = vmatprep.mubr.bf16.mxu0 %v10068_v48 }
 0xd2f   : > { %v7326_v14 = vpop.f32.mrf.mxu0 }
 0xd30   : > { %v5071_v21 = vadd.f32 %v7326_v14, %v6486_v57 }
 0xd31   : > { %v5062_v8 = vpop.f32.mrf.mxu0 }
 0xd32   : > { %v5063_v10 = vadd.f32 %v6486_v57, %v5062_v8  ;;  %v5095_v34 = vadd.f32 %v7824_v23, %v5071_v21  ;;  %v7598_v8 = vld [vmem:[#allocation13 + $0xa8] ss:$16 sps:$4 sm:$0xff]  }
 0xd33   : > { %v7327_v52 = vpop.f32.mrf.mxu0  ;;  %5516 = vmatpush1.bf16.msra.mxu0 %v7598_v8 }
 0xd34   : > { %v5093_v39 = vadd.f32 %v7823_v46, %v5063_v10  ;;  %v5074_v4 = vadd.f32 %v7327_v52, %v6486_v57 }
 0xd35   : > { %v5065_v49 = vpop.f32.mrf.mxu0 }
 0xd36   : > { %v5066_v24 = vadd.f32 %v6486_v57, %v5065_v49  ;;  %5103 = vadd.xlane.f32.xlu0 %v5093_v39  ;;  %v5096_v12 = vadd.f32 %v7826_v59, %v5074_v4  ;;  %v7603_v49 = vld [vmem:[#allocation13 + $0x84] ss:$16 sps:$4 sm:$0xff]   ;;  %v7604_v4 = vld [vmem:[#allocation13 + $0x88] ss:$16 sps:$4 sm:$0xff]  }
 0xd38   : > { %v5094_v61 = vadd.f32 %v7825_v30, %v5066_v24  ;;  %v7606_v24 = vld [vmem:[#allocation13 + $0x8c] ss:$16 sps:$4 sm:$0xff]  }
 0xd39   : > { %5517 = vmatprep.subr.bf16.mxu0 %v7606_v24 }
 0xd3a   : > { %5107 = vadd.xlane.f32.xlu0 %v5095_v34  ;;  %5105 = vadd.xlane.f32.xlu1 %v5094_v61 }
 0xd3b   : > { %5518 = vmatpush1.bf16.msra.mxu0 %v7604_v4 }
 0xd3e   : > { %5109 = vadd.xlane.f32.xlu0 %v5096_v12 }
 0xd43   : > { %v7330_v58 = vpop.f32.mrf.mxu0 }
 0xd44   : > { %v5087_v56 = vadd.f32 %v7330_v58, %v6486_v57  ;;  %v7609_v58 = vld [vmem:[#allocation13 + $0x64] ss:$16 sps:$4 sm:$0xff]  }
 0xd45   : > { %v5078_v54 = vpop.f32.mrf.mxu0 }
 0xd46   : > { %v5079_v28 = vadd.f32 %v6486_v57, %v5078_v54  ;;  %v5099_v42 = vadd.f32 %v7828_v13, %v5087_v56  ;;  %v7612_v54 = vld [vmem:[#allocation13 + $0x6c] ss:$16 sps:$4 sm:$0xff]   ;;  %v7621_v13 = vld [vmem:[#allocation13 + $0x24] ss:$16 sps:$4 sm:$0xff]  }
 0xd47   : > { %v7331_v53 = vpop.f32.mrf.mxu0  ;;  %5519 = vmatprep.subr.bf16.mxu0 %v7612_v54  ;;  %v7633_v54 = vld [vmem:[#allocation14 + $0x38] sm:$0xff]  }
 0xd48   : > { %v5097_v11 = vadd.f32 %v7827_v51, %v5079_v28  ;;  %v5090_v50 = vadd.f32 %v7331_v53, %v6486_v57  ;;  %v7607_v28 = vld [vmem:[#allocation13 + $0x60] ss:$16 sps:$4 sm:$0xff]   ;;  %v7610_v53 = vld [vmem:[#allocation13 + $0x68] ss:$16 sps:$4 sm:$0xff]   ;;  %v7615_v51 = vld [vmem:[#allocation13 + $0x44] ss:$16 sps:$4 sm:$0xff]  }
 0xd49   : > { %v5081_v9 = vpop.f32.mrf.mxu0  ;;  %5520 = vmatpush1.bf16.msra.mxu0 %v7610_v53  ;;  %v7635_v53 = vld [vmem:[#allocation14 + $0x70] sm:$0xff]  }
 0xd4a   : > { %v5082_v36 = vadd.f32 %v6486_v57, %v5081_v9  ;;  %5111 = vadd.xlane.f32.xlu0 %v5097_v11  ;;  %v9639_v26 = vadd.f32 %v7830_v55, %v5090_v50  ;;  %v7595_v57 = vld [vmem:[#allocation13 + $0xa0] ss:$16 sps:$4 sm:$0xff]   ;;  %v7630_v55 = vld [vmem:[#allocation13 + $0xc] ss:$16 sps:$4 sm:$0xff]  }
 0xd4b   : > { %5443 = vmatpush1.bf16.msra.mxu1 %v7595_v57  ;;  %v7613_v9 = vld [vmem:[#allocation13 + $0x40] ss:$16 sps:$4 sm:$0xff]  }
 0xd4c   : > { %v5098_v32 = vadd.f32 %v7829_v63, %v5082_v36  ;;  %5444 = vmatprep.subr.bf16.mxu1 %v7603_v49  ;;  %v7616_v36 = vld [vmem:[#allocation13 + $0x48] ss:$16 sps:$4 sm:$0xff]   ;;  %v7619_v50 = vld [vmem:[#allocation13 + $0x20] ss:$16 sps:$4 sm:$0xff]  }
 0xd4d   : > { %v7622_v63 = vld [vmem:[#allocation13 + $0x28] ss:$16 sps:$4 sm:$0xff]  }
 0xd4e   : > { %5113 = vadd.xlane.f32.xlu1 %v5098_v32  ;;  %5115 = vadd.xlane.f32.xlu0 %v5099_v42 }
 0xd52   : > { %5117 = vadd.xlane.f32.xlu1 %v9639_v26 }
 0xdbf   : > { %v5104_v60 = vpop.xlane.xlu0 %5103 }
 0xdc0   : > { %v5120_v17 = vmul.f32 0.0078125, %v5104_v60 }
 0xdc2   : > { %v9642_v0 = vsub.f32 %v5093_v39, %v5120_v17 }
 0xdc3   : > { %v5108_v1 = vpop.xlane.xlu0 %5107  ;;  %v5106_v35 = vpop.xlane.xlu1 %5105 }
 0xdc4   : > { %v5122_v22 = vmul.f32 0.0078125, %v5108_v1  ;;  %v5121_v62 = vmul.f32 0.0078125, %v5106_v35  ;;  %v5136_v20 = vmul.f32 %v9642_v0, %v9642_v0 }
 0xdc6   : > { %v9646_v5 = vsub.f32 %v5095_v34, %v5122_v22  ;;  %v9648_v37 = vsub.f32 %v5094_v61, %v5121_v62  ;;  %5144 = vadd.xlane.f32.xlu0 %v5136_v20  ;;  %v7601_v34 = vld [vmem:[#allocation13 + $0x80] ss:$16 sps:$4 sm:$0xff]  }
 0xdc7   : > { %v5110_v3 = vpop.xlane.xlu0 %5109  ;;  %5445 = vmatpush1.bf16.msra.mxu1 %v7601_v34 }
 0xdc8   : > { %v5123_v44 = vmul.f32 0.0078125, %v5110_v3  ;;  %v5137_v15 = vmul.f32 %v9648_v37, %v9648_v37  ;;  %v5138_v38 = vmul.f32 %v9646_v5, %v9646_v5  ;;  %5446 = vmatprep.subr.bf16.mxu1 %v7609_v58 }
 0xdca   : > { %v9654_v27 = vsub.f32 %v5096_v12, %v5123_v44  ;;  %5146 = vadd.xlane.f32.xlu1 %v5137_v15  ;;  %5148 = vadd.xlane.f32.xlu0 %v5138_v38 }
 0xdcb   : > { %5447 = vmatpush1.bf16.msra.mxu1 %v7607_v28  ;;  %v9703_v28 = vld [vmem:[#allocation14 + $0xb8] sm:$0xff]  }
 0xdcc   : > { %v5139_v41 = vmul.f32 %v9654_v27, %v9654_v27  ;;  %5448 = vmatprep.subr.bf16.mxu1 %v7615_v51 }
 0xdce   : > { %5150 = vadd.xlane.f32.xlu1 %v5139_v41 }
 0xdcf   : > { %5449 = vmatpush1.bf16.msra.mxu1 %v7613_v9  ;;  %v9714_v9 = vld [vmem:[#allocation14 + $0xb0] sm:$0xff]  }
 0xdd0   : > { %5450 = vmatprep.subr.bf16.mxu1 %v7621_v13  ;;  %v9717_v13 = vld [vmem:[#allocation14 + $0xe8] sm:$0xff]  }
 0xdd3   : > { %v5112_v47 = vpop.xlane.xlu0 %5111  ;;  %5451 = vmatpush1.bf16.msra.mxu1 %v7619_v50 }
 0xdd4   : > { %v5124_v18 = vmul.f32 0.0078125, %v5112_v47 }
 0xdd6   : > { %v9658_v45 = vsub.f32 %v5097_v11, %v5124_v18  ;;  %v7618_v11 = vld [vmem:[#allocation13 + $0x4c] ss:$16 sps:$4 sm:$0xff]  }
 0xdd7   : > { %v5114_v7 = vpop.xlane.xlu1 %5113  ;;  %v5116_v14 = vpop.xlane.xlu0 %5115  ;;  %5521 = vmatprep.subr.bf16.mxu0 %v7618_v11  ;;  %v7637_v11 = vld [vmem:[#allocation14 + $0x30] sm:$0xff]  }
 0xdd8   : > { %v5125_v10 = vmul.f32 0.0078125, %v5114_v7  ;;  %v5126_v52 = vmul.f32 0.0078125, %v5116_v14  ;;  %v5140_v21 = vmul.f32 %v9658_v45, %v9658_v45  ;;  %5522 = vmatpush1.bf16.msra.mxu0 %v7616_v36  ;;  %v9689_v14 = vld [vmem:[%s10078_s27] ss:$0 sm:$0xff]  ;;  %v7639_v36 = vld [vmem:[#allocation14 + $0x68] sm:$0xff]   ;;  %s6160_s27 = scalar_lea.sflag [#allocation4], %s8450_s2 }
 0xdda   : > { %v9662_v46 = vsub.f32 %v5098_v32, %v5125_v10  ;;  %v9664_v39 = vsub.f32 %v5099_v42, %v5126_v52  ;;  %5152 = vadd.xlane.f32.xlu0 %v5140_v21  ;;  %v7624_v42 = vld [vmem:[#allocation13 + $0x2c] ss:$16 sps:$4 sm:$0xff]   ;;  %v7627_v32 = vld [vmem:[#allocation13 + $0x4] ss:$16 sps:$4 sm:$0xff]  }
 0xddb   : > { %v5118_v23 = vpop.xlane.xlu1 %5117  ;;  %5523 = vmatprep.subr.bf16.mxu0 %v7624_v42  ;;  %5452 = vmatprep.subr.bf16.mxu1 %v7627_v32  ;;  %v9725_v32 = vld [vmem:[#allocation14 + $0xa8] sm:$0xff]  }
 0xddc   : > { %v5127_v30 = vmul.f32 0.0078125, %v5118_v23  ;;  %v5141_v61 = vmul.f32 %v9662_v46, %v9662_v46  ;;  %v5142_v59 = vmul.f32 %v9664_v39, %v9664_v39  ;;  %5524 = vmatpush1.bf16.msra.mxu0 %v7622_v63  ;;  %v7641_v63 = vld [vmem:[#allocation14 + $0x28] sm:$0xff]  }
 0xddd   : > { %5525 = vmatprep.subr.bf16.mxu0 %v7630_v55 }
 0xdde   : > { %v9671_v12 = vsub.f32 %v9639_v26, %v5127_v30  ;;  %5154 = vadd.xlane.f32.xlu1 %v5141_v61  ;;  %5156 = vadd.xlane.f32.xlu0 %v5142_v59  ;;  %v7625_v26 = vld [vmem:[#allocation13] ss:$16 sps:$4 sm:$0xff]  }
 0xddf   : > { %5453 = vmatpush1.bf16.msra.mxu1 %v7625_v26  ;;  %v7643_v26 = vld [vmem:[#allocation14 + $0x60] sm:$0xff]  }
 0xde0   : > { %v5143_v56 = vmul.f32 %v9671_v12, %v9671_v12  ;;  %5526 = vmatpush1.bf16.msra.mxu0 %v7628_v31  ;;  %6772 = vmatprep.subr.bf16.mxu1 %v7631_v40  ;;  %v9728_v31 = vld [vmem:[#allocation14 + $0xe0] sm:$0xff]  }
 0xde1   : > { %6812 = vmatprep.subr.bf16.mxu0 %v9675_v29 }
 0xde2   : > { %5158 = vadd.xlane.f32.xlu1 %v5143_v56 }
 0xe4f   : > { %v5145_v33 = vpop.xlane.xlu0 %5144 }
 0xe50   : > { %v5160_v60 = vmul.f32 0.0078125, %v5145_v33  ;;  %v7645_v33 = vld [vmem:[#allocation14 + $0x20] sm:$0xff]  }
 0xe52   : > { %v5168_v17 = vadd.f32 1e-05, %v5160_v60  ;;  %v9734_v60 = vld [vmem:[#allocation14 + $0xa0] sm:$0xff]  }
 0xe53   : > { %v5147_v1 = vpop.xlane.xlu1 %5146  ;;  %v5149_v35 = vpop.xlane.xlu0 %5148 }
 0xe54   : > { %7791 = vrsqrt.f32 %v5168_v17  ;;  %v5161_v22 = vmul.f32 0.0078125, %v5147_v1  ;;  %v5162_v62 = vmul.f32 0.0078125, %v5149_v35  ;;  %v7647_v1 = vld [vmem:[#allocation14 + $0x58] sm:$0xff]  }
 0xe55   : > { %v9737_v35 = vld [vmem:[#allocation14 + $0xd8] sm:$0xff]  }
 0xe56   : > { %v5169_v20 = vadd.f32 1e-05, %v5161_v22  ;;  %v5170_v3 = vadd.f32 1e-05, %v5162_v62 }
 0xe57   : > { %v5151_v44 = vpop.xlane.xlu1 %5150 }
 0xe58   : > { %7793 = vrsqrt.f32 %v5169_v20  ;;  %v5163_v15 = vmul.f32 0.0078125, %v5151_v44  ;;  %v9743_v44 = vld [vmem:[#allocation14 + $0x98] sm:$0xff]  }
 0xe59   : > { %7795 = vrsqrt.f32 %v5170_v3  ;;  %v7649_v3 = vld [vmem:[#allocation14 + $0x18] sm:$0xff]  }
 0xe5a   : > { %v5171_v38 = vadd.f32 1e-05, %v5163_v15 }
 0xe5c   : > { %7797 = vrsqrt.f32 %v5171_v38 }
 0xe61   : > { %v7792_v41 = vpop.eup %7791 }
 0xe62   : > { %v5184_v43 = vmul.f32 %v7792_v41, %v9642_v0 }
 0xe63   : > { %v5153_v47 = vpop.xlane.xlu0 %5152 }
 0xe64   : > { %v5164_v25 = vmul.f32 0.0078125, %v5153_v47  ;;  %v5198_v18 = vmul.f32 %v9682_v6, %v5184_v43 }
 0xe65   : > { %v7794_v16 = vpop.eup %7793 }
 0xe66   : > { %v7796_v2 = vpop.eup %7795  ;;  %v5185_v19 = vmul.f32 %v7794_v16, %v9648_v37  ;;  %v5172_v7 = vadd.f32 1e-05, %v5164_v25  ;;  %v9693_v49 = vadd.f32 %v9689_v14, %v5198_v18 }
 0xe67   : > { %v5155_v0 = vpop.xlane.xlu1 %5154  ;;  %v5157_v57 = vpop.xlane.xlu0 %5156  ;;  %v5186_v24 = vmul.f32 %v7796_v2, %v9646_v5  ;;  %v9705_v5 = vld [vmem:[#allocation14 + $0xf0] sm:$0xff]  }
 0xe68   : > { %7799 = vrsqrt.f32 %v5172_v7  ;;  %v5165_v8 = vmul.f32 0.0078125, %v5155_v0  ;;  %v5166_v10 = vmul.f32 0.0078125, %v5157_v57  ;;  %v5199_v52 = vmul.f32 %v9682_v6, %v5185_v19  ;;  %v7651_v2 = vld [vmem:[#allocation14 + $0x50] sm:$0xff]   ;;  %v7657_v0 = vld [vmem:[#allocation14 + $0x8] sm:$0xff]  }
 0xe69   : > { %v7798_v21 = vpop.eup %7797  ;;  %v9769_v19 = vld [vmem:[#allocation14 + $0xd0] sm:$0xff]   ;;  %v9777_v57 = vld [vmem:[#allocation14 + $0x88] sm:$0xff]  }
 0xe6a   : > { %v5173_v37 = vadd.f32 1e-05, %v5165_v8  ;;  %v5174_v23 = vadd.f32 1e-05, %v5166_v10  ;;  %v9697_v34 = vadd.f32 %v9689_v14, %v5199_v52  ;;  %v5187_v4 = vmul.f32 %v7798_v21, %v9654_v27  ;;  %v7653_v7 = vld [vmem:[#allocation14 + $0x10] sm:$0xff]   ;;  %v7659_v8 = vld [vmem:[#allocation14 + $0x40] sm:$0xff]  }
 0xe6b   : > { %v5159_v30 = vpop.xlane.xlu1 %5158  ;;  %v5200_v27 = vmul.f32 %v9682_v6, %v5186_v24  ;;  %v9781_v10 = vld [vmem:[#allocation14 + $0xc0] sm:$0xff]  }
 0xe6c   : > { %7801 = vrsqrt.f32 %v5173_v37  ;;  %v5167_v61 = vmul.f32 0.0078125, %v5159_v30  ;;  %v5220_v59 = vpack.c.bf16 %v9697_v34, %v9693_v49  ;;  %v5201_v58 = vmul.f32 %v9682_v6, %v5187_v4  ;;  %v7661_v52 = vld [vmem:[#allocation14] sm:$0xff]   ;;  %v5256_v30 = vld [vmem:[%s10080_s30] sm:$0xf]  ;;  %s8047_s30 = sshll.u32 %s8166_s20, 4  ;;  %s8048_s30 = int_to_ptr.vmem [resolvable:$false] %s8047_s30 }
 0xe6d   : > { %7803 = vrsqrt.f32 %v5174_v23  ;;  %v9720_v42 = vadd.f32 %v9689_v14, %v5200_v27  ;;  %v9783_v21 = vld [vmem:[#allocation14 + $0x80] sm:$0xff]   ;;  %s8049_s26 = scalar_lea.vmem %s8048_s30, 2048  ;;  %p8050_p13 = scmp.lt.s32.totalorder %s9919_s14, %s8048_s30 }
 0xe6e   : > { %v5175_v56 = vadd.f32 1e-05, %v5167_v61  ;;  %5471 = vmatmul.mubr.bf16.vlgmr.msra.gmra.mxu1 %v5220_v59  ;;  %5544 = vmatmul.mubr.bf16.vlgmr.msra.gmra.mxu0 %v5220_v59  ;;  %v9711_v51 = vadd.f32 %v9689_v14, %v5201_v58  ;;  %v10079_v24 = vld [vmem:[#allocation31_spill] sm:$0xff]  ;;  %p8051_p2 = scmp.lt.s32.totalorder %s8049_s26, %s8043_s21 }
 0xe6f   : > { %5480 = vmatprep.mubr.bf16.mxu1 %v10068_v48  ;;  %5553 = vmatprep.mubr.bf16.mxu0 %v10068_v48  ;;  %v5264_v37 = vsub.s32 1, %v10079_v24  ;;  %v5272_v23 = vsub.s32 3, %v10079_v24  ;;  %v5268_v4 = vsub.s32 2, %v10079_v24 }
 0xe70   : > { %7805 = vrsqrt.f32 %v5175_v56  ;;  %6773 = vmatpush3.bf16.msra.mxu1 %v7633_v54  ;;  %6813 = vmatpush3.bf16.msra.mxu0 %v9703_v28  ;;  %v5221_v50 = vpack.c.bf16 %v9711_v51, %v9720_v42  ;;  %p8052_p5 = por %p8051_p2, %p8050_p13 }
 0xe71   : > { %6774 = vmatprep.subr.bf16.mxu1 %v7635_v53  ;;  %6814 = vmatprep.subr.bf16.mxu0 %v9705_v5  ;;  %v9794_v58 = vrot.slane %v5256_v30, %v5264_v37  ;;  %v9796_v54 = vrot.slane %v5256_v30, %v5272_v23  ;;  %v10081_v53 = vld [vmem:[#allocation32_spill] sm:$0xff] }
 0xe72   : > { %v9799_v56 = vrot.slane %v5256_v30, %v10081_v53  ;;  %p8053_p9 = pnand %p8052_p5, %p8046_p10 }
 0xe74   : > { %6775 = vmatpush3.bf16.msra.mxu1 %v7637_v11  ;;  %6815 = vmatpush3.bf16.msra.mxu0 %v9714_v9 }
 0xe75   : > { %v7800_v55 = vpop.eup %7799  ;;  %6776 = vmatprep.subr.bf16.mxu1 %v7639_v36  ;;  %6816 = vmatprep.subr.bf16.mxu0 %v9717_v13 }
 0xe76   : > { %5481 = vmatmul.mubr.bf16.gmra.mxu1 %v5221_v50  ;;  %5554 = vmatmul.mubr.bf16.gmra.mxu0 %v5221_v50  ;;  %v5188_v40 = vmul.f32 %v7800_v55, %v9658_v45 }
 0xe77   : > { %5490 = vmatprep.mubr.bf16.mxu1 %v10068_v48  ;;  %5563 = vmatprep.mubr.bf16.mxu0 %v10068_v48 }
 0xe78   : > { %6777 = vmatpush3.bf16.msra.mxu1 %v7641_v63  ;;  %6817 = vmatpush3.bf16.msra.mxu0 %v9725_v32  ;;  %v5202_v45 = vmul.f32 %v9682_v6, %v5188_v40 }
 0xe79   : > { %v7802_v17 = vpop.eup %7801  ;;  %6778 = vmatprep.subr.bf16.mxu1 %v7643_v26  ;;  %6818 = vmatprep.subr.bf16.mxu0 %v9728_v31 }
 0xe7a   : > { %v5189_v22 = vmul.f32 %v7802_v17, %v9662_v46  ;;  %v7804_v62 = vpop.eup %7803  ;;  %v9747_v38 = vadd.f32 %v9689_v14, %v5202_v45 }
 0xe7b   : > { %v5190_v41 = vmul.f32 %v7804_v62, %v9664_v39 }
 0xe7c   : > { %v5203_v20 = vmul.f32 %v9682_v6, %v5189_v22  ;;  %6779 = vmatpush3.bf16.msra.mxu1 %v7645_v33  ;;  %6819 = vmatpush3.bf16.msra.mxu0 %v9734_v60 }
 0xe7d   : > { %v7806_v15 = vpop.eup %7805  ;;  %6780 = vmatprep.subr.bf16.mxu1 %v7647_v1  ;;  %6820 = vmatprep.subr.bf16.mxu0 %v9737_v35  ;;  %v5204_v16 = vmul.f32 %v9682_v6, %v5190_v41 }
 0xe7e   : > { %v9750_v46 = vadd.f32 %v9689_v14, %v5203_v20  ;;  %v5191_v43 = vmul.f32 %v7806_v15, %v9671_v12 }
 0xe7f   : > { %v9765_v12 = vadd.f32 %v9689_v14, %v5204_v16 }
 0xe80   : > { %v5222_v47 = vpack.c.bf16 %v9750_v46, %v9747_v38  ;;  %v5205_v25 = vmul.f32 %v9682_v6, %v5191_v43  ;;  %6781 = vmatpush3.bf16.msra.mxu1 %v7649_v3  ;;  %6821 = vmatpush3.bf16.msra.mxu0 %v9743_v44  ;;  %v9771_v6 = vld [vmem:[#allocation14 + $0x90] sm:$0xff]  }
 0xe81   : > { %6782 = vmatprep.subr.bf16.mxu1 %v7651_v2  ;;  %6822 = vmatprep.subr.bf16.mxu0 %v9769_v19 }
 0xe82   : > { %5491 = vmatmul.mubr.bf16.gmra.mxu1 %v5222_v47  ;;  %5564 = vmatmul.mubr.bf16.gmra.mxu0 %v5222_v47  ;;  %v9762_v39 = vadd.f32 %v9689_v14, %v5205_v25  ;;  %v9775_v14 = vld [vmem:[#allocation14 + $0xc8] sm:$0xff]  }
 0xe83   : > { %5500 = vmatprep.mubr.bf16.mxu1 %v10068_v48  ;;  %5573 = vmatprep.mubr.bf16.mxu0 %v10068_v48  ;;  %v7655_v48 = vld [vmem:[#allocation14 + $0x48] sm:$0xff]  }
 0xe84   : > { %v5223_v18 = vpack.c.bf16 %v9762_v39, %v9765_v12  ;;  %6783 = vmatpush3.bf16.msra.mxu1 %v7653_v7  ;;  %6823 = vmatpush3.bf16.msra.mxu0 %v9771_v6 }
 0xe85   : > { %6784 = vmatprep.subr.bf16.mxu1 %v7655_v48  ;;  %6824 = vmatprep.subr.bf16.mxu0 %v9775_v14 }
 0xe88   : > { %6785 = vmatpush3.bf16.msra.mxu1 %v7657_v0  ;;  %6825 = vmatpush3.bf16.msra.mxu0 %v9777_v57 }
 0xe89   : > { %6786 = vmatprep.subr.bf16.mxu1 %v7659_v8  ;;  %6826 = vmatprep.subr.bf16.mxu0 %v9781_v10 }
 0xe8a   : > { %5501 = vmatmul.mubr.bf16.gmra.mxu1 %v5223_v18  ;;  %5574 = vmatmul.mubr.bf16.gmra.mxu0 %v5223_v18 }
 0xe8c   : > { %6787 = vmatpush3.bf16.msra.mxu1 %v7661_v52  ;;  %6827 = vmatpush3.bf16.msra.mxu0 %v9783_v21 }
 0xe8d   : > { %7332 = vmatprep.subr.bf16.mxu1 %v9675_v29  ;;  %v9801_v29 = vrot.slane %v5256_v30, %v5268_v4 }
 0xf2e   : > { %v5472_v61 = vpop.f32.mrf.mxu1  ;;  %v5545_v59 = vpop.f32.mrf.mxu0 }
 0xf2f   : > { %v5473_v33 = vadd.f32 %v5472_v61, %v9799_v56  ;;  %v5546_v17 = vadd.f32 %v5545_v59, %v9801_v29 }
 0xf30   : > { %v5474_v27 = vpop.f32.mrf.mxu1  ;;  %v5547_v11 = vpop.f32.mrf.mxu0 }
 0xf31   : > { %v5475_v63 = vadd.f32 %v5474_v27, %v9794_v58  ;;  %v5548_v55 = vadd.f32 %v5547_v11, %v9796_v54  ;;  %v5584_v18 = vmax.f32 %v5473_v33, 0.0  ;;  %v5586_v2 = vmax.f32 %v5546_v17, 0.0 }
 0xf32   : > { %v5476_v36 = vpop.f32.mrf.mxu1  ;;  %v5549_v50 = vpop.f32.mrf.mxu0 }
 0xf33   : > { %v5477_v26 = vadd.f32 %v5476_v36, %v9799_v56  ;;  %v5550_v40 = vadd.f32 %v5549_v50, %v9801_v29  ;;  %v5585_v43 = vmax.f32 %v5475_v63, 0.0  ;;  %v5587_v47 = vmax.f32 %v5548_v55, 0.0 }
 0xf34   : > { %v5478_v1 = vpop.f32.mrf.mxu1  ;;  %v5551_v22 = vpop.f32.mrf.mxu0 }
 0xf35   : > { %v5479_v45 = vadd.f32 %v5478_v1, %v9794_v58  ;;  %v5552_v62 = vadd.f32 %v5551_v22, %v9796_v54  ;;  %v5588_v20 = vmax.f32 %v5477_v26, 0.0  ;;  %v5590_v3 = vmax.f32 %v5550_v40, 0.0 }
 0xf36   : > { %v5482_v15 = vpop.f32.mrf.mxu1  ;;  %v5555_v41 = vpop.f32.mrf.mxu0 }
 0xf37   : > { %v5589_v25 = vmax.f32 %v5479_v45, 0.0  ;;  %v5591_v16 = vmax.f32 %v5552_v62, 0.0  ;;  %v5616_v52 = vpack.c.bf16 %v5588_v20, %v5584_v18  ;;  %v5618_v24 = vpack.c.bf16 %v5590_v3, %v5586_v2 }
 0xf38   : > { %v5484_v7 = vpop.f32.mrf.mxu1  ;;  %v5557_v48 = vpop.f32.mrf.mxu0  ;;  %v5483_v53 = vadd.f32 %v5482_v15, %v9799_v56  ;;  %v5556_v27 = vadd.f32 %v5555_v41, %v9801_v29 }
 0xf39   : > { %v5617_v0 = vpack.c.bf16 %v5589_v25, %v5585_v43  ;;  %v5619_v8 = vpack.c.bf16 %v5591_v16, %v5587_v47  ;;  %v5485_v37 = vadd.f32 %v5484_v7, %v9794_v58  ;;  %v5558_v30 = vadd.f32 %v5557_v48, %v9796_v54 }
 0xf3a   : > { %v5486_v23 = vpop.f32.mrf.mxu1  ;;  %v5559_v4 = vpop.f32.mrf.mxu0  ;;  %v5592_v22 = vmax.f32 %v5483_v53, 0.0  ;;  %v5594_v45 = vmax.f32 %v5556_v27, 0.0 }
 0xf3b   : > { %v5487_v61 = vadd.f32 %v5486_v23, %v9799_v56  ;;  %v5560_v59 = vadd.f32 %v5559_v4, %v9801_v29  ;;  %5927 = vmatprep.mubr.bf16.mxu1 %v5617_v0  ;;  %5992 = vmatprep.mubr.bf16.mxu0 %v5619_v8  ;;  %v5593_v40 = vmax.f32 %v5485_v37, 0.0  ;;  %v5595_v33 = vmax.f32 %v5558_v30, 0.0 }
 0xf3c   : > { %v5488_v11 = vpop.f32.mrf.mxu1  ;;  %v5561_v36 = vpop.f32.mrf.mxu0  ;;  %5928 = vmatmul.mubr.bf16.vlgmr.msra.gmra.mxu1 %v5616_v52  ;;  %5993 = vmatmul.mubr.bf16.vlgmr.msra.gmra.mxu0 %v5618_v24 }
 0xf3d   : > { %v5489_v50 = vadd.f32 %v5488_v11, %v9794_v58  ;;  %v5562_v63 = vadd.f32 %v5561_v36, %v9796_v54  ;;  %7340 = vmatpush3.bf16.msra.mxu1 %v9703_v28  ;;  %v5596_v55 = vmax.f32 %v5487_v61, 0.0  ;;  %v5598_v26 = vmax.f32 %v5560_v59, 0.0 }
 0xf3e   : > { %7333 = vmatprep.subr.bf16.mxu1 %v9705_v5 }
 0xf3f   : > { %v5597_v17 = vmax.f32 %v5489_v50, 0.0  ;;  %v5599_v1 = vmax.f32 %v5562_v63, 0.0  ;;  %v5620_v3 = vpack.c.bf16 %v5596_v55, %v5592_v22  ;;  %v5622_v15 = vpack.c.bf16 %v5598_v26, %v5594_v45 }
 0xf41   : > { %v5621_v62 = vpack.c.bf16 %v5597_v17, %v5593_v40  ;;  %v5623_v20 = vpack.c.bf16 %v5599_v1, %v5595_v33  ;;  %7341 = vmatpush3.bf16.msra.mxu1 %v9714_v9 }
 0xf42   : > { %v5492_v41 = vpop.f32.mrf.mxu1  ;;  %v5565_v43 = vpop.f32.mrf.mxu0  ;;  %7334 = vmatprep.subr.bf16.mxu1 %v9717_v13 }
 0xf43   : > { %5935 = vmatprep.mubr.bf16.mxu1 %v5621_v62  ;;  %6000 = vmatprep.mubr.bf16.mxu0 %v5623_v20  ;;  %v5493_v18 = vadd.f32 %v5492_v41, %v9799_v56 }
 0xf44   : > { %v5494_v28 = vpop.f32.mrf.mxu1  ;;  %v5567_v5 = vpop.f32.mrf.mxu0  ;;  %5936 = vmatmul.mubr.bf16.gmra.mxu1 %v5620_v3  ;;  %6001 = vmatmul.mubr.bf16.gmra.mxu0 %v5622_v15 }
 0xf45   : > { %7342 = vmatpush3.bf16.msra.mxu1 %v9725_v32  ;;  %v5495_v9 = vadd.f32 %v5494_v28, %v9794_v58  ;;  %v5568_v11 = vadd.f32 %v5567_v5, %v9796_v54 }
 0xf46   : > { %v5496_v47 = vpop.f32.mrf.mxu1  ;;  %v5569_v25 = vpop.f32.mrf.mxu0  ;;  %7335 = vmatprep.subr.bf16.mxu1 %v9728_v31  ;;  %v5600_v31 = vmax.f32 %v5493_v18, 0.0 }
 0xf47   : > { %v5497_v16 = vadd.f32 %v5496_v47, %v9799_v56  ;;  %v5601_v32 = vmax.f32 %v5495_v9, 0.0  ;;  %v5603_v40 = vmax.f32 %v5568_v11, 0.0 }
 0xf48   : > { %v5498_v2 = vpop.f32.mrf.mxu1  ;;  %v5571_v13 = vpop.f32.mrf.mxu0 }
 0xf49   : > { %v5499_v7 = vadd.f32 %v5498_v2, %v9794_v58  ;;  %7343 = vmatpush3.bf16.msra.mxu1 %v9734_v60  ;;  %v5604_v48 = vmax.f32 %v5497_v16, 0.0  ;;  %v5572_v61 = vadd.f32 %v5571_v13, %v9796_v54 }
 0xf4a   : > { %v5502_v0 = vpop.f32.mrf.mxu1  ;;  %v5575_v8 = vpop.f32.mrf.mxu0  ;;  %7336 = vmatprep.subr.bf16.mxu1 %v9737_v35 }
 0xf4b   : > { %v5605_v52 = vmax.f32 %v5499_v7, 0.0  ;;  %v5624_v4 = vpack.c.bf16 %v5604_v48, %v5600_v31  ;;  %v5503_v35 = vadd.f32 %v5502_v0, %v9799_v56  ;;  %v5576_v15 = vadd.f32 %v5575_v8, %v9801_v29 }
 0xf4c   : > { %v5504_v24 = vpop.f32.mrf.mxu1  ;;  %v5577_v37 = vpop.f32.mrf.mxu0 }
 0xf4d   : > { %v5625_v23 = vpack.c.bf16 %v5605_v52, %v5601_v32  ;;  %7344 = vmatpush3.bf16.msra.mxu1 %v9743_v44  ;;  %v5505_v60 = vadd.f32 %v5504_v24, %v9794_v58  ;;  %v5608_v55 = vmax.f32 %v5503_v35, 0.0  ;;  %v5578_v1 = vadd.f32 %v5577_v37, %v9796_v54 }
 0xf4e   : > { %v5506_v30 = vpop.f32.mrf.mxu1  ;;  %7337 = vmatprep.subr.bf16.mxu1 %v9769_v19  ;;  %v5579_v53 = vpop.f32.mrf.mxu0  ;;  %v5607_v19 = vmax.f32 %v5572_v61, 0.0 }
 0xf4f   : > { %v5507_v59 = vadd.f32 %v5506_v30, %v9799_v56  ;;  %5943 = vmatprep.mubr.bf16.mxu1 %v5625_v23  ;;  %v5609_v50 = vmax.f32 %v5505_v60, 0.0  ;;  %v5570_v56 = vadd.f32 %v5569_v25, %v9801_v29  ;;  %v5611_v62 = vmax.f32 %v5578_v1, 0.0 }
 0xf50   : > { %v5508_v27 = vpop.f32.mrf.mxu1  ;;  %5944 = vmatmul.mubr.bf16.gmra.mxu1 %v5624_v4  ;;  %v5581_v26 = vpop.f32.mrf.mxu0  ;;  %v5580_v3 = vadd.f32 %v5579_v53, %v9801_v29 }
 0xf51   : > { %v5509_v44 = vadd.f32 %v5508_v27, %v9794_v58  ;;  %7345 = vmatpush3.bf16.msra.mxu1 %v9771_v6  ;;  %v5612_v36 = vmax.f32 %v5507_v59, 0.0  ;;  %v5627_v58 = vpack.c.bf16 %v5607_v19, %v5603_v40  ;;  %v5582_v6 = vadd.f32 %v5581_v26, %v9796_v54 }
 0xf52   : > { %7338 = vmatprep.subr.bf16.mxu1 %v9775_v14  ;;  %v5566_v14 = vadd.f32 %v5565_v43, %v9801_v29  ;;  %v5606_v22 = vmax.f32 %v5570_v56, 0.0  ;;  %v5614_v41 = vmax.f32 %v5580_v3, 0.0  ;;  %v5610_v43 = vmax.f32 %v5576_v15, 0.0 }
 0xf53   : > { %v5613_v63 = vmax.f32 %v5509_v44, 0.0  ;;  %v5628_v17 = vpack.c.bf16 %v5612_v36, %v5608_v55  ;;  %v5615_v45 = vmax.f32 %v5582_v6, 0.0 }
 0xf54   : > { %v5630_v28 = vpack.c.bf16 %v5614_v41, %v5610_v43 }
 0xf55   : > { %v5629_v33 = vpack.c.bf16 %v5613_v63, %v5609_v50  ;;  %7346 = vmatpush3.bf16.msra.mxu1 %v9777_v57  ;;  %v5602_v57 = vmax.f32 %v5566_v14, 0.0 }
 0xf56   : > { %7339 = vmatprep.subr.bf16.mxu1 %v9781_v10  ;;  %v5631_v10 = vpack.c.bf16 %v5615_v45, %v5611_v62 }
 0xf57   : > { %5951 = vmatprep.mubr.bf16.mxu1 %v5629_v33  ;;  %v5626_v20 = vpack.c.bf16 %v5606_v22, %v5602_v57 }
 0xf58   : > { %5952 = vmatmul.mubr.bf16.gmra.mxu1 %v5628_v17 }
 0xf59   : > { %6008 = vmatprep.mubr.bf16.mxu1 %v5627_v58  ;;  %7347 = vmatpush3.bf16.msra.mxu1 %v9783_v21  ;;  %v9853_v21 = vld [vmem:[%s10082_s1] ss:$0 sm:$0xff] }
 0xf60   : > { %6009 = vmatmul.mubr.bf16.vlgmr.msra.gmra.mxu1 %v5626_v20 }
 0xf61   : > { %6016 = vmatprep.mubr.bf16.mxu1 %v5631_v10 }
 0xf68   : > { %6017 = vmatmul.mubr.bf16.gmra.mxu1 %v5630_v28 }
 0xffc   : > { %v6788_v54 = vpop.f32.mrf.mxu1  ;;  %v6828_v5 = vpop.f32.mrf.mxu0 }
 0xffe   : > { %v6789_v47 = vpop.f32.mrf.mxu1  ;;  %v6829_v25 = vpop.f32.mrf.mxu0 }
 0xfff   : > { %v6790_v9 = vadd.f32 %v6789_v47, %v6788_v54  ;;  %v6830_v2 = vadd.f32 %v6829_v25, %v6828_v5 }
0x1000   : > { %v6791_v16 = vpop.f32.mrf.mxu1  ;;  %v6831_v18 = vpop.f32.mrf.mxu0 }
0x1001   : > { %v5930_v29 = vadd.f32 %v6790_v9, %v9853_v21 }
0x1002   : > { %v6792_v13 = vpop.f32.mrf.mxu1  ;;  %v6832_v7 = vpop.f32.mrf.mxu0 }
0x1003   : > { %v5995_v48 = vadd.f32 %v6830_v2, %v5930_v29  ;;  %v6793_v0 = vadd.f32 %v6792_v13, %v6791_v16  ;;  %v6833_v31 = vadd.f32 %v6832_v7, %v6831_v18 }
0x1004   : > { %v6794_v8 = vpop.f32.mrf.mxu1  ;;  %v6834_v32 = vpop.f32.mrf.mxu0 }
0x1005   : > { %v5933_v52 = vadd.f32 %v6793_v0, %v9853_v21  ;;  %v9858_v24 = vadd.f32 %v5995_v48, %v9693_v49 }
0x1006   : > { %v6795_v37 = vpop.f32.mrf.mxu1  ;;  %v6835_v23 = vpop.f32.mrf.mxu0 }
0x1007   : > { %v5998_v4 = vadd.f32 %v6833_v31, %v5933_v52  ;;  %v6796_v30 = vadd.f32 %v6795_v37, %v6794_v8  ;;  %6035 = vadd.xlane.f32.xlu0 %v9858_v24  ;;  %v6836_v35 = vadd.f32 %v6835_v23, %v6834_v32 }
0x1008   : > { %v6797_v61 = vpop.f32.mrf.mxu1  ;;  %v6837_v60 = vpop.f32.mrf.mxu0 }
0x1009   : > { %v5938_v59 = vadd.f32 %v6796_v30, %v9853_v21  ;;  %v6026_v53 = vadd.f32 %v5998_v4, %v9697_v34 }
0x100a   : > { %v6798_v27 = vpop.f32.mrf.mxu1  ;;  %v6838_v11 = vpop.f32.mrf.mxu0 }
0x100b   : > { %v6003_v44 = vadd.f32 %v6836_v35, %v5938_v59  ;;  %v6799_v36 = vadd.f32 %v6798_v27, %v6797_v61  ;;  %6037 = vadd.xlane.f32.xlu1 %v6026_v53  ;;  %v6839_v19 = vadd.f32 %v6838_v11, %v6837_v60 }
0x100d   : > { %v5941_v49 = vadd.f32 %v6799_v36, %v9853_v21  ;;  %v6027_v50 = vadd.f32 %v6003_v44, %v9720_v42 }
0x100f   : > { %v6006_v63 = vadd.f32 %v6839_v19, %v5941_v49  ;;  %6039 = vadd.xlane.f32.xlu0 %v6027_v50 }
0x1010   : > { %v6800_v55 = vpop.f32.mrf.mxu1 }
0x1011   : > { %v6028_v26 = vadd.f32 %v6006_v63, %v9711_v51 }
0x1012   : > { %v6801_v40 = vpop.f32.mrf.mxu1 }
0x1013   : > { %6041 = vadd.xlane.f32.xlu1 %v6028_v26  ;;  %v6802_v14 = vadd.f32 %v6801_v40, %v6800_v55 }
0x1014   : > { %v6803_v33 = vpop.f32.mrf.mxu1 }
0x1015   : > { %v5946_v45 = vadd.f32 %v6802_v14, %v9853_v21 }
0x1016   : > { %v6804_v56 = vpop.f32.mrf.mxu1 }
0x1017   : > { %v6805_v57 = vadd.f32 %v6804_v56, %v6803_v33 }
0x1018   : > { %v6806_v34 = vpop.f32.mrf.mxu1 }
0x1019   : > { %v5949_v51 = vadd.f32 %v6805_v57, %v9853_v21 }
0x101a   : > { %v6807_v17 = vpop.f32.mrf.mxu1 }
0x101b   : > { %v6808_v10 = vadd.f32 %v6807_v17, %v6806_v34 }
0x101c   : > { %v6809_v58 = vpop.f32.mrf.mxu1 }
0x101d   : > { %v5954_v5 = vadd.f32 %v6808_v10, %v9853_v21 }
0x101e   : > { %v6810_v6 = vpop.f32.mrf.mxu1 }
0x101f   : > { %v6811_v47 = vadd.f32 %v6810_v6, %v6809_v58 }
0x1020   : > { %v6840_v1 = vpop.f32.mrf.mxu1 }
0x1021   : > { %v5957_v2 = vadd.f32 %v6811_v47, %v9853_v21 }
0x1022   : > { %v6841_v22 = vpop.f32.mrf.mxu1 }
0x1023   : > { %v6842_v42 = vadd.f32 %v6841_v22, %v6840_v1 }
0x1024   : > { %v6843_v62 = vpop.f32.mrf.mxu1 }
0x1025   : > { %v6011_v20 = vadd.f32 %v6842_v42, %v5946_v45 }
0x1026   : > { %v6844_v3 = vpop.f32.mrf.mxu1 }
0x1027   : > { %v6845_v15 = vadd.f32 %v6844_v3, %v6843_v62  ;;  %v6029_v41 = vadd.f32 %v6011_v20, %v9747_v38 }
0x1028   : > { %v6846_v43 = vpop.f32.mrf.mxu1 }
0x1029   : > { %v6014_v28 = vadd.f32 %v6845_v15, %v5949_v51  ;;  %6043 = vadd.xlane.f32.xlu0 %v6029_v41  ;;  %v6562_v51 = vld [vmem:[%s10083_s13] ss:$0 sm:$0xff] }
0x102a   : > { %v6847_v54 = vpop.f32.mrf.mxu1  ;;  %v6563_v15 = vld [vmem:[%s10084_s24] ss:$0 sm:$0xff] }
0x102b   : > { %v6848_v25 = vadd.f32 %v6847_v54, %v6846_v43  ;;  %v6030_v9 = vadd.f32 %v6014_v28, %v9750_v46 }
0x102c   : > { %v6849_v16 = vpop.f32.mrf.mxu1 }
0x102d   : > { %v6019_v18 = vadd.f32 %v6848_v25, %v5954_v5  ;;  %6045 = vadd.xlane.f32.xlu1 %v6030_v9 }
0x102e   : > { %v6850_v29 = vpop.f32.mrf.mxu1 }
0x102f   : > { %v6851_v13 = vadd.f32 %v6850_v29, %v6849_v16  ;;  %v6031_v7 = vadd.f32 %v6019_v18, %v9765_v12 }
0x1031   : > { %v6022_v38 = vadd.f32 %v6851_v13, %v5957_v2  ;;  %6047 = vadd.xlane.f32.xlu0 %v6031_v7 }
0x1033   : > { %v6032_v48 = vadd.f32 %v6022_v38, %v9762_v39 }
0x1035   : > { %6049 = vadd.xlane.f32.xlu1 %v6032_v48 }
0x1090   : > { %v6036_v0 = vpop.xlane.xlu0 %6035 }
0x1091   : > { %v6051_v8 = vmul.f32 0.0078125, %v6036_v0 }
0x1093   : > { %v6059_v32 = vsub.f32 %v9858_v24, %v6051_v8 }
0x1094   : > { %v6038_v52 = vpop.xlane.xlu1 %6037 }
0x1095   : > { %v6052_v46 = vmul.f32 0.0078125, %v6038_v52  ;;  %v6067_v31 = vmul.f32 %v6059_v32, %v6059_v32 }
0x1097   : > { %v6060_v37 = vsub.f32 %v6026_v53, %v6052_v46  ;;  %6075 = vadd.xlane.f32.xlu0 %v6067_v31 }
0x1098   : > { %v6040_v23 = vpop.xlane.xlu0 %6039 }
0x1099   : > { %v6053_v4 = vmul.f32 0.0078125, %v6040_v23  ;;  %v6068_v21 = vmul.f32 %v6060_v37, %v6060_v37 }
0x109b   : > { %v6061_v30 = vsub.f32 %v6027_v50, %v6053_v4  ;;  %6077 = vadd.xlane.f32.xlu1 %v6068_v21 }
0x109c   : > { %v6042_v12 = vpop.xlane.xlu1 %6041 }
0x109d   : > { %v6054_v61 = vmul.f32 0.0078125, %v6042_v12  ;;  %v6069_v60 = vmul.f32 %v6061_v30, %v6061_v30 }
0x109f   : > { %v6062_v59 = vsub.f32 %v6028_v26, %v6054_v61  ;;  %6079 = vadd.xlane.f32.xlu0 %v6069_v60 }
0x10a1   : > { %v6070_v39 = vmul.f32 %v6062_v59, %v6062_v59 }
0x10a3   : > { %6081 = vadd.xlane.f32.xlu1 %v6070_v39 }
0x10b2   : > { %v6044_v35 = vpop.xlane.xlu0 %6043 }
0x10b3   : > { %v6055_v27 = vmul.f32 0.0078125, %v6044_v35 }
0x10b5   : > { %v9875_v24 = vsub.f32 %v6029_v41, %v6055_v27 }
0x10b6   : > { %v6046_v11 = vpop.xlane.xlu1 %6045 }
0x10b7   : > { %v6056_v44 = vmul.f32 0.0078125, %v6046_v11  ;;  %v6071_v53 = vmul.f32 %v9875_v24, %v9875_v24 }
0x10b9   : > { %v9879_v36 = vsub.f32 %v6030_v9, %v6056_v44  ;;  %6083 = vadd.xlane.f32.xlu0 %v6071_v53 }
0x10ba   : > { %v6048_v49 = vpop.xlane.xlu0 %6047 }
0x10bb   : > { %v6057_v19 = vmul.f32 0.0078125, %v6048_v49  ;;  %v6072_v50 = vmul.f32 %v9879_v36, %v9879_v36 }
0x10bd   : > { %v9883_v63 = vsub.f32 %v6031_v7, %v6057_v19  ;;  %6085 = vadd.xlane.f32.xlu1 %v6072_v50 }
0x10be   : > { %v6050_v55 = vpop.xlane.xlu1 %6049 }
0x10bf   : > { %v6058_v26 = vmul.f32 0.0078125, %v6050_v55  ;;  %v6073_v40 = vmul.f32 %v9883_v63, %v9883_v63 }
0x10c1   : > { %v9887_v33 = vsub.f32 %v6032_v48, %v6058_v26  ;;  %6087 = vadd.xlane.f32.xlu0 %v6073_v40 }
0x10c3   : > { %v6074_v56 = vmul.f32 %v9887_v33, %v9887_v33 }
0x10c5   : > { %6089 = vadd.xlane.f32.xlu1 %v6074_v56 }
0x1120   : > { %v6076_v34 = vpop.xlane.xlu0 %6075 }
0x1121   : > { %v6091_v17 = vmul.f32 0.0078125, %v6076_v34 }
0x1123   : > { %v6099_v58 = vadd.f32 1e-05, %v6091_v17 }
0x1124   : > { %v6078_v6 = vpop.xlane.xlu1 %6077 }
0x1125   : > { %7807 = vrsqrt.f32 %v6099_v58  ;;  %v6092_v14 = vmul.f32 0.0078125, %v6078_v6 }
0x1127   : > { %v6100_v1 = vadd.f32 1e-05, %v6092_v14 }
0x1128   : > { %v6080_v22 = vpop.xlane.xlu0 %6079 }
0x1129   : > { %7809 = vrsqrt.f32 %v6100_v1  ;;  %v6093_v45 = vmul.f32 0.0078125, %v6080_v22 }
0x112b   : > { %v6101_v57 = vadd.f32 1e-05, %v6093_v45 }
0x112c   : > { %v6082_v42 = vpop.xlane.xlu1 %6081 }
0x112d   : > { %7811 = vrsqrt.f32 %v6101_v57  ;;  %v6094_v62 = vmul.f32 0.0078125, %v6082_v42 }
0x112f   : > { %v6102_v20 = vadd.f32 1e-05, %v6094_v62 }
0x1131   : > { %7813 = vrsqrt.f32 %v6102_v20 }
0x1132   : > { %v7808_v3 = vpop.eup %7807 }
0x1133   : > { %v6115_v10 = vmul.f32 %v7808_v3, %v6059_v32 }
0x1135   : > { %v6129_v41 = vmul.f32 %v6562_v51, %v6115_v10 }
0x1136   : > { %v7810_v43 = vpop.eup %7809 }
0x1137   : > { %v6143_v28 = vadd.f32 %v6563_v15, %v6129_v41  ;;  %v6116_v54 = vmul.f32 %v7810_v43, %v6060_v37 }
0x1139   : > { %6151 = vst [vmem:[%s9899_s23] sm:$0xff] %v6143_v28  ;;  %v6130_v5 = vmul.f32 %v6562_v51, %v6116_v54 }
0x113a   : > { %v7812_v47 = vpop.eup %7811 }
0x113b   : > { %v6144_v25 = vadd.f32 %v6563_v15, %v6130_v5  ;;  %v6117_v9 = vmul.f32 %v7812_v47, %v6061_v30 }
0x113d   : > { %6152 = vst [vmem:[%s9899_s23 + $0x8] sm:$0xff] %v6144_v25  ;;  %v6131_v16 = vmul.f32 %v6562_v51, %v6117_v9 }
0x113e   : > { %v7814_v18 = vpop.eup %7813 }
0x113f   : > { %v6145_v29 = vadd.f32 %v6563_v15, %v6131_v16  ;;  %v6118_v2 = vmul.f32 %v7814_v18, %v6062_v59 }
0x1141   : > { %6153 = vst [vmem:[%s9899_s23 + $0x10] sm:$0xff] %v6145_v29  ;;  %v6132_v13 = vmul.f32 %v6562_v51, %v6118_v2 }
0x1142   : > { %v6084_v7 = vpop.xlane.xlu0 %6083 }
0x1143   : > { %v6146_v38 = vadd.f32 %v6563_v15, %v6132_v13  ;;  %v6095_v48 = vmul.f32 0.0078125, %v6084_v7 }
0x1145   : > { %6154 = vst [vmem:[%s9899_s23 + $0x18] sm:$0xff] %v6146_v38  ;;  %v6103_v0 = vadd.f32 1e-05, %v6095_v48 }
0x1146   : > { %v6086_v8 = vpop.xlane.xlu1 %6085 }
0x1147   : > { %7815 = vrsqrt.f32 %v6103_v0  ;;  %v6096_v32 = vmul.f32 0.0078125, %v6086_v8 }
0x1149   : > { %v6104_v52 = vadd.f32 1e-05, %v6096_v32 }
0x114a   : > { %v6088_v46 = vpop.xlane.xlu0 %6087 }
0x114b   : > { %7817 = vrsqrt.f32 %v6104_v52  ;;  %v6097_v31 = vmul.f32 0.0078125, %v6088_v46 }
0x114d   : > { %v6105_v37 = vadd.f32 1e-05, %v6097_v31 }
0x114e   : > { %v6090_v23 = vpop.xlane.xlu1 %6089 }
0x114f   : > { %7819 = vrsqrt.f32 %v6105_v37  ;;  %v6098_v4 = vmul.f32 0.0078125, %v6090_v23 }
0x1151   : > { %v6106_v21 = vadd.f32 1e-05, %v6098_v4 }
0x1153   : > { %7821 = vrsqrt.f32 %v6106_v21 }
0x1154   : > { %v7816_v30 = vpop.eup %7815 }
0x1155   : > { %v6119_v12 = vmul.f32 %v7816_v30, %v9875_v24 }
0x1157   : > { %v6133_v61 = vmul.f32 %v6562_v51, %v6119_v12 }
0x1158   : > { %v7818_v60 = vpop.eup %7817 }
0x1159   : > { %v6147_v59 = vadd.f32 %v6563_v15, %v6133_v61  ;;  %v6120_v39 = vmul.f32 %v7818_v60, %v9879_v36 }
0x115b   : > { %6155 = vst [vmem:[%s9899_s23 + $0x20] sm:$0xff] %v6147_v59  ;;  %v6134_v35 = vmul.f32 %v6562_v51, %v6120_v39 }
0x115c   : > { %v7820_v27 = vpop.eup %7819 }
0x115d   : > { %v6148_v11 = vadd.f32 %v6563_v15, %v6134_v35  ;;  %v6121_v44 = vmul.f32 %v7820_v27, %v9883_v63 }
0x115f   : > { %6156 = vst [vmem:[%s9899_s23 + $0x28] sm:$0xff] %v6148_v11  ;;  %v6135_v53 = vmul.f32 %v6562_v51, %v6121_v44 }
0x1160   : > { %v7822_v49 = vpop.eup %7821 }
0x1161   : > { %v6149_v24 = vadd.f32 %v6563_v15, %v6135_v53  ;;  %v6122_v19 = vmul.f32 %v7822_v49, %v9887_v33 }
0x1163   : > { %6157 = vst [vmem:[%s9899_s23 + $0x30] sm:$0xff] %v6149_v24  ;;  %v6136_v50 = vmul.f32 %v6562_v51, %v6122_v19 }
0x1165   : > { %v6150_v36 = vadd.f32 %v6563_v15, %v6136_v50 }
0x1167   : > { %6158 = vst [vmem:[%s9899_s23 + $0x38] sm:$0xff] %v6150_v36 }
0x1168   : > { %8056 = shalt.err (!%p8053_p9)
}
0x1169   : > { %s8057_s16 = scalar_lea.hbm %s9917_s29, 1024  ;;  %s8061_s18 = scalar_lea.hbm %s10087_s12, 2048 }
0x116a   : > { %p8058_p6 = scmp.ne.s32.totalorder %s9917_s29, %s8057_s16  ;;  %p8062_p12 = scmp.lt.s32.totalorder %s9917_s29, %s10087_s12 }
0x116b   : > { %p8063_p7 = scmp.lt.s32.totalorder %s8061_s18, %s8057_s16 }
0x116c   : > { %p8059_p8 = pnand %p8058_p6, %p8400_p11 }
0x116d   : > { %p8064_p1 = por %p8063_p7, %p8062_p12 }
0x116e   : > { %p8060_p4 = pneg %p8059_p8 }
0x1170   : > { %p8065_p3 = pnand %p8064_p1, %p8060_p4 }
0x1172   : > { %8068 = shalt.err (!%p8065_p3)
}
0x1173   : > { %s8167_s15 = smov 128   ;;  %s8168_s24 = smov 8  }
0x1174   : > { %7376 = dma.vmem_to_hbm [thread:$0]  (%p8400_p11), %s9919_s14, 1024, %s9917_s29, %s6160_s27, %s8167_s15, %s8167_s15, %s8168_s24  }
0x1175 PF: > { %s10088_s23 = sld [smem:[#allocation24_spill]]  ;;  %p10090_p10 = scmp.ge.s32.totalorder %s8143_s19, 2 }
0x1177   : > { %p7405_p13 = pnand %p10090_p10, %p8407_p0 }
0x1179   : > { %p7406_p2 = pneg %p7405_p13 }
0x117b   : > { %s6190_s17 = sand.u32 1, %s10088_s23  }
0x117c   : > { %s6191_s8 = scalar_lea.sflag [#allocation4], %s6190_s17 }
0x117d   : > { %8118 = dma.done.wait (%p7406_p2), %s6191_s8, 1024  }
0x117e   : > { %8120 = vsyncadd (%p7406_p2), %s6191_s8, 4294966272  ;;  %s40_s19 = sadd.s32 1, %s8143_s19   ;;  %s10091_s6 = sld [smem:[#allocation25_spill]] }
0x117f   : > { %p37_p5 = scmp.ge.s32.totalorder %s40_s19, 4   ;;  %s10092_s29 = sld [smem:[#allocation29_spill]] }
0x1180   : > { %s10093_s2 = sld [smem:[#allocation27_spill]]  ;;  %s10094_s27 = smov %s8127_s28 }
0x1181   : > { %s10096_s30 = smov %s8139_s0 }
0x1182   :  { %39 = sbr.rel (!%p37_p5) target bundleno = 26 (0x1a), region = 174 }
0x1184   : > { %s10095_s28 = smov %s10091_s6 }
0x1186   : > { %s10097_s0 = smov %s10093_s2 }
0x1187   :  { %6196 = vsyncpa [#allocation3], 1 }
0x1188   :  { %6198 = vsyncpa [#allocation3 + $0x1], 1 }
0x1189   :  { %6199 = vsyncpa [#allocation6], 1 }
0x118a   :  { %6201 = vsyncpa [#allocation6 + $0x1], 1 }
0x118b   :  { %6202 = vsyncpa [#allocation9], 1 }
0x118c   :  { %6203 = vsyncpa [#allocation12], 1 }
0x118d   :  { %6204 = vsyncpa [#allocation15], 1 }
0x118e   :  { %6205 = vsyncpa [#allocation4], 1 }
0x118f   :  { %6207 = vsyncpa [#allocation4 + $0x1], 1 }

</bundles_post_ra>
